<compile_context>
chip_gen: v6e
topology: v6e:2x2x1
jax: 0.10.0
libtpu: 0.0.40
codegen_flags: <defaults>
</compile_context>

<pallas_src>
import numpy as np
import jax
import jax.numpy as jnp
from jax.experimental import pallas as pl
from jax.experimental.pallas import tpu as pltpu

# ----------------------------------------------------------------------------
# Config
# ----------------------------------------------------------------------------
LB, CM, SB = 2, 1, 8            # LUMA_BINS, CHANNEL_MULTIPLIER, SPATIAL_BIN
BN = False                      # BATCH_NORM (False -> BN branches are no-ops)
H = W = 16                      # INPUT.SIZE_TRAIN
NIN, NOUT = 4, 3
BATCH = 2

N_SPLAT = int(np.log2(H / SB))                      # 1
N_GLOBAL = int(np.log2(SB / 4))                     # 1
N_TOTAL = N_SPLAT + N_GLOBAL                        # 2
SPLAT_CH = CM * (2 ** (N_SPLAT - 1)) * LB           # 2
GCONV_CH = CM * 8 * LB                              # 16
HS, WS = H // 2 ** N_SPLAT, W // 2 ** N_SPLAT       # 8, 8  (splat / local grid)
HG, WG = H // 2 ** N_TOTAL, W // 2 ** N_TOTAL       # 4, 4  (global-conv grid)
FC_IN = GCONV_CH * HG * WG                          # 256
FC1_DIM, FC2_DIM, FC3_DIM = 32 * CM * LB, 16 * CM * LB, 8 * CM * LB  # 64,32,16
LN_DIM = HS * WS                                    # 64
OUT_CH = LB * NOUT * NIN                            # 24

# ----------------------------------------------------------------------------
# Constant gather / selection matrices (numpy, built once)
# ----------------------------------------------------------------------------
def _conv_gather(hin, win, hout, wout, stride, pad, k, batch):
    """Per-tap 0/1 spatial gather matrices, block-diagonal over batch.

    G[t, b*hout*wout + (oi*wout+oj), b*hin*win + (ii*win+ij)] = 1
    where (ii, ij) = (oi*stride + kh - pad, oj*stride + kw - pad) is in bounds
    (zero rows at padding positions == zero-padding of the conv).
    """
    g = np.zeros((k * k, hout * wout, hin * win), np.float32)
    for kh in range(k):
        for kw in range(k):
            t = kh * k + kw
            for oi in range(hout):
                for oj in range(wout):
                    ii, ij = oi * stride + kh - pad, oj * stride + kw - pad
                    if 0 <= ii < hin and 0 <= ij < win:
                        g[t, oi * wout + oj, ii * win + ij] = 1.0
    eye = np.eye(batch, dtype=np.float32)
    return np.stack([np.kron(eye, g[t]) for t in range(k * k)], 0)


def _fc_select(n_spatial, batch):
    """Sel[hw, b, b*n_spatial + hw] = 1 : picks row (b, hw) out of (B*HW, C)."""
    s = np.zeros((n_spatial, batch, batch * n_spatial), np.float32)
    for hw in range(n_spatial):
        for b in range(batch):
            s[hw, b, b * n_spatial + hw] = 1.0
    return s


G_GCONV = _conv_gather(HS, WS, HG, WG, 2, 1, 3, BATCH)   # (9, 32, 128)
G_LOCAL = _conv_gather(HS, WS, HS, WS, 1, 1, 3, BATCH)   # (9, 128, 128) shared
SEL_FC = _fc_select(HG * WG, BATCH)                      # (16, 2, 32)


# ----------------------------------------------------------------------------
# The fused Pallas kernel
# ----------------------------------------------------------------------------
def _coeffs_fused_kernel(
    patches_ref, w_splat_ref, b_splat_ref,            # splat conv (im2col'd)
    gg_ref, wg_ref, bg_ref,                           # global conv
    sel_ref, w1_ref, b1_ref, w2_ref, b2_ref, w3_ref, b3_ref,   # fc chain
    gl_ref, wl1_ref, bl1_ref, wl2_ref,                # local convs
    wout_ref, bout_ref, lng_ref, lnb_ref,             # 1x1 conv_out + LN
    o_ref,
):
    f32 = jnp.float32

    def mm(a, b):
        return jnp.dot(a, b, preferred_element_type=f32)

    # --- splat conv (3x3, stride 2) + ReLU : (B*64, 27) @ (27, 2) ------------
    splat = jnp.maximum(
        mm(patches_ref[...], w_splat_ref[...]) + b_splat_ref[...], 0.0)  # (128, 2)

    # --- 3x3 conv as sum over 9 taps: (spatial gather) @ x @ (tap weights) ---
    def conv3x3(x, g_ref, w_ref):
        acc = mm(mm(g_ref[0], x), w_ref[0])
        for t in range(1, 9):
            acc = acc + mm(mm(g_ref[t], x), w_ref[t])
        return acc

    # global conv (3x3, stride 2) + ReLU -> (B*16, 16)
    gc = jnp.maximum(conv3x3(splat, gg_ref, wg_ref) + bg_ref[...], 0.0)

    # fc chain; the PyTorch NCHW flatten is folded into per-spatial-position
    # row selections + a row-permuted W_fc1 (permutation applied in glue).
    n_sp = HG * WG
    h = mm(mm(sel_ref[0], gc), w1_ref[0])
    for hw in range(1, n_sp):
        h = h + mm(mm(sel_ref[hw], gc), w1_ref[hw])
    h = jnp.maximum(h + b1_ref[...], 0.0)                         # (B, 64)
    h = jnp.maximum(mm(h, w2_ref[...]) + b2_ref[...], 0.0)        # (B, 32)
    glob = mm(h, w3_ref[...]) + b3_ref[...]                       # (B, 16)

    # local path: two 3x3 stride-1 convs on the splat features
    loc = jnp.maximum(conv3x3(splat, gl_ref, wl1_ref) + bl1_ref[...], 0.0)
    loc = conv3x3(loc, gl_ref, wl2_ref)                           # no bias/act

    # fusion + 1x1 conv_out (channel-major) + LayerNorm over spatial, per batch
    hw_loc = HS * WS
    for b in range(BATCH):
        fused = jnp.maximum(
            loc[b * hw_loc:(b + 1) * hw_loc, :] + glob[b:b + 1, :], 0.0)  # (64,16)
        # conv_out: (24,16) contracted with (64,16) over channels -> (24,64)
        y = jax.lax.dot_general(
            wout_ref[...], fused, (((1,), (1,)), ((), ())),
            preferred_element_type=f32) + bout_ref[...]                   # (24,64)
        # LayerNorm over the spatial (lane) dim, biased var like nn.LayerNorm
        mean = jnp.mean(y, axis=-1, keepdims=True)
        yc = y - mean
        var = jnp.mean(yc * yc, axis=-1, keepdims=True)
        yn = yc * jax.lax.rsqrt(var + 1e-5)
        o_ref[b] = yn * lng_ref[...] + lnb_ref[...]


# ----------------------------------------------------------------------------
# Plain-JAX glue: im2col of the raw input + weight re-layouts
# ----------------------------------------------------------------------------
def im2col(x, k, stride, pad):
    # x: (B, Hin, Win, Cin) NHWC; columns ordered tap-major then channel.
    B, Hin, Win, C = x.shape
    xp = jnp.pad(x, ((0, 0), (pad, pad), (pad, pad), (0, 0)))
    Hout = (Hin + 2 * pad - k) // stride + 1
    Wout = (Win + 2 * pad - k) // stride + 1
    taps = []
    for kh in range(k):
        for kw in range(k):
            taps.append(xp[:, kh:kh + stride * Hout:stride,
                           kw:kw + stride * Wout:stride, :])
    patches = jnp.stack(taps, axis=3)                   # (B, Ho, Wo, 9, C)
    return patches.reshape(B * Hout * Wout, k * k * C)


def _conv_tap_weights(w_oihw):
    # (Cout, Cin, 3, 3) -> (9, Cin, Cout), tap index = kh*3 + kw
    cout, cin = w_oihw.shape[0], w_oihw.shape[1]
    return jnp.transpose(w_oihw, (2, 3, 1, 0)).reshape(9, cin, cout)


def coeffs_forward(params, lowres_nchw):
    # TODO(synk): BatchNorm branches of ConvBlock/FC are unused (BATCH_NORM=False).
    assert lowres_nchw.shape[0] == BATCH
    x = jnp.transpose(lowres_nchw, (0, 2, 3, 1)).astype(jnp.float32)   # NHWC

    # im2col only for the first conv (its input comes straight from HBM).
    patches = im2col(x, 3, 2, 1)                                        # (128, 27)

    # weight re-layouts (tiny one-time XLA ops)
    w_splat = jnp.transpose(params["w_splat"], (2, 3, 1, 0)).reshape(9 * 3, SPLAT_CH)
    wg = _conv_tap_weights(params["w_gconv"])
    wl1 = _conv_tap_weights(params["w_loc1"])
    wl2 = _conv_tap_weights(params["w_loc2"])
    # W_fc1 rows are in PyTorch NCHW-flatten order (c*16 + hw); regroup into
    # per-spatial-position blocks (hw, c, n) to match the in-kernel taps.
    w1 = jnp.transpose(params["w_fc1"].reshape(GCONV_CH, HG * WG, FC1_DIM), (1, 0, 2))
    w_out = params["w_out"].reshape(OUT_CH, GCONV_CH)

    args = (
        patches, w_splat, params["b_splat"].reshape(1, SPLAT_CH),
        jnp.asarray(G_GCONV), wg, params["b_gconv"].reshape(1, GCONV_CH),
        jnp.asarray(SEL_FC), w1, params["b_fc1"].reshape(1, FC1_DIM),
        params["w_fc2"], params["b_fc2"].reshape(1, FC2_DIM),
        params["w_fc3"], params["b_fc3"].reshape(1, FC3_DIM),
        jnp.asarray(G_LOCAL), wl1, params["b_loc1"].reshape(1, GCONV_CH), wl2,
        w_out, params["b_out"].reshape(OUT_CH, 1),
        params["ln_g"].reshape(1, LN_DIM), params["ln_b"].reshape(1, LN_DIM),
    )
    vmem = pl.BlockSpec(memory_space=pltpu.MemorySpace.VMEM)
    out = pl.pallas_call(
        _coeffs_fused_kernel,
        out_shape=jax.ShapeDtypeStruct((BATCH, OUT_CH, LN_DIM), jnp.float32),
        in_specs=[vmem] * len(args),
        out_specs=vmem,
        compiler_params=pltpu.CompilerParams(vmem_limit_bytes=32 * 1024 * 1024),
    )(*args)
    return out                                                        # (B, 24, 64)


# ----------------------------------------------------------------------------
# Parameter construction (deterministic, synthetic)
# ----------------------------------------------------------------------------
def kaiming_uniform(key, shape, fan_in):
    bound = float(np.sqrt(6.0 / fan_in))
    return jax.random.uniform(key, shape, jnp.float32, -bound, bound)


def trunc_normal(key, shape, std=0.02):
    return std * jax.random.truncated_normal(key, -2.0, 2.0, shape, jnp.float32)


def init_params(key):
    ks = jax.random.split(key, 8)
    p = {}
    # splat conv (3 -> SPLAT_CH, 3x3, stride 2), bias zeroed in __init__
    p["w_splat"] = kaiming_uniform(ks[0], (SPLAT_CH, 3, 3, 3), 3 * 9)
    p["b_splat"] = jnp.zeros((SPLAT_CH,), jnp.float32)
    # global conv (SPLAT_CH -> GCONV_CH, 3x3, stride 2)
    p["w_gconv"] = kaiming_uniform(ks[1], (GCONV_CH, SPLAT_CH, 3, 3), SPLAT_CH * 9)
    p["b_gconv"] = jnp.zeros((GCONV_CH,), jnp.float32)
    # global FCs (stored as (in, out); PyTorch Linear is (out, in))
    p["w_fc1"] = trunc_normal(ks[2], (FC_IN, FC1_DIM))
    p["b_fc1"] = jnp.zeros((FC1_DIM,), jnp.float32)
    p["w_fc2"] = trunc_normal(ks[3], (FC1_DIM, FC2_DIM))
    p["b_fc2"] = jnp.zeros((FC2_DIM,), jnp.float32)
    p["w_fc3"] = trunc_normal(ks[4], (FC2_DIM, FC3_DIM))
    p["b_fc3"] = jnp.zeros((FC3_DIM,), jnp.float32)
    # local convs
    p["w_loc1"] = kaiming_uniform(ks[5], (GCONV_CH, SPLAT_CH, 3, 3), SPLAT_CH * 9)
    p["b_loc1"] = jnp.zeros((GCONV_CH,), jnp.float32)
    p["w_loc2"] = kaiming_uniform(ks[6], (GCONV_CH, GCONV_CH, 3, 3), GCONV_CH * 9)
    # 1x1 conv_out
    p["w_out"] = kaiming_uniform(ks[7], (OUT_CH, GCONV_CH, 1, 1), GCONV_CH)
    p["b_out"] = jnp.zeros((OUT_CH,), jnp.float32)
    # layer norm
    p["ln_g"] = jnp.ones((LN_DIM,), jnp.float32)
    p["ln_b"] = jnp.zeros((LN_DIM,), jnp.float32)
    return p


# ----------------------------------------------------------------------------
if __name__ == "__main__":
    key = jax.random.PRNGKey(0)
    k_param, k_in = jax.random.split(key)
    params = init_params(k_param)
    lowres_input = jax.random.normal(k_in, (BATCH, 3, H, W), jnp.float32)

    out = jax.jit(coeffs_forward)(params, lowres_input)
    out = jax.block_until_ready(out)

    assert out.shape == (BATCH, OUT_CH, LN_DIM), out.shape
    assert bool(jnp.all(jnp.isfinite(out)))
    print("KERNEL_OK")
</pallas_src>

<mosaic_0001>
module attributes {stable_mosaic.version = 11 : i64} {
  func.func @_coeffs_fused_kernel(%arg0: memref<128x27xf32, #tpu.memory_space<vmem>>, %arg1: memref<27x2xf32, #tpu.memory_space<vmem>>, %arg2: memref<1x2xf32, #tpu.memory_space<vmem>>, %arg3: memref<9x32x128xf32, #tpu.memory_space<vmem>>, %arg4: memref<9x2x16xf32, #tpu.memory_space<vmem>>, %arg5: memref<1x16xf32, #tpu.memory_space<vmem>>, %arg6: memref<16x2x32xf32, #tpu.memory_space<vmem>>, %arg7: memref<16x16x64xf32, #tpu.memory_space<vmem>>, %arg8: memref<1x64xf32, #tpu.memory_space<vmem>>, %arg9: memref<64x32xf32, #tpu.memory_space<vmem>>, %arg10: memref<1x32xf32, #tpu.memory_space<vmem>>, %arg11: memref<32x16xf32, #tpu.memory_space<vmem>>, %arg12: memref<1x16xf32, #tpu.memory_space<vmem>>, %arg13: memref<9x128x128xf32, #tpu.memory_space<vmem>>, %arg14: memref<9x2x16xf32, #tpu.memory_space<vmem>>, %arg15: memref<1x16xf32, #tpu.memory_space<vmem>>, %arg16: memref<9x16x16xf32, #tpu.memory_space<vmem>>, %arg17: memref<24x16xf32, #tpu.memory_space<vmem>>, %arg18: memref<24x1xf32, #tpu.memory_space<vmem>>, %arg19: memref<1x64xf32, #tpu.memory_space<vmem>>, %arg20: memref<1x64xf32, #tpu.memory_space<vmem>>, %arg21: memref<2x24x64xf32, #tpu.memory_space<vmem>>) attributes {dimension_semantics = [], scalar_prefetch = 0 : i64, scratch_operands = 0 : i64, tpu.core_type = #tpu.core_type<tc>} {
    %c0 = arith.constant 0 : index
    %c0_0 = arith.constant 0 : index
    %0 = vector.load %arg0[%c0, %c0_0] : memref<128x27xf32, #tpu.memory_space<vmem>>, vector<128x27xf32>
    %c0_1 = arith.constant 0 : index
    %c0_2 = arith.constant 0 : index
    %1 = vector.load %arg1[%c0_1, %c0_2] : memref<27x2xf32, #tpu.memory_space<vmem>>, vector<27x2xf32>
    %cst = arith.constant dense<0.000000e+00> : vector<128x2xf32>
    %2 = tpu.matmul %0, %1, %cst {dimension_numbers = #tpu.dot_dimension_numbers<[1], [0], [0], [1], [0, 0, 1, 1], [], []>} : vector<128x27xf32>, vector<27x2xf32>, vector<128x2xf32> -> vector<128x2xf32>
    %c0_3 = arith.constant 0 : index
    %c0_4 = arith.constant 0 : index
    %3 = vector.load %arg2[%c0_3, %c0_4] : memref<1x2xf32, #tpu.memory_space<vmem>>, vector<1x2xf32>
    %4 = vector.broadcast %3 : vector<1x2xf32> to vector<128x2xf32>
    %5 = arith.addf %2, %4 : vector<128x2xf32>
    %cst_5 = arith.constant 0.000000e+00 : f32
    %6 = vector.broadcast %cst_5 : f32 to vector<128x2xf32>
    %7 = arith.maximumf %5, %6 : vector<128x2xf32>
    %c0_6 = arith.constant 0 : index
    %c0_7 = arith.constant 0 : index
    %c0_8 = arith.constant 0 : index
    %8 = vector.load %arg3[%c0_6, %c0_7, %c0_8] : memref<9x32x128xf32, #tpu.memory_space<vmem>>, vector<1x32x128xf32>
    %9 = vector.shape_cast %8 : vector<1x32x128xf32> to vector<32x128xf32>
    %cst_9 = arith.constant dense<0.000000e+00> : vector<32x2xf32>
    %10 = tpu.matmul %9, %7, %cst_9 {dimension_numbers = #tpu.dot_dimension_numbers<[1], [0], [0], [1], [0, 0, 1, 1], [], []>} : vector<32x128xf32>, vector<128x2xf32>, vector<32x2xf32> -> vector<32x2xf32>
    %c0_10 = arith.constant 0 : index
    %c0_11 = arith.constant 0 : index
    %c0_12 = arith.constant 0 : index
    %11 = vector.load %arg4[%c0_10, %c0_11, %c0_12] : memref<9x2x16xf32, #tpu.memory_space<vmem>>, vector<1x2x16xf32>
    %12 = vector.shape_cast %11 : vector<1x2x16xf32> to vector<2x16xf32>
    %cst_13 = arith.constant dense<0.000000e+00> : vector<32x16xf32>
    %13 = tpu.matmul %10, %12, %cst_13 {dimension_numbers = #tpu.dot_dimension_numbers<[1], [0], [0], [1], [0, 0, 1, 1], [], []>} : vector<32x2xf32>, vector<2x16xf32>, vector<32x16xf32> -> vector<32x16xf32>
    %c1 = arith.constant 1 : index
    %c0_14 = arith.constant 0 : index
    %c0_15 = arith.constant 0 : index
    %14 = vector.load %arg3[%c1, %c0_14, %c0_15] : memref<9x32x128xf32, #tpu.memory_space<vmem>>, vector<1x32x128xf32>
    %15 = vector.shape_cast %14 : vector<1x32x128xf32> to vector<32x128xf32>
    %cst_16 = arith.constant dense<0.000000e+00> : vector<32x2xf32>
    %16 = tpu.matmul %15, %7, %cst_16 {dimension_numbers = #tpu.dot_dimension_numbers<[1], [0], [0], [1], [0, 0, 1, 1], [], []>} : vector<32x128xf32>, vector<128x2xf32>, vector<32x2xf32> -> vector<32x2xf32>
    %c1_17 = arith.constant 1 : index
    %c0_18 = arith.constant 0 : index
    %c0_19 = arith.constant 0 : index
    %17 = vector.load %arg4[%c1_17, %c0_18, %c0_19] : memref<9x2x16xf32, #tpu.memory_space<vmem>>, vector<1x2x16xf32>
    %18 = vector.shape_cast %17 : vector<1x2x16xf32> to vector<2x16xf32>
    %cst_20 = arith.constant dense<0.000000e+00> : vector<32x16xf32>
    %19 = tpu.matmul %16, %18, %cst_20 {dimension_numbers = #tpu.dot_dimension_numbers<[1], [0], [0], [1], [0, 0, 1, 1], [], []>} : vector<32x2xf32>, vector<2x16xf32>, vector<32x16xf32> -> vector<32x16xf32>
    %20 = arith.addf %13, %19 : vector<32x16xf32>
    %c2 = arith.constant 2 : index
    %c0_21 = arith.constant 0 : index
    %c0_22 = arith.constant 0 : index
    %21 = vector.load %arg3[%c2, %c0_21, %c0_22] : memref<9x32x128xf32, #tpu.memory_space<vmem>>, vector<1x32x128xf32>
    %22 = vector.shape_cast %21 : vector<1x32x128xf32> to vector<32x128xf32>
    %cst_23 = arith.constant dense<0.000000e+00> : vector<32x2xf32>
    %23 = tpu.matmul %22, %7, %cst_23 {dimension_numbers = #tpu.dot_dimension_numbers<[1], [0], [0], [1], [0, 0, 1, 1], [], []>} : vector<32x128xf32>, vector<128x2xf32>, vector<32x2xf32> -> vector<32x2xf32>
    %c2_24 = arith.constant 2 : index
    %c0_25 = arith.constant 0 : index
    %c0_26 = arith.constant 0 : index
    %24 = vector.load %arg4[%c2_24, %c0_25, %c0_26] : memref<9x2x16xf32, #tpu.memory_space<vmem>>, vector<1x2x16xf32>
    %25 = vector.shape_cast %24 : vector<1x2x16xf32> to vector<2x16xf32>
    %cst_27 = arith.constant dense<0.000000e+00> : vector<32x16xf32>
    %26 = tpu.matmul %23, %25, %cst_27 {dimension_numbers = #tpu.dot_dimension_numbers<[1], [0], [0], [1], [0, 0, 1, 1], [], []>} : vector<32x2xf32>, vector<2x16xf32>, vector<32x16xf32> -> vector<32x16xf32>
    %27 = arith.addf %20, %26 : vector<32x16xf32>
    %c3 = arith.constant 3 : index
    %c0_28 = arith.constant 0 : index
    %c0_29 = arith.constant 0 : index
    %28 = vector.load %arg3[%c3, %c0_28, %c0_29] : memref<9x32x128xf32, #tpu.memory_space<vmem>>, vector<1x32x128xf32>
    %29 = vector.shape_cast %28 : vector<1x32x128xf32> to vector<32x128xf32>
    %cst_30 = arith.constant dense<0.000000e+00> : vector<32x2xf32>
    %30 = tpu.matmul %29, %7, %cst_30 {dimension_numbers = #tpu.dot_dimension_numbers<[1], [0], [0], [1], [0, 0, 1, 1], [], []>} : vector<32x128xf32>, vector<128x2xf32>, vector<32x2xf32> -> vector<32x2xf32>
    %c3_31 = arith.constant 3 : index
    %c0_32 = arith.constant 0 : index
    %c0_33 = arith.constant 0 : index
    %31 = vector.load %arg4[%c3_31, %c0_32, %c0_33] : memref<9x2x16xf32, #tpu.memory_space<vmem>>, vector<1x2x16xf32>
    %32 = vector.shape_cast %31 : vector<1x2x16xf32> to vector<2x16xf32>
    %cst_34 = arith.constant dense<0.000000e+00> : vector<32x16xf32>
    %33 = tpu.matmul %30, %32, %cst_34 {dimension_numbers = #tpu.dot_dimension_numbers<[1], [0], [0], [1], [0, 0, 1, 1], [], []>} : vector<32x2xf32>, vector<2x16xf32>, vector<32x16xf32> -> vector<32x16xf32>
    %34 = arith.addf %27, %33 : vector<32x16xf32>
    %c4 = arith.constant 4 : index
    %c0_35 = arith.constant 0 : index
    %c0_36 = arith.constant 0 : index
    %35 = vector.load %arg3[%c4, %c0_35, %c0_36] : memref<9x32x128xf32, #tpu.memory_space<vmem>>, vector<1x32x128xf32>
    %36 = vector.shape_cast %35 : vector<1x32x128xf32> to vector<32x128xf32>
    %cst_37 = arith.constant dense<0.000000e+00> : vector<32x2xf32>
    %37 = tpu.matmul %36, %7, %cst_37 {dimension_numbers = #tpu.dot_dimension_numbers<[1], [0], [0], [1], [0, 0, 1, 1], [], []>} : vector<32x128xf32>, vector<128x2xf32>, vector<32x2xf32> -> vector<32x2xf32>
    %c4_38 = arith.constant 4 : index
    %c0_39 = arith.constant 0 : index
    %c0_40 = arith.constant 0 : index
    %38 = vector.load %arg4[%c4_38, %c0_39, %c0_40] : memref<9x2x16xf32, #tpu.memory_space<vmem>>, vector<1x2x16xf32>
    %39 = vector.shape_cast %38 : vector<1x2x16xf32> to vector<2x16xf32>
    %cst_41 = arith.constant dense<0.000000e+00> : vector<32x16xf32>
    %40 = tpu.matmul %37, %39, %cst_41 {dimension_numbers = #tpu.dot_dimension_numbers<[1], [0], [0], [1], [0, 0, 1, 1], [], []>} : vector<32x2xf32>, vector<2x16xf32>, vector<32x16xf32> -> vector<32x16xf32>
    %41 = arith.addf %34, %40 : vector<32x16xf32>
    %c5 = arith.constant 5 : index
    %c0_42 = arith.constant 0 : index
    %c0_43 = arith.constant 0 : index
    %42 = vector.load %arg3[%c5, %c0_42, %c0_43] : memref<9x32x128xf32, #tpu.memory_space<vmem>>, vector<1x32x128xf32>
    %43 = vector.shape_cast %42 : vector<1x32x128xf32> to vector<32x128xf32>
    %cst_44 = arith.constant dense<0.000000e+00> : vector<32x2xf32>
    %44 = tpu.matmul %43, %7, %cst_44 {dimension_numbers = #tpu.dot_dimension_numbers<[1], [0], [0], [1], [0, 0, 1, 1], [], []>} : vector<32x128xf32>, vector<128x2xf32>, vector<32x2xf32> -> vector<32x2xf32>
    %c5_45 = arith.constant 5 : index
    %c0_46 = arith.constant 0 : index
    %c0_47 = arith.constant 0 : index
    %45 = vector.load %arg4[%c5_45, %c0_46, %c0_47] : memref<9x2x16xf32, #tpu.memory_space<vmem>>, vector<1x2x16xf32>
    %46 = vector.shape_cast %45 : vector<1x2x16xf32> to vector<2x16xf32>
    %cst_48 = arith.constant dense<0.000000e+00> : vector<32x16xf32>
    %47 = tpu.matmul %44, %46, %cst_48 {dimension_numbers = #tpu.dot_dimension_numbers<[1], [0], [0], [1], [0, 0, 1, 1], [], []>} : vector<32x2xf32>, vector<2x16xf32>, vector<32x16xf32> -> vector<32x16xf32>
    %48 = arith.addf %41, %47 : vector<32x16xf32>
    %c6 = arith.constant 6 : index
    %c0_49 = arith.constant 0 : index
    %c0_50 = arith.constant 0 : index
    %49 = vector.load %arg3[%c6, %c0_49, %c0_50] : memref<9x32x128xf32, #tpu.memory_space<vmem>>, vector<1x32x128xf32>
    %50 = vector.shape_cast %49 : vector<1x32x128xf32> to vector<32x128xf32>
    %cst_51 = arith.constant dense<0.000000e+00> : vector<32x2xf32>
    %51 = tpu.matmul %50, %7, %cst_51 {dimension_numbers = #tpu.dot_dimension_numbers<[1], [0], [0], [1], [0, 0, 1, 1], [], []>} : vector<32x128xf32>, vector<128x2xf32>, vector<32x2xf32> -> vector<32x2xf32>
    %c6_52 = arith.constant 6 : index
    %c0_53 = arith.constant 0 : index
    %c0_54 = arith.constant 0 : index
    %52 = vector.load %arg4[%c6_52, %c0_53, %c0_54] : memref<9x2x16xf32, #tpu.memory_space<vmem>>, vector<1x2x16xf32>
    %53 = vector.shape_cast %52 : vector<1x2x16xf32> to vector<2x16xf32>
    %cst_55 = arith.constant dense<0.000000e+00> : vector<32x16xf32>
    %54 = tpu.matmul %51, %53, %cst_55 {dimension_numbers = #tpu.dot_dimension_numbers<[1], [0], [0], [1], [0, 0, 1, 1], [], []>} : vector<32x2xf32>, vector<2x16xf32>, vector<32x16xf32> -> vector<32x16xf32>
    %55 = arith.addf %48, %54 : vector<32x16xf32>
    %c7 = arith.constant 7 : index
    %c0_56 = arith.constant 0 : index
    %c0_57 = arith.constant 0 : index
    %56 = vector.load %arg3[%c7, %c0_56, %c0_57] : memref<9x32x128xf32, #tpu.memory_space<vmem>>, vector<1x32x128xf32>
    %57 = vector.shape_cast %56 : vector<1x32x128xf32> to vector<32x128xf32>
    %cst_58 = arith.constant dense<0.000000e+00> : vector<32x2xf32>
    %58 = tpu.matmul %57, %7, %cst_58 {dimension_numbers = #tpu.dot_dimension_numbers<[1], [0], [0], [1], [0, 0, 1, 1], [], []>} : vector<32x128xf32>, vector<128x2xf32>, vector<32x2xf32> -> vector<32x2xf32>
    %c7_59 = arith.constant 7 : index
    %c0_60 = arith.constant 0 : index
    %c0_61 = arith.constant 0 : index
    %59 = vector.load %arg4[%c7_59, %c0_60, %c0_61] : memref<9x2x16xf32, #tpu.memory_space<vmem>>, vector<1x2x16xf32>
    %60 = vector.shape_cast %59 : vector<1x2x16xf32> to vector<2x16xf32>
    %cst_62 = arith.constant dense<0.000000e+00> : vector<32x16xf32>
    %61 = tpu.matmul %58, %60, %cst_62 {dimension_numbers = #tpu.dot_dimension_numbers<[1], [0], [0], [1], [0, 0, 1, 1], [], []>} : vector<32x2xf32>, vector<2x16xf32>, vector<32x16xf32> -> vector<32x16xf32>
    %62 = arith.addf %55, %61 : vector<32x16xf32>
    %c8 = arith.constant 8 : index
    %c0_63 = arith.constant 0 : index
    %c0_64 = arith.constant 0 : index
    %63 = vector.load %arg3[%c8, %c0_63, %c0_64] : memref<9x32x128xf32, #tpu.memory_space<vmem>>, vector<1x32x128xf32>
    %64 = vector.shape_cast %63 : vector<1x32x128xf32> to vector<32x128xf32>
    %cst_65 = arith.constant dense<0.000000e+00> : vector<32x2xf32>
    %65 = tpu.matmul %64, %7, %cst_65 {dimension_numbers = #tpu.dot_dimension_numbers<[1], [0], [0], [1], [0, 0, 1, 1], [], []>} : vector<32x128xf32>, vector<128x2xf32>, vector<32x2xf32> -> vector<32x2xf32>
    %c8_66 = arith.constant 8 : index
    %c0_67 = arith.constant 0 : index
    %c0_68 = arith.constant 0 : index
    %66 = vector.load %arg4[%c8_66, %c0_67, %c0_68] : memref<9x2x16xf32, #tpu.memory_space<vmem>>, vector<1x2x16xf32>
    %67 = vector.shape_cast %66 : vector<1x2x16xf32> to vector<2x16xf32>
    %cst_69 = arith.constant dense<0.000000e+00> : vector<32x16xf32>
    %68 = tpu.matmul %65, %67, %cst_69 {dimension_numbers = #tpu.dot_dimension_numbers<[1], [0], [0], [1], [0, 0, 1, 1], [], []>} : vector<32x2xf32>, vector<2x16xf32>, vector<32x16xf32> -> vector<32x16xf32>
    %69 = arith.addf %62, %68 : vector<32x16xf32>
    %c0_70 = arith.constant 0 : index
    %c0_71 = arith.constant 0 : index
    %70 = vector.load %arg5[%c0_70, %c0_71] : memref<1x16xf32, #tpu.memory_space<vmem>>, vector<1x16xf32>
    %71 = vector.broadcast %70 : vector<1x16xf32> to vector<32x16xf32>
    %72 = arith.addf %69, %71 : vector<32x16xf32>
    %cst_72 = arith.constant 0.000000e+00 : f32
    %73 = vector.broadcast %cst_72 : f32 to vector<32x16xf32>
    %74 = arith.maximumf %72, %73 : vector<32x16xf32>
    %c0_73 = arith.constant 0 : index
    %c0_74 = arith.constant 0 : index
    %c0_75 = arith.constant 0 : index
    %75 = vector.load %arg6[%c0_73, %c0_74, %c0_75] : memref<16x2x32xf32, #tpu.memory_space<vmem>>, vector<1x2x32xf32>
    %76 = vector.shape_cast %75 : vector<1x2x32xf32> to vector<2x32xf32>
    %cst_76 = arith.constant dense<0.000000e+00> : vector<2x16xf32>
    %77 = tpu.matmul %76, %74, %cst_76 {dimension_numbers = #tpu.dot_dimension_numbers<[1], [0], [0], [1], [0, 0, 1, 1], [], []>} : vector<2x32xf32>, vector<32x16xf32>, vector<2x16xf32> -> vector<2x16xf32>
    %c0_77 = arith.constant 0 : index
    %c0_78 = arith.constant 0 : index
    %c0_79 = arith.constant 0 : index
    %78 = vector.load %arg7[%c0_77, %c0_78, %c0_79] : memref<16x16x64xf32, #tpu.memory_space<vmem>>, vector<1x16x64xf32>
    %79 = vector.shape_cast %78 : vector<1x16x64xf32> to vector<16x64xf32>
    %cst_80 = arith.constant dense<0.000000e+00> : vector<2x64xf32>
    %80 = tpu.matmul %77, %79, %cst_80 {dimension_numbers = #tpu.dot_dimension_numbers<[1], [0], [0], [1], [0, 0, 1, 1], [], []>} : vector<2x16xf32>, vector<16x64xf32>, vector<2x64xf32> -> vector<2x64xf32>
    %c1_81 = arith.constant 1 : index
    %c0_82 = arith.constant 0 : index
    %c0_83 = arith.constant 0 : index
    %81 = vector.load %arg6[%c1_81, %c0_82, %c0_83] : memref<16x2x32xf32, #tpu.memory_space<vmem>>, vector<1x2x32xf32>
    %82 = vector.shape_cast %81 : vector<1x2x32xf32> to vector<2x32xf32>
    %cst_84 = arith.constant dense<0.000000e+00> : vector<2x16xf32>
    %83 = tpu.matmul %82, %74, %cst_84 {dimension_numbers = #tpu.dot_dimension_numbers<[1], [0], [0], [1], [0, 0, 1, 1], [], []>} : vector<2x32xf32>, vector<32x16xf32>, vector<2x16xf32> -> vector<2x16xf32>
    %c1_85 = arith.constant 1 : index
    %c0_86 = arith.constant 0 : index
    %c0_87 = arith.constant 0 : index
    %84 = vector.load %arg7[%c1_85, %c0_86, %c0_87] : memref<16x16x64xf32, #tpu.memory_space<vmem>>, vector<1x16x64xf32>
    %85 = vector.shape_cast %84 : vector<1x16x64xf32> to vector<16x64xf32>
    %cst_88 = arith.constant dense<0.000000e+00> : vector<2x64xf32>
    %86 = tpu.matmul %83, %85, %cst_88 {dimension_numbers = #tpu.dot_dimension_numbers<[1], [0], [0], [1], [0, 0, 1, 1], [], []>} : vector<2x16xf32>, vector<16x64xf32>, vector<2x64xf32> -> vector<2x64xf32>
    %87 = arith.addf %80, %86 : vector<2x64xf32>
    %c2_89 = arith.constant 2 : index
    %c0_90 = arith.constant 0 : index
    %c0_91 = arith.constant 0 : index
    %88 = vector.load %arg6[%c2_89, %c0_90, %c0_91] : memref<16x2x32xf32, #tpu.memory_space<vmem>>, vector<1x2x32xf32>
    %89 = vector.shape_cast %88 : vector<1x2x32xf32> to vector<2x32xf32>
    %cst_92 = arith.constant dense<0.000000e+00> : vector<2x16xf32>
    %90 = tpu.matmul %89, %74, %cst_92 {dimension_numbers = #tpu.dot_dimension_numbers<[1], [0], [0], [1], [0, 0, 1, 1], [], []>} : vector<2x32xf32>, vector<32x16xf32>, vector<2x16xf32> -> vector<2x16xf32>
    %c2_93 = arith.constant 2 : index
    %c0_94 = arith.constant 0 : index
    %c0_95 = arith.constant 0 : index
    %91 = vector.load %arg7[%c2_93, %c0_94, %c0_95] : memref<16x16x64xf32, #tpu.memory_space<vmem>>, vector<1x16x64xf32>
    %92 = vector.shape_cast %91 : vector<1x16x64xf32> to vector<16x64xf32>
    %cst_96 = arith.constant dense<0.000000e+00> : vector<2x64xf32>
    %93 = tpu.matmul %90, %92, %cst_96 {dimension_numbers = #tpu.dot_dimension_numbers<[1], [0], [0], [1], [0, 0, 1, 1], [], []>} : vector<2x16xf32>, vector<16x64xf32>, vector<2x64xf32> -> vector<2x64xf32>
    %94 = arith.addf %87, %93 : vector<2x64xf32>
    %c3_97 = arith.constant 3 : index
    %c0_98 = arith.constant 0 : index
    %c0_99 = arith.constant 0 : index
    %95 = vector.load %arg6[%c3_97, %c0_98, %c0_99] : memref<16x2x32xf32, #tpu.memory_space<vmem>>, vector<1x2x32xf32>
    %96 = vector.shape_cast %95 : vector<1x2x32xf32> to vector<2x32xf32>
    %cst_100 = arith.constant dense<0.000000e+00> : vector<2x16xf32>
    %97 = tpu.matmul %96, %74, %cst_100 {dimension_numbers = #tpu.dot_dimension_numbers<[1], [0], [0], [1], [0, 0, 1, 1], [], []>} : vector<2x32xf32>, vector<32x16xf32>, vector<2x16xf32> -> vector<2x16xf32>
    %c3_101 = arith.constant 3 : index
    %c0_102 = arith.constant 0 : index
    %c0_103 = arith.constant 0 : index
    %98 = vector.load %arg7[%c3_101, %c0_102, %c0_103] : memref<16x16x64xf32, #tpu.memory_space<vmem>>, vector<1x16x64xf32>
    %99 = vector.shape_cast %98 : vector<1x16x64xf32> to vector<16x64xf32>
    %cst_104 = arith.constant dense<0.000000e+00> : vector<2x64xf32>
    %100 = tpu.matmul %97, %99, %cst_104 {dimension_numbers = #tpu.dot_dimension_numbers<[1], [0], [0], [1], [0, 0, 1, 1], [], []>} : vector<2x16xf32>, vector<16x64xf32>, vector<2x64xf32> -> vector<2x64xf32>
    %101 = arith.addf %94, %100 : vector<2x64xf32>
    %c4_105 = arith.constant 4 : index
    %c0_106 = arith.constant 0 : index
    %c0_107 = arith.constant 0 : index
    %102 = vector.load %arg6[%c4_105, %c0_106, %c0_107] : memref<16x2x32xf32, #tpu.memory_space<vmem>>, vector<1x2x32xf32>
    %103 = vector.shape_cast %102 : vector<1x2x32xf32> to vector<2x32xf32>
    %cst_108 = arith.constant dense<0.000000e+00> : vector<2x16xf32>
    %104 = tpu.matmul %103, %74, %cst_108 {dimension_numbers = #tpu.dot_dimension_numbers<[1], [0], [0], [1], [0, 0, 1, 1], [], []>} : vector<2x32xf32>, vector<32x16xf32>, vector<2x16xf32> -> vector<2x16xf32>
    %c4_109 = arith.constant 4 : index
    %c0_110 = arith.constant 0 : index
    %c0_111 = arith.constant 0 : index
    %105 = vector.load %arg7[%c4_109, %c0_110, %c0_111] : memref<16x16x64xf32, #tpu.memory_space<vmem>>, vector<1x16x64xf32>
    %106 = vector.shape_cast %105 : vector<1x16x64xf32> to vector<16x64xf32>
    %cst_112 = arith.constant dense<0.000000e+00> : vector<2x64xf32>
    %107 = tpu.matmul %104, %106, %cst_112 {dimension_numbers = #tpu.dot_dimension_numbers<[1], [0], [0], [1], [0, 0, 1, 1], [], []>} : vector<2x16xf32>, vector<16x64xf32>, vector<2x64xf32> -> vector<2x64xf32>
    %108 = arith.addf %101, %107 : vector<2x64xf32>
    %c5_113 = arith.constant 5 : index
    %c0_114 = arith.constant 0 : index
    %c0_115 = arith.constant 0 : index
    %109 = vector.load %arg6[%c5_113, %c0_114, %c0_115] : memref<16x2x32xf32, #tpu.memory_space<vmem>>, vector<1x2x32xf32>
    %110 = vector.shape_cast %109 : vector<1x2x32xf32> to vector<2x32xf32>
    %cst_116 = arith.constant dense<0.000000e+00> : vector<2x16xf32>
    %111 = tpu.matmul %110, %74, %cst_116 {dimension_numbers = #tpu.dot_dimension_numbers<[1], [0], [0], [1], [0, 0, 1, 1], [], []>} : vector<2x32xf32>, vector<32x16xf32>, vector<2x16xf32> -> vector<2x16xf32>
    %c5_117 = arith.constant 5 : index
    %c0_118 = arith.constant 0 : index
    %c0_119 = arith.constant 0 : index
    %112 = vector.load %arg7[%c5_117, %c0_118, %c0_119] : memref<16x16x64xf32, #tpu.memory_space<vmem>>, vector<1x16x64xf32>
    %113 = vector.shape_cast %112 : vector<1x16x64xf32> to vector<16x64xf32>
    %cst_120 = arith.constant dense<0.000000e+00> : vector<2x64xf32>
    %114 = tpu.matmul %111, %113, %cst_120 {dimension_numbers = #tpu.dot_dimension_numbers<[1], [0], [0], [1], [0, 0, 1, 1], [], []>} : vector<2x16xf32>, vector<16x64xf32>, vector<2x64xf32> -> vector<2x64xf32>
    %115 = arith.addf %108, %114 : vector<2x64xf32>
    %c6_121 = arith.constant 6 : index
    %c0_122 = arith.constant 0 : index
    %c0_123 = arith.constant 0 : index
    %116 = vector.load %arg6[%c6_121, %c0_122, %c0_123] : memref<16x2x32xf32, #tpu.memory_space<vmem>>, vector<1x2x32xf32>
    %117 = vector.shape_cast %116 : vector<1x2x32xf32> to vector<2x32xf32>
    %cst_124 = arith.constant dense<0.000000e+00> : vector<2x16xf32>
    %118 = tpu.matmul %117, %74, %cst_124 {dimension_numbers = #tpu.dot_dimension_numbers<[1], [0], [0], [1], [0, 0, 1, 1], [], []>} : vector<2x32xf32>, vector<32x16xf32>, vector<2x16xf32> -> vector<2x16xf32>
    %c6_125 = arith.constant 6 : index
    %c0_126 = arith.constant 0 : index
    %c0_127 = arith.constant 0 : index
    %119 = vector.load %arg7[%c6_125, %c0_126, %c0_127] : memref<16x16x64xf32, #tpu.memory_space<vmem>>, vector<1x16x64xf32>
    %120 = vector.shape_cast %119 : vector<1x16x64xf32> to vector<16x64xf32>
    %cst_128 = arith.constant dense<0.000000e+00> : vector<2x64xf32>
    %121 = tpu.matmul %118, %120, %cst_128 {dimension_numbers = #tpu.dot_dimension_numbers<[1], [0], [0], [1], [0, 0, 1, 1], [], []>} : vector<2x16xf32>, vector<16x64xf32>, vector<2x64xf32> -> vector<2x64xf32>
    %122 = arith.addf %115, %121 : vector<2x64xf32>
    %c7_129 = arith.constant 7 : index
    %c0_130 = arith.constant 0 : index
    %c0_131 = arith.constant 0 : index
    %123 = vector.load %arg6[%c7_129, %c0_130, %c0_131] : memref<16x2x32xf32, #tpu.memory_space<vmem>>, vector<1x2x32xf32>
    %124 = vector.shape_cast %123 : vector<1x2x32xf32> to vector<2x32xf32>
    %cst_132 = arith.constant dense<0.000000e+00> : vector<2x16xf32>
    %125 = tpu.matmul %124, %74, %cst_132 {dimension_numbers = #tpu.dot_dimension_numbers<[1], [0], [0], [1], [0, 0, 1, 1], [], []>} : vector<2x32xf32>, vector<32x16xf32>, vector<2x16xf32> -> vector<2x16xf32>
    %c7_133 = arith.constant 7 : index
    %c0_134 = arith.constant 0 : index
    %c0_135 = arith.constant 0 : index
    %126 = vector.load %arg7[%c7_133, %c0_134, %c0_135] : memref<16x16x64xf32, #tpu.memory_space<vmem>>, vector<1x16x64xf32>
    %127 = vector.shape_cast %126 : vector<1x16x64xf32> to vector<16x64xf32>
    %cst_136 = arith.constant dense<0.000000e+00> : vector<2x64xf32>
    %128 = tpu.matmul %125, %127, %cst_136 {dimension_numbers = #tpu.dot_dimension_numbers<[1], [0], [0], [1], [0, 0, 1, 1], [], []>} : vector<2x16xf32>, vector<16x64xf32>, vector<2x64xf32> -> vector<2x64xf32>
    %129 = arith.addf %122, %128 : vector<2x64xf32>
    %c8_137 = arith.constant 8 : index
    %c0_138 = arith.constant 0 : index
    %c0_139 = arith.constant 0 : index
    %130 = vector.load %arg6[%c8_137, %c0_138, %c0_139] : memref<16x2x32xf32, #tpu.memory_space<vmem>>, vector<1x2x32xf32>
    %131 = vector.shape_cast %130 : vector<1x2x32xf32> to vector<2x32xf32>
    %cst_140 = arith.constant dense<0.000000e+00> : vector<2x16xf32>
    %132 = tpu.matmul %131, %74, %cst_140 {dimension_numbers = #tpu.dot_dimension_numbers<[1], [0], [0], [1], [0, 0, 1, 1], [], []>} : vector<2x32xf32>, vector<32x16xf32>, vector<2x16xf32> -> vector<2x16xf32>
    %c8_141 = arith.constant 8 : index
    %c0_142 = arith.constant 0 : index
    %c0_143 = arith.constant 0 : index
    %133 = vector.load %arg7[%c8_141, %c0_142, %c0_143] : memref<16x16x64xf32, #tpu.memory_space<vmem>>, vector<1x16x64xf32>
    %134 = vector.shape_cast %133 : vector<1x16x64xf32> to vector<16x64xf32>
    %cst_144 = arith.constant dense<0.000000e+00> : vector<2x64xf32>
    %135 = tpu.matmul %132, %134, %cst_144 {dimension_numbers = #tpu.dot_dimension_numbers<[1], [0], [0], [1], [0, 0, 1, 1], [], []>} : vector<2x16xf32>, vector<16x64xf32>, vector<2x64xf32> -> vector<2x64xf32>
    %136 = arith.addf %129, %135 : vector<2x64xf32>
    %c9 = arith.constant 9 : index
    %c0_145 = arith.constant 0 : index
    %c0_146 = arith.constant 0 : index
    %137 = vector.load %arg6[%c9, %c0_145, %c0_146] : memref<16x2x32xf32, #tpu.memory_space<vmem>>, vector<1x2x32xf32>
    %138 = vector.shape_cast %137 : vector<1x2x32xf32> to vector<2x32xf32>
    %cst_147 = arith.constant dense<0.000000e+00> : vector<2x16xf32>
    %139 = tpu.matmul %138, %74, %cst_147 {dimension_numbers = #tpu.dot_dimension_numbers<[1], [0], [0], [1], [0, 0, 1, 1], [], []>} : vector<2x32xf32>, vector<32x16xf32>, vector<2x16xf32> -> vector<2x16xf32>
    %c9_148 = arith.constant 9 : index
    %c0_149 = arith.constant 0 : index
    %c0_150 = arith.constant 0 : index
    %140 = vector.load %arg7[%c9_148, %c0_149, %c0_150] : memref<16x16x64xf32, #tpu.memory_space<vmem>>, vector<1x16x64xf32>
    %141 = vector.shape_cast %140 : vector<1x16x64xf32> to vector<16x64xf32>
    %cst_151 = arith.constant dense<0.000000e+00> : vector<2x64xf32>
    %142 = tpu.matmul %139, %141, %cst_151 {dimension_numbers = #tpu.dot_dimension_numbers<[1], [0], [0], [1], [0, 0, 1, 1], [], []>} : vector<2x16xf32>, vector<16x64xf32>, vector<2x64xf32> -> vector<2x64xf32>
    %143 = arith.addf %136, %142 : vector<2x64xf32>
    %c10 = arith.constant 10 : index
    %c0_152 = arith.constant 0 : index
    %c0_153 = arith.constant 0 : index
    %144 = vector.load %arg6[%c10, %c0_152, %c0_153] : memref<16x2x32xf32, #tpu.memory_space<vmem>>, vector<1x2x32xf32>
    %145 = vector.shape_cast %144 : vector<1x2x32xf32> to vector<2x32xf32>
    %cst_154 = arith.constant dense<0.000000e+00> : vector<2x16xf32>
    %146 = tpu.matmul %145, %74, %cst_154 {dimension_numbers = #tpu.dot_dimension_numbers<[1], [0], [0], [1], [0, 0, 1, 1], [], []>} : vector<2x32xf32>, vector<32x16xf32>, vector<2x16xf32> -> vector<2x16xf32>
    %c10_155 = arith.constant 10 : index
    %c0_156 = arith.constant 0 : index
    %c0_157 = arith.constant 0 : index
    %147 = vector.load %arg7[%c10_155, %c0_156, %c0_157] : memref<16x16x64xf32, #tpu.memory_space<vmem>>, vector<1x16x64xf32>
    %148 = vector.shape_cast %147 : vector<1x16x64xf32> to vector<16x64xf32>
    %cst_158 = arith.constant dense<0.000000e+00> : vector<2x64xf32>
    %149 = tpu.matmul %146, %148, %cst_158 {dimension_numbers = #tpu.dot_dimension_numbers<[1], [0], [0], [1], [0, 0, 1, 1], [], []>} : vector<2x16xf32>, vector<16x64xf32>, vector<2x64xf32> -> vector<2x64xf32>
    %150 = arith.addf %143, %149 : vector<2x64xf32>
    %c11 = arith.constant 11 : index
    %c0_159 = arith.constant 0 : index
    %c0_160 = arith.constant 0 : index
    %151 = vector.load %arg6[%c11, %c0_159, %c0_160] : memref<16x2x32xf32, #tpu.memory_space<vmem>>, vector<1x2x32xf32>
    %152 = vector.shape_cast %151 : vector<1x2x32xf32> to vector<2x32xf32>
    %cst_161 = arith.constant dense<0.000000e+00> : vector<2x16xf32>
    %153 = tpu.matmul %152, %74, %cst_161 {dimension_numbers = #tpu.dot_dimension_numbers<[1], [0], [0], [1], [0, 0, 1, 1], [], []>} : vector<2x32xf32>, vector<32x16xf32>, vector<2x16xf32> -> vector<2x16xf32>
    %c11_162 = arith.constant 11 : index
    %c0_163 = arith.constant 0 : index
    %c0_164 = arith.constant 0 : index
    %154 = vector.load %arg7[%c11_162, %c0_163, %c0_164] : memref<16x16x64xf32, #tpu.memory_space<vmem>>, vector<1x16x64xf32>
    %155 = vector.shape_cast %154 : vector<1x16x64xf32> to vector<16x64xf32>
    %cst_165 = arith.constant dense<0.000000e+00> : vector<2x64xf32>
    %156 = tpu.matmul %153, %155, %cst_165 {dimension_numbers = #tpu.dot_dimension_numbers<[1], [0], [0], [1], [0, 0, 1, 1], [], []>} : vector<2x16xf32>, vector<16x64xf32>, vector<2x64xf32> -> vector<2x64xf32>
    %157 = arith.addf %150, %156 : vector<2x64xf32>
    %c12 = arith.constant 12 : index
    %c0_166 = arith.constant 0 : index
    %c0_167 = arith.constant 0 : index
    %158 = vector.load %arg6[%c12, %c0_166, %c0_167] : memref<16x2x32xf32, #tpu.memory_space<vmem>>, vector<1x2x32xf32>
    %159 = vector.shape_cast %158 : vector<1x2x32xf32> to vector<2x32xf32>
    %cst_168 = arith.constant dense<0.000000e+00> : vector<2x16xf32>
    %160 = tpu.matmul %159, %74, %cst_168 {dimension_numbers = #tpu.dot_dimension_numbers<[1], [0], [0], [1], [0, 0, 1, 1], [], []>} : vector<2x32xf32>, vector<32x16xf32>, vector<2x16xf32> -> vector<2x16xf32>
    %c12_169 = arith.constant 12 : index
    %c0_170 = arith.constant 0 : index
    %c0_171 = arith.constant 0 : index
    %161 = vector.load %arg7[%c12_169, %c0_170, %c0_171] : memref<16x16x64xf32, #tpu.memory_space<vmem>>, vector<1x16x64xf32>
    %162 = vector.shape_cast %161 : vector<1x16x64xf32> to vector<16x64xf32>
    %cst_172 = arith.constant dense<0.000000e+00> : vector<2x64xf32>
    %163 = tpu.matmul %160, %162, %cst_172 {dimension_numbers = #tpu.dot_dimension_numbers<[1], [0], [0], [1], [0, 0, 1, 1], [], []>} : vector<2x16xf32>, vector<16x64xf32>, vector<2x64xf32> -> vector<2x64xf32>
    %164 = arith.addf %157, %163 : vector<2x64xf32>
    %c13 = arith.constant 13 : index
    %c0_173 = arith.constant 0 : index
    %c0_174 = arith.constant 0 : index
    %165 = vector.load %arg6[%c13, %c0_173, %c0_174] : memref<16x2x32xf32, #tpu.memory_space<vmem>>, vector<1x2x32xf32>
    %166 = vector.shape_cast %165 : vector<1x2x32xf32> to vector<2x32xf32>
    %cst_175 = arith.constant dense<0.000000e+00> : vector<2x16xf32>
    %167 = tpu.matmul %166, %74, %cst_175 {dimension_numbers = #tpu.dot_dimension_numbers<[1], [0], [0], [1], [0, 0, 1, 1], [], []>} : vector<2x32xf32>, vector<32x16xf32>, vector<2x16xf32> -> vector<2x16xf32>
    %c13_176 = arith.constant 13 : index
    %c0_177 = arith.constant 0 : index
    %c0_178 = arith.constant 0 : index
    %168 = vector.load %arg7[%c13_176, %c0_177, %c0_178] : memref<16x16x64xf32, #tpu.memory_space<vmem>>, vector<1x16x64xf32>
    %169 = vector.shape_cast %168 : vector<1x16x64xf32> to vector<16x64xf32>
    %cst_179 = arith.constant dense<0.000000e+00> : vector<2x64xf32>
    %170 = tpu.matmul %167, %169, %cst_179 {dimension_numbers = #tpu.dot_dimension_numbers<[1], [0], [0], [1], [0, 0, 1, 1], [], []>} : vector<2x16xf32>, vector<16x64xf32>, vector<2x64xf32> -> vector<2x64xf32>
    %171 = arith.addf %164, %170 : vector<2x64xf32>
    %c14 = arith.constant 14 : index
    %c0_180 = arith.constant 0 : index
    %c0_181 = arith.constant 0 : index
    %172 = vector.load %arg6[%c14, %c0_180, %c0_181] : memref<16x2x32xf32, #tpu.memory_space<vmem>>, vector<1x2x32xf32>
    %173 = vector.shape_cast %172 : vector<1x2x32xf32> to vector<2x32xf32>
    %cst_182 = arith.constant dense<0.000000e+00> : vector<2x16xf32>
    %174 = tpu.matmul %173, %74, %cst_182 {dimension_numbers = #tpu.dot_dimension_numbers<[1], [0], [0], [1], [0, 0, 1, 1], [], []>} : vector<2x32xf32>, vector<32x16xf32>, vector<2x16xf32> -> vector<2x16xf32>
    %c14_183 = arith.constant 14 : index
    %c0_184 = arith.constant 0 : index
    %c0_185 = arith.constant 0 : index
    %175 = vector.load %arg7[%c14_183, %c0_184, %c0_185] : memref<16x16x64xf32, #tpu.memory_space<vmem>>, vector<1x16x64xf32>
    %176 = vector.shape_cast %175 : vector<1x16x64xf32> to vector<16x64xf32>
    %cst_186 = arith.constant dense<0.000000e+00> : vector<2x64xf32>
    %177 = tpu.matmul %174, %176, %cst_186 {dimension_numbers = #tpu.dot_dimension_numbers<[1], [0], [0], [1], [0, 0, 1, 1], [], []>} : vector<2x16xf32>, vector<16x64xf32>, vector<2x64xf32> -> vector<2x64xf32>
    %178 = arith.addf %171, %177 : vector<2x64xf32>
    %c15 = arith.constant 15 : index
    %c0_187 = arith.constant 0 : index
    %c0_188 = arith.constant 0 : index
    %179 = vector.load %arg6[%c15, %c0_187, %c0_188] : memref<16x2x32xf32, #tpu.memory_space<vmem>>, vector<1x2x32xf32>
    %180 = vector.shape_cast %179 : vector<1x2x32xf32> to vector<2x32xf32>
    %cst_189 = arith.constant dense<0.000000e+00> : vector<2x16xf32>
    %181 = tpu.matmul %180, %74, %cst_189 {dimension_numbers = #tpu.dot_dimension_numbers<[1], [0], [0], [1], [0, 0, 1, 1], [], []>} : vector<2x32xf32>, vector<32x16xf32>, vector<2x16xf32> -> vector<2x16xf32>
    %c15_190 = arith.constant 15 : index
    %c0_191 = arith.constant 0 : index
    %c0_192 = arith.constant 0 : index
    %182 = vector.load %arg7[%c15_190, %c0_191, %c0_192] : memref<16x16x64xf32, #tpu.memory_space<vmem>>, vector<1x16x64xf32>
    %183 = vector.shape_cast %182 : vector<1x16x64xf32> to vector<16x64xf32>
    %cst_193 = arith.constant dense<0.000000e+00> : vector<2x64xf32>
    %184 = tpu.matmul %181, %183, %cst_193 {dimension_numbers = #tpu.dot_dimension_numbers<[1], [0], [0], [1], [0, 0, 1, 1], [], []>} : vector<2x16xf32>, vector<16x64xf32>, vector<2x64xf32> -> vector<2x64xf32>
    %185 = arith.addf %178, %184 : vector<2x64xf32>
    %c0_194 = arith.constant 0 : index
    %c0_195 = arith.constant 0 : index
    %186 = vector.load %arg8[%c0_194, %c0_195] : memref<1x64xf32, #tpu.memory_space<vmem>>, vector<1x64xf32>
    %187 = vector.broadcast %186 : vector<1x64xf32> to vector<2x64xf32>
    %188 = arith.addf %185, %187 : vector<2x64xf32>
    %cst_196 = arith.constant 0.000000e+00 : f32
    %189 = vector.broadcast %cst_196 : f32 to vector<2x64xf32>
    %190 = arith.maximumf %188, %189 : vector<2x64xf32>
    %c0_197 = arith.constant 0 : index
    %c0_198 = arith.constant 0 : index
    %191 = vector.load %arg9[%c0_197, %c0_198] : memref<64x32xf32, #tpu.memory_space<vmem>>, vector<64x32xf32>
    %cst_199 = arith.constant dense<0.000000e+00> : vector<2x32xf32>
    %192 = tpu.matmul %190, %191, %cst_199 {dimension_numbers = #tpu.dot_dimension_numbers<[1], [0], [0], [1], [0, 0, 1, 1], [], []>} : vector<2x64xf32>, vector<64x32xf32>, vector<2x32xf32> -> vector<2x32xf32>
    %c0_200 = arith.constant 0 : index
    %c0_201 = arith.constant 0 : index
    %193 = vector.load %arg10[%c0_200, %c0_201] : memref<1x32xf32, #tpu.memory_space<vmem>>, vector<1x32xf32>
    %194 = vector.broadcast %193 : vector<1x32xf32> to vector<2x32xf32>
    %195 = arith.addf %192, %194 : vector<2x32xf32>
    %cst_202 = arith.constant 0.000000e+00 : f32
    %196 = vector.broadcast %cst_202 : f32 to vector<2x32xf32>
    %197 = arith.maximumf %195, %196 : vector<2x32xf32>
    %c0_203 = arith.constant 0 : index
    %c0_204 = arith.constant 0 : index
    %198 = vector.load %arg11[%c0_203, %c0_204] : memref<32x16xf32, #tpu.memory_space<vmem>>, vector<32x16xf32>
    %cst_205 = arith.constant dense<0.000000e+00> : vector<2x16xf32>
    %199 = tpu.matmul %197, %198, %cst_205 {dimension_numbers = #tpu.dot_dimension_numbers<[1], [0], [0], [1], [0, 0, 1, 1], [], []>} : vector<2x32xf32>, vector<32x16xf32>, vector<2x16xf32> -> vector<2x16xf32>
    %c0_206 = arith.constant 0 : index
    %c0_207 = arith.constant 0 : index
    %200 = vector.load %arg12[%c0_206, %c0_207] : memref<1x16xf32, #tpu.memory_space<vmem>>, vector<1x16xf32>
    %201 = vector.broadcast %200 : vector<1x16xf32> to vector<2x16xf32>
    %202 = arith.addf %199, %201 : vector<2x16xf32>
    %c0_208 = arith.constant 0 : index
    %c0_209 = arith.constant 0 : index
    %c0_210 = arith.constant 0 : index
    %203 = vector.load %arg13[%c0_208, %c0_209, %c0_210] : memref<9x128x128xf32, #tpu.memory_space<vmem>>, vector<1x128x128xf32>
    %204 = vector.shape_cast %203 : vector<1x128x128xf32> to vector<128x128xf32>
    %cst_211 = arith.constant dense<0.000000e+00> : vector<128x2xf32>
    %205 = tpu.matmul %204, %7, %cst_211 {dimension_numbers = #tpu.dot_dimension_numbers<[1], [0], [0], [1], [0, 0, 1, 1], [], []>} : vector<128x128xf32>, vector<128x2xf32>, vector<128x2xf32> -> vector<128x2xf32>
    %c0_212 = arith.constant 0 : index
    %c0_213 = arith.constant 0 : index
    %c0_214 = arith.constant 0 : index
    %206 = vector.load %arg14[%c0_212, %c0_213, %c0_214] : memref<9x2x16xf32, #tpu.memory_space<vmem>>, vector<1x2x16xf32>
    %207 = vector.shape_cast %206 : vector<1x2x16xf32> to vector<2x16xf32>
    %cst_215 = arith.constant dense<0.000000e+00> : vector<128x16xf32>
    %208 = tpu.matmul %205, %207, %cst_215 {dimension_numbers = #tpu.dot_dimension_numbers<[1], [0], [0], [1], [0, 0, 1, 1], [], []>} : vector<128x2xf32>, vector<2x16xf32>, vector<128x16xf32> -> vector<128x16xf32>
    %c1_216 = arith.constant 1 : index
    %c0_217 = arith.constant 0 : index
    %c0_218 = arith.constant 0 : index
    %209 = vector.load %arg13[%c1_216, %c0_217, %c0_218] : memref<9x128x128xf32, #tpu.memory_space<vmem>>, vector<1x128x128xf32>
    %210 = vector.shape_cast %209 : vector<1x128x128xf32> to vector<128x128xf32>
    %cst_219 = arith.constant dense<0.000000e+00> : vector<128x2xf32>
    %211 = tpu.matmul %210, %7, %cst_219 {dimension_numbers = #tpu.dot_dimension_numbers<[1], [0], [0], [1], [0, 0, 1, 1], [], []>} : vector<128x128xf32>, vector<128x2xf32>, vector<128x2xf32> -> vector<128x2xf32>
    %c1_220 = arith.constant 1 : index
    %c0_221 = arith.constant 0 : index
    %c0_222 = arith.constant 0 : index
    %212 = vector.load %arg14[%c1_220, %c0_221, %c0_222] : memref<9x2x16xf32, #tpu.memory_space<vmem>>, vector<1x2x16xf32>
    %213 = vector.shape_cast %212 : vector<1x2x16xf32> to vector<2x16xf32>
    %cst_223 = arith.constant dense<0.000000e+00> : vector<128x16xf32>
    %214 = tpu.matmul %211, %213, %cst_223 {dimension_numbers = #tpu.dot_dimension_numbers<[1], [0], [0], [1], [0, 0, 1, 1], [], []>} : vector<128x2xf32>, vector<2x16xf32>, vector<128x16xf32> -> vector<128x16xf32>
    %215 = arith.addf %208, %214 : vector<128x16xf32>
    %c2_224 = arith.constant 2 : index
    %c0_225 = arith.constant 0 : index
    %c0_226 = arith.constant 0 : index
    %216 = vector.load %arg13[%c2_224, %c0_225, %c0_226] : memref<9x128x128xf32, #tpu.memory_space<vmem>>, vector<1x128x128xf32>
    %217 = vector.shape_cast %216 : vector<1x128x128xf32> to vector<128x128xf32>
    %cst_227 = arith.constant dense<0.000000e+00> : vector<128x2xf32>
    %218 = tpu.matmul %217, %7, %cst_227 {dimension_numbers = #tpu.dot_dimension_numbers<[1], [0], [0], [1], [0, 0, 1, 1], [], []>} : vector<128x128xf32>, vector<128x2xf32>, vector<128x2xf32> -> vector<128x2xf32>
    %c2_228 = arith.constant 2 : index
    %c0_229 = arith.constant 0 : index
    %c0_230 = arith.constant 0 : index
    %219 = vector.load %arg14[%c2_228, %c0_229, %c0_230] : memref<9x2x16xf32, #tpu.memory_space<vmem>>, vector<1x2x16xf32>
    %220 = vector.shape_cast %219 : vector<1x2x16xf32> to vector<2x16xf32>
    %cst_231 = arith.constant dense<0.000000e+00> : vector<128x16xf32>
    %221 = tpu.matmul %218, %220, %cst_231 {dimension_numbers = #tpu.dot_dimension_numbers<[1], [0], [0], [1], [0, 0, 1, 1], [], []>} : vector<128x2xf32>, vector<2x16xf32>, vector<128x16xf32> -> vector<128x16xf32>
    %222 = arith.addf %215, %221 : vector<128x16xf32>
    %c3_232 = arith.constant 3 : index
    %c0_233 = arith.constant 0 : index
    %c0_234 = arith.constant 0 : index
    %223 = vector.load %arg13[%c3_232, %c0_233, %c0_234] : memref<9x128x128xf32, #tpu.memory_space<vmem>>, vector<1x128x128xf32>
    %224 = vector.shape_cast %223 : vector<1x128x128xf32> to vector<128x128xf32>
    %cst_235 = arith.constant dense<0.000000e+00> : vector<128x2xf32>
    %225 = tpu.matmul %224, %7, %cst_235 {dimension_numbers = #tpu.dot_dimension_numbers<[1], [0], [0], [1], [0, 0, 1, 1], [], []>} : vector<128x128xf32>, vector<128x2xf32>, vector<128x2xf32> -> vector<128x2xf32>
    %c3_236 = arith.constant 3 : index
    %c0_237 = arith.constant 0 : index
    %c0_238 = arith.constant 0 : index
    %226 = vector.load %arg14[%c3_236, %c0_237, %c0_238] : memref<9x2x16xf32, #tpu.memory_space<vmem>>, vector<1x2x16xf32>
    %227 = vector.shape_cast %226 : vector<1x2x16xf32> to vector<2x16xf32>
    %cst_239 = arith.constant dense<0.000000e+00> : vector<128x16xf32>
    %228 = tpu.matmul %225, %227, %cst_239 {dimension_numbers = #tpu.dot_dimension_numbers<[1], [0], [0], [1], [0, 0, 1, 1], [], []>} : vector<128x2xf32>, vector<2x16xf32>, vector<128x16xf32> -> vector<128x16xf32>
    %229 = arith.addf %222, %228 : vector<128x16xf32>
    %c4_240 = arith.constant 4 : index
    %c0_241 = arith.constant 0 : index
    %c0_242 = arith.constant 0 : index
    %230 = vector.load %arg13[%c4_240, %c0_241, %c0_242] : memref<9x128x128xf32, #tpu.memory_space<vmem>>, vector<1x128x128xf32>
    %231 = vector.shape_cast %230 : vector<1x128x128xf32> to vector<128x128xf32>
    %cst_243 = arith.constant dense<0.000000e+00> : vector<128x2xf32>
    %232 = tpu.matmul %231, %7, %cst_243 {dimension_numbers = #tpu.dot_dimension_numbers<[1], [0], [0], [1], [0, 0, 1, 1], [], []>} : vector<128x128xf32>, vector<128x2xf32>, vector<128x2xf32> -> vector<128x2xf32>
    %c4_244 = arith.constant 4 : index
    %c0_245 = arith.constant 0 : index
    %c0_246 = arith.constant 0 : index
    %233 = vector.load %arg14[%c4_244, %c0_245, %c0_246] : memref<9x2x16xf32, #tpu.memory_space<vmem>>, vector<1x2x16xf32>
    %234 = vector.shape_cast %233 : vector<1x2x16xf32> to vector<2x16xf32>
    %cst_247 = arith.constant dense<0.000000e+00> : vector<128x16xf32>
    %235 = tpu.matmul %232, %234, %cst_247 {dimension_numbers = #tpu.dot_dimension_numbers<[1], [0], [0], [1], [0, 0, 1, 1], [], []>} : vector<128x2xf32>, vector<2x16xf32>, vector<128x16xf32> -> vector<128x16xf32>
    %236 = arith.addf %229, %235 : vector<128x16xf32>
    %c5_248 = arith.constant 5 : index
    %c0_249 = arith.constant 0 : index
    %c0_250 = arith.constant 0 : index
    %237 = vector.load %arg13[%c5_248, %c0_249, %c0_250] : memref<9x128x128xf32, #tpu.memory_space<vmem>>, vector<1x128x128xf32>
    %238 = vector.shape_cast %237 : vector<1x128x128xf32> to vector<128x128xf32>
    %cst_251 = arith.constant dense<0.000000e+00> : vector<128x2xf32>
    %239 = tpu.matmul %238, %7, %cst_251 {dimension_numbers = #tpu.dot_dimension_numbers<[1], [0], [0], [1], [0, 0, 1, 1], [], []>} : vector<128x128xf32>, vector<128x2xf32>, vector<128x2xf32> -> vector<128x2xf32>
    %c5_252 = arith.constant 5 : index
    %c0_253 = arith.constant 0 : index
    %c0_254 = arith.constant 0 : index
    %240 = vector.load %arg14[%c5_252, %c0_253, %c0_254] : memref<9x2x16xf32, #tpu.memory_space<vmem>>, vector<1x2x16xf32>
    %241 = vector.shape_cast %240 : vector<1x2x16xf32> to vector<2x16xf32>
    %cst_255 = arith.constant dense<0.000000e+00> : vector<128x16xf32>
    %242 = tpu.matmul %239, %241, %cst_255 {dimension_numbers = #tpu.dot_dimension_numbers<[1], [0], [0], [1], [0, 0, 1, 1], [], []>} : vector<128x2xf32>, vector<2x16xf32>, vector<128x16xf32> -> vector<128x16xf32>
    %243 = arith.addf %236, %242 : vector<128x16xf32>
    %c6_256 = arith.constant 6 : index
    %c0_257 = arith.constant 0 : index
    %c0_258 = arith.constant 0 : index
    %244 = vector.load %arg13[%c6_256, %c0_257, %c0_258] : memref<9x128x128xf32, #tpu.memory_space<vmem>>, vector<1x128x128xf32>
    %245 = vector.shape_cast %244 : vector<1x128x128xf32> to vector<128x128xf32>
    %cst_259 = arith.constant dense<0.000000e+00> : vector<128x2xf32>
    %246 = tpu.matmul %245, %7, %cst_259 {dimension_numbers = #tpu.dot_dimension_numbers<[1], [0], [0], [1], [0, 0, 1, 1], [], []>} : vector<128x128xf32>, vector<128x2xf32>, vector<128x2xf32> -> vector<128x2xf32>
    %c6_260 = arith.constant 6 : index
    %c0_261 = arith.constant 0 : index
    %c0_262 = arith.constant 0 : index
    %247 = vector.load %arg14[%c6_260, %c0_261, %c0_262] : memref<9x2x16xf32, #tpu.memory_space<vmem>>, vector<1x2x16xf32>
    %248 = vector.shape_cast %247 : vector<1x2x16xf32> to vector<2x16xf32>
    %cst_263 = arith.constant dense<0.000000e+00> : vector<128x16xf32>
    %249 = tpu.matmul %246, %248, %cst_263 {dimension_numbers = #tpu.dot_dimension_numbers<[1], [0], [0], [1], [0, 0, 1, 1], [], []>} : vector<128x2xf32>, vector<2x16xf32>, vector<128x16xf32> -> vector<128x16xf32>
    %250 = arith.addf %243, %249 : vector<128x16xf32>
    %c7_264 = arith.constant 7 : index
    %c0_265 = arith.constant 0 : index
    %c0_266 = arith.constant 0 : index
    %251 = vector.load %arg13[%c7_264, %c0_265, %c0_266] : memref<9x128x128xf32, #tpu.memory_space<vmem>>, vector<1x128x128xf32>
    %252 = vector.shape_cast %251 : vector<1x128x128xf32> to vector<128x128xf32>
    %cst_267 = arith.constant dense<0.000000e+00> : vector<128x2xf32>
    %253 = tpu.matmul %252, %7, %cst_267 {dimension_numbers = #tpu.dot_dimension_numbers<[1], [0], [0], [1], [0, 0, 1, 1], [], []>} : vector<128x128xf32>, vector<128x2xf32>, vector<128x2xf32> -> vector<128x2xf32>
    %c7_268 = arith.constant 7 : index
    %c0_269 = arith.constant 0 : index
    %c0_270 = arith.constant 0 : index
    %254 = vector.load %arg14[%c7_268, %c0_269, %c0_270] : memref<9x2x16xf32, #tpu.memory_space<vmem>>, vector<1x2x16xf32>
    %255 = vector.shape_cast %254 : vector<1x2x16xf32> to vector<2x16xf32>
    %cst_271 = arith.constant dense<0.000000e+00> : vector<128x16xf32>
    %256 = tpu.matmul %253, %255, %cst_271 {dimension_numbers = #tpu.dot_dimension_numbers<[1], [0], [0], [1], [0, 0, 1, 1], [], []>} : vector<128x2xf32>, vector<2x16xf32>, vector<128x16xf32> -> vector<128x16xf32>
    %257 = arith.addf %250, %256 : vector<128x16xf32>
    %c8_272 = arith.constant 8 : index
    %c0_273 = arith.constant 0 : index
    %c0_274 = arith.constant 0 : index
    %258 = vector.load %arg13[%c8_272, %c0_273, %c0_274] : memref<9x128x128xf32, #tpu.memory_space<vmem>>, vector<1x128x128xf32>
    %259 = vector.shape_cast %258 : vector<1x128x128xf32> to vector<128x128xf32>
    %cst_275 = arith.constant dense<0.000000e+00> : vector<128x2xf32>
    %260 = tpu.matmul %259, %7, %cst_275 {dimension_numbers = #tpu.dot_dimension_numbers<[1], [0], [0], [1], [0, 0, 1, 1], [], []>} : vector<128x128xf32>, vector<128x2xf32>, vector<128x2xf32> -> vector<128x2xf32>
    %c8_276 = arith.constant 8 : index
    %c0_277 = arith.constant 0 : index
    %c0_278 = arith.constant 0 : index
    %261 = vector.load %arg14[%c8_276, %c0_277, %c0_278] : memref<9x2x16xf32, #tpu.memory_space<vmem>>, vector<1x2x16xf32>
    %262 = vector.shape_cast %261 : vector<1x2x16xf32> to vector<2x16xf32>
    %cst_279 = arith.constant dense<0.000000e+00> : vector<128x16xf32>
    %263 = tpu.matmul %260, %262, %cst_279 {dimension_numbers = #tpu.dot_dimension_numbers<[1], [0], [0], [1], [0, 0, 1, 1], [], []>} : vector<128x2xf32>, vector<2x16xf32>, vector<128x16xf32> -> vector<128x16xf32>
    %264 = arith.addf %257, %263 : vector<128x16xf32>
    %c0_280 = arith.constant 0 : index
    %c0_281 = arith.constant 0 : index
    %265 = vector.load %arg15[%c0_280, %c0_281] : memref<1x16xf32, #tpu.memory_space<vmem>>, vector<1x16xf32>
    %266 = vector.broadcast %265 : vector<1x16xf32> to vector<128x16xf32>
    %267 = arith.addf %264, %266 : vector<128x16xf32>
    %cst_282 = arith.constant 0.000000e+00 : f32
    %268 = vector.broadcast %cst_282 : f32 to vector<128x16xf32>
    %269 = arith.maximumf %267, %268 : vector<128x16xf32>
    %c0_283 = arith.constant 0 : index
    %c0_284 = arith.constant 0 : index
    %c0_285 = arith.constant 0 : index
    %270 = vector.load %arg13[%c0_283, %c0_284, %c0_285] : memref<9x128x128xf32, #tpu.memory_space<vmem>>, vector<1x128x128xf32>
    %271 = vector.shape_cast %270 : vector<1x128x128xf32> to vector<128x128xf32>
    %cst_286 = arith.constant dense<0.000000e+00> : vector<128x16xf32>
    %272 = tpu.matmul %271, %269, %cst_286 {dimension_numbers = #tpu.dot_dimension_numbers<[1], [0], [0], [1], [0, 0, 1, 1], [], []>} : vector<128x128xf32>, vector<128x16xf32>, vector<128x16xf32> -> vector<128x16xf32>
    %c0_287 = arith.constant 0 : index
    %c0_288 = arith.constant 0 : index
    %c0_289 = arith.constant 0 : index
    %273 = vector.load %arg16[%c0_287, %c0_288, %c0_289] : memref<9x16x16xf32, #tpu.memory_space<vmem>>, vector<1x16x16xf32>
    %274 = vector.shape_cast %273 : vector<1x16x16xf32> to vector<16x16xf32>
    %cst_290 = arith.constant dense<0.000000e+00> : vector<128x16xf32>
    %275 = tpu.matmul %272, %274, %cst_290 {dimension_numbers = #tpu.dot_dimension_numbers<[1], [0], [0], [1], [0, 0, 1, 1], [], []>} : vector<128x16xf32>, vector<16x16xf32>, vector<128x16xf32> -> vector<128x16xf32>
    %c1_291 = arith.constant 1 : index
    %c0_292 = arith.constant 0 : index
    %c0_293 = arith.constant 0 : index
    %276 = vector.load %arg13[%c1_291, %c0_292, %c0_293] : memref<9x128x128xf32, #tpu.memory_space<vmem>>, vector<1x128x128xf32>
    %277 = vector.shape_cast %276 : vector<1x128x128xf32> to vector<128x128xf32>
    %cst_294 = arith.constant dense<0.000000e+00> : vector<128x16xf32>
    %278 = tpu.matmul %277, %269, %cst_294 {dimension_numbers = #tpu.dot_dimension_numbers<[1], [0], [0], [1], [0, 0, 1, 1], [], []>} : vector<128x128xf32>, vector<128x16xf32>, vector<128x16xf32> -> vector<128x16xf32>
    %c1_295 = arith.constant 1 : index
    %c0_296 = arith.constant 0 : index
    %c0_297 = arith.constant 0 : index
    %279 = vector.load %arg16[%c1_295, %c0_296, %c0_297] : memref<9x16x16xf32, #tpu.memory_space<vmem>>, vector<1x16x16xf32>
    %280 = vector.shape_cast %279 : vector<1x16x16xf32> to vector<16x16xf32>
    %cst_298 = arith.constant dense<0.000000e+00> : vector<128x16xf32>
    %281 = tpu.matmul %278, %280, %cst_298 {dimension_numbers = #tpu.dot_dimension_numbers<[1], [0], [0], [1], [0, 0, 1, 1], [], []>} : vector<128x16xf32>, vector<16x16xf32>, vector<128x16xf32> -> vector<128x16xf32>
    %282 = arith.addf %275, %281 : vector<128x16xf32>
    %c2_299 = arith.constant 2 : index
    %c0_300 = arith.constant 0 : index
    %c0_301 = arith.constant 0 : index
    %283 = vector.load %arg13[%c2_299, %c0_300, %c0_301] : memref<9x128x128xf32, #tpu.memory_space<vmem>>, vector<1x128x128xf32>
    %284 = vector.shape_cast %283 : vector<1x128x128xf32> to vector<128x128xf32>
    %cst_302 = arith.constant dense<0.000000e+00> : vector<128x16xf32>
    %285 = tpu.matmul %284, %269, %cst_302 {dimension_numbers = #tpu.dot_dimension_numbers<[1], [0], [0], [1], [0, 0, 1, 1], [], []>} : vector<128x128xf32>, vector<128x16xf32>, vector<128x16xf32> -> vector<128x16xf32>
    %c2_303 = arith.constant 2 : index
    %c0_304 = arith.constant 0 : index
    %c0_305 = arith.constant 0 : index
    %286 = vector.load %arg16[%c2_303, %c0_304, %c0_305] : memref<9x16x16xf32, #tpu.memory_space<vmem>>, vector<1x16x16xf32>
    %287 = vector.shape_cast %286 : vector<1x16x16xf32> to vector<16x16xf32>
    %cst_306 = arith.constant dense<0.000000e+00> : vector<128x16xf32>
    %288 = tpu.matmul %285, %287, %cst_306 {dimension_numbers = #tpu.dot_dimension_numbers<[1], [0], [0], [1], [0, 0, 1, 1], [], []>} : vector<128x16xf32>, vector<16x16xf32>, vector<128x16xf32> -> vector<128x16xf32>
    %289 = arith.addf %282, %288 : vector<128x16xf32>
    %c3_307 = arith.constant 3 : index
    %c0_308 = arith.constant 0 : index
    %c0_309 = arith.constant 0 : index
    %290 = vector.load %arg13[%c3_307, %c0_308, %c0_309] : memref<9x128x128xf32, #tpu.memory_space<vmem>>, vector<1x128x128xf32>
    %291 = vector.shape_cast %290 : vector<1x128x128xf32> to vector<128x128xf32>
    %cst_310 = arith.constant dense<0.000000e+00> : vector<128x16xf32>
    %292 = tpu.matmul %291, %269, %cst_310 {dimension_numbers = #tpu.dot_dimension_numbers<[1], [0], [0], [1], [0, 0, 1, 1], [], []>} : vector<128x128xf32>, vector<128x16xf32>, vector<128x16xf32> -> vector<128x16xf32>
    %c3_311 = arith.constant 3 : index
    %c0_312 = arith.constant 0 : index
    %c0_313 = arith.constant 0 : index
    %293 = vector.load %arg16[%c3_311, %c0_312, %c0_313] : memref<9x16x16xf32, #tpu.memory_space<vmem>>, vector<1x16x16xf32>
    %294 = vector.shape_cast %293 : vector<1x16x16xf32> to vector<16x16xf32>
    %cst_314 = arith.constant dense<0.000000e+00> : vector<128x16xf32>
    %295 = tpu.matmul %292, %294, %cst_314 {dimension_numbers = #tpu.dot_dimension_numbers<[1], [0], [0], [1], [0, 0, 1, 1], [], []>} : vector<128x16xf32>, vector<16x16xf32>, vector<128x16xf32> -> vector<128x16xf32>
    %296 = arith.addf %289, %295 : vector<128x16xf32>
    %c4_315 = arith.constant 4 : index
    %c0_316 = arith.constant 0 : index
    %c0_317 = arith.constant 0 : index
    %297 = vector.load %arg13[%c4_315, %c0_316, %c0_317] : memref<9x128x128xf32, #tpu.memory_space<vmem>>, vector<1x128x128xf32>
    %298 = vector.shape_cast %297 : vector<1x128x128xf32> to vector<128x128xf32>
    %cst_318 = arith.constant dense<0.000000e+00> : vector<128x16xf32>
    %299 = tpu.matmul %298, %269, %cst_318 {dimension_numbers = #tpu.dot_dimension_numbers<[1], [0], [0], [1], [0, 0, 1, 1], [], []>} : vector<128x128xf32>, vector<128x16xf32>, vector<128x16xf32> -> vector<128x16xf32>
    %c4_319 = arith.constant 4 : index
    %c0_320 = arith.constant 0 : index
    %c0_321 = arith.constant 0 : index
    %300 = vector.load %arg16[%c4_319, %c0_320, %c0_321] : memref<9x16x16xf32, #tpu.memory_space<vmem>>, vector<1x16x16xf32>
    %301 = vector.shape_cast %300 : vector<1x16x16xf32> to vector<16x16xf32>
    %cst_322 = arith.constant dense<0.000000e+00> : vector<128x16xf32>
    %302 = tpu.matmul %299, %301, %cst_322 {dimension_numbers = #tpu.dot_dimension_numbers<[1], [0], [0], [1], [0, 0, 1, 1], [], []>} : vector<128x16xf32>, vector<16x16xf32>, vector<128x16xf32> -> vector<128x16xf32>
    %303 = arith.addf %296, %302 : vector<128x16xf32>
    %c5_323 = arith.constant 5 : index
    %c0_324 = arith.constant 0 : index
    %c0_325 = arith.constant 0 : index
    %304 = vector.load %arg13[%c5_323, %c0_324, %c0_325] : memref<9x128x128xf32, #tpu.memory_space<vmem>>, vector<1x128x128xf32>
    %305 = vector.shape_cast %304 : vector<1x128x128xf32> to vector<128x128xf32>
    %cst_326 = arith.constant dense<0.000000e+00> : vector<128x16xf32>
    %306 = tpu.matmul %305, %269, %cst_326 {dimension_numbers = #tpu.dot_dimension_numbers<[1], [0], [0], [1], [0, 0, 1, 1], [], []>} : vector<128x128xf32>, vector<128x16xf32>, vector<128x16xf32> -> vector<128x16xf32>
    %c5_327 = arith.constant 5 : index
    %c0_328 = arith.constant 0 : index
    %c0_329 = arith.constant 0 : index
    %307 = vector.load %arg16[%c5_327, %c0_328, %c0_329] : memref<9x16x16xf32, #tpu.memory_space<vmem>>, vector<1x16x16xf32>
    %308 = vector.shape_cast %307 : vector<1x16x16xf32> to vector<16x16xf32>
    %cst_330 = arith.constant dense<0.000000e+00> : vector<128x16xf32>
    %309 = tpu.matmul %306, %308, %cst_330 {dimension_numbers = #tpu.dot_dimension_numbers<[1], [0], [0], [1], [0, 0, 1, 1], [], []>} : vector<128x16xf32>, vector<16x16xf32>, vector<128x16xf32> -> vector<128x16xf32>
    %310 = arith.addf %303, %309 : vector<128x16xf32>
    %c6_331 = arith.constant 6 : index
    %c0_332 = arith.constant 0 : index
    %c0_333 = arith.constant 0 : index
    %311 = vector.load %arg13[%c6_331, %c0_332, %c0_333] : memref<9x128x128xf32, #tpu.memory_space<vmem>>, vector<1x128x128xf32>
    %312 = vector.shape_cast %311 : vector<1x128x128xf32> to vector<128x128xf32>
    %cst_334 = arith.constant dense<0.000000e+00> : vector<128x16xf32>
    %313 = tpu.matmul %312, %269, %cst_334 {dimension_numbers = #tpu.dot_dimension_numbers<[1], [0], [0], [1], [0, 0, 1, 1], [], []>} : vector<128x128xf32>, vector<128x16xf32>, vector<128x16xf32> -> vector<128x16xf32>
    %c6_335 = arith.constant 6 : index
    %c0_336 = arith.constant 0 : index
    %c0_337 = arith.constant 0 : index
    %314 = vector.load %arg16[%c6_335, %c0_336, %c0_337] : memref<9x16x16xf32, #tpu.memory_space<vmem>>, vector<1x16x16xf32>
    %315 = vector.shape_cast %314 : vector<1x16x16xf32> to vector<16x16xf32>
    %cst_338 = arith.constant dense<0.000000e+00> : vector<128x16xf32>
    %316 = tpu.matmul %313, %315, %cst_338 {dimension_numbers = #tpu.dot_dimension_numbers<[1], [0], [0], [1], [0, 0, 1, 1], [], []>} : vector<128x16xf32>, vector<16x16xf32>, vector<128x16xf32> -> vector<128x16xf32>
    %317 = arith.addf %310, %316 : vector<128x16xf32>
    %c7_339 = arith.constant 7 : index
    %c0_340 = arith.constant 0 : index
    %c0_341 = arith.constant 0 : index
    %318 = vector.load %arg13[%c7_339, %c0_340, %c0_341] : memref<9x128x128xf32, #tpu.memory_space<vmem>>, vector<1x128x128xf32>
    %319 = vector.shape_cast %318 : vector<1x128x128xf32> to vector<128x128xf32>
    %cst_342 = arith.constant dense<0.000000e+00> : vector<128x16xf32>
    %320 = tpu.matmul %319, %269, %cst_342 {dimension_numbers = #tpu.dot_dimension_numbers<[1], [0], [0], [1], [0, 0, 1, 1], [], []>} : vector<128x128xf32>, vector<128x16xf32>, vector<128x16xf32> -> vector<128x16xf32>
    %c7_343 = arith.constant 7 : index
    %c0_344 = arith.constant 0 : index
    %c0_345 = arith.constant 0 : index
    %321 = vector.load %arg16[%c7_343, %c0_344, %c0_345] : memref<9x16x16xf32, #tpu.memory_space<vmem>>, vector<1x16x16xf32>
    %322 = vector.shape_cast %321 : vector<1x16x16xf32> to vector<16x16xf32>
    %cst_346 = arith.constant dense<0.000000e+00> : vector<128x16xf32>
    %323 = tpu.matmul %320, %322, %cst_346 {dimension_numbers = #tpu.dot_dimension_numbers<[1], [0], [0], [1], [0, 0, 1, 1], [], []>} : vector<128x16xf32>, vector<16x16xf32>, vector<128x16xf32> -> vector<128x16xf32>
    %324 = arith.addf %317, %323 : vector<128x16xf32>
    %c8_347 = arith.constant 8 : index
    %c0_348 = arith.constant 0 : index
    %c0_349 = arith.constant 0 : index
    %325 = vector.load %arg13[%c8_347, %c0_348, %c0_349] : memref<9x128x128xf32, #tpu.memory_space<vmem>>, vector<1x128x128xf32>
    %326 = vector.shape_cast %325 : vector<1x128x128xf32> to vector<128x128xf32>
    %cst_350 = arith.constant dense<0.000000e+00> : vector<128x16xf32>
    %327 = tpu.matmul %326, %269, %cst_350 {dimension_numbers = #tpu.dot_dimension_numbers<[1], [0], [0], [1], [0, 0, 1, 1], [], []>} : vector<128x128xf32>, vector<128x16xf32>, vector<128x16xf32> -> vector<128x16xf32>
    %c8_351 = arith.constant 8 : index
    %c0_352 = arith.constant 0 : index
    %c0_353 = arith.constant 0 : index
    %328 = vector.load %arg16[%c8_351, %c0_352, %c0_353] : memref<9x16x16xf32, #tpu.memory_space<vmem>>, vector<1x16x16xf32>
    %329 = vector.shape_cast %328 : vector<1x16x16xf32> to vector<16x16xf32>
    %cst_354 = arith.constant dense<0.000000e+00> : vector<128x16xf32>
    %330 = tpu.matmul %327, %329, %cst_354 {dimension_numbers = #tpu.dot_dimension_numbers<[1], [0], [0], [1], [0, 0, 1, 1], [], []>} : vector<128x16xf32>, vector<16x16xf32>, vector<128x16xf32> -> vector<128x16xf32>
    %331 = arith.addf %324, %330 : vector<128x16xf32>
    %332 = vector.extract_strided_slice %331 {offsets = [0, 0], sizes = [64, 16], strides = [1, 1]} : vector<128x16xf32> to vector<64x16xf32>
    %333 = vector.extract_strided_slice %202 {offsets = [0, 0], sizes = [1, 16], strides = [1, 1]} : vector<2x16xf32> to vector<1x16xf32>
    %334 = vector.broadcast %333 : vector<1x16xf32> to vector<64x16xf32>
    %335 = arith.addf %332, %334 : vector<64x16xf32>
    %cst_355 = arith.constant 0.000000e+00 : f32
    %336 = vector.broadcast %cst_355 : f32 to vector<64x16xf32>
    %337 = arith.maximumf %335, %336 : vector<64x16xf32>
    %c0_356 = arith.constant 0 : index
    %c0_357 = arith.constant 0 : index
    %338 = vector.load %arg17[%c0_356, %c0_357] : memref<24x16xf32, #tpu.memory_space<vmem>>, vector<24x16xf32>
    %cst_358 = arith.constant dense<0.000000e+00> : vector<24x64xf32>
    %339 = tpu.matmul %338, %337, %cst_358 {dimension_numbers = #tpu.dot_dimension_numbers<[1], [1], [0], [0], [0, 0, 1, 0], [], []>} : vector<24x16xf32>, vector<64x16xf32>, vector<24x64xf32> -> vector<24x64xf32>
    %c0_359 = arith.constant 0 : index
    %c0_360 = arith.constant 0 : index
    %340 = vector.load %arg18[%c0_359, %c0_360] : memref<24x1xf32, #tpu.memory_space<vmem>>, vector<24x1xf32>
    %341 = vector.broadcast %340 : vector<24x1xf32> to vector<24x64xf32>
    %342 = arith.addf %339, %341 : vector<24x64xf32>
    %cst_361 = arith.constant dense<0.000000e+00> : vector<24xf32>
    %343 = vector.multi_reduction <add>, %342, %cst_361 [1] : vector<24x64xf32> to vector<24xf32>
    %344 = vector.shape_cast %343 : vector<24xf32> to vector<24x1xf32>
    %cst_362 = arith.constant 6.400000e+01 : f32
    %345 = vector.broadcast %cst_362 : f32 to vector<24x1xf32>
    %346 = arith.divf %344, %345 : vector<24x1xf32>
    %347 = vector.broadcast %346 : vector<24x1xf32> to vector<24x64xf32>
    %348 = arith.subf %342, %347 : vector<24x64xf32>
    %349 = arith.mulf %348, %348 : vector<24x64xf32>
    %cst_363 = arith.constant dense<0.000000e+00> : vector<24xf32>
    %350 = vector.multi_reduction <add>, %349, %cst_363 [1] : vector<24x64xf32> to vector<24xf32>
    %351 = vector.shape_cast %350 : vector<24xf32> to vector<24x1xf32>
    %cst_364 = arith.constant 6.400000e+01 : f32
    %352 = vector.broadcast %cst_364 : f32 to vector<24x1xf32>
    %353 = arith.divf %351, %352 : vector<24x1xf32>
    %cst_365 = arith.constant 9.99999974E-6 : f32
    %354 = vector.broadcast %cst_365 : f32 to vector<24x1xf32>
    %355 = arith.addf %353, %354 : vector<24x1xf32>
    %356 = math.rsqrt %355 : vector<24x1xf32>
    %357 = vector.broadcast %356 : vector<24x1xf32> to vector<24x64xf32>
    %358 = arith.mulf %348, %357 : vector<24x64xf32>
    %c0_366 = arith.constant 0 : index
    %c0_367 = arith.constant 0 : index
    %359 = vector.load %arg19[%c0_366, %c0_367] : memref<1x64xf32, #tpu.memory_space<vmem>>, vector<1x64xf32>
    %360 = vector.broadcast %359 : vector<1x64xf32> to vector<24x64xf32>
    %361 = arith.mulf %358, %360 : vector<24x64xf32>
    %c0_368 = arith.constant 0 : index
    %c0_369 = arith.constant 0 : index
    %362 = vector.load %arg20[%c0_368, %c0_369] : memref<1x64xf32, #tpu.memory_space<vmem>>, vector<1x64xf32>
    %363 = vector.broadcast %362 : vector<1x64xf32> to vector<24x64xf32>
    %364 = arith.addf %361, %363 : vector<24x64xf32>
    %c0_370 = arith.constant 0 : index
    %c0_371 = arith.constant 0 : index
    %c0_372 = arith.constant 0 : index
    %365 = vector.load %arg21[%c0_370, %c0_371, %c0_372] : memref<2x24x64xf32, #tpu.memory_space<vmem>>, vector<1x24x64xf32>
    %366 = vector.shape_cast %365 : vector<1x24x64xf32> to vector<24x64xf32>
    %367 = vector.shape_cast %364 : vector<24x64xf32> to vector<1x24x64xf32>
    tpu.vector_store %arg21[%c0_370, %c0_371, %c0_372], %367 {strides = array<i32>} : memref<2x24x64xf32, #tpu.memory_space<vmem>>, vector<1x24x64xf32>,
    %368 = vector.extract_strided_slice %331 {offsets = [64, 0], sizes = [64, 16], strides = [1, 1]} : vector<128x16xf32> to vector<64x16xf32>
    %369 = vector.extract_strided_slice %202 {offsets = [1, 0], sizes = [1, 16], strides = [1, 1]} : vector<2x16xf32> to vector<1x16xf32>
    %370 = vector.broadcast %369 : vector<1x16xf32> to vector<64x16xf32>
    %371 = arith.addf %368, %370 : vector<64x16xf32>
    %cst_373 = arith.constant 0.000000e+00 : f32
    %372 = vector.broadcast %cst_373 : f32 to vector<64x16xf32>
    %373 = arith.maximumf %371, %372 : vector<64x16xf32>
    %c0_374 = arith.constant 0 : index
    %c0_375 = arith.constant 0 : index
    %374 = vector.load %arg17[%c0_374, %c0_375] : memref<24x16xf32, #tpu.memory_space<vmem>>, vector<24x16xf32>
    %cst_376 = arith.constant dense<0.000000e+00> : vector<24x64xf32>
    %375 = tpu.matmul %374, %373, %cst_376 {dimension_numbers = #tpu.dot_dimension_numbers<[1], [1], [0], [0], [0, 0, 1, 0], [], []>} : vector<24x16xf32>, vector<64x16xf32>, vector<24x64xf32> -> vector<24x64xf32>
    %c0_377 = arith.constant 0 : index
    %c0_378 = arith.constant 0 : index
    %376 = vector.load %arg18[%c0_377, %c0_378] : memref<24x1xf32, #tpu.memory_space<vmem>>, vector<24x1xf32>
    %377 = vector.broadcast %376 : vector<24x1xf32> to vector<24x64xf32>
    %378 = arith.addf %375, %377 : vector<24x64xf32>
    %cst_379 = arith.constant dense<0.000000e+00> : vector<24xf32>
    %379 = vector.multi_reduction <add>, %378, %cst_379 [1] : vector<24x64xf32> to vector<24xf32>
    %380 = vector.shape_cast %379 : vector<24xf32> to vector<24x1xf32>
    %cst_380 = arith.constant 6.400000e+01 : f32
    %381 = vector.broadcast %cst_380 : f32 to vector<24x1xf32>
    %382 = arith.divf %380, %381 : vector<24x1xf32>
    %383 = vector.broadcast %382 : vector<24x1xf32> to vector<24x64xf32>
    %384 = arith.subf %378, %383 : vector<24x64xf32>
    %385 = arith.mulf %384, %384 : vector<24x64xf32>
    %cst_381 = arith.constant dense<0.000000e+00> : vector<24xf32>
    %386 = vector.multi_reduction <add>, %385, %cst_381 [1] : vector<24x64xf32> to vector<24xf32>
    %387 = vector.shape_cast %386 : vector<24xf32> to vector<24x1xf32>
    %cst_382 = arith.constant 6.400000e+01 : f32
    %388 = vector.broadcast %cst_382 : f32 to vector<24x1xf32>
    %389 = arith.divf %387, %388 : vector<24x1xf32>
    %cst_383 = arith.constant 9.99999974E-6 : f32
    %390 = vector.broadcast %cst_383 : f32 to vector<24x1xf32>
    %391 = arith.addf %389, %390 : vector<24x1xf32>
    %392 = math.rsqrt %391 : vector<24x1xf32>
    %393 = vector.broadcast %392 : vector<24x1xf32> to vector<24x64xf32>
    %394 = arith.mulf %384, %393 : vector<24x64xf32>
    %c0_384 = arith.constant 0 : index
    %c0_385 = arith.constant 0 : index
    %395 = vector.load %arg19[%c0_384, %c0_385] : memref<1x64xf32, #tpu.memory_space<vmem>>, vector<1x64xf32>
    %396 = vector.broadcast %395 : vector<1x64xf32> to vector<24x64xf32>
    %397 = arith.mulf %394, %396 : vector<24x64xf32>
    %c0_386 = arith.constant 0 : index
    %c0_387 = arith.constant 0 : index
    %398 = vector.load %arg20[%c0_386, %c0_387] : memref<1x64xf32, #tpu.memory_space<vmem>>, vector<1x64xf32>
    %399 = vector.broadcast %398 : vector<1x64xf32> to vector<24x64xf32>
    %400 = arith.addf %397, %399 : vector<24x64xf32>
    %c1_388 = arith.constant 1 : index
    %c0_389 = arith.constant 0 : index
    %c0_390 = arith.constant 0 : index
    %401 = vector.load %arg21[%c1_388, %c0_389, %c0_390] : memref<2x24x64xf32, #tpu.memory_space<vmem>>, vector<1x24x64xf32>
    %402 = vector.shape_cast %401 : vector<1x24x64xf32> to vector<24x64xf32>
    %403 = vector.shape_cast %400 : vector<24x64xf32> to vector<1x24x64xf32>
    tpu.vector_store %arg21[%c1_388, %c0_389, %c0_390], %403 {strides = array<i32>} : memref<2x24x64xf32, #tpu.memory_space<vmem>>, vector<1x24x64xf32>,
    return
  }
}

</mosaic_0001>

<bundles_post_ra>
// kernel: coeffs_forward.1
= control target key start
LH: loop header
LB: loop body
LE: loop exit
PB: predicated region body
PF: predicated region fallthrough
CT: control target
= control target key end

     0   :  { %s19842_s0 = inlined_call_operand.vmem [shape: f32[128,27], index: 0, kind: input, shape index: {}]   ;;  %s19843_s1 = inlined_call_operand.vmem [shape: f32[27,2], index: 1, kind: input, shape index: {}]   ;;  %s19844_s2 = inlined_call_operand.vmem [shape: f32[1,2], index: 2, kind: input, shape index: {}]   ;;  %s19845_s3 = inlined_call_operand.vmem [shape: f32[9,32,128], index: 3, kind: input, shape index: {}]   ;;  %s19846_s4 = inlined_call_operand.vmem [shape: f32[9,2,16], index: 4, kind: input, shape index: {}]   ;;  %s19847_s5 = inlined_call_operand.vmem [shape: f32[1,16], index: 5, kind: input, shape index: {}]   ;;  %s19848_s6 = inlined_call_operand.vmem [shape: f32[16,2,32], index: 6, kind: input, shape index: {}]   ;;  %s19849_s7 = inlined_call_operand.vmem [shape: f32[16,16,64], index: 7, kind: input, shape index: {}]   ;;  %s19850_s8 = inlined_call_operand.vmem [shape: f32[1,64], index: 8, kind: input, shape index: {}]   ;;  %s19851_s9 = inlined_call_operand.vmem [shape: f32[64,32], index: 9, kind: input, shape index: {}]   ;;  %s19852_s10 = inlined_call_operand.vmem [shape: f32[1,32], index: 10, kind: input, shape index: {}]   ;;  %s19853_s11 = inlined_call_operand.vmem [shape: f32[32,16], index: 11, kind: input, shape index: {}]   ;;  %s19854_s12 = inlined_call_operand.vmem [shape: f32[1,16], index: 12, kind: input, shape index: {}]   ;;  %s19855_s13 = inlined_call_operand.vmem [shape: f32[9,128,128], index: 13, kind: input, shape index: {}]   ;;  %s19856_s14 = inlined_call_operand.vmem [shape: f32[9,2,16], index: 14, kind: input, shape index: {}]   ;;  %s19857_s15 = inlined_call_operand.vmem [shape: f32[1,16], index: 15, kind: input, shape index: {}]   ;;  %s19858_s16 = inlined_call_operand.vmem [shape: f32[9,16,16], index: 16, kind: input, shape index: {}]   ;;  %s19859_s17 = inlined_call_operand.vmem [shape: f32[24,16], index: 17, kind: input, shape index: {}]   ;;  %s19860_s18 = inlined_call_operand.vmem [shape: f32[24,1], index: 18, kind: input, shape index: {}]   ;;  %s19861_s19 = inlined_call_operand.vmem [shape: f32[1,64], index: 19, kind: input, shape index: {}]   ;;  %s19862_s20 = inlined_call_operand.vmem [shape: f32[1,64], index: 20, kind: input, shape index: {}]   ;;  %s19863_s21 = inlined_call_operand.hbm [shape: f32[2,24,64], index: 21, kind: output, shape index: {}]  }
   0x1   :  { %19870 = sst [smem:[#allocation39_spill]] %s19842_s0 }
   0x2   :  { %19871 = sst [smem:[#allocation40_spill]] %s19843_s1 }
   0x3   :  { %19872 = sst [smem:[#allocation41_spill]] %s19844_s2 }
   0x4   :  { %19873 = sst [smem:[#allocation42_spill]] %s19845_s3 }
   0x5   :  { %19874 = sst [smem:[#allocation43_spill]] %s19846_s4 }
   0x6   :  { %19875 = sst [smem:[#allocation44_spill]] %s19847_s5 }
   0x7   :  { %s19876_s26 = sld [smem:[#allocation40_spill]]  ;;  %vm145_vm0 = vcmask 1042432   ;;  %vm96_vm1 = vcmask 220160  }
   0x8   :  { %s19877_s0 = sld [smem:[#allocation39_spill]] }
   0xd   :  { %v88_v0 = vld [vmem:[%s19876_s26 + $0x18] sm:$0x7]  ;;  %v87_v1 = vld [vmem:[%s19876_s26 + $0x10] sm:$0xff]  ;;  %v86_v3 = vld [vmem:[%s19876_s26 + $0x8] sm:$0xff] }
   0xe   :  { %13675 = vmatprep.subr.msk.mxu0 %vm145_vm0, %v88_v0  ;;  %v69_v2 = vld [vmem:[%s19877_s0] sm:$0xff]  ;;  %v70_v5 = vld [vmem:[%s19877_s0 + $0x8] sm:$0xff] }
   0xf   :  { %13676 = vmatpush3.msk.msra.mxu0 %vm145_vm0, %v88_v0  ;;  %13683 = vmatprep.mubr.msk.f32.mxu0 %vm96_vm1, %v69_v2  ;;  %v85_v4 = vld [vmem:[%s19876_s26] sm:$0xff] }
  0x10   :  { %13677 = vmatprep.subr.mxu0 %v87_v1 }
  0x11   :  { %13678 = vmatpush3.msra.mxu0 %v87_v1 }
  0x12   :  { %13679 = vmatprep.subr.mxu0 %v86_v3 }
  0x13   :  { %13680 = vmatpush3.msra.mxu0 %v86_v3 }
  0x14   :  { %26 = vsyncpa [#allocation3], 0  ;;  %13681 = vmatprep.subr.mxu0 %v85_v4  ;;  %v71_v6 = vld [vmem:[%s19877_s0 + $0x10] sm:$0xff]  ;;  %v72_v7 = vld [vmem:[%s19877_s0 + $0x18] sm:$0xff]  ;;  %s19878_s25 = sld [smem:[#allocation42_spill]]  ;;  %vm505_vm2 = vcmask 1041408  }
  0x15   :  { %13682 = vmatpush3.msra.mxu0 %v85_v4  ;;  %v73_v8 = vld [vmem:[%s19877_s0 + $0x20] sm:$0xff]  ;;  %v74_v9 = vld [vmem:[%s19877_s0 + $0x28] sm:$0xff]  ;;  %v75_v10 = vld [vmem:[%s19877_s0 + $0x30] sm:$0xff]  ;;  %s19879_s28 = sld [smem:[#allocation41_spill]]  ;;  %vm492_vm3 = vcmask 15360   ;;  %vm16170_vm4 = vmmov 0  }
  0x16   :  { %13684 = vmatmul.mubr.msk.f32.vlgmr.msra.gmra.mxu0 %vm96_vm1, %v70_v5  ;;  %v76_v11 = vld [vmem:[%s19877_s0 + $0x38] sm:$0xff]  ;;  %v77_v12 = vld [vmem:[%s19877_s0 + $0x40] sm:$0xff]  ;;  %v78_v13 = vld [vmem:[%s19877_s0 + $0x48] sm:$0xff]  ;;  %s19880_s1 = sld [smem:[#allocation43_spill]]  ;;  %vm2082_vm5 = vcmask 261120   ;;  %vm2236_vm6 = vcmask 130048  }
  0x17   :  { %13686 = vmatprep.mubr.msk.f32.mxu0 %vm96_vm1, %v71_v6  ;;  %v79_v14 = vld [vmem:[%s19877_s0 + $0x50] sm:$0xff]  ;;  %v80_v15 = vld [vmem:[%s19877_s0 + $0x58] sm:$0xff]  ;;  %v81_v16 = vld [vmem:[%s19877_s0 + $0x60] sm:$0xff]  ;;  %s19881_s27 = sld [smem:[#allocation44_spill]]  ;;  %vm4535_vm7 = vcmask 523264  }
  0x18   :  { %v82_v17 = vld [vmem:[%s19877_s0 + $0x68] sm:$0xff]  ;;  %v83_v18 = vld [vmem:[%s19877_s0 + $0x70] sm:$0xff]  ;;  %v84_v19 = vld [vmem:[%s19877_s0 + $0x78] sm:$0xff] }
  0x1a   :  { %13687 = vmatmul.mubr.msk.f32.gmra.mxu0 %vm96_vm1, %v72_v7  ;;  %v310_v20 = vld [vmem:[%s19878_s25] sm:$0xff]  ;;  %v311_v7 = vld [vmem:[%s19878_s25 + $0x8] sm:$0xff] }
  0x1b   :  { %13689 = vmatprep.mubr.msk.f32.mxu0 %vm96_vm1, %v73_v8  ;;  %v11731_v21 = vld [vmem:[%s19878_s25 + $0x20] sm:$0xff]  ;;  %13739 = vmatprep.mubr.f32.mxu1 %v310_v20  ;;  %v11732_v8 = vld [vmem:[%s19878_s25 + $0x28] sm:$0xff] }
  0x1c   :  { %v16380_v36 = vld [vmem:[%s19879_s28] ss:$0 sm:$0xff] }
  0x1e   :  { %13690 = vmatmul.mubr.msk.f32.gmra.mxu0 %vm96_vm1, %v74_v9  ;;  %v11735_v9 = vld [vmem:[%s19880_s1 + $0x2] sm:$0x3] }
  0x1f   :  { %13692 = vmatprep.mubr.msk.f32.mxu0 %vm96_vm1, %v75_v10  ;;  %v312_v10 = vld [vmem:[%s19878_s25 + $0x10] sm:$0xff] }
  0x22   :  { %13693 = vmatmul.mubr.msk.f32.gmra.mxu0 %vm96_vm1, %v76_v11  ;;  %v11733_v11 = vld [vmem:[%s19878_s25 + $0x30] sm:$0xff] }
  0x23   :  { %13695 = vmatprep.mubr.msk.f32.mxu0 %vm96_vm1, %v77_v12  ;;  %v313_v12 = vld [vmem:[%s19878_s25 + $0x18] sm:$0xff] }
  0x26   :  { %13696 = vmatmul.mubr.msk.f32.gmra.mxu0 %vm96_vm1, %v78_v13  ;;  %v11734_v13 = vld [vmem:[%s19878_s25 + $0x38] sm:$0xff] }
  0x27   :  { %13698 = vmatprep.mubr.msk.f32.mxu0 %vm96_vm1, %v79_v14  ;;  %v399_v14 = vld [vmem:[%s19880_s1] sm:$0x3] }
  0x2a   :  { %13699 = vmatmul.mubr.msk.f32.gmra.mxu0 %vm96_vm1, %v80_v15  ;;  %v11750_v15 = vld [vmem:[%s19880_s1 + $0x4] sm:$0x3] }
  0x2b   :  { %13701 = vmatprep.mubr.msk.f32.mxu0 %vm96_vm1, %v81_v16 }
  0x2e   :  { %13702 = vmatmul.mubr.msk.f32.gmra.mxu0 %vm96_vm1, %v82_v17 }
  0x2f   :  { %13704 = vmatprep.mubr.msk.f32.mxu0 %vm96_vm1, %v83_v18 }
  0x32   :  { %13705 = vmatmul.mubr.msk.f32.gmra.mxu0 %vm96_vm1, %v84_v19 }
  0x33   :  { %13777 = vmatprep.mubr.f32.mxu0 %v11731_v21 }
  0xd6   :  { %v16367_v22 = vpop.f32.mrf.mxu0 }
  0xd7   :  { %v221_v1 = vadd.f32 %v16367_v22, %v16380_v36 }
  0xd8   :  { %v16369_v23 = vpop.f32.mrf.mxu0 }
  0xd9   :  { %v216_v3 = vadd.f32 %v16380_v36, %v16369_v23  ;;  %v16483_v5 = vmax.f32 %v221_v1, 0.0 }
  0xda   :  { %v16371_v24 = vpop.f32.mrf.mxu0 }
  0xdb   :  { %v231_v61 = vadd.f32 %v16371_v24, %v16380_v36  ;;  %v16489_v6 = vmax.f32 %v216_v3, 0.0  ;;  %v11746_v24 = vld [vmem:[%s19878_s25 + $0x40] sm:$0xff] }
  0xdc   :  { %v16373_v25 = vpop.f32.mrf.mxu0 }
  0xdd   :  { %v226_v63 = vadd.f32 %v16380_v36, %v16373_v25  ;;  %v16469_v2 = vmax.f32 %v231_v61, 0.0  ;;  %v11747_v25 = vld [vmem:[%s19878_s25 + $0x48] sm:$0xff] }
  0xde   :  { %v13691_v26 = vpop.f32.mrf.mxu0 }
  0xdf   :  { %v241_v57 = vadd.f32 %v13691_v26, %v16380_v36  ;;  %v16477_v4 = vmax.f32 %v226_v63, 0.0  ;;  %v11760_v26 = vld [vmem:[%s19880_s1 + $0x6] sm:$0x3] }
  0xe0   :  { %v16375_v27 = vpop.f32.mrf.mxu0 }
  0xe1   :  { %v236_v59 = vadd.f32 %v16380_v36, %v16375_v27  ;;  %v16453_v62 = vmax.f32 %v241_v57, 0.0  ;;  %v11748_v27 = vld [vmem:[%s19878_s25 + $0x50] sm:$0xff] }
  0xe2   :  { %v13694_v28 = vpop.f32.mrf.mxu0 }
  0xe3   :  { %v251_v53 = vadd.f32 %v13694_v28, %v16380_v36  ;;  %v16461_v0 = vmax.f32 %v236_v59, 0.0  ;;  %v11749_v28 = vld [vmem:[%s19878_s25 + $0x58] sm:$0xff] }
  0xe4   :  { %v245_v29 = vpop.f32.mrf.mxu0 }
  0xe5   :  { %v246_v55 = vadd.f32 %v16380_v36, %v245_v29  ;;  %v16437_v58 = vmax.f32 %v251_v53, 0.0 }
  0xe6   :  { %v13697_v30 = vpop.f32.mrf.mxu0 }
  0xe7   :  { %v261_v49 = vadd.f32 %v13697_v30, %v16380_v36  ;;  %v16445_v60 = vmax.f32 %v246_v55, 0.0 }
  0xe8   :  { %v255_v31 = vpop.f32.mrf.mxu0 }
  0xe9   :  { %v256_v51 = vadd.f32 %v16380_v36, %v255_v31  ;;  %v16423_v54 = vmax.f32 %v261_v49, 0.0  ;;  %v11758_v49 = vld [vmem:[%s19878_s25 + $0x70] sm:$0xff] }
  0xea   :  { %v13700_v32 = vpop.f32.mrf.mxu0 }
  0xeb   :  { %v271_v45 = vadd.f32 %v13700_v32, %v16380_v36  ;;  %v16430_v56 = vmax.f32 %v256_v51, 0.0  ;;  %v11759_v51 = vld [vmem:[%s19878_s25 + $0x78] sm:$0xff] }
  0xec   :  { %v265_v33 = vpop.f32.mrf.mxu0 }
  0xed   :  { %v266_v47 = vadd.f32 %v16380_v36, %v265_v33  ;;  %v16409_v50 = vmax.f32 %v271_v45, 0.0  ;;  %v11757_v45 = vld [vmem:[%s19878_s25 + $0x68] sm:$0xff] }
  0xee   :  { %v13703_v34 = vpop.f32.mrf.mxu0 }
  0xef   :  { %v281_v40 = vadd.f32 %v13703_v34, %v16380_v36  ;;  %v16416_v52 = vmax.f32 %v266_v47, 0.0  ;;  %v11770_v47 = vld [vmem:[%s19880_s1 + $0x8] sm:$0x3] }
  0xf0   :  { %v275_v35 = vpop.f32.mrf.mxu0 }
  0xf1   :  { %v276_v43 = vadd.f32 %v16380_v36, %v275_v35  ;;  %v16395_v46 = vmax.f32 %v281_v40, 0.0 }
  0xf2   :  { %v13706_v37 = vpop.f32.mrf.mxu0 }
  0xf3   :  { %v291_v38 = vadd.f32 %v13706_v37, %v16380_v36  ;;  %v16402_v48 = vmax.f32 %v276_v43, 0.0  ;;  %v11756_v43 = vld [vmem:[%s19878_s25 + $0x60] sm:$0xff] }
  0xf4   :  { %v285_v39 = vpop.f32.mrf.mxu0 }
  0xf5   :  { %v16384_v41 = vmax.f32 %v291_v38, 0.0  ;;  %v286_v42 = vadd.f32 %v16380_v36, %v285_v39 }
  0xf7   :  { %v16388_v44 = vmax.f32 %v286_v42, 0.0  ;;  %13707 = vmatprep.subr.mxu1 %v16384_v41  ;;  %13745 = vmatprep.subr.mxu0 %v16384_v41 }
  0xf8   :  { %13708 = vmatpush3.msra.mxu1 %v16384_v41  ;;  %13746 = vmatpush3.msra.mxu0 %v16384_v41 }
  0xf9   :  { %13709 = vmatprep.subr.mxu1 %v16388_v44  ;;  %13747 = vmatprep.subr.mxu0 %v16388_v44 }
  0xfa   :  { %13710 = vmatpush3.msra.mxu1 %v16388_v44  ;;  %13748 = vmatpush3.msra.mxu0 %v16388_v44 }
  0xfb   :  { %13711 = vmatprep.subr.mxu1 %v16395_v46  ;;  %13749 = vmatprep.subr.mxu0 %v16395_v46 }
  0xfc   :  { %13712 = vmatpush3.msra.mxu1 %v16395_v46  ;;  %13750 = vmatpush3.msra.mxu0 %v16395_v46 }
  0xfd   :  { %13713 = vmatprep.subr.mxu1 %v16402_v48  ;;  %13751 = vmatprep.subr.mxu0 %v16402_v48 }
  0xfe   :  { %13714 = vmatpush3.msra.mxu1 %v16402_v48  ;;  %13752 = vmatpush3.msra.mxu0 %v16402_v48 }
  0xff   :  { %13715 = vmatprep.subr.mxu1 %v16409_v50  ;;  %13753 = vmatprep.subr.mxu0 %v16409_v50 }
 0x100   :  { %13716 = vmatpush3.msra.mxu1 %v16409_v50  ;;  %13754 = vmatpush3.msra.mxu0 %v16409_v50 }
 0x101   :  { %13717 = vmatprep.subr.mxu1 %v16416_v52  ;;  %13755 = vmatprep.subr.mxu0 %v16416_v52 }
 0x102   :  { %13718 = vmatpush3.msra.mxu1 %v16416_v52  ;;  %13756 = vmatpush3.msra.mxu0 %v16416_v52 }
 0x103   :  { %13719 = vmatprep.subr.mxu1 %v16423_v54  ;;  %13757 = vmatprep.subr.mxu0 %v16423_v54 }
 0x104   :  { %13720 = vmatpush3.msra.mxu1 %v16423_v54  ;;  %13758 = vmatpush3.msra.mxu0 %v16423_v54 }
 0x105   :  { %13721 = vmatprep.subr.mxu1 %v16430_v56  ;;  %13759 = vmatprep.subr.mxu0 %v16430_v56 }
 0x106   :  { %13722 = vmatpush3.msra.mxu1 %v16430_v56  ;;  %13760 = vmatpush3.msra.mxu0 %v16430_v56 }
 0x107   :  { %13723 = vmatprep.subr.mxu1 %v16437_v58  ;;  %13761 = vmatprep.subr.mxu0 %v16437_v58 }
 0x108   :  { %13724 = vmatpush3.msra.mxu1 %v16437_v58  ;;  %13762 = vmatpush3.msra.mxu0 %v16437_v58 }
 0x109   :  { %13725 = vmatprep.subr.mxu1 %v16445_v60  ;;  %13763 = vmatprep.subr.mxu0 %v16445_v60 }
 0x10a   :  { %13726 = vmatpush3.msra.mxu1 %v16445_v60  ;;  %13764 = vmatpush3.msra.mxu0 %v16445_v60 }
 0x10b   :  { %13727 = vmatprep.subr.mxu1 %v16453_v62  ;;  %13765 = vmatprep.subr.mxu0 %v16453_v62 }
 0x10c   :  { %13728 = vmatpush3.msra.mxu1 %v16453_v62  ;;  %13766 = vmatpush3.msra.mxu0 %v16453_v62 }
 0x10d   :  { %13729 = vmatprep.subr.mxu1 %v16461_v0  ;;  %13767 = vmatprep.subr.mxu0 %v16461_v0 }
 0x10e   :  { %13730 = vmatpush3.msra.mxu1 %v16461_v0  ;;  %13768 = vmatpush3.msra.mxu0 %v16461_v0 }
 0x10f   :  { %13731 = vmatprep.subr.mxu1 %v16469_v2  ;;  %13769 = vmatprep.subr.mxu0 %v16469_v2 }
 0x110   :  { %13732 = vmatpush3.msra.mxu1 %v16469_v2  ;;  %13770 = vmatpush3.msra.mxu0 %v16469_v2 }
 0x111   :  { %13733 = vmatprep.subr.mxu1 %v16477_v4  ;;  %13771 = vmatprep.subr.mxu0 %v16477_v4 }
 0x112   :  { %13734 = vmatpush3.msra.mxu1 %v16477_v4  ;;  %13772 = vmatpush3.msra.mxu0 %v16477_v4 }
 0x113   :  { %13735 = vmatprep.subr.mxu1 %v16483_v5  ;;  %13773 = vmatprep.subr.mxu0 %v16483_v5 }
 0x114   :  { %13736 = vmatpush3.msra.mxu1 %v16483_v5  ;;  %13774 = vmatpush3.msra.mxu0 %v16483_v5 }
 0x115   :  { %13737 = vmatprep.subr.mxu1 %v16489_v6  ;;  %13775 = vmatprep.subr.mxu0 %v16489_v6 }
 0x116   :  { %13738 = vmatpush3.msra.mxu1 %v16489_v6  ;;  %13776 = vmatpush3.msra.mxu0 %v16489_v6 }
 0x117   :  { %13740 = vmatmul.mubr.f32.vlgmr.msra.gmra.mxu1 %v311_v7  ;;  %13778 = vmatmul.mubr.f32.vlgmr.msra.gmra.mxu0 %v11732_v8 }
 0x118   :  { %13783 = vmatprep.subr.msk.mxu1 %vm505_vm2, %v11735_v9  ;;  %13742 = vmatprep.mubr.f32.mxu1 %v312_v10  ;;  %v11766_v10 = vld [vmem:[%s19878_s25 + $0x80] sm:$0xff] }
 0x119   :  { %13784 = vmatpush3.msk.msra.mxu1 %vm505_vm2, %v11735_v9  ;;  %13780 = vmatprep.mubr.f32.mxu0 %v11733_v11  ;;  %v11767_v11 = vld [vmem:[%s19878_s25 + $0x88] sm:$0xff] }
 0x11a   :  { %13799 = vmatprep.subr.mxu1 %v16384_v41  ;;  %13791 = vmatprep.subr.msk.mxu0 %vm505_vm2, %v399_v14 }
 0x11b   :  { %13743 = vmatmul.mubr.f32.gmra.mxu1 %v313_v12  ;;  %13781 = vmatmul.mubr.f32.gmra.mxu0 %v11734_v13  ;;  %v11780_v12 = vld [vmem:[%s19880_s1 + $0xa] sm:$0x3]  ;;  %v11768_v13 = vld [vmem:[%s19878_s25 + $0x90] sm:$0xff] }
 0x11c   :  { %13792 = vmatpush3.msk.msra.mxu0 %vm505_vm2, %v399_v14  ;;  %v11769_v14 = vld [vmem:[%s19878_s25 + $0x98] sm:$0xff] }
 0x11d   :  { %13837 = vmatprep.subr.msk.mxu0 %vm505_vm2, %v11750_v15 }
 0x1d7   :  { %v13741_v16 = vpop.f32.mrf.mxu1  ;;  %v13779_v17 = vpop.f32.mrf.mxu0 }
 0x1d9   :  { %v380_v18 = vpop.f32.mrf.mxu1  ;;  %v471_v19 = vpop.f32.mrf.mxu0 }
 0x1da   :  { %13785 = vmatprep.mubr.msk.f32.mxu1 %vm492_vm3, %v471_v19  ;;  %13793 = vmatprep.mubr.msk.f32.mxu0 %vm492_vm3, %v380_v18 }
 0x1db   :  { %13786 = vmatmul.mubr.msk.f32.vlgmr.msra.gmra.mxu1 %vm492_vm3, %v13779_v17  ;;  %13794 = vmatmul.mubr.msk.f32.vlgmr.msra.gmra.mxu0 %vm492_vm3, %v13741_v16  ;;  %v13744_v20 = vpop.f32.mrf.mxu1  ;;  %v13782_v21 = vpop.f32.mrf.mxu0 }
 0x1dc   :  { %13800 = vmatpush3.msra.mxu1 %v16384_v41  ;;  %13838 = vmatpush3.msk.msra.mxu0 %vm505_vm2, %v11750_v15 }
 0x1dd   :  { %13801 = vmatprep.subr.mxu1 %v16388_v44  ;;  %13845 = vmatprep.subr.mxu0 %v16384_v41  ;;  %v390_v22 = vpop.f32.mrf.mxu1  ;;  %v481_v23 = vpop.f32.mrf.mxu0 }
 0x1de   :  { %13802 = vmatpush3.msra.mxu1 %v16388_v44  ;;  %13788 = vmatprep.mubr.msk.f32.mxu1 %vm492_vm3, %v481_v23 }
 0x1df   :  { %13803 = vmatprep.subr.mxu1 %v16395_v46  ;;  %13796 = vmatprep.mubr.msk.f32.mxu0 %vm492_vm3, %v390_v22 }
 0x1e0   :  { %13804 = vmatpush3.msra.mxu1 %v16395_v46  ;;  %13797 = vmatmul.mubr.msk.f32.gmra.mxu0 %vm492_vm3, %v13744_v20 }
 0x1e1   :  { %13805 = vmatprep.subr.mxu1 %v16402_v48  ;;  %13789 = vmatmul.mubr.msk.f32.gmra.mxu1 %vm492_vm3, %v13782_v21 }
 0x1e2   :  { %13806 = vmatpush3.msra.mxu1 %v16402_v48  ;;  %13831 = vmatprep.mubr.f32.mxu1 %v11746_v24 }
 0x1e3   :  { %13807 = vmatprep.subr.mxu1 %v16409_v50 }
 0x1e4   :  { %13808 = vmatpush3.msra.mxu1 %v16409_v50 }
 0x1e5   :  { %13809 = vmatprep.subr.mxu1 %v16416_v52 }
 0x1e6   :  { %13810 = vmatpush3.msra.mxu1 %v16416_v52 }
 0x1e7   :  { %13811 = vmatprep.subr.mxu1 %v16423_v54 }
 0x1e8   :  { %13812 = vmatpush3.msra.mxu1 %v16423_v54 }
 0x1e9   :  { %13813 = vmatprep.subr.mxu1 %v16430_v56 }
 0x1ea   :  { %13814 = vmatpush3.msra.mxu1 %v16430_v56 }
 0x1eb   :  { %13815 = vmatprep.subr.mxu1 %v16437_v58 }
 0x1ec   :  { %13816 = vmatpush3.msra.mxu1 %v16437_v58 }
 0x1ed   :  { %13817 = vmatprep.subr.mxu1 %v16445_v60 }
 0x1ee   :  { %13818 = vmatpush3.msra.mxu1 %v16445_v60 }
 0x1ef   :  { %13819 = vmatprep.subr.mxu1 %v16453_v62 }
 0x1f0   :  { %13820 = vmatpush3.msra.mxu1 %v16453_v62 }
 0x1f1   :  { %13821 = vmatprep.subr.mxu1 %v16461_v0 }
 0x1f2   :  { %13822 = vmatpush3.msra.mxu1 %v16461_v0 }
 0x1f3   :  { %13823 = vmatprep.subr.mxu1 %v16469_v2 }
 0x1f4   :  { %13824 = vmatpush3.msra.mxu1 %v16469_v2 }
 0x1f5   :  { %13825 = vmatprep.subr.mxu1 %v16477_v4 }
 0x1f6   :  { %13826 = vmatpush3.msra.mxu1 %v16477_v4 }
 0x1f7   :  { %13827 = vmatprep.subr.mxu1 %v16483_v5 }
 0x1f8   :  { %13828 = vmatpush3.msra.mxu1 %v16483_v5 }
 0x1f9   :  { %13829 = vmatprep.subr.mxu1 %v16489_v6 }
 0x1fa   :  { %13830 = vmatpush3.msra.mxu1 %v16489_v6 }
 0x1fb   :  { %13832 = vmatmul.mubr.f32.vlgmr.msra.gmra.mxu1 %v11747_v25  ;;  %13883 = vmatprep.subr.msk.mxu1 %vm505_vm2, %v11760_v26  ;;  %v11776_v25 = vld [vmem:[%s19878_s25 + $0xa0] sm:$0xff] }
 0x1fc   :  { %13884 = vmatpush3.msk.msra.mxu1 %vm505_vm2, %v11760_v26  ;;  %13834 = vmatprep.mubr.f32.mxu1 %v11748_v27  ;;  %v11777_v26 = vld [vmem:[%s19878_s25 + $0xa8] sm:$0xff] }
 0x1fd   :  { %13891 = vmatprep.subr.mxu1 %v16384_v41  ;;  %v11790_v27 = vld [vmem:[%s19880_s1 + $0xc] sm:$0x3] }
 0x1ff   :  { %13835 = vmatmul.mubr.f32.gmra.mxu1 %v11749_v28  ;;  %v11778_v28 = vld [vmem:[%s19878_s25 + $0xb0] sm:$0xff] }
 0x29b   :  { %v13787_v29 = vpop.f32.mrf.mxu1  ;;  %v13795_v30 = vpop.f32.mrf.mxu0 }
 0x29c   :  { %v681_v31 = vadd.f32 %v13795_v30, %v13787_v29  ;;  %v11779_v29 = vld [vmem:[%s19878_s25 + $0xb8] sm:$0xff] }
 0x29d   :  { %v16591_v32 = vpop.f32.mrf.mxu1  ;;  %v16593_v33 = vpop.f32.mrf.mxu0 }
 0x2a0   :  { %v13798_v35 = vpop.f32.mrf.mxu0 }
 0x2a1   :  { %v13790_v34 = vpop.f32.mrf.mxu1 }
 0x2a2   :  { %v691_v36 = vadd.f32 %v13798_v35, %v13790_v34  ;;  %v16650_v53 = vpop.f32.mrf.mxu0 }
 0x2a3   :  { %v16595_v37 = vpop.f32.mrf.mxu1 }
 0x2bb   :  { %v13833_v38 = vpop.f32.mrf.mxu1 }
 0x2bd   :  { %v765_v39 = vpop.f32.mrf.mxu1 }
 0x2be   :  { %13839 = vmatprep.mubr.msk.f32.mxu0 %vm492_vm3, %v765_v39 }
 0x2bf   :  { %v13836_v40 = vpop.f32.mrf.mxu1  ;;  %13840 = vmatmul.mubr.msk.f32.vlgmr.msra.gmra.mxu0 %vm492_vm3, %v13833_v38 }
 0x2c0   :  { %13846 = vmatpush3.msra.mxu0 %v16384_v41 }
 0x2c1   :  { %13847 = vmatprep.subr.mxu0 %v16388_v44  ;;  %v775_v42 = vpop.f32.mrf.mxu1 }
 0x2c2   :  { %13848 = vmatpush3.msra.mxu0 %v16388_v44  ;;  %13842 = vmatprep.mubr.msk.f32.mxu0 %vm492_vm3, %v775_v42 }
 0x2c3   :  { %13849 = vmatprep.subr.mxu0 %v16395_v46  ;;  %13843 = vmatmul.mubr.msk.f32.gmra.mxu0 %vm492_vm3, %v13836_v40 }
 0x2c4   :  { %13850 = vmatpush3.msra.mxu0 %v16395_v46  ;;  %13877 = vmatprep.mubr.f32.mxu0 %v11756_v43 }
 0x2c5   :  { %13851 = vmatprep.subr.mxu0 %v16402_v48 }
 0x2c6   :  { %13852 = vmatpush3.msra.mxu0 %v16402_v48 }
 0x2c7   :  { %13853 = vmatprep.subr.mxu0 %v16409_v50 }
 0x2c8   :  { %13854 = vmatpush3.msra.mxu0 %v16409_v50 }
 0x2c9   :  { %13855 = vmatprep.subr.mxu0 %v16416_v52 }
 0x2ca   :  { %13856 = vmatpush3.msra.mxu0 %v16416_v52 }
 0x2cb   :  { %13857 = vmatprep.subr.mxu0 %v16423_v54 }
 0x2cc   :  { %13858 = vmatpush3.msra.mxu0 %v16423_v54 }
 0x2cd   :  { %13859 = vmatprep.subr.mxu0 %v16430_v56 }
 0x2ce   :  { %13860 = vmatpush3.msra.mxu0 %v16430_v56 }
 0x2cf   :  { %13861 = vmatprep.subr.mxu0 %v16437_v58 }
 0x2d0   :  { %13862 = vmatpush3.msra.mxu0 %v16437_v58 }
 0x2d1   :  { %13863 = vmatprep.subr.mxu0 %v16445_v60 }
 0x2d2   :  { %13864 = vmatpush3.msra.mxu0 %v16445_v60 }
 0x2d3   :  { %13865 = vmatprep.subr.mxu0 %v16453_v62 }
 0x2d4   :  { %13866 = vmatpush3.msra.mxu0 %v16453_v62 }
 0x2d5   :  { %13867 = vmatprep.subr.mxu0 %v16461_v0 }
 0x2d6   :  { %13868 = vmatpush3.msra.mxu0 %v16461_v0 }
 0x2d7   :  { %13869 = vmatprep.subr.mxu0 %v16469_v2 }
 0x2d8   :  { %13870 = vmatpush3.msra.mxu0 %v16469_v2 }
 0x2d9   :  { %13871 = vmatprep.subr.mxu0 %v16477_v4 }
 0x2da   :  { %13872 = vmatpush3.msra.mxu0 %v16477_v4 }
 0x2db   :  { %13873 = vmatprep.subr.mxu0 %v16483_v5 }
 0x2dc   :  { %13874 = vmatpush3.msra.mxu0 %v16483_v5 }
 0x2dd   :  { %13875 = vmatprep.subr.mxu0 %v16489_v6 }
 0x2de   :  { %13876 = vmatpush3.msra.mxu0 %v16489_v6 }
 0x2df   :  { %13878 = vmatmul.mubr.f32.vlgmr.msra.gmra.mxu0 %v11757_v45  ;;  %13929 = vmatprep.subr.msk.mxu0 %vm505_vm2, %v11770_v47  ;;  %v11786_v45 = vld [vmem:[%s19878_s25 + $0xc0] sm:$0xff] }
 0x2e0   :  { %13930 = vmatpush3.msk.msra.mxu0 %vm505_vm2, %v11770_v47  ;;  %13880 = vmatprep.mubr.f32.mxu0 %v11758_v49  ;;  %v11787_v47 = vld [vmem:[%s19878_s25 + $0xc8] sm:$0xff] }
 0x2e1   :  { %13937 = vmatprep.subr.mxu0 %v16384_v41  ;;  %v11800_v49 = vld [vmem:[%s19880_s1 + $0xe] sm:$0x3] }
 0x2e3   :  { %13881 = vmatmul.mubr.f32.gmra.mxu0 %v11759_v51  ;;  %v11788_v51 = vld [vmem:[%s19878_s25 + $0xd0] sm:$0xff] }
 0x37f   :  { %v13841_v55 = vpop.f32.mrf.mxu0 }
 0x380   :  { %v887_v57 = vadd.f32 %v13841_v55, %v681_v31  ;;  %v11789_v55 = vld [vmem:[%s19878_s25 + $0xd8] sm:$0xff] }
 0x381   :  { %v16652_v59 = vpop.f32.mrf.mxu0 }
 0x383   :  { %v13844_v61 = vpop.f32.mrf.mxu0 }
 0x384   :  { %v889_v63 = vadd.f32 %v13844_v61, %v691_v36 }
 0x385   :  { %v16654_v1 = vpop.f32.mrf.mxu0 }
 0x39f   :  { %v13879_v3 = vpop.f32.mrf.mxu0 }
 0x3a1   :  { %v961_v7 = vpop.f32.mrf.mxu0 }
 0x3a2   :  { %13885 = vmatprep.mubr.msk.f32.mxu1 %vm492_vm3, %v961_v7 }
 0x3a3   :  { %v13882_v8 = vpop.f32.mrf.mxu0  ;;  %13886 = vmatmul.mubr.msk.f32.vlgmr.msra.gmra.mxu1 %vm492_vm3, %v13879_v3 }
 0x3a4   :  { %13892 = vmatpush3.msra.mxu1 %v16384_v41 }
 0x3a5   :  { %13893 = vmatprep.subr.mxu1 %v16388_v44  ;;  %v971_v9 = vpop.f32.mrf.mxu0 }
 0x3a6   :  { %13894 = vmatpush3.msra.mxu1 %v16388_v44  ;;  %13888 = vmatprep.mubr.msk.f32.mxu1 %vm492_vm3, %v971_v9 }
 0x3a7   :  { %13895 = vmatprep.subr.mxu1 %v16395_v46  ;;  %13889 = vmatmul.mubr.msk.f32.gmra.mxu1 %vm492_vm3, %v13882_v8 }
 0x3a8   :  { %13896 = vmatpush3.msra.mxu1 %v16395_v46  ;;  %13923 = vmatprep.mubr.f32.mxu1 %v11766_v10 }
 0x3a9   :  { %13897 = vmatprep.subr.mxu1 %v16402_v48 }
 0x3aa   :  { %13898 = vmatpush3.msra.mxu1 %v16402_v48 }
 0x3ab   :  { %13899 = vmatprep.subr.mxu1 %v16409_v50 }
 0x3ac   :  { %13900 = vmatpush3.msra.mxu1 %v16409_v50 }
 0x3ad   :  { %13901 = vmatprep.subr.mxu1 %v16416_v52 }
 0x3ae   :  { %13902 = vmatpush3.msra.mxu1 %v16416_v52 }
 0x3af   :  { %13903 = vmatprep.subr.mxu1 %v16423_v54 }
 0x3b0   :  { %13904 = vmatpush3.msra.mxu1 %v16423_v54 }
 0x3b1   :  { %13905 = vmatprep.subr.mxu1 %v16430_v56 }
 0x3b2   :  { %13906 = vmatpush3.msra.mxu1 %v16430_v56 }
 0x3b3   :  { %13907 = vmatprep.subr.mxu1 %v16437_v58 }
 0x3b4   :  { %13908 = vmatpush3.msra.mxu1 %v16437_v58 }
 0x3b5   :  { %13909 = vmatprep.subr.mxu1 %v16445_v60 }
 0x3b6   :  { %13910 = vmatpush3.msra.mxu1 %v16445_v60 }
 0x3b7   :  { %13911 = vmatprep.subr.mxu1 %v16453_v62 }
 0x3b8   :  { %13912 = vmatpush3.msra.mxu1 %v16453_v62 }
 0x3b9   :  { %13913 = vmatprep.subr.mxu1 %v16461_v0 }
 0x3ba   :  { %13914 = vmatpush3.msra.mxu1 %v16461_v0 }
 0x3bb   :  { %13915 = vmatprep.subr.mxu1 %v16469_v2 }
 0x3bc   :  { %13916 = vmatpush3.msra.mxu1 %v16469_v2 }
 0x3bd   :  { %13917 = vmatprep.subr.mxu1 %v16477_v4 }
 0x3be   :  { %13918 = vmatpush3.msra.mxu1 %v16477_v4 }
 0x3bf   :  { %13919 = vmatprep.subr.mxu1 %v16483_v5 }
 0x3c0   :  { %13920 = vmatpush3.msra.mxu1 %v16483_v5 }
 0x3c1   :  { %13921 = vmatprep.subr.mxu1 %v16489_v6 }
 0x3c2   :  { %13922 = vmatpush3.msra.mxu1 %v16489_v6 }
 0x3c3   :  { %13924 = vmatmul.mubr.f32.vlgmr.msra.gmra.mxu1 %v11767_v11  ;;  %13975 = vmatprep.subr.msk.mxu1 %vm505_vm2, %v11780_v12 }
 0x3c4   :  { %13976 = vmatpush3.msk.msra.mxu1 %vm505_vm2, %v11780_v12  ;;  %13926 = vmatprep.mubr.f32.mxu1 %v11768_v13  ;;  %v11796_v13 = vld [vmem:[%s19878_s25 + $0xe0] sm:$0xff] }
 0x3c5   :  { %13983 = vmatprep.subr.mxu1 %v16384_v41 }
 0x3c7   :  { %13927 = vmatmul.mubr.f32.gmra.mxu1 %v11769_v14  ;;  %v11797_v14 = vld [vmem:[%s19878_s25 + $0xe8] sm:$0xff] }
 0x463   :  { %v13887_v15 = vpop.f32.mrf.mxu1 }
 0x464   :  { %v1083_v16 = vadd.f32 %v13887_v15, %v887_v57  ;;  %v11798_v15 = vld [vmem:[%s19878_s25 + $0xf0] sm:$0xff] }
 0x465   :  { %v16709_v17 = vpop.f32.mrf.mxu1 }
 0x467   :  { %v13890_v18 = vpop.f32.mrf.mxu1 }
 0x468   :  { %v1085_v19 = vadd.f32 %v13890_v18, %v889_v63 }
 0x469   :  { %v16711_v20 = vpop.f32.mrf.mxu1 }
 0x483   :  { %v13925_v21 = vpop.f32.mrf.mxu1 }
 0x485   :  { %v1157_v22 = vpop.f32.mrf.mxu1 }
 0x486   :  { %13931 = vmatprep.mubr.msk.f32.mxu0 %vm492_vm3, %v1157_v22 }
 0x487   :  { %v13928_v23 = vpop.f32.mrf.mxu1  ;;  %13932 = vmatmul.mubr.msk.f32.vlgmr.msra.gmra.mxu0 %vm492_vm3, %v13925_v21 }
 0x488   :  { %13938 = vmatpush3.msra.mxu0 %v16384_v41 }
 0x489   :  { %13939 = vmatprep.subr.mxu0 %v16388_v44  ;;  %v1167_v24 = vpop.f32.mrf.mxu1 }
 0x48a   :  { %13940 = vmatpush3.msra.mxu0 %v16388_v44  ;;  %13934 = vmatprep.mubr.msk.f32.mxu0 %vm492_vm3, %v1167_v24 }
 0x48b   :  { %13941 = vmatprep.subr.mxu0 %v16395_v46  ;;  %13935 = vmatmul.mubr.msk.f32.gmra.mxu0 %vm492_vm3, %v13928_v23 }
 0x48c   :  { %13942 = vmatpush3.msra.mxu0 %v16395_v46  ;;  %13969 = vmatprep.mubr.f32.mxu0 %v11776_v25 }
 0x48d   :  { %13943 = vmatprep.subr.mxu0 %v16402_v48 }
 0x48e   :  { %13944 = vmatpush3.msra.mxu0 %v16402_v48 }
 0x48f   :  { %13945 = vmatprep.subr.mxu0 %v16409_v50 }
 0x490   :  { %13946 = vmatpush3.msra.mxu0 %v16409_v50 }
 0x491   :  { %13947 = vmatprep.subr.mxu0 %v16416_v52 }
 0x492   :  { %13948 = vmatpush3.msra.mxu0 %v16416_v52 }
 0x493   :  { %13949 = vmatprep.subr.mxu0 %v16423_v54 }
 0x494   :  { %13950 = vmatpush3.msra.mxu0 %v16423_v54 }
 0x495   :  { %13951 = vmatprep.subr.mxu0 %v16430_v56 }
 0x496   :  { %13952 = vmatpush3.msra.mxu0 %v16430_v56 }
 0x497   :  { %13953 = vmatprep.subr.mxu0 %v16437_v58 }
 0x498   :  { %13954 = vmatpush3.msra.mxu0 %v16437_v58 }
 0x499   :  { %13955 = vmatprep.subr.mxu0 %v16445_v60 }
 0x49a   :  { %13956 = vmatpush3.msra.mxu0 %v16445_v60 }
 0x49b   :  { %13957 = vmatprep.subr.mxu0 %v16453_v62 }
 0x49c   :  { %13958 = vmatpush3.msra.mxu0 %v16453_v62 }
 0x49d   :  { %13959 = vmatprep.subr.mxu0 %v16461_v0 }
 0x49e   :  { %13960 = vmatpush3.msra.mxu0 %v16461_v0 }
 0x49f   :  { %13961 = vmatprep.subr.mxu0 %v16469_v2 }
 0x4a0   :  { %13962 = vmatpush3.msra.mxu0 %v16469_v2 }
 0x4a1   :  { %13963 = vmatprep.subr.mxu0 %v16477_v4 }
 0x4a2   :  { %13964 = vmatpush3.msra.mxu0 %v16477_v4 }
 0x4a3   :  { %13965 = vmatprep.subr.mxu0 %v16483_v5 }
 0x4a4   :  { %13966 = vmatpush3.msra.mxu0 %v16483_v5 }
 0x4a5   :  { %13967 = vmatprep.subr.mxu0 %v16489_v6 }
 0x4a6   :  { %13968 = vmatpush3.msra.mxu0 %v16489_v6 }
 0x4a7   :  { %13970 = vmatmul.mubr.f32.vlgmr.msra.gmra.mxu0 %v11777_v26  ;;  %14021 = vmatprep.subr.msk.mxu0 %vm505_vm2, %v11790_v27 }
 0x4a8   :  { %14022 = vmatpush3.msk.msra.mxu0 %vm505_vm2, %v11790_v27  ;;  %13972 = vmatprep.mubr.f32.mxu0 %v11778_v28 }
 0x4a9   :  { %14029 = vmatprep.subr.mxu0 %v16384_v41 }
 0x4ab   :  { %13973 = vmatmul.mubr.f32.gmra.mxu0 %v11779_v29  ;;  %v11806_v29 = vld [vmem:[%s19878_s25 + $0x100] sm:$0xff] }
 0x547   :  { %v13933_v30 = vpop.f32.mrf.mxu0 }
 0x548   :  { %v1279_v31 = vadd.f32 %v13933_v30, %v1083_v16  ;;  %v11799_v16 = vld [vmem:[%s19878_s25 + $0xf8] sm:$0xff]  ;;  %v11807_v30 = vld [vmem:[%s19878_s25 + $0x108] sm:$0xff] }
 0x549   :  { %v16766_v34 = vpop.f32.mrf.mxu0 }
 0x54b   :  { %v13936_v35 = vpop.f32.mrf.mxu0 }
 0x54c   :  { %v1281_v36 = vadd.f32 %v13936_v35, %v1085_v19  ;;  %v11809_v35 = vld [vmem:[%s19878_s25 + $0x118] sm:$0xff] }
 0x54d   :  { %v16768_v38 = vpop.f32.mrf.mxu0 }
 0x567   :  { %v13971_v39 = vpop.f32.mrf.mxu0 }
 0x569   :  { %v1353_v40 = vpop.f32.mrf.mxu0 }
 0x56a   :  { %13977 = vmatprep.mubr.msk.f32.mxu1 %vm492_vm3, %v1353_v40 }
 0x56b   :  { %v13974_v42 = vpop.f32.mrf.mxu0  ;;  %13978 = vmatmul.mubr.msk.f32.vlgmr.msra.gmra.mxu1 %vm492_vm3, %v13971_v39 }
 0x56c   :  { %13984 = vmatpush3.msra.mxu1 %v16384_v41 }
 0x56d   :  { %13985 = vmatprep.subr.mxu1 %v16388_v44  ;;  %v1363_v43 = vpop.f32.mrf.mxu0 }
 0x56e   :  { %13986 = vmatpush3.msra.mxu1 %v16388_v44  ;;  %13980 = vmatprep.mubr.msk.f32.mxu1 %vm492_vm3, %v1363_v43 }
 0x56f   :  { %13987 = vmatprep.subr.mxu1 %v16395_v46  ;;  %13981 = vmatmul.mubr.msk.f32.gmra.mxu1 %vm492_vm3, %v13974_v42 }
 0x570   :  { %13988 = vmatpush3.msra.mxu1 %v16395_v46  ;;  %14015 = vmatprep.mubr.f32.mxu1 %v11786_v45 }
 0x571   :  { %13989 = vmatprep.subr.mxu1 %v16402_v48 }
 0x572   :  { %13990 = vmatpush3.msra.mxu1 %v16402_v48 }
 0x573   :  { %13991 = vmatprep.subr.mxu1 %v16409_v50 }
 0x574   :  { %13992 = vmatpush3.msra.mxu1 %v16409_v50 }
 0x575   :  { %13993 = vmatprep.subr.mxu1 %v16416_v52 }
 0x576   :  { %13994 = vmatpush3.msra.mxu1 %v16416_v52 }
 0x577   :  { %13995 = vmatprep.subr.mxu1 %v16423_v54 }
 0x578   :  { %13996 = vmatpush3.msra.mxu1 %v16423_v54 }
 0x579   :  { %13997 = vmatprep.subr.mxu1 %v16430_v56 }
 0x57a   :  { %13998 = vmatpush3.msra.mxu1 %v16430_v56 }
 0x57b   :  { %13999 = vmatprep.subr.mxu1 %v16437_v58 }
 0x57c   :  { %14000 = vmatpush3.msra.mxu1 %v16437_v58 }
 0x57d   :  { %14001 = vmatprep.subr.mxu1 %v16445_v60 }
 0x57e   :  { %14002 = vmatpush3.msra.mxu1 %v16445_v60 }
 0x57f   :  { %14003 = vmatprep.subr.mxu1 %v16453_v62 }
 0x580   :  { %14004 = vmatpush3.msra.mxu1 %v16453_v62 }
 0x581   :  { %14005 = vmatprep.subr.mxu1 %v16461_v0 }
 0x582   :  { %14006 = vmatpush3.msra.mxu1 %v16461_v0 }
 0x583   :  { %14007 = vmatprep.subr.mxu1 %v16469_v2 }
 0x584   :  { %14008 = vmatpush3.msra.mxu1 %v16469_v2 }
 0x585   :  { %14009 = vmatprep.subr.mxu1 %v16477_v4 }
 0x586   :  { %14010 = vmatpush3.msra.mxu1 %v16477_v4 }
 0x587   :  { %14011 = vmatprep.subr.mxu1 %v16483_v5 }
 0x588   :  { %14012 = vmatpush3.msra.mxu1 %v16483_v5 }
 0x589   :  { %14013 = vmatprep.subr.mxu1 %v16489_v6 }
 0x58a   :  { %14014 = vmatpush3.msra.mxu1 %v16489_v6 }
 0x58b   :  { %14016 = vmatmul.mubr.f32.vlgmr.msra.gmra.mxu1 %v11787_v47  ;;  %14067 = vmatprep.subr.msk.mxu1 %vm505_vm2, %v11800_v49 }
 0x58c   :  { %14068 = vmatpush3.msk.msra.mxu1 %vm505_vm2, %v11800_v49  ;;  %14018 = vmatprep.mubr.f32.mxu1 %v11788_v51 }
 0x58d   :  { %14075 = vmatprep.subr.mxu1 %v16384_v41 }
 0x58f   :  { %14019 = vmatmul.mubr.f32.gmra.mxu1 %v11789_v55 }
 0x62b   :  { %v13979_v57 = vpop.f32.mrf.mxu1 }
 0x62c   :  { %v1475_v61 = vadd.f32 %v13979_v57, %v1279_v31  ;;  %v11808_v31 = vld [vmem:[%s19878_s25 + $0x110] sm:$0xff] }
 0x62d   :  { %v16823_v63 = vpop.f32.mrf.mxu1 }
 0x62f   :  { %v13982_v3 = vpop.f32.mrf.mxu1 }
 0x630   :  { %v1477_v7 = vadd.f32 %v13982_v3, %v1281_v36  ;;  %v11810_v36 = vld [vmem:[%s19880_s1 + $0x10] sm:$0x3]  ;;  %v676_v3 = vadd.f32 %v16593_v33, %v16591_v32 }
 0x631   :  { %v16825_v8 = vpop.f32.mrf.mxu1 }
 0x64b   :  { %v14017_v9 = vpop.f32.mrf.mxu1 }
 0x64d   :  { %v1549_v10 = vpop.f32.mrf.mxu1 }
 0x64e   :  { %14023 = vmatprep.mubr.msk.f32.mxu0 %vm492_vm3, %v1549_v10 }
 0x64f   :  { %v14020_v11 = vpop.f32.mrf.mxu1  ;;  %14024 = vmatmul.mubr.msk.f32.vlgmr.msra.gmra.mxu0 %vm492_vm3, %v14017_v9  ;;  %v886_v9 = vadd.f32 %v16652_v59, %v676_v3  ;;  %v11832_v3 = vld [vmem:[%s19849_s7 + $0x38] sm:$0xff] }
 0x650   :  { %14030 = vmatpush3.msra.mxu0 %v16384_v41 }
 0x651   :  { %14031 = vmatprep.subr.mxu0 %v16388_v44  ;;  %v1559_v12 = vpop.f32.mrf.mxu1 }
 0x652   :  { %14032 = vmatpush3.msra.mxu0 %v16388_v44  ;;  %14026 = vmatprep.mubr.msk.f32.mxu0 %vm492_vm3, %v1559_v12 }
 0x653   :  { %14033 = vmatprep.subr.mxu0 %v16395_v46  ;;  %14027 = vmatmul.mubr.msk.f32.gmra.mxu0 %vm492_vm3, %v14020_v11  ;;  %v1082_v11 = vadd.f32 %v16709_v17, %v886_v9 }
 0x654   :  { %14034 = vmatpush3.msra.mxu0 %v16395_v46  ;;  %14061 = vmatprep.mubr.f32.mxu0 %v11796_v13 }
 0x655   :  { %14035 = vmatprep.subr.mxu0 %v16402_v48  ;;  %v1278_v13 = vadd.f32 %v16766_v34, %v1082_v11 }
 0x656   :  { %14036 = vmatpush3.msra.mxu0 %v16402_v48 }
 0x657   :  { %14037 = vmatprep.subr.mxu0 %v16409_v50 }
 0x658   :  { %14038 = vmatpush3.msra.mxu0 %v16409_v50 }
 0x659   :  { %14039 = vmatprep.subr.mxu0 %v16416_v52 }
 0x65a   :  { %14040 = vmatpush3.msra.mxu0 %v16416_v52 }
 0x65b   :  { %14041 = vmatprep.subr.mxu0 %v16423_v54 }
 0x65c   :  { %14042 = vmatpush3.msra.mxu0 %v16423_v54 }
 0x65d   :  { %14043 = vmatprep.subr.mxu0 %v16430_v56 }
 0x65e   :  { %14044 = vmatpush3.msra.mxu0 %v16430_v56 }
 0x65f   :  { %14045 = vmatprep.subr.mxu0 %v16437_v58 }
 0x660   :  { %14046 = vmatpush3.msra.mxu0 %v16437_v58 }
 0x661   :  { %14047 = vmatprep.subr.mxu0 %v16445_v60 }
 0x662   :  { %14048 = vmatpush3.msra.mxu0 %v16445_v60 }
 0x663   :  { %14049 = vmatprep.subr.mxu0 %v16453_v62 }
 0x664   :  { %14050 = vmatpush3.msra.mxu0 %v16453_v62 }
 0x665   :  { %14051 = vmatprep.subr.mxu0 %v16461_v0 }
 0x666   :  { %14052 = vmatpush3.msra.mxu0 %v16461_v0 }
 0x667   :  { %14053 = vmatprep.subr.mxu0 %v16469_v2 }
 0x668   :  { %14054 = vmatpush3.msra.mxu0 %v16469_v2 }
 0x669   :  { %14055 = vmatprep.subr.mxu0 %v16477_v4 }
 0x66a   :  { %14056 = vmatpush3.msra.mxu0 %v16477_v4 }
 0x66b   :  { %14057 = vmatprep.subr.mxu0 %v16483_v5 }
 0x66c   :  { %14058 = vmatpush3.msra.mxu0 %v16483_v5 }
 0x66d   :  { %14059 = vmatprep.subr.mxu0 %v16489_v6 }
 0x66e   :  { %14060 = vmatpush3.msra.mxu0 %v16489_v6 }
 0x66f   :  { %14062 = vmatmul.mubr.f32.vlgmr.msra.gmra.mxu0 %v11797_v14  ;;  %14113 = vmatprep.subr.msk.mxu0 %vm505_vm2, %v11810_v36 }
 0x670   :  { %14064 = vmatprep.mubr.f32.mxu0 %v11798_v15  ;;  %14114 = vmatpush3.msk.msra.mxu0 %vm505_vm2, %v11810_v36  ;;  %v11821_v36 = vld [vmem:[%s19849_s7 + $0x18] sm:$0xff] }
 0x673   :  { %14065 = vmatmul.mubr.f32.gmra.mxu0 %v11799_v16  ;;  %v1474_v16 = vadd.f32 %v16823_v63, %v1278_v13 }
 0x70f   :  { %v14025_v18 = vpop.f32.mrf.mxu0 }
 0x710   :  { %v1671_v19 = vadd.f32 %v14025_v18, %v1475_v61  ;;  %v19868_v61 = vmov 0.0  }
 0x711   :  { %v16874_v21 = vpop.f32.mrf.mxu0  ;;  %14121 = vmatprep.subr.mxu0 %v19868_v61 }
 0x713   :  { %v14028_v22 = vpop.f32.mrf.mxu0 }
 0x714   :  { %v1673_v23 = vadd.f32 %v14028_v22, %v1477_v7  ;;  %v686_v7 = vadd.f32 %v16650_v53, %v16595_v37  ;;  %v1670_v37 = vadd.f32 %v16874_v21, %v1474_v16 }
 0x715   :  { %v16876_v24 = vpop.f32.mrf.mxu0 }
 0x716   :  { %v888_v10 = vadd.f32 %v16654_v1, %v686_v7  ;;  %v11831_v7 = vld [vmem:[%s19849_s7 + $0x30] sm:$0xff] }
 0x718   :  { %v1084_v12 = vadd.f32 %v16711_v20, %v888_v10  ;;  %v11816_v20 = vld [vmem:[%s19881_s27] ss:$0 sm:$0xff] }
 0x71a   :  { %v1280_v14 = vadd.f32 %v16768_v38, %v1084_v12 }
 0x71c   :  { %v1476_v32 = vadd.f32 %v16825_v8, %v1280_v14 }
 0x71e   :  { %v1672_v53 = vadd.f32 %v16876_v24, %v1476_v32  ;;  %v11834_v32 = vld [vmem:[%s19848_s6 + $0x8] sm:$0x3] }
 0x72f   :  { %v14063_v25 = vpop.f32.mrf.mxu0 }
 0x731   :  { %v1745_v26 = vpop.f32.mrf.mxu0 }
 0x732   :  { %14069 = vmatprep.mubr.msk.f32.mxu1 %vm492_vm3, %v1745_v26 }
 0x733   :  { %v14066_v27 = vpop.f32.mrf.mxu0  ;;  %14070 = vmatmul.mubr.msk.f32.vlgmr.msra.gmra.mxu1 %vm492_vm3, %v14063_v25 }
 0x734   :  { %14076 = vmatpush3.msra.mxu1 %v16384_v41 }
 0x735   :  { %14077 = vmatprep.subr.mxu1 %v16388_v44  ;;  %v1755_v28 = vpop.f32.mrf.mxu0 }
 0x736   :  { %14078 = vmatpush3.msra.mxu1 %v16388_v44  ;;  %14072 = vmatprep.mubr.msk.f32.mxu1 %vm492_vm3, %v1755_v28  ;;  %v11824_v28 = vld [vmem:[%s19848_s6 + $0x4] sm:$0x3] }
 0x737   :  { %14079 = vmatprep.subr.mxu1 %v16395_v46  ;;  %14073 = vmatmul.mubr.msk.f32.gmra.mxu1 %vm492_vm3, %v14066_v27 }
 0x738   :  { %14080 = vmatpush3.msra.mxu1 %v16395_v46  ;;  %14107 = vmatprep.mubr.f32.mxu1 %v11806_v29  ;;  %v2081_v29 = vld [vmem:[%s19848_s6] sm:$0x3] }
 0x739   :  { %14081 = vmatprep.subr.mxu1 %v16402_v48 }
 0x73a   :  { %14082 = vmatpush3.msra.mxu1 %v16402_v48 }
 0x73b   :  { %14083 = vmatprep.subr.mxu1 %v16409_v50 }
 0x73c   :  { %14084 = vmatpush3.msra.mxu1 %v16409_v50 }
 0x73d   :  { %14085 = vmatprep.subr.mxu1 %v16416_v52 }
 0x73e   :  { %14086 = vmatpush3.msra.mxu1 %v16416_v52 }
 0x73f   :  { %14087 = vmatprep.subr.mxu1 %v16423_v54 }
 0x740   :  { %14088 = vmatpush3.msra.mxu1 %v16423_v54 }
 0x741   :  { %14089 = vmatprep.subr.mxu1 %v16430_v56 }
 0x742   :  { %14090 = vmatpush3.msra.mxu1 %v16430_v56 }
 0x743   :  { %14091 = vmatprep.subr.mxu1 %v16437_v58 }
 0x744   :  { %14092 = vmatpush3.msra.mxu1 %v16437_v58 }
 0x745   :  { %14093 = vmatprep.subr.mxu1 %v16445_v60 }
 0x746   :  { %14094 = vmatpush3.msra.mxu1 %v16445_v60 }
 0x747   :  { %14095 = vmatprep.subr.mxu1 %v16453_v62 }
 0x748   :  { %14096 = vmatpush3.msra.mxu1 %v16453_v62 }
 0x749   :  { %14097 = vmatprep.subr.mxu1 %v16461_v0 }
 0x74a   :  { %14098 = vmatpush3.msra.mxu1 %v16461_v0 }
 0x74b   :  { %14099 = vmatprep.subr.mxu1 %v16469_v2 }
 0x74c   :  { %14100 = vmatpush3.msra.mxu1 %v16469_v2 }
 0x74d   :  { %14101 = vmatprep.subr.mxu1 %v16477_v4 }
 0x74e   :  { %14102 = vmatpush3.msra.mxu1 %v16477_v4 }
 0x74f   :  { %14103 = vmatprep.subr.mxu1 %v16483_v5 }
 0x750   :  { %14104 = vmatpush3.msra.mxu1 %v16483_v5 }
 0x751   :  { %14105 = vmatprep.subr.mxu1 %v16489_v6 }
 0x752   :  { %14106 = vmatpush3.msra.mxu1 %v16489_v6 }
 0x753   :  { %14108 = vmatmul.mubr.f32.vlgmr.msra.gmra.mxu1 %v11807_v30  ;;  %14157 = vmatprep.subr.mxu1 %v19868_v61  ;;  %v11827_v30 = vld [vmem:[%s19849_s7 + $0x28] sm:$0xff] }
 0x754   :  { %14110 = vmatprep.mubr.f32.mxu1 %v11808_v31  ;;  %v11826_v31 = vld [vmem:[%s19849_s7 + $0x20] sm:$0xff] }
 0x757   :  { %14111 = vmatmul.mubr.f32.gmra.mxu1 %v11809_v35  ;;  %v11818_v35 = vld [vmem:[%s19848_s6 + $0x2] sm:$0x3] }
 0x758   :  { %14165 = vmatprep.mubr.msk.f32.mxu1 %vm16170_vm4, %v19868_v61 }
 0x7f3   :  { %v14071_v39 = vpop.f32.mrf.mxu1 }
 0x7f4   :  { %v1867_v40 = vadd.f32 %v14071_v39, %v1671_v19  ;;  %v11820_v39 = vld [vmem:[%s19849_s7 + $0x10] sm:$0xff] }
 0x7f5   :  { %v1847_v42 = vpop.f32.mrf.mxu1 }
 0x7f6   :  { %v1866_v1 = vadd.f32 %v1847_v42, %v1670_v37 }
 0x7f7   :  { %v14074_v43 = vpop.f32.mrf.mxu1 }
 0x7f8   :  { %v1869_v45 = vadd.f32 %v14074_v43, %v1673_v23 }
 0x7f9   :  { %v1857_v47 = vpop.f32.mrf.mxu1 }
 0x7fa   :  { %v1868_v18 = vadd.f32 %v1857_v47, %v1672_v53  ;;  %v11829_v47 = vld [vmem:[%s19848_s6 + $0x6] sm:$0x3]  ;;  %v11837_v53 = vld [vmem:[%s19849_s7 + $0x48] sm:$0xff] }
 0x813   :  { %v14109_v49 = vpop.f32.mrf.mxu1 }
 0x815   :  { %v1941_v51 = vpop.f32.mrf.mxu1 }
 0x816   :  { %14115 = vmatprep.mubr.msk.f32.mxu0 %vm492_vm3, %v1941_v51 }
 0x817   :  { %v14112_v55 = vpop.f32.mrf.mxu1  ;;  %14116 = vmatmul.mubr.msk.f32.vlgmr.msra.gmra.mxu0 %vm492_vm3, %v14109_v49  ;;  %v2157_v49 = vld [vmem:[%s19849_s7 + $0x8] sm:$0xff] }
 0x819   :  { %v1951_v57 = vpop.f32.mrf.mxu1 }
 0x81a   :  { %14118 = vmatprep.mubr.msk.f32.mxu0 %vm492_vm3, %v1951_v57 }
 0x81b   :  { %14119 = vmatmul.mubr.msk.f32.gmra.mxu0 %vm492_vm3, %v14112_v55  ;;  %v2156_v55 = vld [vmem:[%s19849_s7] sm:$0xff] }
 0x81c   :  { %14129 = vmatprep.mubr.msk.f32.mxu0 %vm16170_vm4, %v19868_v61 }
 0x8d7   :  { %v14117_v15 = vpop.f32.mrf.mxu0 }
 0x8d8   :  { %v2063_v17 = vadd.f32 %v14117_v15, %v1867_v40 }
 0x8d9   :  { %v2043_v33 = vpop.f32.mrf.mxu0 }
 0x8da   :  { %v2062_v38 = vadd.f32 %v2043_v33, %v1866_v1  ;;  %v2074_v23 = vadd.f32 %v11816_v20, %v2063_v17 }
 0x8db   :  { %v14120_v59 = vpop.f32.mrf.mxu0 }
 0x8dc   :  { %v2065_v19 = vadd.f32 %v14120_v59, %v1869_v45  ;;  %v2073_v21 = vadd.f32 %v11816_v20, %v2062_v38  ;;  %v16965_v24 = vmax.f32 %v2074_v23, 0.0  ;;  %v11836_v59 = vld [vmem:[%s19849_s7 + $0x40] sm:$0xff]  ;;  %v11842_v38 = vld [vmem:[%s19849_s7 + $0x58] sm:$0xff] }
 0x8dd   :  { %v2053_v34 = vpop.f32.mrf.mxu0 }
 0x8de   :  { %v2076_v22 = vadd.f32 %v11816_v20, %v2065_v19  ;;  %v2064_v63 = vadd.f32 %v2053_v34, %v1868_v18  ;;  %v16971_v27 = vmax.f32 %v2073_v21, 0.0  ;;  %v11839_v34 = vld [vmem:[%s19848_s6 + $0xa] sm:$0x3] }
 0x8e0   :  { %v16957_v8 = vmax.f32 %v2076_v22, 0.0  ;;  %v2075_v25 = vadd.f32 %v11816_v20, %v2064_v63  ;;  %v11841_v22 = vld [vmem:[%s19849_s7 + $0x50] sm:$0xff] }
 0x8e2   :  { %v16959_v26 = vmax.f32 %v2075_v25, 0.0  ;;  %14122 = vmatpush3.msra.mxu0 %v16957_v8  ;;  %14158 = vmatpush3.msra.mxu1 %v16957_v8 }
 0x8e3   :  { %14123 = vmatprep.subr.mxu0 %v19868_v61  ;;  %14159 = vmatprep.subr.mxu1 %v19868_v61 }
 0x8e4   :  { %14124 = vmatpush3.msra.mxu0 %v16959_v26  ;;  %14160 = vmatpush3.msra.mxu1 %v16959_v26 }
 0x8e5   :  { %14125 = vmatprep.subr.mxu0 %v19868_v61  ;;  %14161 = vmatprep.subr.mxu1 %v19868_v61 }
 0x8e6   :  { %14126 = vmatpush3.msra.mxu0 %v16965_v24  ;;  %14162 = vmatpush3.msra.mxu1 %v16965_v24 }
 0x8e7   :  { %14127 = vmatprep.subr.mxu0 %v19868_v61  ;;  %14163 = vmatprep.subr.mxu1 %v19868_v61 }
 0x8e8   :  { %14128 = vmatpush3.msra.mxu0 %v16971_v27  ;;  %14164 = vmatpush3.msra.mxu1 %v16971_v27 }
 0x8e9   :  { %14132 = vmatprep.subr.mxu0 %v19868_v61  ;;  %14166 = vmatmul.mubr.msk.f32.vlgmr.msra.gmra.mxu1 %vm2082_vm5, %v11824_v28 }
 0x8ea   :  { %14130 = vmatmul.mubr.msk.f32.vlgmr.msra.gmra.mxu0 %vm2082_vm5, %v2081_v29  ;;  %14168 = vmatprep.subr.mxu1 %v19868_v61  ;;  %v11844_v29 = vld [vmem:[%s19848_s6 + $0xc] sm:$0x3] }
 0x8eb   :  { %14133 = vmatpush3.msra.mxu0 %v16957_v8  ;;  %14140 = vmatprep.mubr.msk.f32.mxu0 %vm16170_vm4, %v19868_v61 }
 0x8ec   :  { %14134 = vmatprep.subr.mxu0 %v19868_v61  ;;  %14169 = vmatpush3.msra.mxu1 %v11827_v30  ;;  %v11847_v30 = vld [vmem:[%s19849_s7 + $0x68] sm:$0xff] }
 0x8ed   :  { %14135 = vmatpush3.msra.mxu0 %v16959_v26  ;;  %14170 = vmatprep.subr.mxu1 %v19868_v61 }
 0x8ee   :  { %14136 = vmatprep.subr.mxu0 %v19868_v61  ;;  %14171 = vmatpush3.msra.mxu1 %v11826_v31  ;;  %v11846_v31 = vld [vmem:[%s19849_s7 + $0x60] sm:$0xff] }
 0x8ef   :  { %14137 = vmatpush3.msra.mxu0 %v16965_v24  ;;  %14172 = vmatprep.mubr.msk.f32.mxu1 %vm16170_vm4, %v19868_v61 }
 0x8f0   :  { %14138 = vmatprep.subr.mxu0 %v19868_v61  ;;  %14175 = vmatprep.subr.mxu1 %v19868_v61 }
 0x8f1   :  { %14139 = vmatpush3.msra.mxu0 %v16971_v27 }
 0x8f2   :  { %14141 = vmatmul.mubr.msk.f32.vlgmr.msra.gmra.mxu0 %vm2082_vm5, %v11818_v35  ;;  %14143 = vmatprep.subr.mxu0 %v19868_v61 }
 0x8f3   :  { %14147 = vmatprep.mubr.msk.f32.mxu0 %vm16170_vm4, %v19868_v61  ;;  %14144 = vmatpush3.msra.mxu0 %v11821_v36 }
 0x8f4   :  { %14145 = vmatprep.subr.mxu0 %v19868_v61 }
 0x8f5   :  { %14146 = vmatpush3.msra.mxu0 %v11820_v39 }
 0x8f6   :  { %14150 = vmatprep.subr.mxu0 %v19868_v61 }
 0x9a9   :  { %v2454_v40 = vpop.f32.mrf.mxu1 }
 0x9aa   :  { %14173 = vmatmul.mubr.msk.f32.vlgmr.msra.gmra.mxu1 %vm2236_vm6, %v2454_v40  ;;  %v2152_v42 = vpop.f32.mrf.mxu0 }
 0x9ab   :  { %14176 = vmatpush3.msra.mxu1 %v16957_v8  ;;  %v14167_v43 = vpop.f32.mrf.mxu1  ;;  %14183 = vmatprep.mubr.msk.f32.mxu1 %vm16170_vm4, %v19868_v61 }
 0x9ac   :  { %14177 = vmatprep.subr.mxu1 %v19868_v61  ;;  %v14131_v45 = vpop.f32.mrf.mxu0  ;;  %v11849_v43 = vld [vmem:[%s19848_s6 + $0xe] sm:$0x3] }
 0x9ad   :  { %14178 = vmatpush3.msra.mxu1 %v16959_v26  ;;  %v11852_v45 = vld [vmem:[%s19849_s7 + $0x78] sm:$0xff] }
 0x9ae   :  { %14179 = vmatprep.subr.mxu1 %v19868_v61 }
 0x9af   :  { %14180 = vmatpush3.msra.mxu1 %v16965_v24 }
 0x9b0   :  { %14181 = vmatprep.subr.mxu1 %v19868_v61 }
 0x9b1   :  { %14182 = vmatpush3.msra.mxu1 %v16971_v27 }
 0x9b2   :  { %v2229_v51 = vpop.f32.mrf.mxu0  ;;  %14184 = vmatmul.mubr.msk.f32.vlgmr.msra.gmra.mxu1 %vm2082_vm5, %v11829_v47  ;;  %14204 = vmatprep.subr.mxu1 %v19868_v61  ;;  %v11851_v47 = vld [vmem:[%s19849_s7 + $0x70] sm:$0xff] }
 0x9b3   :  { %14148 = vmatmul.mubr.msk.f32.vlgmr.msra.gmra.mxu0 %vm2236_vm6, %v2229_v51  ;;  %14208 = vmatprep.mubr.msk.f32.mxu1 %vm16170_vm4, %v19868_v61 }
 0x9b4   :  { %14151 = vmatpush3.msra.mxu0 %v2157_v49  ;;  %14154 = vmatprep.mubr.msk.f32.mxu0 %vm16170_vm4, %v19868_v61  ;;  %v14142_v57 = vpop.f32.mrf.mxu0 }
 0x9b5   :  { %14152 = vmatprep.subr.mxu0 %v19868_v61  ;;  %14205 = vmatpush3.msra.mxu1 %v11837_v53 }
 0x9b6   :  { %14153 = vmatpush3.msra.mxu0 %v2156_v55  ;;  %14206 = vmatprep.subr.mxu1 %v19868_v61 }
 0x9b7   :  { %14155 = vmatmul.mubr.msk.f32.vlgmr.msra.gmra.mxu0 %vm2236_vm6, %v2152_v42  ;;  %14186 = vmatprep.subr.mxu0 %v19868_v61 }
 0x9b8   :  { %14190 = vmatprep.mubr.msk.f32.mxu0 %vm16170_vm4, %v19868_v61  ;;  %14187 = vmatpush3.msra.mxu0 %v11832_v3 }
 0x9b9   :  { %14188 = vmatprep.subr.mxu0 %v19868_v61  ;;  %14207 = vmatpush3.msra.mxu1 %v11836_v59 }
 0x9ba   :  { %14189 = vmatpush3.msra.mxu0 %v11831_v7  ;;  %14211 = vmatprep.subr.mxu1 %v19868_v61  ;;  %v11854_v7 = vld [vmem:[%s19848_s6 + $0x10] sm:$0x3] }
 0x9bb   :  { %14193 = vmatprep.subr.mxu0 %v19868_v61 }
 0xa6a   :  { %v2530_v9 = vpop.f32.mrf.mxu1 }
 0xa6c   :  { %v14174_v10 = vpop.f32.mrf.mxu1 }
 0xa6d   :  { %v11856_v10 = vld [vmem:[%s19849_s7 + $0x80] sm:$0xff] }
 0xa72   :  { %v2606_v11 = vpop.f32.mrf.mxu1 }
 0xa73   :  { %v2306_v12 = vpop.f32.mrf.mxu0  ;;  %14191 = vmatmul.mubr.msk.f32.vlgmr.msra.gmra.mxu0 %vm2236_vm6, %v2606_v11 }
 0xa74   :  { %14194 = vmatpush3.msra.mxu0 %v16957_v8  ;;  %v14185_v13 = vpop.f32.mrf.mxu1  ;;  %14201 = vmatprep.mubr.msk.f32.mxu0 %vm16170_vm4, %v19868_v61 }
 0xa75   :  { %14195 = vmatprep.subr.mxu0 %v19868_v61  ;;  %v14149_v14 = vpop.f32.mrf.mxu0 }
 0xa76   :  { %14196 = vmatpush3.msra.mxu0 %v16959_v26 }
 0xa77   :  { %14197 = vmatprep.subr.mxu0 %v19868_v61  ;;  %v2379_v15 = vpop.f32.mrf.mxu0 }
 0xa78   :  { %v2380_v16 = vadd.f32 %v2379_v15, %v2306_v12  ;;  %14198 = vmatpush3.msra.mxu0 %v16965_v24 }
 0xa79   :  { %14199 = vmatprep.subr.mxu0 %v19868_v61  ;;  %v14156_v33 = vpop.f32.mrf.mxu0 }
 0xa7a   :  { %14200 = vmatpush3.msra.mxu0 %v16971_v27  ;;  %v2534_v37 = vadd.f32 %v2530_v9, %v2380_v16  ;;  %v11857_v9 = vld [vmem:[%s19849_s7 + $0x88] sm:$0xff]  ;;  %v11859_v16 = vld [vmem:[%s19848_s6 + $0x12] sm:$0x3] }
 0xa7b   :  { %14202 = vmatmul.mubr.msk.f32.vlgmr.msra.gmra.mxu0 %vm2082_vm5, %v11834_v32  ;;  %14222 = vmatprep.subr.mxu0 %v19868_v61  ;;  %v11862_v32 = vld [vmem:[%s19849_s7 + $0x98] sm:$0xff]  ;;  %v11861_v33 = vld [vmem:[%s19849_s7 + $0x90] sm:$0xff] }
 0xa7c   :  { %14226 = vmatprep.mubr.msk.f32.mxu0 %vm16170_vm4, %v19868_v61  ;;  %14223 = vmatpush3.msra.mxu0 %v11842_v38 }
 0xa7d   :  { %14224 = vmatprep.subr.mxu0 %v19868_v61 }
 0xa7e   :  { %14225 = vmatpush3.msra.mxu0 %v11841_v22 }
 0xa7f   :  { %14229 = vmatprep.subr.mxu0 %v19868_v61 }
 0xb33   :  { %v2682_v1 = vpop.f32.mrf.mxu0 }
 0xb34   :  { %v2686_v18 = vadd.f32 %v2682_v1, %v2534_v37 }
 0xb35   :  { %v14192_v17 = vpop.f32.mrf.mxu0 }
 0xb36   :  { %v11864_v17 = vld [vmem:[%s19848_s6 + $0x14] sm:$0x3] }
 0xb3b   :  { %v2758_v19 = vpop.f32.mrf.mxu0 }
 0xb3c   :  { %14209 = vmatmul.mubr.msk.f32.vlgmr.msra.gmra.mxu1 %vm2236_vm6, %v2758_v19  ;;  %v11867_v19 = vld [vmem:[%s19849_s7 + $0xa8] sm:$0xff] }
 0xb3d   :  { %14212 = vmatpush3.msra.mxu1 %v16957_v8  ;;  %v14203_v20 = vpop.f32.mrf.mxu0  ;;  %14219 = vmatprep.mubr.msk.f32.mxu1 %vm16170_vm4, %v19868_v61 }
 0xb3e   :  { %14213 = vmatprep.subr.mxu1 %v19868_v61  ;;  %v11866_v20 = vld [vmem:[%s19849_s7 + $0xa0] sm:$0xff] }
 0xb3f   :  { %14214 = vmatpush3.msra.mxu1 %v16959_v26 }
 0xb40   :  { %14215 = vmatprep.subr.mxu1 %v19868_v61 }
 0xb41   :  { %14216 = vmatpush3.msra.mxu1 %v16965_v24 }
 0xb42   :  { %14217 = vmatprep.subr.mxu1 %v19868_v61 }
 0xb43   :  { %14218 = vmatpush3.msra.mxu1 %v16971_v27 }
 0xb44   :  { %14220 = vmatmul.mubr.msk.f32.vlgmr.msra.gmra.mxu1 %vm2082_vm5, %v11839_v34  ;;  %14240 = vmatprep.subr.mxu1 %v19868_v61 }
 0xb45   :  { %14244 = vmatprep.mubr.msk.f32.mxu1 %vm16170_vm4, %v19868_v61  ;;  %14241 = vmatpush3.msra.mxu1 %v11847_v30 }
 0xb46   :  { %14242 = vmatprep.subr.mxu1 %v19868_v61 }
 0xb47   :  { %14243 = vmatpush3.msra.mxu1 %v11846_v31 }
 0xb48   :  { %14247 = vmatprep.subr.mxu1 %v19868_v61 }
 0xbfc   :  { %v2834_v63 = vpop.f32.mrf.mxu1 }
 0xbfd   :  { %v2838_v23 = vadd.f32 %v2834_v63, %v2686_v18 }
 0xbfe   :  { %v14210_v25 = vpop.f32.mrf.mxu1 }
 0xbff   :  { %v11869_v25 = vld [vmem:[%s19848_s6 + $0x16] sm:$0x3] }
 0xc04   :  { %v2910_v21 = vpop.f32.mrf.mxu1 }
 0xc05   :  { %14227 = vmatmul.mubr.msk.f32.vlgmr.msra.gmra.mxu0 %vm2236_vm6, %v2910_v21  ;;  %v11872_v21 = vld [vmem:[%s19849_s7 + $0xb8] sm:$0xff] }
 0xc06   :  { %14230 = vmatpush3.msra.mxu0 %v16957_v8  ;;  %v14221_v28 = vpop.f32.mrf.mxu1  ;;  %14237 = vmatprep.mubr.msk.f32.mxu0 %vm16170_vm4, %v19868_v61 }
 0xc07   :  { %14231 = vmatprep.subr.mxu0 %v19868_v61  ;;  %v11871_v28 = vld [vmem:[%s19849_s7 + $0xb0] sm:$0xff] }
 0xc08   :  { %14232 = vmatpush3.msra.mxu0 %v16959_v26 }
 0xc09   :  { %14233 = vmatprep.subr.mxu0 %v19868_v61 }
 0xc0a   :  { %14234 = vmatpush3.msra.mxu0 %v16965_v24 }
 0xc0b   :  { %14235 = vmatprep.subr.mxu0 %v19868_v61 }
 0xc0c   :  { %14236 = vmatpush3.msra.mxu0 %v16971_v27 }
 0xc0d   :  { %14238 = vmatmul.mubr.msk.f32.vlgmr.msra.gmra.mxu0 %vm2082_vm5, %v11844_v29  ;;  %14258 = vmatprep.subr.mxu0 %v19868_v61 }
 0xc0e   :  { %14262 = vmatprep.mubr.msk.f32.mxu0 %vm16170_vm4, %v19868_v61  ;;  %14259 = vmatpush3.msra.mxu0 %v11852_v45 }
 0xc0f   :  { %14260 = vmatprep.subr.mxu0 %v19868_v61 }
 0xc10   :  { %14261 = vmatpush3.msra.mxu0 %v11851_v47 }
 0xc11   :  { %14265 = vmatprep.subr.mxu0 %v19868_v61 }
 0xcc5   :  { %v2986_v35 = vpop.f32.mrf.mxu0 }
 0xcc6   :  { %v2990_v36 = vadd.f32 %v2986_v35, %v2838_v23 }
 0xcc7   :  { %v14228_v39 = vpop.f32.mrf.mxu0 }
 0xcc8   :  { %v11874_v39 = vld [vmem:[%s19848_s6 + $0x18] sm:$0x3] }
 0xccd   :  { %v3062_v40 = vpop.f32.mrf.mxu0 }
 0xcce   :  { %14245 = vmatmul.mubr.msk.f32.vlgmr.msra.gmra.mxu1 %vm2236_vm6, %v3062_v40  ;;  %v11877_v40 = vld [vmem:[%s19849_s7 + $0xc8] sm:$0xff] }
 0xccf   :  { %14248 = vmatpush3.msra.mxu1 %v16957_v8  ;;  %v14239_v42 = vpop.f32.mrf.mxu0  ;;  %14255 = vmatprep.mubr.msk.f32.mxu1 %vm16170_vm4, %v19868_v61 }
 0xcd0   :  { %14249 = vmatprep.subr.mxu1 %v19868_v61  ;;  %v11876_v42 = vld [vmem:[%s19849_s7 + $0xc0] sm:$0xff] }
 0xcd1   :  { %14250 = vmatpush3.msra.mxu1 %v16959_v26 }
 0xcd2   :  { %14251 = vmatprep.subr.mxu1 %v19868_v61 }
 0xcd3   :  { %14252 = vmatpush3.msra.mxu1 %v16965_v24 }
 0xcd4   :  { %14253 = vmatprep.subr.mxu1 %v19868_v61 }
 0xcd5   :  { %14254 = vmatpush3.msra.mxu1 %v16971_v27 }
 0xcd6   :  { %14256 = vmatmul.mubr.msk.f32.vlgmr.msra.gmra.mxu1 %vm2082_vm5, %v11849_v43  ;;  %14276 = vmatprep.subr.mxu1 %v19868_v61 }
 0xcd7   :  { %14280 = vmatprep.mubr.msk.f32.mxu1 %vm16170_vm4, %v19868_v61  ;;  %14277 = vmatpush3.msra.mxu1 %v11857_v9 }
 0xcd8   :  { %14278 = vmatprep.subr.mxu1 %v19868_v61 }
 0xcd9   :  { %14279 = vmatpush3.msra.mxu1 %v11856_v10 }
 0xcda   :  { %14283 = vmatprep.subr.mxu1 %v19868_v61 }
 0xd8e   :  { %v3138_v49 = vpop.f32.mrf.mxu1 }
 0xd8f   :  { %v3142_v51 = vadd.f32 %v3138_v49, %v2990_v36 }
 0xd90   :  { %v14246_v55 = vpop.f32.mrf.mxu1 }
 0xd91   :  { %v11879_v55 = vld [vmem:[%s19848_s6 + $0x1a] sm:$0x3] }
 0xd96   :  { %v3214_v57 = vpop.f32.mrf.mxu1 }
 0xd97   :  { %14263 = vmatmul.mubr.msk.f32.vlgmr.msra.gmra.mxu0 %vm2236_vm6, %v3214_v57  ;;  %v11882_v57 = vld [vmem:[%s19849_s7 + $0xd8] sm:$0xff] }
 0xd98   :  { %14266 = vmatpush3.msra.mxu0 %v16957_v8  ;;  %v14257_v3 = vpop.f32.mrf.mxu1  ;;  %14273 = vmatprep.mubr.msk.f32.mxu0 %vm16170_vm4, %v19868_v61 }
 0xd99   :  { %14267 = vmatprep.subr.mxu0 %v19868_v61  ;;  %v11881_v3 = vld [vmem:[%s19849_s7 + $0xd0] sm:$0xff] }
 0xd9a   :  { %14268 = vmatpush3.msra.mxu0 %v16959_v26 }
 0xd9b   :  { %14269 = vmatprep.subr.mxu0 %v19868_v61 }
 0xd9c   :  { %14270 = vmatpush3.msra.mxu0 %v16965_v24 }
 0xd9d   :  { %14271 = vmatprep.subr.mxu0 %v19868_v61 }
 0xd9e   :  { %14272 = vmatpush3.msra.mxu0 %v16971_v27 }
 0xd9f   :  { %14274 = vmatmul.mubr.msk.f32.vlgmr.msra.gmra.mxu0 %vm2082_vm5, %v11854_v7  ;;  %14294 = vmatprep.subr.mxu0 %v19868_v61 }
 0xda0   :  { %14298 = vmatprep.mubr.msk.f32.mxu0 %vm16170_vm4, %v19868_v61  ;;  %14295 = vmatpush3.msra.mxu0 %v11862_v32 }
 0xda1   :  { %14296 = vmatprep.subr.mxu0 %v19868_v61 }
 0xda2   :  { %14297 = vmatpush3.msra.mxu0 %v11861_v33 }
 0xda3   :  { %14301 = vmatprep.subr.mxu0 %v19868_v61 }
 0xe57   :  { %v3290_v11 = vpop.f32.mrf.mxu0 }
 0xe58   :  { %v3294_v12 = vadd.f32 %v3290_v11, %v3142_v51 }
 0xe59   :  { %v14264_v13 = vpop.f32.mrf.mxu0 }
 0xe5a   :  { %v11884_v13 = vld [vmem:[%s19848_s6 + $0x1c] sm:$0x3] }
 0xe5f   :  { %v3366_v14 = vpop.f32.mrf.mxu0 }
 0xe60   :  { %14281 = vmatmul.mubr.msk.f32.vlgmr.msra.gmra.mxu1 %vm2236_vm6, %v3366_v14  ;;  %v11887_v14 = vld [vmem:[%s19849_s7 + $0xe8] sm:$0xff] }
 0xe61   :  { %14284 = vmatpush3.msra.mxu1 %v16957_v8  ;;  %v14275_v15 = vpop.f32.mrf.mxu0  ;;  %14291 = vmatprep.mubr.msk.f32.mxu1 %vm16170_vm4, %v19868_v61 }
 0xe62   :  { %14285 = vmatprep.subr.mxu1 %v19868_v61  ;;  %v11886_v15 = vld [vmem:[%s19849_s7 + $0xe0] sm:$0xff] }
 0xe63   :  { %14286 = vmatpush3.msra.mxu1 %v16959_v26 }
 0xe64   :  { %14287 = vmatprep.subr.mxu1 %v19868_v61 }
 0xe65   :  { %14288 = vmatpush3.msra.mxu1 %v16965_v24 }
 0xe66   :  { %14289 = vmatprep.subr.mxu1 %v19868_v61 }
 0xe67   :  { %14290 = vmatpush3.msra.mxu1 %v16971_v27 }
 0xe68   :  { %14292 = vmatmul.mubr.msk.f32.vlgmr.msra.gmra.mxu1 %vm2082_vm5, %v11859_v16  ;;  %14312 = vmatprep.subr.mxu1 %v19868_v61 }
 0xe69   :  { %14316 = vmatprep.mubr.msk.f32.mxu1 %vm16170_vm4, %v19868_v61  ;;  %14313 = vmatpush3.msra.mxu1 %v11867_v19 }
 0xe6a   :  { %14314 = vmatprep.subr.mxu1 %v19868_v61 }
 0xe6b   :  { %14315 = vmatpush3.msra.mxu1 %v11866_v20 }
 0xe6c   :  { %14319 = vmatprep.subr.mxu1 %v19868_v61 }
 0xf20   :  { %v3442_v37 = vpop.f32.mrf.mxu1 }
 0xf21   :  { %v3446_v53 = vadd.f32 %v3442_v37, %v3294_v12 }
 0xf22   :  { %v14282_v59 = vpop.f32.mrf.mxu1 }
 0xf23   :  { %v11889_v59 = vld [vmem:[%s19848_s6 + $0x1e] sm:$0x3] }
 0xf28   :  { %v3518_v1 = vpop.f32.mrf.mxu1 }
 0xf29   :  { %14299 = vmatmul.mubr.msk.f32.vlgmr.msra.gmra.mxu0 %vm2236_vm6, %v3518_v1  ;;  %v11892_v1 = vld [vmem:[%s19849_s7 + $0xf8] sm:$0xff] }
 0xf2a   :  { %14302 = vmatpush3.msra.mxu0 %v16957_v8  ;;  %v14293_v18 = vpop.f32.mrf.mxu1  ;;  %14309 = vmatprep.mubr.msk.f32.mxu0 %vm16170_vm4, %v19868_v61 }
 0xf2b   :  { %14303 = vmatprep.subr.mxu0 %v19868_v61  ;;  %v11891_v18 = vld [vmem:[%s19849_s7 + $0xf0] sm:$0xff] }
 0xf2c   :  { %14304 = vmatpush3.msra.mxu0 %v16959_v26 }
 0xf2d   :  { %14305 = vmatprep.subr.mxu0 %v19868_v61 }
 0xf2e   :  { %14306 = vmatpush3.msra.mxu0 %v16965_v24 }
 0xf2f   :  { %14307 = vmatprep.subr.mxu0 %v19868_v61 }
 0xf30   :  { %14308 = vmatpush3.msra.mxu0 %v16971_v27 }
 0xf31   :  { %14310 = vmatmul.mubr.msk.f32.vlgmr.msra.gmra.mxu0 %vm2082_vm5, %v11864_v17  ;;  %14330 = vmatprep.subr.mxu0 %v19868_v61 }
 0xf32   :  { %14334 = vmatprep.mubr.msk.f32.mxu0 %vm16170_vm4, %v19868_v61  ;;  %14331 = vmatpush3.msra.mxu0 %v11872_v21  ;;  %v4523_v21 = vld [vmem:[%s19851_s9 + $0x18] sm:$0xff] }
 0xf33   :  { %14332 = vmatprep.subr.mxu0 %v19868_v61 }
 0xf34   :  { %14333 = vmatpush3.msra.mxu0 %v11871_v28  ;;  %v4522_v28 = vld [vmem:[%s19851_s9 + $0x10] sm:$0xff] }
 0xf35   :  { %14337 = vmatprep.subr.mxu0 %v19868_v61 }
 0xfe9   :  { %v3594_v34 = vpop.f32.mrf.mxu0 }
 0xfea   :  { %v3598_v38 = vadd.f32 %v3594_v34, %v3446_v53  ;;  %v4527_v34 = vld [vmem:[%s19851_s9 + $0x38] sm:$0xff] }
 0xfeb   :  { %v14300_v22 = vpop.f32.mrf.mxu0 }
 0xfec   :  { %v4526_v22 = vld [vmem:[%s19851_s9 + $0x30] sm:$0xff] }
 0xff1   :  { %v3670_v63 = vpop.f32.mrf.mxu0 }
 0xff2   :  { %14317 = vmatmul.mubr.msk.f32.vlgmr.msra.gmra.mxu1 %vm2236_vm6, %v3670_v63 }
 0xff3   :  { %14320 = vmatpush3.msra.mxu1 %v16957_v8  ;;  %v14311_v23 = vpop.f32.mrf.mxu0  ;;  %14327 = vmatprep.mubr.msk.f32.mxu1 %vm16170_vm4, %v19868_v61 }
 0xff4   :  { %14321 = vmatprep.subr.mxu1 %v19868_v61  ;;  %v4525_v23 = vld [vmem:[%s19851_s9 + $0x28] sm:$0xff] }
 0xff5   :  { %14322 = vmatpush3.msra.mxu1 %v16959_v26 }
 0xff6   :  { %14323 = vmatprep.subr.mxu1 %v19868_v61 }
 0xff7   :  { %14324 = vmatpush3.msra.mxu1 %v16965_v24 }
 0xff8   :  { %14325 = vmatprep.subr.mxu1 %v19868_v61 }
 0xff9   :  { %14326 = vmatpush3.msra.mxu1 %v16971_v27 }
 0xffa   :  { %14328 = vmatmul.mubr.msk.f32.vlgmr.msra.gmra.mxu1 %vm2082_vm5, %v11869_v25  ;;  %14348 = vmatprep.subr.mxu1 %v19868_v61  ;;  %v4524_v25 = vld [vmem:[%s19851_s9 + $0x20] sm:$0xff] }
 0xffb   :  { %14352 = vmatprep.mubr.msk.f32.mxu1 %vm16170_vm4, %v19868_v61  ;;  %14349 = vmatpush3.msra.mxu1 %v11877_v40 }
 0xffc   :  { %14350 = vmatprep.subr.mxu1 %v19868_v61 }
 0xffd   :  { %14351 = vmatpush3.msra.mxu1 %v11876_v42 }
 0xffe   :  { %14355 = vmatprep.subr.mxu1 %v19868_v61 }
0x10b2   :  { %v3746_v29 = vpop.f32.mrf.mxu1 }
0x10b3   :  { %v3750_v30 = vadd.f32 %v3746_v29, %v3598_v38  ;;  %v4521_v29 = vld [vmem:[%s19851_s9 + $0x8] sm:$0xff] }
0x10b4   :  { %v14318_v31 = vpop.f32.mrf.mxu1 }
0x10ba   :  { %v3822_v35 = vpop.f32.mrf.mxu1 }
0x10bb   :  { %14335 = vmatmul.mubr.msk.f32.vlgmr.msra.gmra.mxu0 %vm2236_vm6, %v3822_v35  ;;  %v11894_v35 = vld [vmem:[%s19850_s8] ss:$0 sm:$0xff] }
0x10bc   :  { %14338 = vmatpush3.msra.mxu0 %v16957_v8  ;;  %v14329_v36 = vpop.f32.mrf.mxu1  ;;  %14345 = vmatprep.mubr.msk.f32.mxu0 %vm16170_vm4, %v19868_v61 }
0x10bd   :  { %14339 = vmatprep.subr.mxu0 %v19868_v61 }
0x10be   :  { %14340 = vmatpush3.msra.mxu0 %v16959_v26 }
0x10bf   :  { %14341 = vmatprep.subr.mxu0 %v19868_v61 }
0x10c0   :  { %14342 = vmatpush3.msra.mxu0 %v16965_v24 }
0x10c1   :  { %14343 = vmatprep.subr.mxu0 %v19868_v61 }
0x10c2   :  { %14344 = vmatpush3.msra.mxu0 %v16971_v27 }
0x10c3   :  { %14346 = vmatmul.mubr.msk.f32.vlgmr.msra.gmra.mxu0 %vm2082_vm5, %v11874_v39  ;;  %14366 = vmatprep.subr.mxu0 %v19868_v61 }
0x10c4   :  { %14370 = vmatprep.mubr.msk.f32.mxu0 %vm16170_vm4, %v19868_v61  ;;  %14367 = vmatpush3.msra.mxu0 %v11882_v57  ;;  %v11905_v57 = vld [vmem:[%s19855_s13 + $0xb0] sm:$0xff] }
0x10c5   :  { %14368 = vmatprep.subr.mxu0 %v19868_v61 }
0x10c6   :  { %14369 = vmatpush3.msra.mxu0 %v11881_v3  ;;  %v11906_v3 = vld [vmem:[%s19855_s13 + $0xb8] sm:$0xff] }
0x10c7   :  { %14373 = vmatprep.subr.mxu0 %v19868_v61 }
0x117b   :  { %v3898_v43 = vpop.f32.mrf.mxu0 }
0x117c   :  { %v3902_v45 = vadd.f32 %v3898_v43, %v3750_v30  ;;  %v4520_v30 = vld [vmem:[%s19851_s9] sm:$0xff] }
0x117d   :  { %v14336_v47 = vpop.f32.mrf.mxu0  ;;  %v11899_v43 = vld [vmem:[%s19855_s13 + $0x80] sm:$0xff] }
0x117e   :  { %v11901_v47 = vld [vmem:[%s19855_s13 + $0x90] sm:$0xff] }
0x1183   :  { %v3974_v49 = vpop.f32.mrf.mxu0 }
0x1184   :  { %14353 = vmatmul.mubr.msk.f32.vlgmr.msra.gmra.mxu1 %vm2236_vm6, %v3974_v49  ;;  %v11902_v49 = vld [vmem:[%s19855_s13 + $0x98] sm:$0xff] }
0x1185   :  { %14356 = vmatpush3.msra.mxu1 %v16957_v8  ;;  %v14347_v51 = vpop.f32.mrf.mxu0  ;;  %14363 = vmatprep.mubr.msk.f32.mxu1 %vm16170_vm4, %v19868_v61 }
0x1186   :  { %14357 = vmatprep.subr.mxu1 %v19868_v61  ;;  %v11903_v51 = vld [vmem:[%s19855_s13 + $0xa0] sm:$0xff] }
0x1187   :  { %14358 = vmatpush3.msra.mxu1 %v16959_v26 }
0x1188   :  { %14359 = vmatprep.subr.mxu1 %v19868_v61 }
0x1189   :  { %14360 = vmatpush3.msra.mxu1 %v16965_v24 }
0x118a   :  { %14361 = vmatprep.subr.mxu1 %v19868_v61 }
0x118b   :  { %14362 = vmatpush3.msra.mxu1 %v16971_v27 }
0x118c   :  { %14364 = vmatmul.mubr.msk.f32.vlgmr.msra.gmra.mxu1 %vm2082_vm5, %v11879_v55  ;;  %14384 = vmatprep.subr.mxu1 %v19868_v61  ;;  %v11904_v55 = vld [vmem:[%s19855_s13 + $0xa8] sm:$0xff] }
0x118d   :  { %14388 = vmatprep.mubr.msk.f32.mxu1 %vm16170_vm4, %v19868_v61  ;;  %14385 = vmatpush3.msra.mxu1 %v11887_v14  ;;  %v11913_v14 = vld [vmem:[%s19855_s13 + $0xf0] sm:$0xff] }
0x118e   :  { %14386 = vmatprep.subr.mxu1 %v19868_v61 }
0x118f   :  { %14387 = vmatpush3.msra.mxu1 %v11886_v15  ;;  %v11914_v15 = vld [vmem:[%s19855_s13 + $0xf8] sm:$0xff] }
0x1190   :  { %14391 = vmatprep.subr.mxu1 %v19868_v61 }
0x1244   :  { %v4050_v7 = vpop.f32.mrf.mxu1 }
0x1245   :  { %v4054_v9 = vadd.f32 %v4050_v7, %v3902_v45  ;;  %v11900_v45 = vld [vmem:[%s19855_s13 + $0x88] sm:$0xff]  ;;  %v11907_v7 = vld [vmem:[%s19855_s13 + $0xc0] sm:$0xff] }
0x1246   :  { %v14354_v10 = vpop.f32.mrf.mxu1 }
0x1247   :  { %v11909_v10 = vld [vmem:[%s19855_s13 + $0xd0] sm:$0xff] }
0x124c   :  { %v4126_v11 = vpop.f32.mrf.mxu1 }
0x124d   :  { %14371 = vmatmul.mubr.msk.f32.vlgmr.msra.gmra.mxu0 %vm2236_vm6, %v4126_v11  ;;  %v11910_v11 = vld [vmem:[%s19855_s13 + $0xd8] sm:$0xff] }
0x124e   :  { %14374 = vmatpush3.msra.mxu0 %v16957_v8  ;;  %v14365_v12 = vpop.f32.mrf.mxu1  ;;  %14381 = vmatprep.mubr.msk.f32.mxu0 %vm16170_vm4, %v19868_v61 }
0x124f   :  { %14375 = vmatprep.subr.mxu0 %v19868_v61  ;;  %v11911_v12 = vld [vmem:[%s19855_s13 + $0xe0] sm:$0xff] }
0x1250   :  { %14376 = vmatpush3.msra.mxu0 %v16959_v26 }
0x1251   :  { %14377 = vmatprep.subr.mxu0 %v19868_v61 }
0x1252   :  { %14378 = vmatpush3.msra.mxu0 %v16965_v24 }
0x1253   :  { %14379 = vmatprep.subr.mxu0 %v19868_v61 }
0x1254   :  { %14380 = vmatpush3.msra.mxu0 %v16971_v27 }
0x1255   :  { %14382 = vmatmul.mubr.msk.f32.vlgmr.msra.gmra.mxu0 %vm2082_vm5, %v11884_v13  ;;  %14402 = vmatprep.subr.mxu0 %v19868_v61  ;;  %v11912_v13 = vld [vmem:[%s19855_s13 + $0xe8] sm:$0xff] }
0x1256   :  { %14406 = vmatprep.mubr.msk.f32.mxu0 %vm16170_vm4, %v19868_v61  ;;  %14403 = vmatpush3.msra.mxu0 %v11892_v1 }
0x1257   :  { %14404 = vmatprep.subr.mxu0 %v19868_v61 }
0x1258   :  { %14405 = vmatpush3.msra.mxu0 %v11891_v18  ;;  %v4697_v18 = vld [vmem:[%s19855_s13 + $0x18] sm:$0xff] }
0x1259   :  { %14409 = vmatprep.subr.mxu0 %v19868_v61 }
0x130d   :  { %v4202_v16 = vpop.f32.mrf.mxu0 }
0x130e   :  { %v4206_v32 = vadd.f32 %v4202_v16, %v4054_v9  ;;  %v11908_v9 = vld [vmem:[%s19855_s13 + $0xc8] sm:$0xff]  ;;  %v11895_v16 = vld [vmem:[%s19852_s10] ss:$0 sm:$0xff] }
0x130f   :  { %v14372_v33 = vpop.f32.mrf.mxu0 }
0x1315   :  { %v4278_v37 = vpop.f32.mrf.mxu0 }
0x1316   :  { %14389 = vmatmul.mubr.msk.f32.vlgmr.msra.gmra.mxu1 %vm2236_vm6, %v4278_v37 }
0x1317   :  { %14392 = vmatpush3.msra.mxu1 %v16957_v8  ;;  %v14383_v53 = vpop.f32.mrf.mxu0  ;;  %14399 = vmatprep.mubr.msk.f32.mxu1 %vm16170_vm4, %v19868_v61  ;;  %v4613_v8 = vld [vmem:[%s19853_s11 + $0x18] sm:$0xff] }
0x1318   :  { %14393 = vmatprep.subr.mxu1 %v19868_v61 }
0x1319   :  { %14394 = vmatpush3.msra.mxu1 %v16959_v26  ;;  %v4612_v26 = vld [vmem:[%s19853_s11 + $0x10] sm:$0xff] }
0x131a   :  { %14395 = vmatprep.subr.mxu1 %v19868_v61 }
0x131b   :  { %14396 = vmatpush3.msra.mxu1 %v16965_v24  ;;  %v4611_v24 = vld [vmem:[%s19853_s11 + $0x8] sm:$0xff] }
0x131c   :  { %14397 = vmatprep.subr.mxu1 %v19868_v61 }
0x131d   :  { %14398 = vmatpush3.msra.mxu1 %v16971_v27  ;;  %v4610_v27 = vld [vmem:[%s19853_s11] sm:$0xff] }
0x131e   :  { %14400 = vmatmul.mubr.msk.f32.vlgmr.msra.gmra.mxu1 %vm2082_vm5, %v11889_v59  ;;  %14428 = vmatprep.subr.mxu1 %v19868_v61  ;;  %v4694_v59 = vld [vmem:[%s19855_s13] sm:$0xff] }
0x131f   :  { %14429 = vmatpush3.msra.mxu1 %v4613_v8  ;;  %14436 = vmatprep.mubr.msk.f32.mxu1 %vm16170_vm4, %v19868_v61 }
0x1320   :  { %14430 = vmatprep.subr.mxu1 %v19868_v61 }
0x1321   :  { %14431 = vmatpush3.msra.mxu1 %v4612_v26  ;;  %v4695_v26 = vld [vmem:[%s19855_s13 + $0x8] sm:$0xff] }
0x1322   :  { %14432 = vmatprep.subr.mxu1 %v19868_v61 }
0x1323   :  { %14433 = vmatpush3.msra.mxu1 %v4611_v24  ;;  %v11915_v24 = vld [vmem:[%s19856_s14 + $0x2] sm:$0x3] }
0x1324   :  { %14434 = vmatprep.subr.mxu1 %v19868_v61 }
0x1325   :  { %14435 = vmatpush3.msra.mxu1 %v4610_v27  ;;  %v4696_v27 = vld [vmem:[%s19855_s13 + $0x10] sm:$0xff] }
0x1326   :  { %14439 = vmatprep.subr.mxu1 %v16384_v41 }
0x13d6   :  { %v4354_v17 = vpop.f32.mrf.mxu1 }
0x13d7   :  { %v4358_v19 = vadd.f32 %v4354_v17, %v4206_v32  ;;  %v4698_v17 = vld [vmem:[%s19855_s13 + $0x20] sm:$0xff] }
0x13d8   :  { %v14390_v20 = vpop.f32.mrf.mxu1 }
0x13d9   :  { %v4699_v20 = vld [vmem:[%s19855_s13 + $0x28] sm:$0xff] }
0x13de   :  { %v4430_v38 = vpop.f32.mrf.mxu1 }
0x13df   :  { %14407 = vmatmul.mubr.msk.f32.vlgmr.msra.gmra.mxu0 %vm2236_vm6, %v4430_v38 }
0x13e0   :  { %14410 = vmatpush3.msra.mxu0 %v4527_v34  ;;  %v14401_v63 = vpop.f32.mrf.mxu1  ;;  %14425 = vmatprep.mubr.msk.f32.mxu0 %vm16170_vm4, %v19868_v61  ;;  %v4700_v34 = vld [vmem:[%s19855_s13 + $0x30] sm:$0xff] }
0x13e1   :  { %14411 = vmatprep.subr.mxu0 %v19868_v61  ;;  %v4702_v63 = vld [vmem:[%s19855_s13 + $0x40] sm:$0xff] }
0x13e2   :  { %14412 = vmatpush3.msra.mxu0 %v4526_v22  ;;  %v4701_v22 = vld [vmem:[%s19855_s13 + $0x38] sm:$0xff] }
0x13e3   :  { %14413 = vmatprep.subr.mxu0 %v19868_v61 }
0x13e4   :  { %14414 = vmatpush3.msra.mxu0 %v4525_v23 }
0x13e5   :  { %14415 = vmatprep.subr.mxu0 %v19868_v61 }
0x13e6   :  { %14416 = vmatpush3.msra.mxu0 %v4524_v25  ;;  %v4703_v25 = vld [vmem:[%s19855_s13 + $0x48] sm:$0xff] }
0x13e7   :  { %14417 = vmatprep.subr.mxu0 %v19868_v61 }
0x13e8   :  { %14418 = vmatpush3.msra.mxu0 %v4523_v21  ;;  %v4704_v21 = vld [vmem:[%s19855_s13 + $0x50] sm:$0xff] }
0x13e9   :  { %14419 = vmatprep.subr.mxu0 %v19868_v61 }
0x13ea   :  { %14420 = vmatpush3.msra.mxu0 %v4522_v28 }
0x13eb   :  { %14421 = vmatprep.subr.mxu0 %v19868_v61 }
0x13ec   :  { %14422 = vmatpush3.msra.mxu0 %v4521_v29  ;;  %v4705_v29 = vld [vmem:[%s19855_s13 + $0x58] sm:$0xff] }
0x13ed   :  { %14423 = vmatprep.subr.mxu0 %v19868_v61 }
0x13ee   :  { %14424 = vmatpush3.msra.mxu0 %v4520_v30  ;;  %v4706_v30 = vld [vmem:[%s19855_s13 + $0x60] sm:$0xff] }
0x13ef   :  { %14495 = vmatprep.subr.mxu0 %v16384_v41 }
0x149f   :  { %v4506_v31 = vpop.f32.mrf.mxu0 }
0x14a0   :  { %v4510_v36 = vadd.f32 %v4506_v31, %v4358_v19 }
0x14a1   :  { %v14408_v39 = vpop.f32.mrf.mxu0 }
0x14a2   :  { %v4518_v40 = vadd.f32 %v11894_v35, %v4510_v36  ;;  %v4707_v35 = vld [vmem:[%s19855_s13 + $0x68] sm:$0xff]  ;;  %v4708_v36 = vld [vmem:[%s19855_s13 + $0x70] sm:$0xff] }
0x14a4   :  { %v4519_v42 = vmax.f32 %v4518_v40, 0.0  ;;  %v4709_v40 = vld [vmem:[%s19855_s13 + $0x78] sm:$0xff] }
0x14a6   :  { %14426 = vmatmul.mubr.msk.f32.vlgmr.msra.gmra.mxu0 %vm4535_vm7, %v4519_v42 }
0x14a7   :  { %14496 = vmatpush3.msra.mxu0 %v16384_v41  ;;  %14527 = vmatprep.mubr.f32.mxu0 %v11899_v43 }
0x14a8   :  { %14497 = vmatprep.subr.mxu0 %v16388_v44 }
0x14a9   :  { %14498 = vmatpush3.msra.mxu0 %v16388_v44 }
0x14aa   :  { %14499 = vmatprep.subr.mxu0 %v16395_v46 }
0x14ab   :  { %14500 = vmatpush3.msra.mxu0 %v16395_v46 }
0x14ac   :  { %14501 = vmatprep.subr.mxu0 %v16402_v48 }
0x14ad   :  { %14502 = vmatpush3.msra.mxu0 %v16402_v48 }
0x14ae   :  { %14503 = vmatprep.subr.mxu0 %v16409_v50 }
0x14af   :  { %14504 = vmatpush3.msra.mxu0 %v16409_v50 }
0x14b0   :  { %14505 = vmatprep.subr.mxu0 %v16416_v52 }
0x14b1   :  { %14506 = vmatpush3.msra.mxu0 %v16416_v52 }
0x14b2   :  { %14507 = vmatprep.subr.mxu0 %v16423_v54 }
0x14b3   :  { %14508 = vmatpush3.msra.mxu0 %v16423_v54 }
0x14b4   :  { %14509 = vmatprep.subr.mxu0 %v16430_v56 }
0x14b5   :  { %14510 = vmatpush3.msra.mxu0 %v16430_v56 }
0x14b6   :  { %14511 = vmatprep.subr.mxu0 %v16437_v58 }
0x14b7   :  { %14512 = vmatpush3.msra.mxu0 %v16437_v58 }
0x14b8   :  { %14513 = vmatprep.subr.mxu0 %v16445_v60 }
0x14b9   :  { %14514 = vmatpush3.msra.mxu0 %v16445_v60 }
0x14ba   :  { %14515 = vmatprep.subr.mxu0 %v16453_v62 }
0x14bb   :  { %14516 = vmatpush3.msra.mxu0 %v16453_v62 }
0x14bc   :  { %14517 = vmatprep.subr.mxu0 %v16461_v0 }
0x14bd   :  { %14518 = vmatpush3.msra.mxu0 %v16461_v0 }
0x14be   :  { %14519 = vmatprep.subr.mxu0 %v16469_v2 }
0x14bf   :  { %14520 = vmatpush3.msra.mxu0 %v16469_v2 }
0x14c0   :  { %14521 = vmatprep.subr.mxu0 %v16477_v4 }
0x14c1   :  { %14522 = vmatpush3.msra.mxu0 %v16477_v4 }
0x14c2   :  { %14523 = vmatprep.subr.mxu0 %v16483_v5 }
0x14c3   :  { %14524 = vmatpush3.msra.mxu0 %v16483_v5 }
0x14c4   :  { %14525 = vmatprep.subr.mxu0 %v16489_v6 }
0x14c5   :  { %14526 = vmatpush3.msra.mxu0 %v16489_v6 }
0x14c6   :  { %14528 = vmatmul.mubr.f32.vlgmr.msra.gmra.mxu0 %v11900_v45 }
0x14c7   :  { %14530 = vmatprep.mubr.f32.mxu0 %v11901_v47 }
0x14ca   :  { %14531 = vmatmul.mubr.f32.gmra.mxu0 %v11902_v49 }
0x14cb   :  { %14533 = vmatprep.mubr.f32.mxu0 %v11903_v51 }
0x14ce   :  { %14534 = vmatmul.mubr.f32.gmra.mxu0 %v11904_v55 }
0x14cf   :  { %14536 = vmatprep.mubr.f32.mxu0 %v11905_v57 }
0x14d2   :  { %14537 = vmatmul.mubr.f32.gmra.mxu0 %v11906_v3  ;;  %v11950_v3 = vld [vmem:[%s19855_s13 + $0x100] sm:$0xff] }
0x14d3   :  { %14539 = vmatprep.mubr.f32.mxu0 %v11907_v7  ;;  %v11951_v7 = vld [vmem:[%s19855_s13 + $0x108] sm:$0xff] }
0x14d6   :  { %14540 = vmatmul.mubr.f32.gmra.mxu0 %v11908_v9  ;;  %v11952_v9 = vld [vmem:[%s19855_s13 + $0x110] sm:$0xff] }
0x14d7   :  { %14542 = vmatprep.mubr.f32.mxu0 %v11909_v10  ;;  %v11953_v10 = vld [vmem:[%s19855_s13 + $0x118] sm:$0xff] }
0x14da   :  { %14543 = vmatmul.mubr.f32.gmra.mxu0 %v11910_v11  ;;  %v11954_v11 = vld [vmem:[%s19855_s13 + $0x120] sm:$0xff] }
0x14db   :  { %14545 = vmatprep.mubr.f32.mxu0 %v11911_v12  ;;  %v4855_v12 = vld [vmem:[%s19856_s14] sm:$0x3] }
0x14dc   :  { %14577 = vmatprep.subr.msk.mxu0 %vm505_vm2, %v4855_v12 }
0x14dd   :  { %14578 = vmatpush3.msk.msra.mxu0 %vm505_vm2, %v4855_v12  ;;  %v12054_v12 = vld [vmem:[%s19855_s13 + $0x290] sm:$0xff] }
0x14de   :  { %14546 = vmatmul.mubr.f32.gmra.mxu0 %v11912_v13  ;;  %v11955_v13 = vld [vmem:[%s19855_s13 + $0x128] sm:$0xff] }
0x14df   :  { %14548 = vmatprep.mubr.f32.mxu0 %v11913_v14  ;;  %v11956_v14 = vld [vmem:[%s19855_s13 + $0x130] sm:$0xff] }
0x14e2   :  { %14549 = vmatmul.mubr.f32.gmra.mxu0 %v11914_v15  ;;  %v11957_v15 = vld [vmem:[%s19855_s13 + $0x138] sm:$0xff] }
0x1566   :  { %v4605_v32 = vpop.f32.mrf.mxu0 }
0x1567   :  { %v4606_v33 = vadd.f32 %v11895_v16, %v4605_v32  ;;  %v11958_v16 = vld [vmem:[%s19855_s13 + $0x140] sm:$0xff]  ;;  %v11959_v32 = vld [vmem:[%s19855_s13 + $0x148] sm:$0xff] }
0x1568   :  { %v14427_v37 = vpop.f32.mrf.mxu0 }
0x1569   :  { %v4609_v53 = vmax.f32 %v4606_v33, 0.0  ;;  %v11960_v33 = vld [vmem:[%s19855_s13 + $0x150] sm:$0xff]  ;;  %v11961_v37 = vld [vmem:[%s19855_s13 + $0x158] sm:$0xff] }
0x156b   :  { %14437 = vmatmul.mubr.msk.f32.vlgmr.msra.gmra.mxu1 %vm2082_vm5, %v4609_v53  ;;  %v11962_v53 = vld [vmem:[%s19855_s13 + $0x160] sm:$0xff] }
0x156c   :  { %14440 = vmatpush3.msra.mxu1 %v16384_v41  ;;  %14471 = vmatprep.mubr.f32.mxu1 %v4694_v59  ;;  %v11963_v59 = vld [vmem:[%s19855_s13 + $0x168] sm:$0xff] }
0x156d   :  { %14441 = vmatprep.subr.mxu1 %v16388_v44 }
0x156e   :  { %14442 = vmatpush3.msra.mxu1 %v16388_v44 }
0x156f   :  { %14443 = vmatprep.subr.mxu1 %v16395_v46 }
0x1570   :  { %14444 = vmatpush3.msra.mxu1 %v16395_v46 }
0x1571   :  { %14445 = vmatprep.subr.mxu1 %v16402_v48 }
0x1572   :  { %14446 = vmatpush3.msra.mxu1 %v16402_v48 }
0x1573   :  { %14447 = vmatprep.subr.mxu1 %v16409_v50 }
0x1574   :  { %14448 = vmatpush3.msra.mxu1 %v16409_v50 }
0x1575   :  { %14449 = vmatprep.subr.mxu1 %v16416_v52 }
0x1576   :  { %14450 = vmatpush3.msra.mxu1 %v16416_v52 }
0x1577   :  { %14451 = vmatprep.subr.mxu1 %v16423_v54 }
0x1578   :  { %14452 = vmatpush3.msra.mxu1 %v16423_v54 }
0x1579   :  { %14453 = vmatprep.subr.mxu1 %v16430_v56 }
0x157a   :  { %14454 = vmatpush3.msra.mxu1 %v16430_v56 }
0x157b   :  { %14455 = vmatprep.subr.mxu1 %v16437_v58 }
0x157c   :  { %14456 = vmatpush3.msra.mxu1 %v16437_v58 }
0x157d   :  { %14457 = vmatprep.subr.mxu1 %v16445_v60 }
0x157e   :  { %14458 = vmatpush3.msra.mxu1 %v16445_v60 }
0x157f   :  { %14459 = vmatprep.subr.mxu1 %v16453_v62 }
0x1580   :  { %14460 = vmatpush3.msra.mxu1 %v16453_v62 }
0x1581   :  { %14461 = vmatprep.subr.mxu1 %v16461_v0 }
0x1582   :  { %14462 = vmatpush3.msra.mxu1 %v16461_v0 }
0x1583   :  { %14463 = vmatprep.subr.mxu1 %v16469_v2 }
0x1584   :  { %14464 = vmatpush3.msra.mxu1 %v16469_v2 }
0x1585   :  { %14465 = vmatprep.subr.mxu1 %v16477_v4 }
0x1586   :  { %14466 = vmatpush3.msra.mxu1 %v16477_v4  ;;  %v14529_v8 = vpop.f32.mrf.mxu0 }
0x1587   :  { %14467 = vmatprep.subr.mxu1 %v16483_v5 }
0x1588   :  { %14468 = vmatpush3.msra.mxu1 %v16483_v5  ;;  %v4939_v1 = vpop.f32.mrf.mxu0 }
0x1589   :  { %14469 = vmatprep.subr.mxu1 %v16489_v6 }
0x158a   :  { %14470 = vmatpush3.msra.mxu1 %v16489_v6  ;;  %v14532_v19 = vpop.f32.mrf.mxu0 }
0x158b   :  { %14472 = vmatmul.mubr.f32.vlgmr.msra.gmra.mxu1 %v4695_v26  ;;  %14551 = vmatprep.subr.msk.mxu1 %vm505_vm2, %v11915_v24  ;;  %v11965_v26 = vld [vmem:[%s19855_s13 + $0x178] sm:$0xff] }
0x158c   :  { %14552 = vmatpush3.msk.msra.mxu1 %vm505_vm2, %v11915_v24  ;;  %14474 = vmatprep.mubr.f32.mxu1 %v4696_v27  ;;  %v4949_v38 = vpop.f32.mrf.mxu0  ;;  %v11984_v24 = vld [vmem:[%s19855_s13 + $0x180] sm:$0xff]  ;;  %v11985_v27 = vld [vmem:[%s19855_s13 + $0x188] sm:$0xff] }
0x158d   :  { %14603 = vmatprep.subr.mxu1 %v16384_v41 }
0x158e   :  { %v14535_v23 = vpop.f32.mrf.mxu0 }
0x158f   :  { %14475 = vmatmul.mubr.f32.gmra.mxu1 %v4697_v18  ;;  %v11987_v18 = vld [vmem:[%s19855_s13 + $0x198] sm:$0xff] }
0x1590   :  { %14477 = vmatprep.mubr.f32.mxu1 %v4698_v17  ;;  %v4959_v28 = vpop.f32.mrf.mxu0  ;;  %v11988_v17 = vld [vmem:[%s19855_s13 + $0x1a0] sm:$0xff] }
0x1592   :  { %v14538_v31 = vpop.f32.mrf.mxu0 }
0x1593   :  { %14478 = vmatmul.mubr.f32.gmra.mxu1 %v4699_v20  ;;  %v17744_v20 = vld [vmem:[%s19856_s14 + $0x4] sm:$0x3] }
0x1594   :  { %14480 = vmatprep.mubr.f32.mxu1 %v4700_v34  ;;  %v4969_v39 = vpop.f32.mrf.mxu0  ;;  %v11990_v34 = vld [vmem:[%s19855_s13 + $0x1b0] sm:$0xff]  ;;  %14659 = vmatprep.subr.msk.mxu0 %vm505_vm2, %v17744_v20 }
0x1596   :  { %v14541_v42 = vpop.f32.mrf.mxu0 }
0x1597   :  { %14481 = vmatmul.mubr.f32.gmra.mxu1 %v4701_v22  ;;  %v11992_v22 = vld [vmem:[%s19855_s13 + $0x1c0] sm:$0xff] }
0x1598   :  { %14483 = vmatprep.mubr.f32.mxu1 %v4702_v63  ;;  %v4979_v43 = vpop.f32.mrf.mxu0  ;;  %v11993_v63 = vld [vmem:[%s19855_s13 + $0x1c8] sm:$0xff] }
0x159a   :  { %v14544_v45 = vpop.f32.mrf.mxu0 }
0x159b   :  { %14484 = vmatmul.mubr.f32.gmra.mxu1 %v4703_v25  ;;  %v11995_v25 = vld [vmem:[%s19855_s13 + $0x1d8] sm:$0xff] }
0x159c   :  { %14486 = vmatprep.mubr.f32.mxu1 %v4704_v21  ;;  %v4989_v47 = vpop.f32.mrf.mxu0  ;;  %v11996_v21 = vld [vmem:[%s19855_s13 + $0x1e0] sm:$0xff] }
0x159e   :  { %v14547_v49 = vpop.f32.mrf.mxu0 }
0x159f   :  { %14487 = vmatmul.mubr.f32.gmra.mxu1 %v4705_v29  ;;  %v11998_v29 = vld [vmem:[%s19855_s13 + $0x1f0] sm:$0xff] }
0x15a0   :  { %14489 = vmatprep.mubr.f32.mxu1 %v4706_v30  ;;  %v4999_v51 = vpop.f32.mrf.mxu0  ;;  %v11999_v30 = vld [vmem:[%s19855_s13 + $0x1f8] sm:$0xff] }
0x15a2   :  { %v14550_v55 = vpop.f32.mrf.mxu0 }
0x15a3   :  { %14490 = vmatmul.mubr.f32.gmra.mxu1 %v4707_v35  ;;  %v12019_v35 = vld [vmem:[%s19855_s13 + $0x208] sm:$0xff] }
0x15a4   :  { %14492 = vmatprep.mubr.f32.mxu1 %v4708_v36  ;;  %v5009_v57 = vpop.f32.mrf.mxu0  ;;  %v12020_v36 = vld [vmem:[%s19855_s13 + $0x210] sm:$0xff] }
0x15a7   :  { %14493 = vmatmul.mubr.f32.gmra.mxu1 %v4709_v40  ;;  %v12022_v40 = vld [vmem:[%s19855_s13 + $0x220] sm:$0xff] }
0x15a8   :  { %14553 = vmatprep.mubr.msk.f32.mxu1 %vm492_vm3, %v4939_v1  ;;  %v11986_v1 = vld [vmem:[%s19855_s13 + $0x190] sm:$0xff] }
0x15ab   :  { %14554 = vmatmul.mubr.msk.f32.vlgmr.msra.gmra.mxu1 %vm492_vm3, %v14529_v8  ;;  %v11964_v8 = vld [vmem:[%s19855_s13 + $0x170] sm:$0xff] }
0x15ac   :  { %14604 = vmatpush3.msra.mxu1 %v16384_v41  ;;  %14556 = vmatprep.mubr.msk.f32.mxu1 %vm492_vm3, %v4949_v38  ;;  %v11991_v38 = vld [vmem:[%s19855_s13 + $0x1b8] sm:$0xff] }
0x15ad   :  { %14605 = vmatprep.subr.mxu1 %v16388_v44 }
0x15ae   :  { %14606 = vmatpush3.msra.mxu1 %v16388_v44 }
0x15af   :  { %14607 = vmatprep.subr.mxu1 %v16395_v46  ;;  %14557 = vmatmul.mubr.msk.f32.gmra.mxu1 %vm492_vm3, %v14532_v19  ;;  %v11989_v19 = vld [vmem:[%s19855_s13 + $0x1a8] sm:$0xff] }
0x15b0   :  { %14608 = vmatpush3.msra.mxu1 %v16395_v46  ;;  %14559 = vmatprep.mubr.msk.f32.mxu1 %vm492_vm3, %v4959_v28  ;;  %v11997_v28 = vld [vmem:[%s19855_s13 + $0x1e8] sm:$0xff] }
0x15b1   :  { %14609 = vmatprep.subr.mxu1 %v16402_v48 }
0x15b2   :  { %14610 = vmatpush3.msra.mxu1 %v16402_v48 }
0x15b3   :  { %14611 = vmatprep.subr.mxu1 %v16409_v50  ;;  %14560 = vmatmul.mubr.msk.f32.gmra.mxu1 %vm492_vm3, %v14535_v23  ;;  %v11994_v23 = vld [vmem:[%s19855_s13 + $0x1d0] sm:$0xff] }
0x15b4   :  { %14612 = vmatpush3.msra.mxu1 %v16409_v50  ;;  %14562 = vmatprep.mubr.msk.f32.mxu1 %vm492_vm3, %v4969_v39  ;;  %v12021_v39 = vld [vmem:[%s19855_s13 + $0x218] sm:$0xff] }
0x15b5   :  { %14613 = vmatprep.subr.mxu1 %v16416_v52 }
0x15b6   :  { %14614 = vmatpush3.msra.mxu1 %v16416_v52 }
0x15b7   :  { %14615 = vmatprep.subr.mxu1 %v16423_v54  ;;  %14563 = vmatmul.mubr.msk.f32.gmra.mxu1 %vm492_vm3, %v14538_v31  ;;  %v12018_v31 = vld [vmem:[%s19855_s13 + $0x200] sm:$0xff] }
0x15b8   :  { %14616 = vmatpush3.msra.mxu1 %v16423_v54  ;;  %14565 = vmatprep.mubr.msk.f32.mxu1 %vm492_vm3, %v4979_v43  ;;  %v12024_v43 = vld [vmem:[%s19855_s13 + $0x230] sm:$0xff] }
0x15b9   :  { %14617 = vmatprep.subr.mxu1 %v16430_v56 }
0x15ba   :  { %14618 = vmatpush3.msra.mxu1 %v16430_v56 }
0x15bb   :  { %14619 = vmatprep.subr.mxu1 %v16437_v58  ;;  %14566 = vmatmul.mubr.msk.f32.gmra.mxu1 %vm492_vm3, %v14541_v42  ;;  %v12023_v42 = vld [vmem:[%s19855_s13 + $0x228] sm:$0xff] }
0x15bc   :  { %14620 = vmatpush3.msra.mxu1 %v16437_v58  ;;  %14568 = vmatprep.mubr.msk.f32.mxu1 %vm492_vm3, %v4989_v47  ;;  %v12026_v47 = vld [vmem:[%s19855_s13 + $0x240] sm:$0xff] }
0x15bd   :  { %14621 = vmatprep.subr.mxu1 %v16445_v60 }
0x15be   :  { %14622 = vmatpush3.msra.mxu1 %v16445_v60 }
0x15bf   :  { %14623 = vmatprep.subr.mxu1 %v16453_v62  ;;  %14569 = vmatmul.mubr.msk.f32.gmra.mxu1 %vm492_vm3, %v14544_v45  ;;  %v12025_v45 = vld [vmem:[%s19855_s13 + $0x238] sm:$0xff] }
0x15c0   :  { %14624 = vmatpush3.msra.mxu1 %v16453_v62  ;;  %14571 = vmatprep.mubr.msk.f32.mxu1 %vm492_vm3, %v4999_v51  ;;  %v12028_v51 = vld [vmem:[%s19855_s13 + $0x250] sm:$0xff] }
0x15c1   :  { %14625 = vmatprep.subr.mxu1 %v16461_v0 }
0x15c2   :  { %14626 = vmatpush3.msra.mxu1 %v16461_v0 }
0x15c3   :  { %14627 = vmatprep.subr.mxu1 %v16469_v2  ;;  %14572 = vmatmul.mubr.msk.f32.gmra.mxu1 %vm492_vm3, %v14547_v49  ;;  %v12027_v49 = vld [vmem:[%s19855_s13 + $0x248] sm:$0xff] }
0x15c4   :  { %14628 = vmatpush3.msra.mxu1 %v16469_v2  ;;  %14574 = vmatprep.mubr.msk.f32.mxu1 %vm492_vm3, %v5009_v57  ;;  %v12030_v57 = vld [vmem:[%s19855_s13 + $0x260] sm:$0xff] }
0x15c5   :  { %14629 = vmatprep.subr.mxu1 %v16477_v4 }
0x15c6   :  { %14630 = vmatpush3.msra.mxu1 %v16477_v4 }
0x15c7   :  { %14631 = vmatprep.subr.mxu1 %v16483_v5  ;;  %14575 = vmatmul.mubr.msk.f32.gmra.mxu1 %vm492_vm3, %v14550_v55  ;;  %v12029_v55 = vld [vmem:[%s19855_s13 + $0x258] sm:$0xff] }
0x15c8   :  { %14632 = vmatpush3.msra.mxu1 %v16483_v5  ;;  %14635 = vmatprep.mubr.f32.mxu1 %v11950_v3  ;;  %v12031_v3 = vld [vmem:[%s19855_s13 + $0x268] sm:$0xff] }
0x15c9   :  { %14633 = vmatprep.subr.mxu1 %v16489_v6 }
0x15ca   :  { %14634 = vmatpush3.msra.mxu1 %v16489_v6 }
0x15cb   :  { %14685 = vmatprep.subr.mxu1 %v16384_v41  ;;  %14636 = vmatmul.mubr.f32.vlgmr.msra.gmra.mxu1 %v11951_v7  ;;  %v12032_v7 = vld [vmem:[%s19855_s13 + $0x270] sm:$0xff] }
0x15cc   :  { %14686 = vmatpush3.msra.mxu1 %v16384_v41  ;;  %14638 = vmatprep.mubr.f32.mxu1 %v11952_v9  ;;  %v12033_v9 = vld [vmem:[%s19855_s13 + $0x278] sm:$0xff] }
0x15cd   :  { %14687 = vmatprep.subr.mxu1 %v16388_v44 }
0x15ce   :  { %14688 = vmatpush3.msra.mxu1 %v16388_v44 }
0x15cf   :  { %14689 = vmatprep.subr.mxu1 %v16395_v46  ;;  %14639 = vmatmul.mubr.f32.gmra.mxu1 %v11953_v10  ;;  %v12052_v10 = vld [vmem:[%s19855_s13 + $0x280] sm:$0xff] }
0x15d0   :  { %14690 = vmatpush3.msra.mxu1 %v16395_v46  ;;  %14641 = vmatprep.mubr.f32.mxu1 %v11954_v11  ;;  %v12053_v11 = vld [vmem:[%s19855_s13 + $0x288] sm:$0xff] }
0x15d1   :  { %14691 = vmatprep.subr.mxu1 %v16402_v48 }
0x15d2   :  { %14692 = vmatpush3.msra.mxu1 %v16402_v48 }
0x15d3   :  { %14693 = vmatprep.subr.mxu1 %v16409_v50  ;;  %14642 = vmatmul.mubr.f32.gmra.mxu1 %v11955_v13 }
0x15d4   :  { %14694 = vmatpush3.msra.mxu1 %v16409_v50  ;;  %14644 = vmatprep.mubr.f32.mxu1 %v11956_v14  ;;  %v12055_v14 = vld [vmem:[%s19855_s13 + $0x298] sm:$0xff] }
0x15d5   :  { %14695 = vmatprep.subr.mxu1 %v16416_v52 }
0x15d6   :  { %14696 = vmatpush3.msra.mxu1 %v16416_v52 }
0x15d7   :  { %14697 = vmatprep.subr.mxu1 %v16423_v54  ;;  %14645 = vmatmul.mubr.f32.gmra.mxu1 %v11957_v15 }
0x15d8   :  { %14698 = vmatpush3.msra.mxu1 %v16423_v54  ;;  %14647 = vmatprep.mubr.f32.mxu1 %v11958_v16  ;;  %v12056_v16 = vld [vmem:[%s19855_s13 + $0x2a0] sm:$0xff] }
0x15d9   :  { %14699 = vmatprep.subr.mxu1 %v16430_v56 }
0x15da   :  { %14700 = vmatpush3.msra.mxu1 %v16430_v56 }
0x15db   :  { %14701 = vmatprep.subr.mxu1 %v16437_v58  ;;  %14648 = vmatmul.mubr.f32.gmra.mxu1 %v11959_v32  ;;  %v12057_v32 = vld [vmem:[%s19855_s13 + $0x2a8] sm:$0xff] }
0x15dc   :  { %14702 = vmatpush3.msra.mxu1 %v16437_v58  ;;  %14650 = vmatprep.mubr.f32.mxu1 %v11960_v33  ;;  %v12058_v33 = vld [vmem:[%s19855_s13 + $0x2b0] sm:$0xff] }
0x15dd   :  { %14703 = vmatprep.subr.mxu1 %v16445_v60 }
0x15de   :  { %14704 = vmatpush3.msra.mxu1 %v16445_v60 }
0x15df   :  { %14705 = vmatprep.subr.mxu1 %v16453_v62  ;;  %14651 = vmatmul.mubr.f32.gmra.mxu1 %v11961_v37  ;;  %v12059_v37 = vld [vmem:[%s19855_s13 + $0x2b8] sm:$0xff] }
0x15e0   :  { %14706 = vmatpush3.msra.mxu1 %v16453_v62  ;;  %14653 = vmatprep.mubr.f32.mxu1 %v11962_v53  ;;  %v12060_v53 = vld [vmem:[%s19855_s13 + $0x2c0] sm:$0xff] }
0x15e1   :  { %14707 = vmatprep.subr.mxu1 %v16461_v0 }
0x15e2   :  { %14708 = vmatpush3.msra.mxu1 %v16461_v0 }
0x15e3   :  { %14709 = vmatprep.subr.mxu1 %v16469_v2  ;;  %14654 = vmatmul.mubr.f32.gmra.mxu1 %v11963_v59  ;;  %v12061_v59 = vld [vmem:[%s19855_s13 + $0x2c8] sm:$0xff] }
0x15e4   :  { %14710 = vmatpush3.msra.mxu1 %v16469_v2  ;;  %14656 = vmatprep.mubr.f32.mxu1 %v11964_v8  ;;  %v12062_v8 = vld [vmem:[%s19855_s13 + $0x2d0] sm:$0xff] }
0x15e5   :  { %14711 = vmatprep.subr.mxu1 %v16477_v4 }
0x15e6   :  { %14712 = vmatpush3.msra.mxu1 %v16477_v4 }
0x15e7   :  { %14713 = vmatprep.subr.mxu1 %v16483_v5  ;;  %14657 = vmatmul.mubr.f32.gmra.mxu1 %v11965_v26  ;;  %v12063_v26 = vld [vmem:[%s19855_s13 + $0x2d8] sm:$0xff] }
0x15e8   :  { %14714 = vmatpush3.msra.mxu1 %v16483_v5  ;;  %14717 = vmatprep.mubr.f32.mxu1 %v11984_v24  ;;  %v12064_v24 = vld [vmem:[%s19855_s13 + $0x2e0] sm:$0xff] }
0x15e9   :  { %14715 = vmatprep.subr.mxu1 %v16489_v6 }
0x15ea   :  { %14716 = vmatpush3.msra.mxu1 %v16489_v6 }
0x15eb   :  { %14767 = vmatprep.subr.mxu1 %v16384_v41  ;;  %14718 = vmatmul.mubr.f32.vlgmr.msra.gmra.mxu1 %v11985_v27  ;;  %v12065_v27 = vld [vmem:[%s19855_s13 + $0x2e8] sm:$0xff] }
0x15ec   :  { %14768 = vmatpush3.msra.mxu1 %v16384_v41  ;;  %14720 = vmatprep.mubr.f32.mxu1 %v11986_v1  ;;  %v12066_v1 = vld [vmem:[%s19855_s13 + $0x2f0] sm:$0xff] }
0x15ed   :  { %14769 = vmatprep.subr.mxu1 %v16388_v44 }
0x15ee   :  { %14770 = vmatpush3.msra.mxu1 %v16388_v44 }
0x15ef   :  { %14771 = vmatprep.subr.mxu1 %v16395_v46  ;;  %14721 = vmatmul.mubr.f32.gmra.mxu1 %v11987_v18  ;;  %v12067_v18 = vld [vmem:[%s19855_s13 + $0x2f8] sm:$0xff] }
0x15f0   :  { %14772 = vmatpush3.msra.mxu1 %v16395_v46  ;;  %14723 = vmatprep.mubr.f32.mxu1 %v11988_v17  ;;  %v12086_v17 = vld [vmem:[%s19855_s13 + $0x300] sm:$0xff] }
0x15f1   :  { %14773 = vmatprep.subr.mxu1 %v16402_v48 }
0x15f2   :  { %14774 = vmatpush3.msra.mxu1 %v16402_v48 }
0x15f3   :  { %14775 = vmatprep.subr.mxu1 %v16409_v50  ;;  %14724 = vmatmul.mubr.f32.gmra.mxu1 %v11989_v19  ;;  %v12087_v19 = vld [vmem:[%s19855_s13 + $0x308] sm:$0xff] }
0x15f4   :  { %14776 = vmatpush3.msra.mxu1 %v16409_v50  ;;  %14726 = vmatprep.mubr.f32.mxu1 %v11990_v34  ;;  %v12088_v34 = vld [vmem:[%s19855_s13 + $0x310] sm:$0xff] }
0x15f5   :  { %14777 = vmatprep.subr.mxu1 %v16416_v52 }
0x15f6   :  { %14778 = vmatpush3.msra.mxu1 %v16416_v52 }
0x15f7   :  { %14779 = vmatprep.subr.mxu1 %v16423_v54  ;;  %14727 = vmatmul.mubr.f32.gmra.mxu1 %v11991_v38 }
0x15f8   :  { %14780 = vmatpush3.msra.mxu1 %v16423_v54  ;;  %14729 = vmatprep.mubr.f32.mxu1 %v11992_v22 }
0x15f9   :  { %14781 = vmatprep.subr.mxu1 %v16430_v56 }
0x15fa   :  { %14782 = vmatpush3.msra.mxu1 %v16430_v56 }
0x15fb   :  { %14783 = vmatprep.subr.mxu1 %v16437_v58  ;;  %14730 = vmatmul.mubr.f32.gmra.mxu1 %v11993_v63  ;;  %v12089_v63 = vld [vmem:[%s19855_s13 + $0x318] sm:$0xff] }
0x15fc   :  { %14784 = vmatpush3.msra.mxu1 %v16437_v58  ;;  %14732 = vmatprep.mubr.f32.mxu1 %v11994_v23  ;;  %v12090_v23 = vld [vmem:[%s19855_s13 + $0x320] sm:$0xff] }
0x15fd   :  { %14785 = vmatprep.subr.mxu1 %v16445_v60 }
0x15fe   :  { %14786 = vmatpush3.msra.mxu1 %v16445_v60 }
0x15ff   :  { %14787 = vmatprep.subr.mxu1 %v16453_v62  ;;  %14733 = vmatmul.mubr.f32.gmra.mxu1 %v11995_v25 }
0x1600   :  { %14788 = vmatpush3.msra.mxu1 %v16453_v62  ;;  %14735 = vmatprep.mubr.f32.mxu1 %v11996_v21 }
0x1601   :  { %14789 = vmatprep.subr.mxu1 %v16461_v0 }
0x1602   :  { %14790 = vmatpush3.msra.mxu1 %v16461_v0 }
0x1603   :  { %14791 = vmatprep.subr.mxu1 %v16469_v2  ;;  %14736 = vmatmul.mubr.f32.gmra.mxu1 %v11997_v28  ;;  %v12091_v28 = vld [vmem:[%s19855_s13 + $0x328] sm:$0xff] }
0x1604   :  { %14792 = vmatpush3.msra.mxu1 %v16469_v2  ;;  %14738 = vmatprep.mubr.f32.mxu1 %v11998_v29  ;;  %v12092_v29 = vld [vmem:[%s19855_s13 + $0x330] sm:$0xff] }
0x1605   :  { %14793 = vmatprep.subr.mxu1 %v16477_v4 }
0x1606   :  { %14794 = vmatpush3.msra.mxu1 %v16477_v4 }
0x1607   :  { %14795 = vmatprep.subr.mxu1 %v16483_v5  ;;  %14739 = vmatmul.mubr.f32.gmra.mxu1 %v11999_v30 }
0x1608   :  { %14796 = vmatpush3.msra.mxu1 %v16483_v5  ;;  %14799 = vmatprep.mubr.f32.mxu1 %v12018_v31  ;;  %v12093_v31 = vld [vmem:[%s19855_s13 + $0x338] sm:$0xff] }
0x1609   :  { %14797 = vmatprep.subr.mxu1 %v16489_v6 }
0x160a   :  { %14798 = vmatpush3.msra.mxu1 %v16489_v6 }
0x160b   :  { %14849 = vmatprep.subr.mxu1 %v16384_v41  ;;  %14800 = vmatmul.mubr.f32.vlgmr.msra.gmra.mxu1 %v12019_v35  ;;  %v12094_v35 = vld [vmem:[%s19855_s13 + $0x340] sm:$0xff] }
0x160c   :  { %14850 = vmatpush3.msra.mxu1 %v16384_v41  ;;  %14802 = vmatprep.mubr.f32.mxu1 %v12020_v36 }
0x160d   :  { %14851 = vmatprep.subr.mxu1 %v16388_v44 }
0x160e   :  { %14852 = vmatpush3.msra.mxu1 %v16388_v44 }
0x160f   :  { %14853 = vmatprep.subr.mxu1 %v16395_v46  ;;  %14803 = vmatmul.mubr.f32.gmra.mxu1 %v12021_v39 }
0x1610   :  { %14854 = vmatpush3.msra.mxu1 %v16395_v46  ;;  %14805 = vmatprep.mubr.f32.mxu1 %v12022_v40  ;;  %v12095_v40 = vld [vmem:[%s19855_s13 + $0x348] sm:$0xff] }
0x1611   :  { %14855 = vmatprep.subr.mxu1 %v16402_v48 }
0x1612   :  { %14856 = vmatpush3.msra.mxu1 %v16402_v48 }
0x1613   :  { %14857 = vmatprep.subr.mxu1 %v16409_v50  ;;  %14806 = vmatmul.mubr.f32.gmra.mxu1 %v12023_v42  ;;  %v12096_v42 = vld [vmem:[%s19855_s13 + $0x350] sm:$0xff] }
0x1614   :  { %14858 = vmatpush3.msra.mxu1 %v16409_v50  ;;  %14808 = vmatprep.mubr.f32.mxu1 %v12024_v43 }
0x1615   :  { %14859 = vmatprep.subr.mxu1 %v16416_v52 }
0x1616   :  { %14860 = vmatpush3.msra.mxu1 %v16416_v52 }
0x1617   :  { %14861 = vmatprep.subr.mxu1 %v16423_v54  ;;  %14809 = vmatmul.mubr.f32.gmra.mxu1 %v12025_v45 }
0x1618   :  { %14862 = vmatpush3.msra.mxu1 %v16423_v54  ;;  %14811 = vmatprep.mubr.f32.mxu1 %v12026_v47  ;;  %v12097_v47 = vld [vmem:[%s19855_s13 + $0x358] sm:$0xff] }
0x1619   :  { %14863 = vmatprep.subr.mxu1 %v16430_v56 }
0x161a   :  { %14864 = vmatpush3.msra.mxu1 %v16430_v56 }
0x161b   :  { %14865 = vmatprep.subr.mxu1 %v16437_v58  ;;  %14812 = vmatmul.mubr.f32.gmra.mxu1 %v12027_v49  ;;  %v12098_v49 = vld [vmem:[%s19855_s13 + $0x360] sm:$0xff] }
0x161c   :  { %14866 = vmatpush3.msra.mxu1 %v16437_v58  ;;  %14814 = vmatprep.mubr.f32.mxu1 %v12028_v51 }
0x161d   :  { %14867 = vmatprep.subr.mxu1 %v16445_v60 }
0x161e   :  { %14868 = vmatpush3.msra.mxu1 %v16445_v60 }
0x161f   :  { %14869 = vmatprep.subr.mxu1 %v16453_v62  ;;  %14815 = vmatmul.mubr.f32.gmra.mxu1 %v12029_v55 }
0x1620   :  { %14870 = vmatpush3.msra.mxu1 %v16453_v62  ;;  %14817 = vmatprep.mubr.f32.mxu1 %v12030_v57  ;;  %v12099_v57 = vld [vmem:[%s19855_s13 + $0x368] sm:$0xff] }
0x1621   :  { %14871 = vmatprep.subr.mxu1 %v16461_v0 }
0x1622   :  { %14872 = vmatpush3.msra.mxu1 %v16461_v0 }
0x1623   :  { %14873 = vmatprep.subr.mxu1 %v16469_v2  ;;  %14818 = vmatmul.mubr.f32.gmra.mxu1 %v12031_v3  ;;  %v12100_v3 = vld [vmem:[%s19855_s13 + $0x370] sm:$0xff] }
0x1624   :  { %14874 = vmatpush3.msra.mxu1 %v16469_v2  ;;  %14820 = vmatprep.mubr.f32.mxu1 %v12032_v7 }
0x1625   :  { %14875 = vmatprep.subr.mxu1 %v16477_v4 }
0x1626   :  { %14876 = vmatpush3.msra.mxu1 %v16477_v4 }
0x1627   :  { %14877 = vmatprep.subr.mxu1 %v16483_v5  ;;  %14821 = vmatmul.mubr.f32.gmra.mxu1 %v12033_v9 }
0x1628   :  { %14878 = vmatpush3.msra.mxu1 %v16483_v5  ;;  %14881 = vmatprep.mubr.f32.mxu1 %v12052_v10  ;;  %v12101_v10 = vld [vmem:[%s19855_s13 + $0x378] sm:$0xff] }
0x1629   :  { %14879 = vmatprep.subr.mxu1 %v16489_v6 }
0x162a   :  { %14880 = vmatpush3.msra.mxu1 %v16489_v6 }
0x162b   :  { %14931 = vmatprep.subr.mxu1 %v16384_v41  ;;  %14882 = vmatmul.mubr.f32.vlgmr.msra.gmra.mxu1 %v12053_v11  ;;  %v17894_v13 = vpop.f32.mrf.mxu1  ;;  %v12120_v11 = vld [vmem:[%s19855_s13 + $0x380] sm:$0xff] }
0x162c   :  { %19882 = vst [vmem:[#allocation5_spill] sm:$0xff] %v17894_v13  ;;  %14932 = vmatpush3.msra.mxu1 %v16384_v41  ;;  %14884 = vmatprep.mubr.f32.mxu1 %v12054_v12 }
0x162d   :  { %14933 = vmatprep.subr.mxu1 %v16388_v44  ;;  %v14438_v15 = vpop.f32.mrf.mxu1 }
0x162e   :  { %14934 = vmatpush3.msra.mxu1 %v16388_v44  ;;  %v12121_v15 = vld [vmem:[%s19855_s13 + $0x388] sm:$0xff] }
0x162f   :  { %14935 = vmatprep.subr.mxu1 %v16395_v46  ;;  %14885 = vmatmul.mubr.f32.gmra.mxu1 %v12055_v14 }
0x1630   :  { %14936 = vmatpush3.msra.mxu1 %v16395_v46  ;;  %14887 = vmatprep.mubr.f32.mxu1 %v12056_v16  ;;  %v12122_v16 = vld [vmem:[%s19855_s13 + $0x390] sm:$0xff] }
0x1631   :  { %14937 = vmatprep.subr.mxu1 %v16402_v48 }
0x1632   :  { %14938 = vmatpush3.msra.mxu1 %v16402_v48 }
0x1633   :  { %14939 = vmatprep.subr.mxu1 %v16409_v50  ;;  %14888 = vmatmul.mubr.f32.gmra.mxu1 %v12057_v32 }
0x1634   :  { %14940 = vmatpush3.msra.mxu1 %v16409_v50  ;;  %14890 = vmatprep.mubr.f32.mxu1 %v12058_v33  ;;  %v18078_v33 = vld [vmem:[%s19856_s14 + $0x6] sm:$0x3] }
0x1635   :  { %14941 = vmatprep.subr.mxu1 %v16416_v52 }
0x1636   :  { %14942 = vmatpush3.msra.mxu1 %v16416_v52 }
0x1637   :  { %14943 = vmatprep.subr.mxu1 %v16423_v54  ;;  %14891 = vmatmul.mubr.f32.gmra.mxu1 %v12059_v37 }
0x1638   :  { %14944 = vmatpush3.msra.mxu1 %v16423_v54  ;;  %14893 = vmatprep.mubr.f32.mxu1 %v12060_v53  ;;  %v12123_v53 = vld [vmem:[%s19855_s13 + $0x398] sm:$0xff] }
0x1639   :  { %14945 = vmatprep.subr.mxu1 %v16430_v56 }
0x163a   :  { %14946 = vmatpush3.msra.mxu1 %v16430_v56 }
0x163b   :  { %14947 = vmatprep.subr.mxu1 %v16437_v58  ;;  %14894 = vmatmul.mubr.f32.gmra.mxu1 %v12061_v59  ;;  %v12124_v59 = vld [vmem:[%s19855_s13 + $0x3a0] sm:$0xff] }
0x163c   :  { %14948 = vmatpush3.msra.mxu1 %v16437_v58  ;;  %14896 = vmatprep.mubr.f32.mxu1 %v12062_v8 }
0x163d   :  { %14949 = vmatprep.subr.mxu1 %v16445_v60 }
0x163e   :  { %14950 = vmatpush3.msra.mxu1 %v16445_v60 }
0x163f   :  { %14951 = vmatprep.subr.mxu1 %v16453_v62  ;;  %14897 = vmatmul.mubr.f32.gmra.mxu1 %v12063_v26  ;;  %v12125_v26 = vld [vmem:[%s19855_s13 + $0x3a8] sm:$0xff] }
0x1640   :  { %14952 = vmatpush3.msra.mxu1 %v16453_v62  ;;  %14899 = vmatprep.mubr.f32.mxu1 %v12064_v24 }
0x1641   :  { %14953 = vmatprep.subr.mxu1 %v16461_v0 }
0x1642   :  { %14954 = vmatpush3.msra.mxu1 %v16461_v0 }
0x1643   :  { %14955 = vmatprep.subr.mxu1 %v16469_v2  ;;  %14900 = vmatmul.mubr.f32.gmra.mxu1 %v12065_v27  ;;  %v12127_v27 = vld [vmem:[%s19855_s13 + $0x3b8] sm:$0xff] }
0x1644   :  { %14956 = vmatpush3.msra.mxu1 %v16469_v2  ;;  %14902 = vmatprep.mubr.f32.mxu1 %v12066_v1 }
0x1645   :  { %14957 = vmatprep.subr.mxu1 %v16477_v4 }
0x1646   :  { %14958 = vmatpush3.msra.mxu1 %v16477_v4 }
0x1647   :  { %14959 = vmatprep.subr.mxu1 %v16483_v5  ;;  %14903 = vmatmul.mubr.f32.gmra.mxu1 %v12067_v18  ;;  %v12129_v18 = vld [vmem:[%s19855_s13 + $0x3c8] sm:$0xff] }
0x1648   :  { %14960 = vmatpush3.msra.mxu1 %v16483_v5  ;;  %14963 = vmatprep.mubr.f32.mxu1 %v12086_v17 }
0x1649   :  { %14961 = vmatprep.subr.mxu1 %v16489_v6 }
0x164a   :  { %14962 = vmatpush3.msra.mxu1 %v16489_v6 }
0x164b   :  { %15013 = vmatprep.subr.mxu1 %v16384_v41  ;;  %v14473_v38 = vpop.f32.mrf.mxu1  ;;  %14964 = vmatmul.mubr.f32.vlgmr.msra.gmra.mxu1 %v12087_v19  ;;  %v12131_v19 = vld [vmem:[%s19855_s13 + $0x3d8] sm:$0xff] }
0x164c   :  { %15014 = vmatpush3.msra.mxu1 %v16384_v41  ;;  %14966 = vmatprep.mubr.f32.mxu1 %v12088_v34 }
0x164d   :  { %15015 = vmatprep.subr.mxu1 %v16388_v44  ;;  %v4776_v22 = vpop.f32.mrf.mxu1 }
0x164e   :  { %15016 = vmatpush3.msra.mxu1 %v16388_v44  ;;  %14579 = vmatprep.mubr.msk.f32.mxu0 %vm492_vm3, %v4776_v22 }
0x164f   :  { %15017 = vmatprep.subr.mxu1 %v16395_v46  ;;  %v14476_v25 = vpop.f32.mrf.mxu1  ;;  %14580 = vmatmul.mubr.msk.f32.vlgmr.msra.gmra.mxu0 %vm492_vm3, %v14473_v38  ;;  %v12133_v38 = vld [vmem:[%s19855_s13 + $0x3e8] sm:$0xff] }
0x1650   :  { %14967 = vmatmul.mubr.f32.gmra.mxu1 %v12089_v63  ;;  %14660 = vmatpush3.msk.msra.mxu0 %vm505_vm2, %v17744_v20  ;;  %v12135_v63 = vld [vmem:[%s19855_s13 + $0x3f8] sm:$0xff] }
0x1651   :  { %15018 = vmatpush3.msra.mxu1 %v16395_v46  ;;  %v4786_v21 = vpop.f32.mrf.mxu1  ;;  %14969 = vmatprep.mubr.f32.mxu1 %v12090_v23 }
0x1652   :  { %15019 = vmatprep.subr.mxu1 %v16402_v48  ;;  %14582 = vmatprep.mubr.msk.f32.mxu0 %vm492_vm3, %v4786_v21 }
0x1653   :  { %15020 = vmatpush3.msra.mxu1 %v16402_v48  ;;  %v14479_v30 = vpop.f32.mrf.mxu1  ;;  %14583 = vmatmul.mubr.msk.f32.gmra.mxu0 %vm492_vm3, %v14476_v25  ;;  %v12155_v25 = vld [vmem:[%s19855_s13 + $0x408] sm:$0xff] }
0x1654   :  { %15021 = vmatprep.subr.mxu1 %v16409_v50  ;;  %14970 = vmatmul.mubr.f32.gmra.mxu1 %v12091_v28 }
0x1655   :  { %15022 = vmatpush3.msra.mxu1 %v16409_v50  ;;  %v4796_v20 = vpop.f32.mrf.mxu1  ;;  %14972 = vmatprep.mubr.f32.mxu1 %v12092_v29  ;;  %v12158_v29 = vld [vmem:[%s19855_s13 + $0x420] sm:$0xff] }
0x1656   :  { %15023 = vmatprep.subr.mxu1 %v16416_v52  ;;  %14585 = vmatprep.mubr.msk.f32.mxu0 %vm492_vm3, %v4796_v20 }
0x1657   :  { %15024 = vmatpush3.msra.mxu1 %v16416_v52  ;;  %v14482_v36 = vpop.f32.mrf.mxu1  ;;  %14586 = vmatmul.mubr.msk.f32.gmra.mxu0 %vm492_vm3, %v14479_v30  ;;  %v18202_v30 = vld [vmem:[%s19856_s14 + $0x8] sm:$0x3] }
0x1658   :  { %15025 = vmatprep.subr.mxu1 %v16423_v54  ;;  %14973 = vmatmul.mubr.f32.gmra.mxu1 %v12093_v31  ;;  %v12159_v31 = vld [vmem:[%s19855_s13 + $0x428] sm:$0xff] }
0x1659   :  { %15026 = vmatpush3.msra.mxu1 %v16423_v54  ;;  %v4806_v39 = vpop.f32.mrf.mxu1  ;;  %14975 = vmatprep.mubr.f32.mxu1 %v12094_v35  ;;  %v12160_v35 = vld [vmem:[%s19855_s13 + $0x430] sm:$0xff] }
0x165a   :  { %15027 = vmatprep.subr.mxu1 %v16430_v56  ;;  %14588 = vmatprep.mubr.msk.f32.mxu0 %vm492_vm3, %v4806_v39 }
0x165b   :  { %15028 = vmatpush3.msra.mxu1 %v16430_v56  ;;  %v14485_v43 = vpop.f32.mrf.mxu1  ;;  %14589 = vmatmul.mubr.msk.f32.gmra.mxu0 %vm492_vm3, %v14482_v36 }
0x165c   :  { %15029 = vmatprep.subr.mxu1 %v16437_v58  ;;  %14976 = vmatmul.mubr.f32.gmra.mxu1 %v12095_v40  ;;  %v12161_v40 = vld [vmem:[%s19855_s13 + $0x438] sm:$0xff] }
0x165d   :  { %15030 = vmatpush3.msra.mxu1 %v16437_v58  ;;  %v4816_v45 = vpop.f32.mrf.mxu1  ;;  %14978 = vmatprep.mubr.f32.mxu1 %v12096_v42  ;;  %v12162_v42 = vld [vmem:[%s19855_s13 + $0x440] sm:$0xff] }
0x165e   :  { %15031 = vmatprep.subr.mxu1 %v16445_v60  ;;  %14591 = vmatprep.mubr.msk.f32.mxu0 %vm492_vm3, %v4816_v45 }
0x165f   :  { %15032 = vmatpush3.msra.mxu1 %v16445_v60  ;;  %v14488_v51 = vpop.f32.mrf.mxu1  ;;  %14592 = vmatmul.mubr.msk.f32.gmra.mxu0 %vm492_vm3, %v14485_v43 }
0x1660   :  { %15033 = vmatprep.subr.mxu1 %v16453_v62  ;;  %14979 = vmatmul.mubr.f32.gmra.mxu1 %v12097_v47  ;;  %v12163_v47 = vld [vmem:[%s19855_s13 + $0x448] sm:$0xff] }
0x1661   :  { %15034 = vmatpush3.msra.mxu1 %v16453_v62  ;;  %v4826_v55 = vpop.f32.mrf.mxu1  ;;  %14981 = vmatprep.mubr.f32.mxu1 %v12098_v49  ;;  %v12164_v49 = vld [vmem:[%s19855_s13 + $0x450] sm:$0xff] }
0x1662   :  { %15035 = vmatprep.subr.mxu1 %v16461_v0  ;;  %14594 = vmatprep.mubr.msk.f32.mxu0 %vm492_vm3, %v4826_v55 }
0x1663   :  { %15036 = vmatpush3.msra.mxu1 %v16461_v0  ;;  %v14491_v7 = vpop.f32.mrf.mxu1  ;;  %14595 = vmatmul.mubr.msk.f32.gmra.mxu0 %vm492_vm3, %v14488_v51 }
0x1664   :  { %15037 = vmatprep.subr.mxu1 %v16469_v2  ;;  %14982 = vmatmul.mubr.f32.gmra.mxu1 %v12099_v57  ;;  %v12165_v57 = vld [vmem:[%s19855_s13 + $0x458] sm:$0xff] }
0x1665   :  { %15038 = vmatpush3.msra.mxu1 %v16469_v2  ;;  %v4836_v9 = vpop.f32.mrf.mxu1  ;;  %14984 = vmatprep.mubr.f32.mxu1 %v12100_v3  ;;  %v12166_v3 = vld [vmem:[%s19855_s13 + $0x460] sm:$0xff] }
0x1666   :  { %15039 = vmatprep.subr.mxu1 %v16477_v4  ;;  %14597 = vmatprep.mubr.msk.f32.mxu0 %vm492_vm3, %v4836_v9 }
0x1667   :  { %15040 = vmatpush3.msra.mxu1 %v16477_v4  ;;  %v14494_v12 = vpop.f32.mrf.mxu1  ;;  %14598 = vmatmul.mubr.msk.f32.gmra.mxu0 %vm492_vm3, %v14491_v7 }
0x1668   :  { %15041 = vmatprep.subr.mxu1 %v16483_v5  ;;  %14985 = vmatmul.mubr.f32.gmra.mxu1 %v12101_v10  ;;  %v12167_v10 = vld [vmem:[%s19855_s13 + $0x468] sm:$0xff] }
0x1669   :  { %15042 = vmatpush3.msra.mxu1 %v16483_v5  ;;  %v4846_v14 = vpop.f32.mrf.mxu1  ;;  %15045 = vmatprep.mubr.f32.mxu1 %v12120_v11  ;;  %v12168_v11 = vld [vmem:[%s19855_s13 + $0x470] sm:$0xff] }
0x166a   :  { %15043 = vmatprep.subr.mxu1 %v16489_v6  ;;  %14600 = vmatprep.mubr.msk.f32.mxu0 %vm492_vm3, %v4846_v14 }
0x166b   :  { %15044 = vmatpush3.msra.mxu1 %v16489_v6  ;;  %v18072_v32 = vpop.f32.mrf.mxu1  ;;  %14601 = vmatmul.mubr.msk.f32.gmra.mxu0 %vm492_vm3, %v14494_v12 }
0x166c   :  { %15095 = vmatprep.subr.mxu1 %v16384_v41  ;;  %15046 = vmatmul.mubr.f32.vlgmr.msra.gmra.mxu1 %v12121_v15  ;;  %v12169_v15 = vld [vmem:[%s19855_s13 + $0x478] sm:$0xff] }
0x166d   :  { %15096 = vmatpush3.msra.mxu1 %v16384_v41  ;;  %v18082_v37 = vpop.f32.mrf.mxu1  ;;  %15048 = vmatprep.mubr.f32.mxu1 %v12122_v16 }
0x166e   :  { %19883 = vst [vmem:[#allocation6_spill] sm:$0xff] %v18082_v37  ;;  %15097 = vmatprep.subr.mxu1 %v16388_v44  ;;  %14741 = vmatprep.subr.msk.mxu0 %vm505_vm2, %v18078_v33 }
0x166f   :  { %15098 = vmatpush3.msra.mxu1 %v16388_v44  ;;  %v18094_v8 = vpop.f32.mrf.mxu1  ;;  %v12126_v44 = vld [vmem:[%s19855_s13 + $0x3b0] sm:$0xff] }
0x1670   :  { %15099 = vmatprep.subr.mxu1 %v16395_v46  ;;  %15049 = vmatmul.mubr.f32.gmra.mxu1 %v12123_v53  ;;  %v16003_v53 = vld [vmem:[%s19855_s13] sm:$0xff] }
0x1671   :  { %15100 = vmatpush3.msra.mxu1 %v16395_v46  ;;  %v18098_v41 = vpop.f32.mrf.mxu1  ;;  %15051 = vmatprep.mubr.f32.mxu1 %v12124_v59 }
0x1672   :  { %15101 = vmatprep.subr.mxu1 %v16402_v48 }
0x1673   :  { %15102 = vmatpush3.msra.mxu1 %v16402_v48  ;;  %v18108_v24 = vpop.f32.mrf.mxu1  ;;  %v12128_v48 = vld [vmem:[%s19855_s13 + $0x3c0] sm:$0xff] }
0x1674   :  { %15103 = vmatprep.subr.mxu1 %v16409_v50  ;;  %15052 = vmatmul.mubr.f32.gmra.mxu1 %v12125_v26 }
0x1675   :  { %15104 = vmatpush3.msra.mxu1 %v16409_v50  ;;  %v18112_v46 = vpop.f32.mrf.mxu1  ;;  %15054 = vmatprep.mubr.f32.mxu1 %v12126_v44  ;;  %v12068_v44 = vld [vmem:[%s19856_s14 + $0xa] sm:$0x3] }
0x1676   :  { %15105 = vmatprep.subr.mxu1 %v16416_v52 }
0x1677   :  { %15106 = vmatpush3.msra.mxu1 %v16416_v52  ;;  %v18122_v1 = vpop.f32.mrf.mxu1  ;;  %v12130_v52 = vld [vmem:[%s19855_s13 + $0x3d0] sm:$0xff] }
0x1678   :  { %15107 = vmatprep.subr.mxu1 %v16423_v54  ;;  %15055 = vmatmul.mubr.f32.gmra.mxu1 %v12127_v27 }
0x1679   :  { %15108 = vmatpush3.msra.mxu1 %v16423_v54  ;;  %v18126_v50 = vpop.f32.mrf.mxu1  ;;  %15057 = vmatprep.mubr.f32.mxu1 %v12128_v48 }
0x167a   :  { %15109 = vmatprep.subr.mxu1 %v16430_v56 }
0x167b   :  { %15110 = vmatpush3.msra.mxu1 %v16430_v56  ;;  %v18136_v17 = vpop.f32.mrf.mxu1  ;;  %v12132_v56 = vld [vmem:[%s19855_s13 + $0x3e0] sm:$0xff] }
0x167c   :  { %15111 = vmatprep.subr.mxu1 %v16437_v58  ;;  %15058 = vmatmul.mubr.f32.gmra.mxu1 %v12129_v18 }
0x167d   :  { %15112 = vmatpush3.msra.mxu1 %v16437_v58  ;;  %v18140_v54 = vpop.f32.mrf.mxu1  ;;  %15060 = vmatprep.mubr.f32.mxu1 %v12130_v52 }
0x167e   :  { %15113 = vmatprep.subr.mxu1 %v16445_v60 }
0x167f   :  { %15114 = vmatpush3.msra.mxu1 %v16445_v60  ;;  %v18150_v34 = vpop.f32.mrf.mxu1  ;;  %v12134_v60 = vld [vmem:[%s19855_s13 + $0x3f0] sm:$0xff] }
0x1680   :  { %15115 = vmatprep.subr.mxu1 %v16453_v62  ;;  %15061 = vmatmul.mubr.f32.gmra.mxu1 %v12131_v19 }
0x1681   :  { %15116 = vmatpush3.msra.mxu1 %v16453_v62  ;;  %v18154_v58 = vpop.f32.mrf.mxu1  ;;  %15063 = vmatprep.mubr.f32.mxu1 %v12132_v56 }
0x1682   :  { %15117 = vmatprep.subr.mxu1 %v16461_v0 }
0x1683   :  { %15118 = vmatpush3.msra.mxu1 %v16461_v0  ;;  %v18164_v22 = vpop.f32.mrf.mxu1  ;;  %v12154_v0 = vld [vmem:[%s19855_s13 + $0x400] sm:$0xff] }
0x1684   :  { %15119 = vmatprep.subr.mxu1 %v16469_v2  ;;  %15064 = vmatmul.mubr.f32.gmra.mxu1 %v12133_v38 }
0x1685   :  { %15120 = vmatpush3.msra.mxu1 %v16469_v2  ;;  %v18168_v62 = vpop.f32.mrf.mxu1  ;;  %15066 = vmatprep.mubr.f32.mxu1 %v12134_v60 }
0x1686   :  { %15121 = vmatprep.subr.mxu1 %v16477_v4 }
0x1687   :  { %15122 = vmatpush3.msra.mxu1 %v16477_v4  ;;  %v18178_v23 = vpop.f32.mrf.mxu1  ;;  %v12156_v4 = vld [vmem:[%s19855_s13 + $0x410] sm:$0xff] }
0x1688   :  { %15123 = vmatprep.subr.mxu1 %v16483_v5  ;;  %15067 = vmatmul.mubr.f32.gmra.mxu1 %v12135_v63 }
0x1689   :  { %15124 = vmatpush3.msra.mxu1 %v16483_v5  ;;  %v18182_v2 = vpop.f32.mrf.mxu1  ;;  %15127 = vmatprep.mubr.f32.mxu1 %v12154_v0  ;;  %v12157_v5 = vld [vmem:[%s19855_s13 + $0x418] sm:$0xff] }
0x168a   :  { %15125 = vmatprep.subr.mxu1 %v16489_v6 }
0x168b   :  { %15126 = vmatpush3.msra.mxu1 %v16489_v6  ;;  %v14637_v21 = vpop.f32.mrf.mxu1 }
0x168c   :  { %15128 = vmatmul.mubr.f32.vlgmr.msra.gmra.mxu1 %v12155_v25 }
0x168d   :  { %v5495_v28 = vpop.f32.mrf.mxu1  ;;  %15130 = vmatprep.mubr.f32.mxu1 %v12156_v4 }
0x168e   :  { %14661 = vmatprep.mubr.msk.f32.mxu0 %vm492_vm3, %v5495_v28 }
0x168f   :  { %v14640_v6 = vpop.f32.mrf.mxu1  ;;  %14662 = vmatmul.mubr.msk.f32.vlgmr.msra.gmra.mxu0 %vm492_vm3, %v14637_v21 }
0x1690   :  { %15131 = vmatmul.mubr.f32.gmra.mxu1 %v12157_v5  ;;  %14742 = vmatpush3.msk.msra.mxu0 %vm505_vm2, %v18078_v33 }
0x1691   :  { %v5505_v20 = vpop.f32.mrf.mxu1  ;;  %15133 = vmatprep.mubr.f32.mxu1 %v12158_v29  ;;  %14823 = vmatprep.subr.msk.mxu0 %vm505_vm2, %v18202_v30 }
0x1692   :  { %14664 = vmatprep.mubr.msk.f32.mxu0 %vm492_vm3, %v5505_v20 }
0x1693   :  { %v14643_v36 = vpop.f32.mrf.mxu1  ;;  %14665 = vmatmul.mubr.msk.f32.gmra.mxu0 %vm492_vm3, %v14640_v6 }
0x1694   :  { %15134 = vmatmul.mubr.f32.gmra.mxu1 %v12159_v31 }
0x1695   :  { %v5515_v39 = vpop.f32.mrf.mxu1  ;;  %15136 = vmatprep.mubr.f32.mxu1 %v12160_v35 }
0x1696   :  { %14667 = vmatprep.mubr.msk.f32.mxu0 %vm492_vm3, %v5515_v39 }
0x1697   :  { %v14646_v43 = vpop.f32.mrf.mxu1  ;;  %14668 = vmatmul.mubr.msk.f32.gmra.mxu0 %vm492_vm3, %v14643_v36 }
0x1698   :  { %15137 = vmatmul.mubr.f32.gmra.mxu1 %v12161_v40 }
0x1699   :  { %v5525_v45 = vpop.f32.mrf.mxu1  ;;  %15139 = vmatprep.mubr.f32.mxu1 %v12162_v42 }
0x169a   :  { %14670 = vmatprep.mubr.msk.f32.mxu0 %vm492_vm3, %v5525_v45 }
0x169b   :  { %v14649_v51 = vpop.f32.mrf.mxu1  ;;  %14671 = vmatmul.mubr.msk.f32.gmra.mxu0 %vm492_vm3, %v14646_v43 }
0x169c   :  { %15140 = vmatmul.mubr.f32.gmra.mxu1 %v12163_v47 }
0x169d   :  { %v5535_v55 = vpop.f32.mrf.mxu1  ;;  %15142 = vmatprep.mubr.f32.mxu1 %v12164_v49 }
0x169e   :  { %14673 = vmatprep.mubr.msk.f32.mxu0 %vm492_vm3, %v5535_v55 }
0x169f   :  { %v14652_v7 = vpop.f32.mrf.mxu1  ;;  %14674 = vmatmul.mubr.msk.f32.gmra.mxu0 %vm492_vm3, %v14649_v51 }
0x16a0   :  { %15143 = vmatmul.mubr.f32.gmra.mxu1 %v12165_v57 }
0x16a1   :  { %v5545_v9 = vpop.f32.mrf.mxu1  ;;  %15145 = vmatprep.mubr.f32.mxu1 %v12166_v3 }
0x16a2   :  { %14676 = vmatprep.mubr.msk.f32.mxu0 %vm492_vm3, %v5545_v9 }
0x16a3   :  { %v14655_v12 = vpop.f32.mrf.mxu1  ;;  %14677 = vmatmul.mubr.msk.f32.gmra.mxu0 %vm492_vm3, %v14652_v7  ;;  %v12136_v7 = vld [vmem:[%s19856_s14 + $0xe] sm:$0x3] }
0x16a4   :  { %15146 = vmatmul.mubr.f32.gmra.mxu1 %v12167_v10 }
0x16a5   :  { %v5555_v14 = vpop.f32.mrf.mxu1  ;;  %15148 = vmatprep.mubr.f32.mxu1 %v12168_v11 }
0x16a6   :  { %14679 = vmatprep.mubr.msk.f32.mxu0 %vm492_vm3, %v5555_v14 }
0x16a7   :  { %v14658_v16 = vpop.f32.mrf.mxu1  ;;  %14680 = vmatmul.mubr.msk.f32.gmra.mxu0 %vm492_vm3, %v14655_v12 }
0x16a8   :  { %15149 = vmatmul.mubr.f32.gmra.mxu1 %v12169_v15 }
0x16a9   :  { %v5565_v33 = vpop.f32.mrf.mxu1  ;;  %15209 = vmatprep.mubr.f32.mxu1 %v16003_v53 }
0x16aa   :  { %14682 = vmatprep.mubr.msk.f32.mxu0 %vm492_vm3, %v5565_v33 }
0x16ab   :  { %14683 = vmatmul.mubr.msk.f32.gmra.mxu0 %vm492_vm3, %v14658_v16  ;;  %v14719_v59 = vpop.f32.mrf.mxu1 }
0x16ad   :  { %v5871_v26 = vpop.f32.mrf.mxu1 }
0x16ae   :  { %14743 = vmatprep.mubr.msk.f32.mxu0 %vm492_vm3, %v5871_v26 }
0x16af   :  { %v14722_v27 = vpop.f32.mrf.mxu1  ;;  %14744 = vmatmul.mubr.msk.f32.vlgmr.msra.gmra.mxu0 %vm492_vm3, %v14719_v59 }
0x16b0   :  { %14824 = vmatpush3.msk.msra.mxu0 %vm505_vm2, %v18202_v30  ;;  %v12102_v30 = vld [vmem:[%s19856_s14 + $0xc] sm:$0x3] }
0x16b1   :  { %v5881_v48 = vpop.f32.mrf.mxu1  ;;  %14905 = vmatprep.subr.msk.mxu0 %vm505_vm2, %v12068_v44 }
0x16b2   :  { %14746 = vmatprep.mubr.msk.f32.mxu0 %vm492_vm3, %v5881_v48 }
0x16b3   :  { %v14725_v18 = vpop.f32.mrf.mxu1  ;;  %14747 = vmatmul.mubr.msk.f32.gmra.mxu0 %vm492_vm3, %v14722_v27 }
0x16b5   :  { %v5891_v52 = vpop.f32.mrf.mxu1 }
0x16b6   :  { %14749 = vmatprep.mubr.msk.f32.mxu0 %vm492_vm3, %v5891_v52 }
0x16b7   :  { %v14728_v19 = vpop.f32.mrf.mxu1  ;;  %14750 = vmatmul.mubr.msk.f32.gmra.mxu0 %vm492_vm3, %v14725_v18 }
0x16b9   :  { %v5901_v56 = vpop.f32.mrf.mxu1 }
0x16ba   :  { %14752 = vmatprep.mubr.msk.f32.mxu0 %vm492_vm3, %v5901_v56 }
0x16bb   :  { %v14731_v38 = vpop.f32.mrf.mxu1  ;;  %14753 = vmatmul.mubr.msk.f32.gmra.mxu0 %vm492_vm3, %v14728_v19  ;;  %v12170_v19 = vld [vmem:[%s19856_s14 + $0x10] sm:$0x3] }
0x16bd   :  { %v5911_v60 = vpop.f32.mrf.mxu1 }
0x16be   :  { %14755 = vmatprep.mubr.msk.f32.mxu0 %vm492_vm3, %v5911_v60 }
0x16bf   :  { %v14734_v63 = vpop.f32.mrf.mxu1  ;;  %14756 = vmatmul.mubr.msk.f32.gmra.mxu0 %vm492_vm3, %v14731_v38 }
0x16c1   :  { %v5921_v0 = vpop.f32.mrf.mxu1 }
0x16c2   :  { %14758 = vmatprep.mubr.msk.f32.mxu0 %vm492_vm3, %v5921_v0 }
0x16c3   :  { %v14737_v25 = vpop.f32.mrf.mxu1  ;;  %14759 = vmatmul.mubr.msk.f32.gmra.mxu0 %vm492_vm3, %v14734_v63 }
0x16c5   :  { %v5931_v4 = vpop.f32.mrf.mxu1 }
0x16c6   :  { %14761 = vmatprep.mubr.msk.f32.mxu0 %vm492_vm3, %v5931_v4 }
0x16c7   :  { %v14740_v21 = vpop.f32.mrf.mxu1  ;;  %14762 = vmatmul.mubr.msk.f32.gmra.mxu0 %vm492_vm3, %v14737_v25 }
0x16c9   :  { %v5941_v28 = vpop.f32.mrf.mxu1 }
0x16ca   :  { %14764 = vmatprep.mubr.msk.f32.mxu0 %vm492_vm3, %v5941_v28 }
0x16cb   :  { %14765 = vmatmul.mubr.msk.f32.gmra.mxu0 %vm492_vm3, %v14740_v21  ;;  %v14801_v5 = vpop.f32.mrf.mxu1 }
0x16cd   :  { %v6247_v29 = vpop.f32.mrf.mxu1 }
0x16ce   :  { %14825 = vmatprep.mubr.msk.f32.mxu0 %vm492_vm3, %v6247_v29 }
0x16cf   :  { %v14804_v6 = vpop.f32.mrf.mxu1  ;;  %14826 = vmatmul.mubr.msk.f32.vlgmr.msra.gmra.mxu0 %vm492_vm3, %v14801_v5 }
0x16d0   :  { %14906 = vmatpush3.msk.msra.mxu0 %vm505_vm2, %v12068_v44 }
0x16d1   :  { %v6257_v20 = vpop.f32.mrf.mxu1  ;;  %14987 = vmatprep.subr.msk.mxu0 %vm505_vm2, %v12102_v30 }
0x16d2   :  { %14828 = vmatprep.mubr.msk.f32.mxu0 %vm492_vm3, %v6257_v20 }
0x16d3   :  { %v14807_v31 = vpop.f32.mrf.mxu1  ;;  %14829 = vmatmul.mubr.msk.f32.gmra.mxu0 %vm492_vm3, %v14804_v6 }
0x16d5   :  { %v6267_v35 = vpop.f32.mrf.mxu1 }
0x16d6   :  { %14831 = vmatprep.mubr.msk.f32.mxu0 %vm492_vm3, %v6267_v35 }
0x16d7   :  { %v14810_v36 = vpop.f32.mrf.mxu1  ;;  %14832 = vmatmul.mubr.msk.f32.gmra.mxu0 %vm492_vm3, %v14807_v31 }
0x16d9   :  { %v6277_v39 = vpop.f32.mrf.mxu1 }
0x16da   :  { %14834 = vmatprep.mubr.msk.f32.mxu0 %vm492_vm3, %v6277_v39 }
0x16db   :  { %v14813_v40 = vpop.f32.mrf.mxu1  ;;  %14835 = vmatmul.mubr.msk.f32.gmra.mxu0 %vm492_vm3, %v14810_v36 }
0x16dd   :  { %v6287_v42 = vpop.f32.mrf.mxu1 }
0x16de   :  { %14837 = vmatprep.mubr.msk.f32.mxu0 %vm492_vm3, %v6287_v42 }
0x16df   :  { %v14816_v43 = vpop.f32.mrf.mxu1  ;;  %14838 = vmatmul.mubr.msk.f32.gmra.mxu0 %vm492_vm3, %v14813_v40 }
0x16e1   :  { %v6297_v45 = vpop.f32.mrf.mxu1 }
0x16e2   :  { %14840 = vmatprep.mubr.msk.f32.mxu0 %vm492_vm3, %v6297_v45 }
0x16e3   :  { %v14819_v47 = vpop.f32.mrf.mxu1  ;;  %14841 = vmatmul.mubr.msk.f32.gmra.mxu0 %vm492_vm3, %v14816_v43 }
0x16e5   :  { %v6307_v49 = vpop.f32.mrf.mxu1 }
0x16e6   :  { %14843 = vmatprep.mubr.msk.f32.mxu0 %vm492_vm3, %v6307_v49 }
0x16e7   :  { %v14822_v51 = vpop.f32.mrf.mxu1  ;;  %14844 = vmatmul.mubr.msk.f32.gmra.mxu0 %vm492_vm3, %v14819_v47 }
0x16e9   :  { %v6317_v55 = vpop.f32.mrf.mxu1 }
0x16ea   :  { %14846 = vmatprep.mubr.msk.f32.mxu0 %vm492_vm3, %v6317_v55 }
0x16eb   :  { %14847 = vmatmul.mubr.msk.f32.gmra.mxu0 %vm492_vm3, %v14822_v51  ;;  %v14883_v57 = vpop.f32.mrf.mxu1 }
0x16ed   :  { %v6623_v3 = vpop.f32.mrf.mxu1 }
0x16ee   :  { %14907 = vmatprep.mubr.msk.f32.mxu0 %vm492_vm3, %v6623_v3 }
0x16ef   :  { %v14886_v9 = vpop.f32.mrf.mxu1  ;;  %14908 = vmatmul.mubr.msk.f32.vlgmr.msra.gmra.mxu0 %vm492_vm3, %v14883_v57 }
0x16f0   :  { %14988 = vmatpush3.msk.msra.mxu0 %vm505_vm2, %v12102_v30 }
0x16f1   :  { %v6633_v10 = vpop.f32.mrf.mxu1  ;;  %15069 = vmatprep.subr.msk.mxu0 %vm505_vm2, %v12136_v7 }
0x16f2   :  { %14910 = vmatprep.mubr.msk.f32.mxu0 %vm492_vm3, %v6633_v10 }
0x16f3   :  { %v14889_v11 = vpop.f32.mrf.mxu1  ;;  %14911 = vmatmul.mubr.msk.f32.gmra.mxu0 %vm492_vm3, %v14886_v9 }
0x16f5   :  { %v6643_v12 = vpop.f32.mrf.mxu1 }
0x16f6   :  { %14913 = vmatprep.mubr.msk.f32.mxu0 %vm492_vm3, %v6643_v12 }
0x16f7   :  { %v14892_v14 = vpop.f32.mrf.mxu1  ;;  %14914 = vmatmul.mubr.msk.f32.gmra.mxu0 %vm492_vm3, %v14889_v11 }
0x16f9   :  { %v6653_v15 = vpop.f32.mrf.mxu1 }
0x16fa   :  { %14916 = vmatprep.mubr.msk.f32.mxu0 %vm492_vm3, %v6653_v15 }
0x16fb   :  { %v14895_v16 = vpop.f32.mrf.mxu1  ;;  %14917 = vmatmul.mubr.msk.f32.gmra.mxu0 %vm492_vm3, %v14892_v14 }
0x16fd   :  { %v6663_v33 = vpop.f32.mrf.mxu1 }
0x16fe   :  { %14919 = vmatprep.mubr.msk.f32.mxu0 %vm492_vm3, %v6663_v33 }
0x16ff   :  { %v14898_v53 = vpop.f32.mrf.mxu1  ;;  %14920 = vmatmul.mubr.msk.f32.gmra.mxu0 %vm492_vm3, %v14895_v16 }
0x1701   :  { %v6673_v59 = vpop.f32.mrf.mxu1 }
0x1702   :  { %14922 = vmatprep.mubr.msk.f32.mxu0 %vm492_vm3, %v6673_v59 }
0x1703   :  { %v14901_v26 = vpop.f32.mrf.mxu1  ;;  %14923 = vmatmul.mubr.msk.f32.gmra.mxu0 %vm492_vm3, %v14898_v53 }
0x1705   :  { %v6683_v44 = vpop.f32.mrf.mxu1 }
0x1706   :  { %14925 = vmatprep.mubr.msk.f32.mxu0 %vm492_vm3, %v6683_v44 }
0x1707   :  { %v14904_v27 = vpop.f32.mrf.mxu1  ;;  %14926 = vmatmul.mubr.msk.f32.gmra.mxu0 %vm492_vm3, %v14901_v26 }
0x1709   :  { %v6693_v48 = vpop.f32.mrf.mxu1 }
0x170a   :  { %14928 = vmatprep.mubr.msk.f32.mxu0 %vm492_vm3, %v6693_v48 }
0x170b   :  { %14929 = vmatmul.mubr.msk.f32.gmra.mxu0 %vm492_vm3, %v14904_v27  ;;  %v14965_v18 = vpop.f32.mrf.mxu1 }
0x170d   :  { %v6999_v52 = vpop.f32.mrf.mxu1 }
0x170e   :  { %14989 = vmatprep.mubr.msk.f32.mxu0 %vm492_vm3, %v6999_v52 }
0x170f   :  { %14990 = vmatmul.mubr.msk.f32.vlgmr.msra.gmra.mxu0 %vm492_vm3, %v14965_v18  ;;  %v18329_v38 = vpop.f32.mrf.mxu0 }
0x1710   :  { %v14968_v56 = vpop.f32.mrf.mxu1  ;;  %15070 = vmatpush3.msk.msra.mxu0 %vm505_vm2, %v12136_v7 }
0x1711   :  { %15151 = vmatprep.subr.msk.mxu0 %vm505_vm2, %v12170_v19  ;;  %v18334_v0 = vpop.f32.mrf.mxu0 }
0x1712   :  { %v7009_v60 = vpop.f32.mrf.mxu1  ;;  %19884 = vst [vmem:[#allocation7_spill] sm:$0xff] %v18334_v0 }
0x1713   :  { %14992 = vmatprep.mubr.msk.f32.mxu0 %vm492_vm3, %v7009_v60  ;;  %v18338_v21 = vpop.f32.mrf.mxu0  ;;  %v5339_v60 = vadd.f32 %v18329_v38, %v18072_v32 }
0x1714   :  { %v14971_v63 = vpop.f32.mrf.mxu1  ;;  %14993 = vmatmul.mubr.msk.f32.gmra.mxu0 %vm492_vm3, %v14968_v56 }
0x1715   :  { %v18342_v29 = vpop.f32.mrf.mxu0 }
0x1716   :  { %v7019_v25 = vpop.f32.mrf.mxu1 }
0x1717   :  { %14995 = vmatprep.mubr.msk.f32.mxu0 %vm492_vm3, %v7019_v25  ;;  %v18346_v20 = vpop.f32.mrf.mxu0 }
0x1718   :  { %v14974_v4 = vpop.f32.mrf.mxu1  ;;  %14996 = vmatmul.mubr.msk.f32.gmra.mxu0 %vm492_vm3, %v14971_v63  ;;  %v5359_v38 = vadd.f32 %v18346_v20, %v18108_v24 }
0x1719   :  { %v18350_v36 = vpop.f32.mrf.mxu0 }
0x171a   :  { %v7029_v28 = vpop.f32.mrf.mxu1 }
0x171b   :  { %14998 = vmatprep.mubr.msk.f32.mxu0 %vm492_vm3, %v7029_v28  ;;  %v18354_v42 = vpop.f32.mrf.mxu0 }
0x171c   :  { %v14977_v5 = vpop.f32.mrf.mxu1  ;;  %14999 = vmatmul.mubr.msk.f32.gmra.mxu0 %vm492_vm3, %v14974_v4 }
0x171d   :  { %v18358_v47 = vpop.f32.mrf.mxu0 }
0x171e   :  { %v7039_v30 = vpop.f32.mrf.mxu1 }
0x171f   :  { %15001 = vmatprep.mubr.msk.f32.mxu0 %vm492_vm3, %v7039_v30  ;;  %v18362_v55 = vpop.f32.mrf.mxu0  ;;  %v5349_v30 = vadd.f32 %v18338_v21, %v18094_v8  ;;  %v5369_v21 = vadd.f32 %v18354_v42, %v18122_v1 }
0x1720   :  { %v14980_v6 = vpop.f32.mrf.mxu1  ;;  %15002 = vmatmul.mubr.msk.f32.gmra.mxu0 %vm492_vm3, %v14977_v5  ;;  %v5379_v20 = vadd.f32 %v18362_v55, %v18136_v17 }
0x1721   :  { %v18367_v7 = vpop.f32.mrf.mxu0 }
0x1722   :  { %v7049_v31 = vpop.f32.mrf.mxu1 }
0x1723   :  { %15004 = vmatprep.mubr.msk.f32.mxu0 %vm492_vm3, %v7049_v31  ;;  %v18371_v11 = vpop.f32.mrf.mxu0 }
0x1724   :  { %v14983_v35 = vpop.f32.mrf.mxu1  ;;  %15005 = vmatmul.mubr.msk.f32.gmra.mxu0 %vm492_vm3, %v14980_v6  ;;  %v5389_v42 = vadd.f32 %v18371_v11, %v18150_v34 }
0x1725   :  { %v18375_v15 = vpop.f32.mrf.mxu0 }
0x1726   :  { %v7059_v39 = vpop.f32.mrf.mxu1 }
0x1727   :  { %15007 = vmatprep.mubr.msk.f32.mxu0 %vm492_vm3, %v7059_v39  ;;  %v18379_v53 = vpop.f32.mrf.mxu0 }
0x1728   :  { %v14986_v40 = vpop.f32.mrf.mxu1  ;;  %15008 = vmatmul.mubr.msk.f32.gmra.mxu0 %vm492_vm3, %v14983_v35  ;;  %v5399_v55 = vadd.f32 %v18379_v53, %v18164_v22  ;;  %v16004_v53 = vld [vmem:[%s19855_s13 + $0x80] sm:$0xff] }
0x1729   :  { %v18383_v44 = vpop.f32.mrf.mxu0 }
0x172a   :  { %v7069_v43 = vpop.f32.mrf.mxu1 }
0x172b   :  { %15010 = vmatprep.mubr.msk.f32.mxu0 %vm492_vm3, %v7069_v43  ;;  %v14602_v18 = vpop.f32.mrf.mxu0 }
0x172c   :  { %15011 = vmatmul.mubr.msk.f32.gmra.mxu0 %vm492_vm3, %v14986_v40  ;;  %v15047_v45 = vpop.f32.mrf.mxu1  ;;  %v5409_v11 = vadd.f32 %v14602_v18, %v18178_v23 }
0x172d   :  { %v18389_v56 = vpop.f32.mrf.mxu0 }
0x172e   :  { %v7375_v49 = vpop.f32.mrf.mxu1 }
0x172f   :  { %15071 = vmatprep.mubr.msk.f32.mxu0 %vm492_vm3, %v7375_v49 }
0x1730   :  { %v15050_v51 = vpop.f32.mrf.mxu1  ;;  %15072 = vmatmul.mubr.msk.f32.vlgmr.msra.gmra.mxu0 %vm492_vm3, %v15047_v45 }
0x1731   :  { %15152 = vmatpush3.msk.msra.mxu0 %vm505_vm2, %v12170_v19 }
0x1732   :  { %v7385_v57 = vpop.f32.mrf.mxu1 }
0x1733   :  { %15074 = vmatprep.mubr.msk.f32.mxu0 %vm492_vm3, %v7385_v57 }
0x1734   :  { %v15053_v3 = vpop.f32.mrf.mxu1  ;;  %15075 = vmatmul.mubr.msk.f32.gmra.mxu0 %vm492_vm3, %v15050_v51 }
0x1736   :  { %v7395_v9 = vpop.f32.mrf.mxu1 }
0x1737   :  { %15077 = vmatprep.mubr.msk.f32.mxu0 %vm492_vm3, %v7395_v9 }
0x1738   :  { %v15056_v10 = vpop.f32.mrf.mxu1  ;;  %15078 = vmatmul.mubr.msk.f32.gmra.mxu0 %vm492_vm3, %v15053_v3 }
0x173a   :  { %v7405_v12 = vpop.f32.mrf.mxu1 }
0x173b   :  { %15080 = vmatprep.mubr.msk.f32.mxu0 %vm492_vm3, %v7405_v12 }
0x173c   :  { %v15059_v14 = vpop.f32.mrf.mxu1  ;;  %15081 = vmatmul.mubr.msk.f32.gmra.mxu0 %vm492_vm3, %v15056_v10 }
0x173e   :  { %v7415_v16 = vpop.f32.mrf.mxu1 }
0x173f   :  { %15083 = vmatprep.mubr.msk.f32.mxu0 %vm492_vm3, %v7415_v16 }
0x1740   :  { %v15062_v33 = vpop.f32.mrf.mxu1  ;;  %15084 = vmatmul.mubr.msk.f32.gmra.mxu0 %vm492_vm3, %v15059_v14 }
0x1742   :  { %v7425_v59 = vpop.f32.mrf.mxu1 }
0x1743   :  { %15086 = vmatprep.mubr.msk.f32.mxu0 %vm492_vm3, %v7425_v59 }
0x1744   :  { %v15065_v26 = vpop.f32.mrf.mxu1  ;;  %15087 = vmatmul.mubr.msk.f32.gmra.mxu0 %vm492_vm3, %v15062_v33 }
0x1746   :  { %v7435_v27 = vpop.f32.mrf.mxu1 }
0x1747   :  { %15089 = vmatprep.mubr.msk.f32.mxu0 %vm492_vm3, %v7435_v27 }
0x1748   :  { %v15068_v48 = vpop.f32.mrf.mxu1  ;;  %15090 = vmatmul.mubr.msk.f32.gmra.mxu0 %vm492_vm3, %v15065_v26 }
0x174a   :  { %v7445_v52 = vpop.f32.mrf.mxu1 }
0x174b   :  { %15092 = vmatprep.mubr.msk.f32.mxu0 %vm492_vm3, %v7445_v52 }
0x174c   :  { %15093 = vmatmul.mubr.msk.f32.gmra.mxu0 %vm492_vm3, %v15068_v48  ;;  %v15129_v19 = vpop.f32.mrf.mxu1 }
0x174e   :  { %v7751_v63 = vpop.f32.mrf.mxu1 }
0x174f   :  { %15153 = vmatprep.mubr.msk.f32.mxu0 %vm492_vm3, %v7751_v63  ;;  %v14663_v25 = vpop.f32.mrf.mxu0 }
0x1750   :  { %v5773_v4 = vadd.f32 %v14663_v25, %v5339_v60  ;;  %v15132_v28 = vpop.f32.mrf.mxu1  ;;  %15154 = vmatmul.mubr.msk.f32.vlgmr.msra.gmra.mxu0 %vm492_vm3, %v15129_v19 }
0x1751   :  { %v18395_v5 = vpop.f32.mrf.mxu0 }
0x1752   :  { %19885 = vst [vmem:[#allocation8_spill] sm:$0xff] %v18395_v5  ;;  %v7761_v6 = vpop.f32.mrf.mxu1 }
0x1753   :  { %15156 = vmatprep.mubr.msk.f32.mxu0 %vm492_vm3, %v7761_v6  ;;  %v14666_v31 = vpop.f32.mrf.mxu0 }
0x1754   :  { %v5775_v35 = vadd.f32 %v14666_v31, %v5349_v30  ;;  %v15135_v39 = vpop.f32.mrf.mxu1  ;;  %15157 = vmatmul.mubr.msk.f32.gmra.mxu0 %vm492_vm3, %v15132_v28 }
0x1755   :  { %v18401_v32 = vpop.f32.mrf.mxu0 }
0x1756   :  { %19886 = vst [vmem:[#allocation9_spill] sm:$0xff] %v18401_v32  ;;  %v7771_v40 = vpop.f32.mrf.mxu1 }
0x1757   :  { %15159 = vmatprep.mubr.msk.f32.mxu0 %vm492_vm3, %v7771_v40  ;;  %v14669_v43 = vpop.f32.mrf.mxu0 }
0x1758   :  { %v5777_v45 = vadd.f32 %v14669_v43, %v5359_v38  ;;  %v15138_v49 = vpop.f32.mrf.mxu1  ;;  %15160 = vmatmul.mubr.msk.f32.gmra.mxu0 %vm492_vm3, %v15135_v39 }
0x1759   :  { %v18407_v8 = vpop.f32.mrf.mxu0 }
0x175a   :  { %v7781_v51 = vpop.f32.mrf.mxu1 }
0x175b   :  { %15162 = vmatprep.mubr.msk.f32.mxu0 %vm492_vm3, %v7781_v51  ;;  %v14672_v57 = vpop.f32.mrf.mxu0 }
0x175c   :  { %v5779_v3 = vadd.f32 %v14672_v57, %v5369_v21  ;;  %v15141_v9 = vpop.f32.mrf.mxu1  ;;  %15163 = vmatmul.mubr.msk.f32.gmra.mxu0 %vm492_vm3, %v15138_v49 }
0x175d   :  { %v18413_v24 = vpop.f32.mrf.mxu0 }
0x175e   :  { %v7791_v10 = vpop.f32.mrf.mxu1 }
0x175f   :  { %15165 = vmatprep.mubr.msk.f32.mxu0 %vm492_vm3, %v7791_v10  ;;  %v14675_v12 = vpop.f32.mrf.mxu0 }
0x1760   :  { %v5781_v14 = vadd.f32 %v14675_v12, %v5379_v20  ;;  %v15144_v16 = vpop.f32.mrf.mxu1  ;;  %15166 = vmatmul.mubr.msk.f32.gmra.mxu0 %vm492_vm3, %v15141_v9 }
0x1761   :  { %v18419_v1 = vpop.f32.mrf.mxu0 }
0x1762   :  { %v7801_v33 = vpop.f32.mrf.mxu1 }
0x1763   :  { %15168 = vmatprep.mubr.msk.f32.mxu0 %vm492_vm3, %v7801_v33  ;;  %v14678_v59 = vpop.f32.mrf.mxu0 }
0x1764   :  { %v5783_v26 = vadd.f32 %v14678_v59, %v5389_v42  ;;  %v15147_v27 = vpop.f32.mrf.mxu1  ;;  %15169 = vmatmul.mubr.msk.f32.gmra.mxu0 %vm492_vm3, %v15144_v16 }
0x1765   :  { %v18425_v17 = vpop.f32.mrf.mxu0 }
0x1766   :  { %v7811_v48 = vpop.f32.mrf.mxu1 }
0x1767   :  { %15171 = vmatprep.mubr.msk.f32.mxu0 %vm492_vm3, %v7811_v48  ;;  %v14681_v52 = vpop.f32.mrf.mxu0 }
0x1768   :  { %v5785_v19 = vadd.f32 %v14681_v52, %v5399_v55  ;;  %v15150_v60 = vpop.f32.mrf.mxu1  ;;  %15172 = vmatmul.mubr.msk.f32.gmra.mxu0 %vm492_vm3, %v15147_v27 }
0x1769   :  { %v18431_v34 = vpop.f32.mrf.mxu0 }
0x176a   :  { %v7821_v63 = vpop.f32.mrf.mxu1 }
0x176b   :  { %15174 = vmatprep.mubr.msk.f32.mxu0 %vm492_vm3, %v7821_v63  ;;  %v14684_v25 = vpop.f32.mrf.mxu0 }
0x176c   :  { %v5787_v28 = vadd.f32 %v14684_v25, %v5409_v11  ;;  %15175 = vmatmul.mubr.msk.f32.gmra.mxu0 %vm492_vm3, %v15150_v60 }
0x176d   :  { %v18436_v22 = vpop.f32.mrf.mxu0  ;;  %15265 = vmatprep.mubr.f32.mxu0 %v16004_v53 }
0x176f   :  { %v14745_v30 = vpop.f32.mrf.mxu0 }
0x1770   :  { %v6149_v6 = vadd.f32 %v14745_v30, %v5773_v4 }
0x1771   :  { %v18441_v31 = vpop.f32.mrf.mxu0 }
0x1772   :  { %19887 = vst [vmem:[#allocation10_spill] sm:$0xff] %v18441_v31 }
0x1773   :  { %v14748_v39 = vpop.f32.mrf.mxu0 }
0x1774   :  { %v6151_v23 = vadd.f32 %v14748_v39, %v5775_v35 }
0x1775   :  { %v18443_v18 = vpop.f32.mrf.mxu0 }
0x1776   :  { %19888 = vst [vmem:[#allocation11_spill] sm:$0xff] %v18443_v18 }
0x1777   :  { %v14751_v38 = vpop.f32.mrf.mxu0 }
0x1778   :  { %v6153_v40 = vadd.f32 %v14751_v38, %v5777_v45 }
0x1779   :  { %v18445_v43 = vpop.f32.mrf.mxu0 }
0x177b   :  { %v14754_v49 = vpop.f32.mrf.mxu0 }
0x177c   :  { %v6155_v21 = vadd.f32 %v14754_v49, %v5779_v3 }
0x177d   :  { %v18447_v51 = vpop.f32.mrf.mxu0 }
0x177f   :  { %v14757_v57 = vpop.f32.mrf.mxu0 }
0x1780   :  { %v6157_v9 = vadd.f32 %v14757_v57, %v5781_v14 }
0x1781   :  { %v18449_v20 = vpop.f32.mrf.mxu0 }
0x1783   :  { %v14760_v10 = vpop.f32.mrf.mxu0 }
0x1784   :  { %v6159_v4 = vadd.f32 %v14760_v10, %v5783_v26 }
0x1785   :  { %v18451_v12 = vpop.f32.mrf.mxu0 }
0x1787   :  { %v14763_v16 = vpop.f32.mrf.mxu0 }
0x1788   :  { %v6161_v35 = vadd.f32 %v14763_v16, %v5785_v19 }
0x1789   :  { %v18453_v42 = vpop.f32.mrf.mxu0 }
0x178b   :  { %v14766_v33 = vpop.f32.mrf.mxu0 }
0x178c   :  { %v6163_v45 = vadd.f32 %v14766_v33, %v5787_v28 }
0x178d   :  { %v18455_v59 = vpop.f32.mrf.mxu0 }
0x178f   :  { %v14827_v27 = vpop.f32.mrf.mxu0 }
0x1790   :  { %v6525_v3 = vadd.f32 %v14827_v27, %v6149_v6 }
0x1791   :  { %v18457_v55 = vpop.f32.mrf.mxu0 }
0x1792   :  { %19889 = vst [vmem:[#allocation12_spill] sm:$0xff] %v18457_v55 }
0x1793   :  { %v14830_v48 = vpop.f32.mrf.mxu0 }
0x1794   :  { %v6527_v14 = vadd.f32 %v14830_v48, %v6151_v23 }
0x1795   :  { %v18459_v52 = vpop.f32.mrf.mxu0 }
0x1796   :  { %19890 = vst [vmem:[#allocation13_spill] sm:$0xff] %v18459_v52 }
0x1797   :  { %v14833_v60 = vpop.f32.mrf.mxu0 }
0x1798   :  { %v6529_v26 = vadd.f32 %v14833_v60, %v6153_v40 }
0x1799   :  { %v18461_v11 = vpop.f32.mrf.mxu0 }
0x179a   :  { %19891 = vst [vmem:[#allocation14_spill] sm:$0xff] %v18461_v11  ;;  %v5394_v11 = vadd.f32 %v18383_v44, %v18168_v62 }
0x179b   :  { %v14836_v63 = vpop.f32.mrf.mxu0 }
0x179c   :  { %v6531_v19 = vadd.f32 %v14836_v63, %v6155_v21 }
0x179d   :  { %v18463_v25 = vpop.f32.mrf.mxu0 }
0x179f   :  { %v14839_v53 = vpop.f32.mrf.mxu0 }
0x17a0   :  { %v6533_v28 = vadd.f32 %v14839_v53, %v6157_v9 }
0x17a1   :  { %v18465_v30 = vpop.f32.mrf.mxu0 }
0x17a3   :  { %v14842_v39 = vpop.f32.mrf.mxu0 }
0x17a4   :  { %v6535_v6 = vadd.f32 %v14842_v39, %v6159_v4 }
0x17a5   :  { %v18467_v38 = vpop.f32.mrf.mxu0 }
0x17a7   :  { %v14845_v49 = vpop.f32.mrf.mxu0 }
0x17a8   :  { %v6537_v23 = vadd.f32 %v14845_v49, %v6161_v35 }
0x17a9   :  { %v18469_v57 = vpop.f32.mrf.mxu0 }
0x17ab   :  { %v14848_v10 = vpop.f32.mrf.mxu0 }
0x17ac   :  { %v6539_v40 = vadd.f32 %v14848_v10, %v6163_v45 }
0x17ad   :  { %v18471_v16 = vpop.f32.mrf.mxu0 }
0x17af   :  { %v14909_v33 = vpop.f32.mrf.mxu0 }
0x17b0   :  { %v6901_v21 = vadd.f32 %v14909_v33, %v6525_v3 }
0x17b1   :  { %v18473_v27 = vpop.f32.mrf.mxu0 }
0x17b2   :  { %19892 = vst [vmem:[#allocation15_spill] sm:$0xff] %v18473_v27 }
0x17b3   :  { %v14912_v48 = vpop.f32.mrf.mxu0 }
0x17b4   :  { %v6903_v9 = vadd.f32 %v14912_v48, %v6527_v14 }
0x17b5   :  { %v18475_v60 = vpop.f32.mrf.mxu0 }
0x17b6   :  { %19893 = vst [vmem:[#allocation16_spill] sm:$0xff] %v18475_v60 }
0x17b7   :  { %v14915_v63 = vpop.f32.mrf.mxu0 }
0x17b8   :  { %v6905_v4 = vadd.f32 %v14915_v63, %v6529_v26 }
0x17b9   :  { %v18477_v53 = vpop.f32.mrf.mxu0 }
0x17ba   :  { %19894 = vst [vmem:[#allocation17_spill] sm:$0xff] %v18477_v53 }
0x17bb   :  { %v14918_v39 = vpop.f32.mrf.mxu0 }
0x17bc   :  { %v6907_v35 = vadd.f32 %v14918_v39, %v6531_v19 }
0x17bd   :  { %v18479_v49 = vpop.f32.mrf.mxu0 }
0x17bf   :  { %v14921_v61 = vpop.f32.mrf.mxu0 }
0x17c0   :  { %v6909_v45 = vadd.f32 %v14921_v61, %v6533_v28 }
0x17c1   :  { %v18481_v10 = vpop.f32.mrf.mxu0 }
0x17c3   :  { %v14924_v13 = vpop.f32.mrf.mxu0 }
0x17c4   :  { %v6911_v3 = vadd.f32 %v14924_v13, %v6535_v6 }
0x17c5   :  { %v18483_v33 = vpop.f32.mrf.mxu0 }
0x17c7   :  { %v14927_v27 = vpop.f32.mrf.mxu0 }
0x17c8   :  { %v6913_v14 = vadd.f32 %v14927_v27, %v6537_v23 }
0x17c9   :  { %v18485_v48 = vpop.f32.mrf.mxu0 }
0x17cb   :  { %v14930_v55 = vpop.f32.mrf.mxu0 }
0x17cc   :  { %v18487_v26 = vadd.f32 %v14930_v55, %v6539_v40 }
0x17cd   :  { %v18489_v63 = vpop.f32.mrf.mxu0 }
0x17cf   :  { %v14991_v19 = vpop.f32.mrf.mxu0 }
0x17d0   :  { %v7277_v39 = vadd.f32 %v14991_v19, %v6901_v21 }
0x17d1   :  { %v18491_v60 = vpop.f32.mrf.mxu0 }
0x17d2   :  { %19895 = vst [vmem:[#allocation18_spill] sm:$0xff] %v18491_v60 }
0x17d4   :  { %v14994_v61 = vpop.f32.mrf.mxu0 }
0x17d5   :  { %v7279_v28 = vadd.f32 %v14994_v61, %v6903_v9 }
0x17d6   :  { %v18493_v31 = vpop.f32.mrf.mxu0 }
0x17d7   :  { %19896 = vst [vmem:[#allocation19_spill] sm:$0xff] %v18493_v31 }
0x17d8   :  { %v14997_v13 = vpop.f32.mrf.mxu0 }
0x17d9   :  { %v7281_v6 = vadd.f32 %v14997_v13, %v6905_v4 }
0x17da   :  { %v18495_v52 = vpop.f32.mrf.mxu0 }
0x17db   :  { %19897 = vst [vmem:[#allocation20_spill] sm:$0xff] %v18495_v52 }
0x17dc   :  { %v15000_v23 = vpop.f32.mrf.mxu0 }
0x17dd   :  { %v18497_v27 = vadd.f32 %v15000_v23, %v6907_v35 }
0x17de   :  { %v18499_v5 = vpop.f32.mrf.mxu0 }
0x17df   :  { %19898 = vst [vmem:[#allocation21_spill] sm:$0xff] %v18497_v27  ;;  %19899 = vst [vmem:[#allocation22_spill] sm:$0xff] %v18499_v5 }
0x17e0   :  { %v15003_v55 = vpop.f32.mrf.mxu0 }
0x17e1   :  { %v18501_v40 = vadd.f32 %v15003_v55, %v6909_v45 }
0x17e2   :  { %v18503_v53 = vpop.f32.mrf.mxu0 }
0x17e4   :  { %v15006_v21 = vpop.f32.mrf.mxu0 }
0x17e5   :  { %v18505_v19 = vadd.f32 %v15006_v21, %v6911_v3 }
0x17e6   :  { %v18507_v9 = vpop.f32.mrf.mxu0 }
0x17e8   :  { %v15009_v61 = vpop.f32.mrf.mxu0 }
0x17e9   :  { %v7289_v60 = vadd.f32 %v15009_v61, %v6913_v14 }
0x17ea   :  { %v7257_v4 = vpop.f32.mrf.mxu0 }
0x17ec   :  { %v15012_v13 = vpop.f32.mrf.mxu0 }
0x17ee   :  { %v7267_v31 = vpop.f32.mrf.mxu0 }
0x17f0   :  { %v15073_v52 = vpop.f32.mrf.mxu0 }
0x17f1   :  { %v18509_v35 = vadd.f32 %v15073_v52, %v7277_v39 }
0x17f2   :  { %v18511_v23 = vpop.f32.mrf.mxu0 }
0x17f3   :  { %19900 = vst [vmem:[#allocation23_spill] sm:$0xff] %v18509_v35  ;;  %19901 = vst [vmem:[#allocation24_spill] sm:$0xff] %v18511_v23 }
0x17f4   :  { %v15076_v18 = vpop.f32.mrf.mxu0 }
0x17f5   :  { %v18513_v45 = vadd.f32 %v15076_v18, %v7279_v28 }
0x17f6   :  { %v18515_v55 = vpop.f32.mrf.mxu0 }
0x17f7   :  { %19902 = vst [vmem:[#allocation25_spill] sm:$0xff] %v18513_v45  ;;  %19903 = vst [vmem:[#allocation26_spill] sm:$0xff] %v18515_v55 }
0x17f8   :  { %v15079_v0 = vpop.f32.mrf.mxu0 }
0x17f9   :  { %v18517_v3 = vadd.f32 %v15079_v0, %v7281_v6 }
0x17fa   :  { %v18519_v21 = vpop.f32.mrf.mxu0 }
0x17fb   :  { %19904 = vst [vmem:[#allocation27_spill] sm:$0xff] %v18517_v3  ;;  %19905 = vst [vmem:[#allocation28_spill] sm:$0xff] %v18519_v21 }
0x17fc   :  { %v18521_v37 = vpop.f32.mrf.mxu0 }
0x17fd   :  { %19906 = vst [vmem:[#allocation29_spill] sm:$0xff] %v18521_v37 }
0x17fe   :  { %v18523_v14 = vpop.f32.mrf.mxu0 }
0x17ff   :  { %19907 = vst [vmem:[#allocation30_spill] sm:$0xff] %v18523_v14 }
0x1800   :  { %v18525_v61 = vpop.f32.mrf.mxu0 }
0x1802   :  { %v18527_v52 = vpop.f32.mrf.mxu0 }
0x1804   :  { %v15088_v39 = vpop.f32.mrf.mxu0 }
0x1806   :  { %v7623_v35 = vpop.f32.mrf.mxu0 }
0x1808   :  { %v15091_v23 = vpop.f32.mrf.mxu0 }
0x180a   :  { %v7633_v18 = vpop.f32.mrf.mxu0 }
0x180c   :  { %v15094_v28 = vpop.f32.mrf.mxu0 }
0x180e   :  { %v7643_v45 = vpop.f32.mrf.mxu0 }
0x1810   :  { %v18529_v55 = vpop.f32.mrf.mxu0 }
0x1811   :  { %19908 = vst [vmem:[#allocation31_spill] sm:$0xff] %v18529_v55 }
0x1812   :  { %v18531_v0 = vpop.f32.mrf.mxu0 }
0x1813   :  { %19909 = vst [vmem:[#allocation32_spill] sm:$0xff] %v18531_v0  ;;  %v5404_v0 = vadd.f32 %v18389_v56, %v18182_v2  ;;  %v5374_v56 = vadd.f32 %v18367_v7, %v18140_v54  ;;  %v5364_v54 = vadd.f32 %v18358_v47, %v18126_v50  ;;  %v7663_v47 = vadd.f32 %v15088_v39, %v18505_v19 }
0x1814   :  { %v18533_v6 = vpop.f32.mrf.mxu0 }
0x1815   :  { %19910 = vst [vmem:[#allocation33_spill] sm:$0xff] %v18533_v6  ;;  %v5786_v6 = vadd.f32 %v18436_v22, %v5404_v0  ;;  %v19918_v0 = vld [vmem:[#allocation22_spill] sm:$0xff] }
0x1816   :  { %v18535_v3 = vpop.f32.mrf.mxu0 }
0x1817   :  { %19911 = vst [vmem:[#allocation34_spill] sm:$0xff] %v18535_v3  ;;  %v5784_v3 = vadd.f32 %v18431_v34, %v5394_v11 }
0x1818   :  { %v18537_v21 = vpop.f32.mrf.mxu0 }
0x1819   :  { %19912 = vst [vmem:[#allocation35_spill] sm:$0xff] %v18537_v21 }
0x181a   :  { %v18539_v14 = vpop.f32.mrf.mxu0 }
0x181b   :  { %19913 = vst [vmem:[#allocation36_spill] sm:$0xff] %v18539_v14  ;;  %v5384_v14 = vadd.f32 %v18375_v15, %v18154_v58 }
0x181c   :  { %v18541_v37 = vpop.f32.mrf.mxu0 }
0x181d   :  { %19914 = vst [vmem:[#allocation37_spill] sm:$0xff] %v18541_v37  ;;  %v6162_v37 = vadd.f32 %v18455_v59, %v5786_v6  ;;  %v5782_v32 = vadd.f32 %v18425_v17, %v5384_v14  ;;  %v5780_v59 = vadd.f32 %v18419_v1, %v5374_v56  ;;  %v5778_v1 = vadd.f32 %v18413_v24, %v5364_v54  ;;  %v19927_v54 = vld [vmem:[#allocation8_spill] sm:$0xff] }
0x181e   :  { %v18543_v27 = vpop.f32.mrf.mxu0 }
0x181f   :  { %19915 = vst [vmem:[#allocation38_spill] sm:$0xff] %v18543_v27  ;;  %v6160_v27 = vadd.f32 %v18453_v42, %v5784_v3  ;;  %v6538_v2 = vadd.f32 %v18471_v16, %v6162_v37  ;;  %v6158_v34 = vadd.f32 %v18451_v12, %v5782_v32  ;;  %v7291_v42 = vadd.f32 %v15012_v13, %v18487_v26 }
0x1820   :  { %v18545_v5 = vpop.f32.mrf.mxu0  ;;  %v7665_v37 = vadd.f32 %v15091_v23, %v7289_v60  ;;  %v6156_v7 = vadd.f32 %v18449_v20, %v5780_v59  ;;  %v18580_v60 = vld [vmem:[%s19857_s15] ss:$0 sm:$0xff]  ;;  %v5354_v23 = vadd.f32 %v18350_v36, %v18112_v46  ;;  %v6154_v24 = vadd.f32 %v18447_v51, %v5778_v1  ;;  %v19924_v59 = vld [vmem:[#allocation17_spill] sm:$0xff] }
0x1821   :  { %v6536_v44 = vadd.f32 %v18469_v57, %v6160_v27  ;;  %v6914_v15 = vadd.f32 %v18489_v63, %v6538_v2  ;;  %v6534_v17 = vadd.f32 %v18467_v38, %v6158_v34  ;;  %v7667_v16 = vadd.f32 %v15094_v28, %v7291_v42  ;;  %v19921_v34 = vld [vmem:[#allocation6_spill] sm:$0xff] }
0x1822   :  { %v18551_v55 = vpop.f32.mrf.mxu0  ;;  %v6532_v38 = vadd.f32 %v18465_v30, %v6156_v7  ;;  %v5776_v19 = vadd.f32 %v18407_v8, %v5354_v23  ;;  %v6530_v39 = vadd.f32 %v18463_v25, %v6154_v24  ;;  %v7661_v46 = vadd.f32 %v18525_v61, %v18501_v40  ;;  %v19934_v23 = vld [vmem:[#allocation27_spill] sm:$0xff] }
0x1823   :  { %v6912_v58 = vadd.f32 %v18485_v48, %v6536_v44  ;;  %v7290_v27 = vadd.f32 %v7267_v31, %v6914_v15  ;;  %v6910_v32 = vadd.f32 %v18483_v33, %v6534_v17  ;;  %v19923_v15 = vld [vmem:[#allocation11_spill] sm:$0xff] }
0x1824   :  { %v15170_v21 = vpop.f32.mrf.mxu0  ;;  %v6908_v30 = vadd.f32 %v18481_v10, %v6532_v38  ;;  %v6152_v8 = vadd.f32 %v18445_v43, %v5776_v19  ;;  %v6906_v25 = vadd.f32 %v18479_v49, %v6530_v39  ;;  %v8037_v40 = vadd.f32 %v18545_v5, %v7661_v46  ;;  %v19917_v43 = vld [vmem:[#allocation14_spill] sm:$0xff]  ;;  %v19920_v5 = vld [vmem:[#allocation29_spill] sm:$0xff]  ;;  %v19935_v24 = vld [vmem:[#allocation35_spill] sm:$0xff] }
0x1825   :  { %v7288_v57 = vadd.f32 %v7257_v4, %v6912_v58  ;;  %v7666_v63 = vadd.f32 %v7643_v45, %v7290_v27  ;;  %v7286_v31 = vadd.f32 %v18507_v9, %v6910_v32  ;;  %v8039_v45 = vadd.f32 %v15170_v21, %v7663_v47  ;;  %v19928_v32 = vld [vmem:[#allocation13_spill] sm:$0xff]  ;;  %v19932_v47 = vld [vmem:[#allocation16_spill] sm:$0xff]  ;;  %v19937_v19 = vld [vmem:[#allocation19_spill] sm:$0xff] }
0x1826   :  { %v7999_v62 = vpop.f32.mrf.mxu0  ;;  %v7284_v28 = vadd.f32 %v18503_v53, %v6908_v30  ;;  %v6528_v49 = vadd.f32 %v19917_v43, %v6152_v8  ;;  %v7282_v6 = vadd.f32 %v19918_v0, %v6906_v25  ;;  %v8033_v30 = vadd.f32 %v19935_v24, %v19934_v23  ;;  %v19940_v25 = vld [vmem:[#allocation26_spill] sm:$0xff]  ;;  %v16016_v23 = vld [vmem:[%s19855_s13 + $0x30] sm:$0xff] }
0x1827   :  { %v7664_v48 = vadd.f32 %v7633_v18, %v7288_v57  ;;  %v7662_v9 = vadd.f32 %v7623_v35, %v7286_v31  ;;  %v5344_v35 = vadd.f32 %v18342_v29, %v18098_v41  ;;  %v8062_v21 = vadd.f32 %v18580_v60, %v8039_v45  ;;  %v19916_v41 = vld [vmem:[#allocation9_spill] sm:$0xff]  ;;  %v19931_v31 = vld [vmem:[#allocation10_spill] sm:$0xff] }
0x1828   :  { %v15173_v22 = vpop.f32.mrf.mxu0  ;;  %v7660_v53 = vadd.f32 %v18527_v52, %v7284_v28  ;;  %v19919_v52 = vld [vmem:[#allocation21_spill] sm:$0xff]  ;;  %v6904_v17 = vadd.f32 %v19924_v59, %v6528_v49  ;;  %v19938_v28 = vld [vmem:[#allocation36_spill] sm:$0xff]  ;;  %v19943_v49 = vld [vmem:[#allocation18_spill] sm:$0xff] }
0x1829   :  { %v8041_v26 = vadd.f32 %v15173_v22, %v7665_v37  ;;  %v8038_v36 = vadd.f32 %v7999_v62, %v7662_v9  ;;  %v5774_v29 = vadd.f32 %v19916_v41, %v5344_v35  ;;  %v7659_v62 = vadd.f32 %v19920_v5, %v19919_v52  ;;  %v19922_v22 = vld [vmem:[#allocation7_spill] sm:$0xff]  ;;  %v19926_v57 = vld [vmem:[#allocation37_spill] sm:$0xff]  ;;  %v19948_v59 = vld [vmem:[#allocation32_spill] sm:$0xff] }
0x182a   :  { %v8009_v11 = vpop.f32.mrf.mxu0  ;;  %v8036_v44 = vadd.f32 %v18551_v55, %v7660_v53  ;;  %v5334_v58 = vadd.f32 %v19922_v22, %v19921_v34  ;;  %v19925_v55 = vld [vmem:[#allocation30_spill] sm:$0xff]  ;;  %v8060_v37 = vadd.f32 %v18580_v60, %v8037_v40  ;;  %v19939_v35 = vld [vmem:[#allocation15_spill] sm:$0xff]  ;;  %v19941_v40 = vld [vmem:[#allocation25_spill] sm:$0xff] }
0x182b   :  { %v8040_v20 = vadd.f32 %v8009_v11, %v7664_v48  ;;  %v8064_v3 = vadd.f32 %v18580_v60, %v8041_v26  ;;  %v8061_v2 = vadd.f32 %v18580_v60, %v8038_v36  ;;  %v6150_v42 = vadd.f32 %v19923_v15, %v5774_v29  ;;  %v19929_v48 = vld [vmem:[#allocation20_spill] sm:$0xff]  ;;  %v19930_v26 = vld [vmem:[#allocation38_spill] sm:$0xff]  ;;  %v19946_v34 = vld [vmem:[#allocation23_spill] sm:$0xff] }
0x182c   :  { %v15176_v12 = vpop.f32.mrf.mxu0  ;;  %v7658_v11 = vadd.f32 %v19925_v55, %v7282_v6  ;;  %v8035_v27 = vadd.f32 %v19926_v57, %v7659_v62  ;;  %v5772_v7 = vadd.f32 %v19927_v54, %v5334_v58  ;;  %v8059_v1 = vadd.f32 %v18580_v60, %v8036_v44  ;;  %v19944_v6 = vld [vmem:[#allocation34_spill] sm:$0xff]  ;;  %v19945_v44 = vld [vmem:[#allocation24_spill] sm:$0xff]  ;;  %v19947_v22 = vld [vmem:[#allocation31_spill] sm:$0xff] }
0x182d   :  { %v8043_v13 = vadd.f32 %v15176_v12, %v7667_v16  ;;  %v8063_v51 = vadd.f32 %v18580_v60, %v8040_v20  ;;  %v18611_v61 = vmax.f32 %v8064_v3, 0.0  ;;  %v18637_v16 = vmax.f32 %v8062_v21, 0.0  ;;  %v19936_v3 = vld [vmem:[#allocation12_spill] sm:$0xff]  ;;  %v19942_v21 = vld [vmem:[#allocation33_spill] sm:$0xff]  ;;  %v16017_v24 = vld [vmem:[%s19855_s13 + $0xb8] sm:$0xff] }
0x182e   :  { %v8019_v50 = vpop.f32.mrf.mxu0  ;;  %v6526_v12 = vadd.f32 %v19928_v32, %v6150_v42  ;;  %v18648_v38 = vmax.f32 %v8061_v2, 0.0  ;;  %v8058_v9 = vadd.f32 %v18580_v60, %v8035_v27  ;;  %v18660_v45 = vmax.f32 %v8060_v37, 0.0  ;;  %v12190_v32 = vld [vmem:[%s19858_s16 + $0x18] sm:$0xff] }
0x182f   :  { %v8066_v33 = vadd.f32 %v18580_v60, %v8043_v13  ;;  %v8042_v4 = vadd.f32 %v8019_v50, %v7666_v63  ;;  %v18624_v56 = vmax.f32 %v8063_v51, 0.0  ;;  %v7280_v63 = vadd.f32 %v19929_v48, %v6904_v17  ;;  %v16006_v48 = vld [vmem:[%s19855_s13 + $0x88] sm:$0xff] }
0x1830   :  { %v8034_v13 = vadd.f32 %v19930_v26, %v7658_v11  ;;  %v6148_v50 = vadd.f32 %v19931_v31, %v5772_v7  ;;  %v6902_v20 = vadd.f32 %v19932_v47, %v6526_v12  ;;  %v18670_v51 = vmax.f32 %v8059_v1, 0.0  ;;  %v16005_v12 = vld [vmem:[%s19855_s13 + $0x8] sm:$0xff]  ;;  %v16007_v26 = vld [vmem:[%s19855_s13 + $0x10] sm:$0xff]  ;;  %v16009_v1 = vld [vmem:[%s19855_s13 + $0x98] sm:$0xff] }
0x1831   :  { %v18589_v14 = vmax.f32 %v8066_v33, 0.0  ;;  %v8065_v18 = vadd.f32 %v18580_v60, %v8042_v4  ;;  %v19933_v33 = vld [vmem:[#allocation28_spill] sm:$0xff]  ;;  %v8031_v41 = vadd.f32 %v19942_v21, %v19941_v40  ;;  %v8056_v29 = vadd.f32 %v18580_v60, %v8033_v30  ;;  %v16010_v31 = vld [vmem:[%s19855_s13 + $0x18] sm:$0xff]  ;;  %v16012_v47 = vld [vmem:[%s19855_s13 + $0xa0] sm:$0xff] }
0x1832   :  { %v7656_v4 = vadd.f32 %v19933_v33, %v7280_v63  ;;  %v7278_v39 = vadd.f32 %v19937_v19, %v6902_v20  ;;  %v8057_v36 = vadd.f32 %v18580_v60, %v8034_v13  ;;  %v18681_v43 = vmax.f32 %v8058_v9, 0.0  ;;  %v12189_v63 = vld [vmem:[%s19858_s16 + $0x10] sm:$0xff]  ;;  %v16013_v20 = vld [vmem:[%s19855_s13 + $0xa8] sm:$0xff]  ;;  %v16018_v30 = vld [vmem:[%s19855_s13 + $0x38] sm:$0xff] }
0x1833   :  { %v18598_v10 = vmax.f32 %v8065_v18, 0.0  ;;  %15177 = vmatprep.subr.mxu1 %v18589_v14  ;;  %15233 = vmatprep.subr.mxu0 %v18589_v14  ;;  %v6524_v18 = vadd.f32 %v19936_v3, %v6148_v50  ;;  %v8029_v58 = vadd.f32 %v19947_v22, %v19946_v34  ;;  %v8054_v15 = vadd.f32 %v18580_v60, %v8031_v41  ;;  %v16008_v13 = vld [vmem:[%s19855_s13 + $0x90] sm:$0xff]  ;;  %v16011_v50 = vld [vmem:[%s19855_s13 + $0x20] sm:$0xff]  ;;  %v16014_v33 = vld [vmem:[%s19855_s13 + $0x28] sm:$0xff] }
0x1834   :  { %15178 = vmatpush3.msra.mxu1 %v18589_v14  ;;  %15234 = vmatpush3.msra.mxu0 %v18589_v14  ;;  %v8032_v46 = vadd.f32 %v19938_v28, %v7656_v4  ;;  %v7654_v53 = vadd.f32 %v19940_v25, %v7278_v39  ;;  %v18690_v62 = vmax.f32 %v8057_v36, 0.0  ;;  %v18700_v42 = vmax.f32 %v8056_v29, 0.0  ;;  %v16015_v4 = vld [vmem:[%s19855_s13 + $0xb0] sm:$0xff]  ;;  %v16019_v9 = vld [vmem:[%s19855_s13 + $0xc0] sm:$0xff]  ;;  %v16022_v19 = vld [vmem:[%s19855_s13 + $0x48] sm:$0xff] }
0x1835   :  { %15179 = vmatprep.subr.mxu1 %v18598_v10  ;;  %15235 = vmatprep.subr.mxu0 %v18598_v10  ;;  %v6900_v8 = vadd.f32 %v19939_v35, %v6524_v18  ;;  %v8052_v57 = vadd.f32 %v18580_v60, %v8029_v58  ;;  %v18715_v27 = vmax.f32 %v8054_v15, 0.0  ;;  %v16020_v3 = vld [vmem:[%s19855_s13 + $0x40] sm:$0xff]  ;;  %v16021_v18 = vld [vmem:[%s19855_s13 + $0xc8] sm:$0xff]  ;;  %v16023_v39 = vld [vmem:[%s19855_s13 + $0xd0] sm:$0xff] }
0x1836   :  { %15180 = vmatpush3.msra.mxu1 %v18598_v10  ;;  %15236 = vmatpush3.msra.mxu0 %v18598_v10  ;;  %v8030_v52 = vadd.f32 %v19944_v6, %v7654_v53  ;;  %v8055_v5 = vadd.f32 %v18580_v60, %v8032_v46  ;;  %v16024_v28 = vld [vmem:[%s19855_s13 + $0x50] sm:$0xff]  ;;  %v16025_v46 = vld [vmem:[%s19855_s13 + $0xd8] sm:$0xff]  ;;  %v16027_v35 = vld [vmem:[%s19855_s13 + $0xe0] sm:$0xff] }
0x1837   :  { %15181 = vmatprep.subr.mxu1 %v18611_v61  ;;  %15237 = vmatprep.subr.mxu0 %v18611_v61  ;;  %v7276_v0 = vadd.f32 %v19943_v49, %v6900_v8  ;;  %v18728_v7 = vmax.f32 %v8052_v57, 0.0  ;;  %v16026_v36 = vld [vmem:[%s19855_s13 + $0x58] sm:$0xff]  ;;  %v16028_v8 = vld [vmem:[%s19855_s13 + $0x60] sm:$0xff]  ;;  %v16029_v25 = vld [vmem:[%s19855_s13 + $0xe8] sm:$0xff] }
0x1838   :  { %15182 = vmatpush3.msra.mxu1 %v18611_v61  ;;  %15238 = vmatpush3.msra.mxu0 %v18611_v61  ;;  %v8053_v55 = vadd.f32 %v18580_v60, %v8030_v52  ;;  %v18708_v11 = vmax.f32 %v8055_v5, 0.0  ;;  %v16030_v53 = vld [vmem:[%s19855_s13 + $0x68] sm:$0xff]  ;;  %v16031_v40 = vld [vmem:[%s19855_s13 + $0xf0] sm:$0xff]  ;;  %v16033_v41 = vld [vmem:[%s19855_s13 + $0xf8] sm:$0xff] }
0x1839   :  { %15183 = vmatprep.subr.mxu1 %v18624_v56  ;;  %15239 = vmatprep.subr.mxu0 %v18624_v56  ;;  %v7652_v2 = vadd.f32 %v19945_v44, %v7276_v0  ;;  %v16032_v21 = vld [vmem:[%s19855_s13 + $0x70] sm:$0xff]  ;;  %v16034_v29 = vld [vmem:[%s19855_s13 + $0x78] sm:$0xff]  ;;  %v8229_v49 = vld [vmem:[%s19858_s16 + $0x8] sm:$0xff] }
0x183a   :  { %15184 = vmatpush3.msra.mxu1 %v18624_v56  ;;  %15240 = vmatpush3.msra.mxu0 %v18624_v56  ;;  %v18722_v54 = vmax.f32 %v8053_v55, 0.0  ;;  %v8228_v0 = vld [vmem:[%s19858_s16] sm:$0xff] }
0x183b   :  { %15185 = vmatprep.subr.mxu1 %v18637_v16  ;;  %15241 = vmatprep.subr.mxu0 %v18637_v16  ;;  %v8028_v17 = vadd.f32 %v19948_v59, %v7652_v2 }
0x183c   :  { %15186 = vmatpush3.msra.mxu1 %v18637_v16  ;;  %15242 = vmatpush3.msra.mxu0 %v18637_v16 }
0x183d   :  { %15187 = vmatprep.subr.mxu1 %v18648_v38  ;;  %15243 = vmatprep.subr.mxu0 %v18648_v38  ;;  %v8051_v37 = vadd.f32 %v18580_v60, %v8028_v17 }
0x183e   :  { %15188 = vmatpush3.msra.mxu1 %v18648_v38  ;;  %15244 = vmatpush3.msra.mxu0 %v18648_v38 }
0x183f   :  { %15189 = vmatprep.subr.mxu1 %v18660_v45  ;;  %15245 = vmatprep.subr.mxu0 %v18660_v45  ;;  %v18734_v60 = vmax.f32 %v8051_v37, 0.0 }
0x1840   :  { %15190 = vmatpush3.msra.mxu1 %v18660_v45  ;;  %15246 = vmatpush3.msra.mxu0 %v18660_v45 }
0x1841   :  { %15191 = vmatprep.subr.mxu1 %v18670_v51  ;;  %15247 = vmatprep.subr.mxu0 %v18670_v51 }
0x1842   :  { %15192 = vmatpush3.msra.mxu1 %v18670_v51  ;;  %15248 = vmatpush3.msra.mxu0 %v18670_v51 }
0x1843   :  { %15193 = vmatprep.subr.mxu1 %v18681_v43  ;;  %15249 = vmatprep.subr.mxu0 %v18681_v43 }
0x1844   :  { %15194 = vmatpush3.msra.mxu1 %v18681_v43  ;;  %15250 = vmatpush3.msra.mxu0 %v18681_v43 }
0x1845   :  { %15195 = vmatprep.subr.mxu1 %v18690_v62  ;;  %15251 = vmatprep.subr.mxu0 %v18690_v62 }
0x1846   :  { %15196 = vmatpush3.msra.mxu1 %v18690_v62  ;;  %15252 = vmatpush3.msra.mxu0 %v18690_v62 }
0x1847   :  { %15197 = vmatprep.subr.mxu1 %v18700_v42  ;;  %15253 = vmatprep.subr.mxu0 %v18700_v42 }
0x1848   :  { %15198 = vmatpush3.msra.mxu1 %v18700_v42  ;;  %15254 = vmatpush3.msra.mxu0 %v18700_v42 }
0x1849   :  { %15199 = vmatprep.subr.mxu1 %v18708_v11  ;;  %15255 = vmatprep.subr.mxu0 %v18708_v11 }
0x184a   :  { %15200 = vmatpush3.msra.mxu1 %v18708_v11  ;;  %15256 = vmatpush3.msra.mxu0 %v18708_v11 }
0x184b   :  { %15201 = vmatprep.subr.mxu1 %v18715_v27  ;;  %15257 = vmatprep.subr.mxu0 %v18715_v27 }
0x184c   :  { %15202 = vmatpush3.msra.mxu1 %v18715_v27  ;;  %15258 = vmatpush3.msra.mxu0 %v18715_v27 }
0x184d   :  { %15203 = vmatprep.subr.mxu1 %v18722_v54  ;;  %15259 = vmatprep.subr.mxu0 %v18722_v54 }
0x184e   :  { %15204 = vmatpush3.msra.mxu1 %v18722_v54  ;;  %15260 = vmatpush3.msra.mxu0 %v18722_v54 }
0x184f   :  { %15205 = vmatprep.subr.mxu1 %v18728_v7  ;;  %15261 = vmatprep.subr.mxu0 %v18728_v7 }
0x1850   :  { %15206 = vmatpush3.msra.mxu1 %v18728_v7  ;;  %15262 = vmatpush3.msra.mxu0 %v18728_v7 }
0x1851   :  { %15207 = vmatprep.subr.mxu1 %v18734_v60  ;;  %15263 = vmatprep.subr.mxu0 %v18734_v60 }
0x1852   :  { %15208 = vmatpush3.msra.mxu1 %v18734_v60  ;;  %15264 = vmatpush3.msra.mxu0 %v18734_v60 }
0x1853   :  { %15210 = vmatmul.mubr.f32.vlgmr.msra.gmra.mxu1 %v16005_v12  ;;  %15266 = vmatmul.mubr.f32.vlgmr.msra.gmra.mxu0 %v16006_v48 }
0x1854   :  { %15289 = vmatprep.subr.mxu1 %v12190_v32  ;;  %15212 = vmatprep.mubr.f32.mxu1 %v16007_v26 }
0x1855   :  { %15290 = vmatpush3.msra.mxu1 %v12190_v32  ;;  %15268 = vmatprep.mubr.f32.mxu0 %v16008_v13 }
0x1856   :  { %15291 = vmatprep.subr.mxu1 %v12189_v63  ;;  %15317 = vmatprep.subr.mxu0 %v8229_v49 }
0x1857   :  { %15292 = vmatpush3.msra.mxu1 %v12189_v63  ;;  %15269 = vmatmul.mubr.f32.gmra.mxu0 %v16009_v1 }
0x1858   :  { %15213 = vmatmul.mubr.f32.gmra.mxu1 %v16010_v31  ;;  %15345 = vmatprep.subr.mxu1 %v18589_v14 }
0x1859   :  { %15215 = vmatprep.mubr.f32.mxu1 %v16011_v50  ;;  %15271 = vmatprep.mubr.f32.mxu0 %v16012_v47 }
0x185a   :  { %15318 = vmatpush3.msra.mxu0 %v8229_v49  ;;  %v16049_v49 = vld [vmem:[%s19855_s13 + $0x170] sm:$0xff] }
0x185b   :  { %15272 = vmatmul.mubr.f32.gmra.mxu0 %v16013_v20  ;;  %15319 = vmatprep.subr.mxu0 %v8228_v0 }
0x185c   :  { %15216 = vmatmul.mubr.f32.gmra.mxu1 %v16014_v33  ;;  %15274 = vmatprep.mubr.f32.mxu0 %v16015_v4 }
0x185d   :  { %15218 = vmatprep.mubr.f32.mxu1 %v16016_v23  ;;  %15320 = vmatpush3.msra.mxu0 %v8228_v0  ;;  %v16050_v0 = vld [vmem:[%s19855_s13 + $0x178] sm:$0xff] }
0x185f   :  { %15275 = vmatmul.mubr.f32.gmra.mxu0 %v16017_v24 }
0x1860   :  { %15219 = vmatmul.mubr.f32.gmra.mxu1 %v16018_v30  ;;  %15277 = vmatprep.mubr.f32.mxu0 %v16019_v9 }
0x1861   :  { %15221 = vmatprep.mubr.f32.mxu1 %v16020_v3 }
0x1863   :  { %15278 = vmatmul.mubr.f32.gmra.mxu0 %v16021_v18  ;;  %v16035_v18 = vld [vmem:[%s19855_s13 + $0x100] sm:$0xff] }
0x1864   :  { %15222 = vmatmul.mubr.f32.gmra.mxu1 %v16022_v19  ;;  %15280 = vmatprep.mubr.f32.mxu0 %v16023_v39  ;;  %v16036_v19 = vld [vmem:[%s19855_s13 + $0x108] sm:$0xff]  ;;  %v16037_v39 = vld [vmem:[%s19855_s13 + $0x110] sm:$0xff] }
0x1865   :  { %15224 = vmatprep.mubr.f32.mxu1 %v16024_v28  ;;  %v16038_v28 = vld [vmem:[%s19855_s13 + $0x118] sm:$0xff] }
0x1867   :  { %15281 = vmatmul.mubr.f32.gmra.mxu0 %v16025_v46  ;;  %v16039_v46 = vld [vmem:[%s19855_s13 + $0x120] sm:$0xff] }
0x1868   :  { %15225 = vmatmul.mubr.f32.gmra.mxu1 %v16026_v36  ;;  %15283 = vmatprep.mubr.f32.mxu0 %v16027_v35  ;;  %v16040_v36 = vld [vmem:[%s19855_s13 + $0x128] sm:$0xff]  ;;  %v16041_v35 = vld [vmem:[%s19855_s13 + $0x130] sm:$0xff] }
0x1869   :  { %15227 = vmatprep.mubr.f32.mxu1 %v16028_v8  ;;  %v16042_v8 = vld [vmem:[%s19855_s13 + $0x138] sm:$0xff] }
0x186b   :  { %15284 = vmatmul.mubr.f32.gmra.mxu0 %v16029_v25  ;;  %v16043_v25 = vld [vmem:[%s19855_s13 + $0x140] sm:$0xff] }
0x186c   :  { %15228 = vmatmul.mubr.f32.gmra.mxu1 %v16030_v53  ;;  %15286 = vmatprep.mubr.f32.mxu0 %v16031_v40  ;;  %v16044_v53 = vld [vmem:[%s19855_s13 + $0x148] sm:$0xff]  ;;  %v16045_v40 = vld [vmem:[%s19855_s13 + $0x150] sm:$0xff] }
0x186d   :  { %15230 = vmatprep.mubr.f32.mxu1 %v16032_v21  ;;  %v16046_v21 = vld [vmem:[%s19855_s13 + $0x158] sm:$0xff] }
0x186f   :  { %15287 = vmatmul.mubr.f32.gmra.mxu0 %v16033_v41  ;;  %v16047_v41 = vld [vmem:[%s19855_s13 + $0x160] sm:$0xff] }
0x1870   :  { %15231 = vmatmul.mubr.f32.gmra.mxu1 %v16034_v29  ;;  %v16048_v29 = vld [vmem:[%s19855_s13 + $0x168] sm:$0xff] }
0x1913   :  { %v15211_v6 = vpop.f32.mrf.mxu1  ;;  %v15267_v52 = vpop.f32.mrf.mxu0 }
0x1915   :  { %v8149_v5 = vpop.f32.mrf.mxu1  ;;  %v8296_v44 = vpop.f32.mrf.mxu0 }
0x1916   :  { %15293 = vmatprep.mubr.msk.f32.mxu1 %vm2236_vm6, %v8296_v44  ;;  %15321 = vmatprep.mubr.msk.f32.mxu0 %vm2236_vm6, %v8149_v5  ;;  %v16053_v5 = vld [vmem:[%s19855_s13 + $0x190] sm:$0xff]  ;;  %v16054_v44 = vld [vmem:[%s19855_s13 + $0x198] sm:$0xff] }
0x1917   :  { %v15270_v2 = vpop.f32.mrf.mxu0  ;;  %15294 = vmatmul.mubr.msk.f32.vlgmr.msra.gmra.mxu1 %vm2236_vm6, %v15267_v52  ;;  %15322 = vmatmul.mubr.msk.f32.vlgmr.msra.gmra.mxu0 %vm2236_vm6, %v15211_v6  ;;  %v16051_v6 = vld [vmem:[%s19855_s13 + $0x180] sm:$0xff]  ;;  %v16052_v52 = vld [vmem:[%s19855_s13 + $0x188] sm:$0xff] }
0x1918   :  { %v15214_v34 = vpop.f32.mrf.mxu1  ;;  %15346 = vmatpush3.msra.mxu1 %v18589_v14 }
0x1919   :  { %15347 = vmatprep.subr.mxu1 %v18598_v10  ;;  %v8306_v22 = vpop.f32.mrf.mxu0 }
0x191a   :  { %v8159_v58 = vpop.f32.mrf.mxu1  ;;  %15348 = vmatpush3.msra.mxu1 %v18598_v10  ;;  %15296 = vmatprep.mubr.msk.f32.mxu1 %vm2236_vm6, %v8306_v22  ;;  %v16056_v22 = vld [vmem:[%s19855_s13 + $0x1a8] sm:$0xff] }
0x191b   :  { %15324 = vmatprep.mubr.msk.f32.mxu0 %vm2236_vm6, %v8159_v58  ;;  %15349 = vmatprep.subr.mxu1 %v18611_v61  ;;  %v15273_v15 = vpop.f32.mrf.mxu0  ;;  %v16057_v58 = vld [vmem:[%s19855_s13 + $0x1b0] sm:$0xff] }
0x191c   :  { %v15217_v59 = vpop.f32.mrf.mxu1  ;;  %15297 = vmatmul.mubr.msk.f32.gmra.mxu1 %vm2236_vm6, %v15270_v2  ;;  %15325 = vmatmul.mubr.msk.f32.gmra.mxu0 %vm2236_vm6, %v15214_v34  ;;  %v16055_v2 = vld [vmem:[%s19855_s13 + $0x1a0] sm:$0xff]  ;;  %v12224_v34 = vld [vmem:[%s19858_s16 + $0x28] sm:$0xff] }
0x191d   :  { %15350 = vmatpush3.msra.mxu1 %v18611_v61  ;;  %v8316_v17 = vpop.f32.mrf.mxu0  ;;  %15401 = vmatprep.subr.mxu0 %v12224_v34 }
0x191e   :  { %15351 = vmatprep.subr.mxu1 %v18624_v56  ;;  %v8169_v55 = vpop.f32.mrf.mxu1  ;;  %15299 = vmatprep.mubr.msk.f32.mxu1 %vm2236_vm6, %v8316_v17  ;;  %v16060_v17 = vld [vmem:[%s19855_s13 + $0x1c8] sm:$0xff] }
0x191f   :  { %15352 = vmatpush3.msra.mxu1 %v18624_v56  ;;  %15327 = vmatprep.mubr.msk.f32.mxu0 %vm2236_vm6, %v8169_v55  ;;  %v15276_v57 = vpop.f32.mrf.mxu0  ;;  %v16061_v55 = vld [vmem:[%s19855_s13 + $0x1d0] sm:$0xff] }
0x1920   :  { %15353 = vmatprep.subr.mxu1 %v18637_v16  ;;  %v15220_v37 = vpop.f32.mrf.mxu1  ;;  %15300 = vmatmul.mubr.msk.f32.gmra.mxu1 %vm2236_vm6, %v15273_v15  ;;  %v16058_v15 = vld [vmem:[%s19855_s13 + $0x1b8] sm:$0xff] }
0x1921   :  { %15328 = vmatmul.mubr.msk.f32.gmra.mxu0 %vm2236_vm6, %v15217_v59  ;;  %15354 = vmatpush3.msra.mxu1 %v18637_v16  ;;  %v8326_v32 = vpop.f32.mrf.mxu0  ;;  %v16059_v59 = vld [vmem:[%s19855_s13 + $0x1c0] sm:$0xff] }
0x1922   :  { %15355 = vmatprep.subr.mxu1 %v18648_v38  ;;  %v8179_v12 = vpop.f32.mrf.mxu1  ;;  %15302 = vmatprep.mubr.msk.f32.mxu1 %vm2236_vm6, %v8326_v32  ;;  %v12223_v32 = vld [vmem:[%s19858_s16 + $0x20] sm:$0xff] }
0x1923   :  { %15356 = vmatpush3.msra.mxu1 %v18648_v38  ;;  %15330 = vmatprep.mubr.msk.f32.mxu0 %vm2236_vm6, %v8179_v12  ;;  %v15279_v48 = vpop.f32.mrf.mxu0  ;;  %v16064_v12 = vld [vmem:[%s19855_s13 + $0x1e8] sm:$0xff] }
0x1924   :  { %15357 = vmatprep.subr.mxu1 %v18660_v45  ;;  %v15223_v63 = vpop.f32.mrf.mxu1  ;;  %15303 = vmatmul.mubr.msk.f32.gmra.mxu1 %vm2236_vm6, %v15276_v57  ;;  %v16062_v57 = vld [vmem:[%s19855_s13 + $0x1d8] sm:$0xff] }
0x1925   :  { %15331 = vmatmul.mubr.msk.f32.gmra.mxu0 %vm2236_vm6, %v15220_v37  ;;  %15358 = vmatpush3.msra.mxu1 %v18660_v45  ;;  %v8336_v26 = vpop.f32.mrf.mxu0  ;;  %v16063_v37 = vld [vmem:[%s19855_s13 + $0x1e0] sm:$0xff] }
0x1926   :  { %15359 = vmatprep.subr.mxu1 %v18670_v51  ;;  %v8189_v13 = vpop.f32.mrf.mxu1  ;;  %15305 = vmatprep.mubr.msk.f32.mxu1 %vm2236_vm6, %v8336_v26  ;;  %v16067_v26 = vld [vmem:[%s19855_s13 + $0x200] sm:$0xff] }
0x1927   :  { %15360 = vmatpush3.msra.mxu1 %v18670_v51  ;;  %15333 = vmatprep.mubr.msk.f32.mxu0 %vm2236_vm6, %v8189_v13  ;;  %v15282_v1 = vpop.f32.mrf.mxu0  ;;  %v16068_v13 = vld [vmem:[%s19855_s13 + $0x208] sm:$0xff] }
0x1928   :  { %15361 = vmatprep.subr.mxu1 %v18681_v43  ;;  %v15226_v31 = vpop.f32.mrf.mxu1  ;;  %15306 = vmatmul.mubr.msk.f32.gmra.mxu1 %vm2236_vm6, %v15279_v48  ;;  %v16065_v48 = vld [vmem:[%s19855_s13 + $0x1f0] sm:$0xff] }
0x1929   :  { %15334 = vmatmul.mubr.msk.f32.gmra.mxu0 %vm2236_vm6, %v15223_v63  ;;  %15362 = vmatpush3.msra.mxu1 %v18681_v43  ;;  %v8346_v50 = vpop.f32.mrf.mxu0  ;;  %v16066_v63 = vld [vmem:[%s19855_s13 + $0x1f8] sm:$0xff] }
0x192a   :  { %15363 = vmatprep.subr.mxu1 %v18690_v62  ;;  %v8199_v47 = vpop.f32.mrf.mxu1  ;;  %15308 = vmatprep.mubr.msk.f32.mxu1 %vm2236_vm6, %v8346_v50  ;;  %v19096_v50 = vld [vmem:[%s19858_s16 + $0x38] sm:$0xff] }
0x192b   :  { %15364 = vmatpush3.msra.mxu1 %v18690_v62  ;;  %15336 = vmatprep.mubr.msk.f32.mxu0 %vm2236_vm6, %v8199_v47  ;;  %v15285_v20 = vpop.f32.mrf.mxu0  ;;  %v16071_v47 = vld [vmem:[%s19855_s13 + $0x220] sm:$0xff] }
0x192c   :  { %15365 = vmatprep.subr.mxu1 %v18700_v42  ;;  %v15229_v33 = vpop.f32.mrf.mxu1  ;;  %15309 = vmatmul.mubr.msk.f32.gmra.mxu1 %vm2236_vm6, %v15282_v1  ;;  %v16069_v1 = vld [vmem:[%s19855_s13 + $0x210] sm:$0xff] }
0x192d   :  { %15337 = vmatmul.mubr.msk.f32.gmra.mxu0 %vm2236_vm6, %v15226_v31  ;;  %15366 = vmatpush3.msra.mxu1 %v18700_v42  ;;  %v8356_v4 = vpop.f32.mrf.mxu0  ;;  %v16070_v31 = vld [vmem:[%s19855_s13 + $0x218] sm:$0xff] }
0x192e   :  { %15367 = vmatprep.subr.mxu1 %v18708_v11  ;;  %v8209_v23 = vpop.f32.mrf.mxu1  ;;  %15311 = vmatprep.mubr.msk.f32.mxu1 %vm2236_vm6, %v8356_v4  ;;  %v16074_v4 = vld [vmem:[%s19855_s13 + $0x238] sm:$0xff] }
0x192f   :  { %15368 = vmatpush3.msra.mxu1 %v18708_v11  ;;  %15339 = vmatprep.mubr.msk.f32.mxu0 %vm2236_vm6, %v8209_v23  ;;  %v15288_v24 = vpop.f32.mrf.mxu0  ;;  %v16075_v23 = vld [vmem:[%s19855_s13 + $0x240] sm:$0xff] }
0x1930   :  { %15369 = vmatprep.subr.mxu1 %v18715_v27  ;;  %v15232_v30 = vpop.f32.mrf.mxu1  ;;  %15312 = vmatmul.mubr.msk.f32.gmra.mxu1 %vm2236_vm6, %v15285_v20  ;;  %v16072_v20 = vld [vmem:[%s19855_s13 + $0x228] sm:$0xff] }
0x1931   :  { %15340 = vmatmul.mubr.msk.f32.gmra.mxu0 %vm2236_vm6, %v15229_v33  ;;  %15370 = vmatpush3.msra.mxu1 %v18715_v27  ;;  %v8366_v9 = vpop.f32.mrf.mxu0  ;;  %v16073_v33 = vld [vmem:[%s19855_s13 + $0x230] sm:$0xff] }
0x1932   :  { %15371 = vmatprep.subr.mxu1 %v18722_v54  ;;  %v8219_v3 = vpop.f32.mrf.mxu1  ;;  %15314 = vmatprep.mubr.msk.f32.mxu1 %vm2236_vm6, %v8366_v9  ;;  %v16078_v9 = vld [vmem:[%s19855_s13 + $0x258] sm:$0xff] }
0x1933   :  { %15372 = vmatpush3.msra.mxu1 %v18722_v54  ;;  %15342 = vmatprep.mubr.msk.f32.mxu0 %vm2236_vm6, %v8219_v3  ;;  %v16079_v3 = vld [vmem:[%s19855_s13 + $0x260] sm:$0xff] }
0x1934   :  { %15373 = vmatprep.subr.mxu1 %v18728_v7  ;;  %15315 = vmatmul.mubr.msk.f32.gmra.mxu1 %vm2236_vm6, %v15288_v24  ;;  %v16076_v24 = vld [vmem:[%s19855_s13 + $0x248] sm:$0xff] }
0x1935   :  { %15343 = vmatmul.mubr.msk.f32.gmra.mxu0 %vm2236_vm6, %v15232_v30  ;;  %15374 = vmatpush3.msra.mxu1 %v18728_v7  ;;  %v16077_v30 = vld [vmem:[%s19855_s13 + $0x250] sm:$0xff] }
0x1936   :  { %15375 = vmatprep.subr.mxu1 %v18734_v60  ;;  %15377 = vmatprep.mubr.f32.mxu1 %v16035_v18  ;;  %v16080_v18 = vld [vmem:[%s19855_s13 + $0x268] sm:$0xff] }
0x1937   :  { %15376 = vmatpush3.msra.mxu1 %v18734_v60  ;;  %15402 = vmatpush3.msra.mxu0 %v12224_v34  ;;  %v16101_v34 = vld [vmem:[%s19855_s13 + $0x310] sm:$0xff] }
0x1938   :  { %15429 = vmatprep.subr.mxu1 %v18589_v14  ;;  %15378 = vmatmul.mubr.f32.vlgmr.msra.gmra.mxu1 %v16036_v19  ;;  %v16081_v19 = vld [vmem:[%s19855_s13 + $0x270] sm:$0xff] }
0x1939   :  { %15430 = vmatpush3.msra.mxu1 %v18589_v14  ;;  %15380 = vmatprep.mubr.f32.mxu1 %v16037_v39  ;;  %v16082_v39 = vld [vmem:[%s19855_s13 + $0x278] sm:$0xff] }
0x193a   :  { %15431 = vmatprep.subr.mxu1 %v18598_v10  ;;  %15403 = vmatprep.subr.mxu0 %v12223_v32 }
0x193b   :  { %15432 = vmatpush3.msra.mxu1 %v18598_v10  ;;  %15404 = vmatpush3.msra.mxu0 %v12223_v32  ;;  %v16110_v32 = vld [vmem:[%s19855_s13 + $0x358] sm:$0xff] }
0x193c   :  { %15433 = vmatprep.subr.mxu1 %v18611_v61  ;;  %15381 = vmatmul.mubr.f32.gmra.mxu1 %v16038_v28  ;;  %v16083_v28 = vld [vmem:[%s19855_s13 + $0x280] sm:$0xff] }
0x193d   :  { %15434 = vmatpush3.msra.mxu1 %v18611_v61  ;;  %15383 = vmatprep.mubr.f32.mxu1 %v16039_v46  ;;  %v16084_v46 = vld [vmem:[%s19855_s13 + $0x288] sm:$0xff] }
0x193e   :  { %15435 = vmatprep.subr.mxu1 %v18624_v56  ;;  %15485 = vmatprep.subr.mxu0 %v19096_v50 }
0x193f   :  { %15436 = vmatpush3.msra.mxu1 %v18624_v56 }
0x1940   :  { %15437 = vmatprep.subr.mxu1 %v18637_v16  ;;  %15384 = vmatmul.mubr.f32.gmra.mxu1 %v16040_v36  ;;  %v16085_v36 = vld [vmem:[%s19855_s13 + $0x290] sm:$0xff] }
0x1941   :  { %15438 = vmatpush3.msra.mxu1 %v18637_v16  ;;  %15386 = vmatprep.mubr.f32.mxu1 %v16041_v35  ;;  %v16086_v35 = vld [vmem:[%s19855_s13 + $0x298] sm:$0xff] }
0x1942   :  { %15439 = vmatprep.subr.mxu1 %v18648_v38 }
0x1943   :  { %15440 = vmatpush3.msra.mxu1 %v18648_v38 }
0x1944   :  { %15441 = vmatprep.subr.mxu1 %v18660_v45  ;;  %15387 = vmatmul.mubr.f32.gmra.mxu1 %v16042_v8  ;;  %v16087_v8 = vld [vmem:[%s19855_s13 + $0x2a0] sm:$0xff] }
0x1945   :  { %15442 = vmatpush3.msra.mxu1 %v18660_v45  ;;  %15389 = vmatprep.mubr.f32.mxu1 %v16043_v25  ;;  %v16088_v25 = vld [vmem:[%s19855_s13 + $0x2a8] sm:$0xff] }
0x1946   :  { %15443 = vmatprep.subr.mxu1 %v18670_v51 }
0x1947   :  { %15444 = vmatpush3.msra.mxu1 %v18670_v51 }
0x1948   :  { %15445 = vmatprep.subr.mxu1 %v18681_v43  ;;  %15390 = vmatmul.mubr.f32.gmra.mxu1 %v16044_v53  ;;  %v16089_v53 = vld [vmem:[%s19855_s13 + $0x2b0] sm:$0xff] }
0x1949   :  { %15446 = vmatpush3.msra.mxu1 %v18681_v43  ;;  %15392 = vmatprep.mubr.f32.mxu1 %v16045_v40  ;;  %v16090_v40 = vld [vmem:[%s19855_s13 + $0x2b8] sm:$0xff] }
0x194a   :  { %15447 = vmatprep.subr.mxu1 %v18690_v62 }
0x194b   :  { %15448 = vmatpush3.msra.mxu1 %v18690_v62 }
0x194c   :  { %15449 = vmatprep.subr.mxu1 %v18700_v42  ;;  %15393 = vmatmul.mubr.f32.gmra.mxu1 %v16046_v21  ;;  %v16091_v21 = vld [vmem:[%s19855_s13 + $0x2c0] sm:$0xff] }
0x194d   :  { %15450 = vmatpush3.msra.mxu1 %v18700_v42  ;;  %15395 = vmatprep.mubr.f32.mxu1 %v16047_v41  ;;  %v16092_v41 = vld [vmem:[%s19855_s13 + $0x2c8] sm:$0xff] }
0x194e   :  { %15451 = vmatprep.subr.mxu1 %v18708_v11 }
0x194f   :  { %15452 = vmatpush3.msra.mxu1 %v18708_v11 }
0x1950   :  { %15453 = vmatprep.subr.mxu1 %v18715_v27  ;;  %15396 = vmatmul.mubr.f32.gmra.mxu1 %v16048_v29  ;;  %v16093_v29 = vld [vmem:[%s19855_s13 + $0x2d0] sm:$0xff] }
0x1951   :  { %15454 = vmatpush3.msra.mxu1 %v18715_v27  ;;  %15398 = vmatprep.mubr.f32.mxu1 %v16049_v49  ;;  %v16094_v49 = vld [vmem:[%s19855_s13 + $0x2d8] sm:$0xff] }
0x1952   :  { %15455 = vmatprep.subr.mxu1 %v18722_v54 }
0x1953   :  { %15456 = vmatpush3.msra.mxu1 %v18722_v54 }
0x1954   :  { %15457 = vmatprep.subr.mxu1 %v18728_v7  ;;  %15399 = vmatmul.mubr.f32.gmra.mxu1 %v16050_v0  ;;  %v16095_v0 = vld [vmem:[%s19855_s13 + $0x2e0] sm:$0xff] }
0x1955   :  { %15458 = vmatpush3.msra.mxu1 %v18728_v7  ;;  %15461 = vmatprep.mubr.f32.mxu1 %v16051_v6  ;;  %v16096_v6 = vld [vmem:[%s19855_s13 + $0x2e8] sm:$0xff] }
0x1956   :  { %15459 = vmatprep.subr.mxu1 %v18734_v60 }
0x1957   :  { %15460 = vmatpush3.msra.mxu1 %v18734_v60 }
0x1958   :  { %15513 = vmatprep.subr.mxu1 %v18589_v14  ;;  %15462 = vmatmul.mubr.f32.vlgmr.msra.gmra.mxu1 %v16052_v52  ;;  %v16097_v52 = vld [vmem:[%s19855_s13 + $0x2f0] sm:$0xff] }
0x1959   :  { %15514 = vmatpush3.msra.mxu1 %v18589_v14  ;;  %15464 = vmatprep.mubr.f32.mxu1 %v16053_v5  ;;  %v16098_v5 = vld [vmem:[%s19855_s13 + $0x2f8] sm:$0xff] }
0x195a   :  { %15515 = vmatprep.subr.mxu1 %v18598_v10 }
0x195b   :  { %15516 = vmatpush3.msra.mxu1 %v18598_v10 }
0x195c   :  { %15517 = vmatprep.subr.mxu1 %v18611_v61  ;;  %15465 = vmatmul.mubr.f32.gmra.mxu1 %v16054_v44  ;;  %v16099_v44 = vld [vmem:[%s19855_s13 + $0x300] sm:$0xff] }
0x195d   :  { %15518 = vmatpush3.msra.mxu1 %v18611_v61  ;;  %15467 = vmatprep.mubr.f32.mxu1 %v16055_v2  ;;  %v16100_v2 = vld [vmem:[%s19855_s13 + $0x308] sm:$0xff] }
0x195e   :  { %15519 = vmatprep.subr.mxu1 %v18624_v56 }
0x195f   :  { %15520 = vmatpush3.msra.mxu1 %v18624_v56 }
0x1960   :  { %15521 = vmatprep.subr.mxu1 %v18637_v16  ;;  %15468 = vmatmul.mubr.f32.gmra.mxu1 %v16056_v22  ;;  %v16102_v22 = vld [vmem:[%s19855_s13 + $0x318] sm:$0xff] }
0x1961   :  { %15522 = vmatpush3.msra.mxu1 %v18637_v16  ;;  %15470 = vmatprep.mubr.f32.mxu1 %v16057_v58  ;;  %v16103_v58 = vld [vmem:[%s19855_s13 + $0x320] sm:$0xff] }
0x1962   :  { %15523 = vmatprep.subr.mxu1 %v18648_v38 }
0x1963   :  { %15524 = vmatpush3.msra.mxu1 %v18648_v38 }
0x1964   :  { %15525 = vmatprep.subr.mxu1 %v18660_v45  ;;  %15471 = vmatmul.mubr.f32.gmra.mxu1 %v16058_v15  ;;  %v16104_v15 = vld [vmem:[%s19855_s13 + $0x328] sm:$0xff] }
0x1965   :  { %15526 = vmatpush3.msra.mxu1 %v18660_v45  ;;  %15473 = vmatprep.mubr.f32.mxu1 %v16059_v59  ;;  %v16105_v59 = vld [vmem:[%s19855_s13 + $0x330] sm:$0xff] }
0x1966   :  { %15527 = vmatprep.subr.mxu1 %v18670_v51 }
0x1967   :  { %15528 = vmatpush3.msra.mxu1 %v18670_v51 }
0x1968   :  { %15529 = vmatprep.subr.mxu1 %v18681_v43  ;;  %15474 = vmatmul.mubr.f32.gmra.mxu1 %v16060_v17  ;;  %v16106_v17 = vld [vmem:[%s19855_s13 + $0x338] sm:$0xff] }
0x1969   :  { %15530 = vmatpush3.msra.mxu1 %v18681_v43  ;;  %15476 = vmatprep.mubr.f32.mxu1 %v16061_v55  ;;  %v16107_v55 = vld [vmem:[%s19855_s13 + $0x340] sm:$0xff] }
0x196a   :  { %15531 = vmatprep.subr.mxu1 %v18690_v62 }
0x196b   :  { %15532 = vmatpush3.msra.mxu1 %v18690_v62 }
0x196c   :  { %15533 = vmatprep.subr.mxu1 %v18700_v42  ;;  %15477 = vmatmul.mubr.f32.gmra.mxu1 %v16062_v57  ;;  %v16108_v57 = vld [vmem:[%s19855_s13 + $0x348] sm:$0xff] }
0x196d   :  { %15534 = vmatpush3.msra.mxu1 %v18700_v42  ;;  %15479 = vmatprep.mubr.f32.mxu1 %v16063_v37  ;;  %v16109_v37 = vld [vmem:[%s19855_s13 + $0x350] sm:$0xff] }
0x196e   :  { %15535 = vmatprep.subr.mxu1 %v18708_v11 }
0x196f   :  { %15536 = vmatpush3.msra.mxu1 %v18708_v11 }
0x1970   :  { %15537 = vmatprep.subr.mxu1 %v18715_v27  ;;  %15480 = vmatmul.mubr.f32.gmra.mxu1 %v16064_v12  ;;  %v16111_v12 = vld [vmem:[%s19855_s13 + $0x360] sm:$0xff] }
0x1971   :  { %15538 = vmatpush3.msra.mxu1 %v18715_v27  ;;  %15482 = vmatprep.mubr.f32.mxu1 %v16065_v48  ;;  %v16112_v48 = vld [vmem:[%s19855_s13 + $0x368] sm:$0xff] }
0x1972   :  { %15539 = vmatprep.subr.mxu1 %v18722_v54 }
0x1973   :  { %15540 = vmatpush3.msra.mxu1 %v18722_v54 }
0x1974   :  { %15541 = vmatprep.subr.mxu1 %v18728_v7  ;;  %15483 = vmatmul.mubr.f32.gmra.mxu1 %v16066_v63  ;;  %v16113_v63 = vld [vmem:[%s19855_s13 + $0x370] sm:$0xff] }
0x1975   :  { %15542 = vmatpush3.msra.mxu1 %v18728_v7  ;;  %15545 = vmatprep.mubr.f32.mxu1 %v16067_v26  ;;  %v16114_v26 = vld [vmem:[%s19855_s13 + $0x378] sm:$0xff] }
0x1976   :  { %15543 = vmatprep.subr.mxu1 %v18734_v60 }
0x1977   :  { %15544 = vmatpush3.msra.mxu1 %v18734_v60 }
0x1978   :  { %15597 = vmatprep.subr.mxu1 %v18589_v14  ;;  %15546 = vmatmul.mubr.f32.vlgmr.msra.gmra.mxu1 %v16068_v13  ;;  %v16115_v13 = vld [vmem:[%s19855_s13 + $0x380] sm:$0xff] }
0x1979   :  { %15598 = vmatpush3.msra.mxu1 %v18589_v14  ;;  %15548 = vmatprep.mubr.f32.mxu1 %v16069_v1 }
0x197a   :  { %15599 = vmatprep.subr.mxu1 %v18598_v10 }
0x197b   :  { %15600 = vmatpush3.msra.mxu1 %v18598_v10 }
0x197c   :  { %15601 = vmatprep.subr.mxu1 %v18611_v61  ;;  %15549 = vmatmul.mubr.f32.gmra.mxu1 %v16070_v31 }
0x197d   :  { %15602 = vmatpush3.msra.mxu1 %v18611_v61  ;;  %15551 = vmatprep.mubr.f32.mxu1 %v16071_v47 }
0x197e   :  { %15603 = vmatprep.subr.mxu1 %v18624_v56 }
0x197f   :  { %15604 = vmatpush3.msra.mxu1 %v18624_v56 }
0x1980   :  { %15605 = vmatprep.subr.mxu1 %v18637_v16  ;;  %15552 = vmatmul.mubr.f32.gmra.mxu1 %v16072_v20  ;;  %v16116_v20 = vld [vmem:[%s19855_s13 + $0x388] sm:$0xff] }
0x1981   :  { %15606 = vmatpush3.msra.mxu1 %v18637_v16  ;;  %15554 = vmatprep.mubr.f32.mxu1 %v16073_v33 }
0x1982   :  { %15607 = vmatprep.subr.mxu1 %v18648_v38 }
0x1983   :  { %15608 = vmatpush3.msra.mxu1 %v18648_v38 }
0x1984   :  { %15609 = vmatprep.subr.mxu1 %v18660_v45  ;;  %15555 = vmatmul.mubr.f32.gmra.mxu1 %v16074_v4 }
0x1985   :  { %15610 = vmatpush3.msra.mxu1 %v18660_v45  ;;  %15557 = vmatprep.mubr.f32.mxu1 %v16075_v23  ;;  %v16117_v23 = vld [vmem:[%s19855_s13 + $0x390] sm:$0xff] }
0x1986   :  { %15611 = vmatprep.subr.mxu1 %v18670_v51 }
0x1987   :  { %15612 = vmatpush3.msra.mxu1 %v18670_v51 }
0x1988   :  { %15613 = vmatprep.subr.mxu1 %v18681_v43  ;;  %15558 = vmatmul.mubr.f32.gmra.mxu1 %v16076_v24 }
0x1989   :  { %15614 = vmatpush3.msra.mxu1 %v18681_v43  ;;  %15560 = vmatprep.mubr.f32.mxu1 %v16077_v30 }
0x198a   :  { %15615 = vmatprep.subr.mxu1 %v18690_v62 }
0x198b   :  { %15616 = vmatpush3.msra.mxu1 %v18690_v62 }
0x198c   :  { %15617 = vmatprep.subr.mxu1 %v18700_v42  ;;  %15561 = vmatmul.mubr.f32.gmra.mxu1 %v16078_v9 }
0x198d   :  { %15618 = vmatpush3.msra.mxu1 %v18700_v42  ;;  %15563 = vmatprep.mubr.f32.mxu1 %v16079_v3  ;;  %v16119_v3 = vld [vmem:[%s19855_s13 + $0x3a0] sm:$0xff] }
0x198e   :  { %15619 = vmatprep.subr.mxu1 %v18708_v11 }
0x198f   :  { %15620 = vmatpush3.msra.mxu1 %v18708_v11 }
0x1990   :  { %15621 = vmatprep.subr.mxu1 %v18715_v27  ;;  %15564 = vmatmul.mubr.f32.gmra.mxu1 %v16080_v18 }
0x1991   :  { %15622 = vmatpush3.msra.mxu1 %v18715_v27  ;;  %15566 = vmatprep.mubr.f32.mxu1 %v16081_v19 }
0x1992   :  { %15623 = vmatprep.subr.mxu1 %v18722_v54 }
0x1993   :  { %15624 = vmatpush3.msra.mxu1 %v18722_v54 }
0x1994   :  { %15625 = vmatprep.subr.mxu1 %v18728_v7  ;;  %15567 = vmatmul.mubr.f32.gmra.mxu1 %v16082_v39 }
0x1995   :  { %15626 = vmatpush3.msra.mxu1 %v18728_v7  ;;  %15629 = vmatprep.mubr.f32.mxu1 %v16083_v28  ;;  %v16121_v28 = vld [vmem:[%s19855_s13 + $0x3b0] sm:$0xff] }
0x1996   :  { %15627 = vmatprep.subr.mxu1 %v18734_v60 }
0x1997   :  { %15628 = vmatpush3.msra.mxu1 %v18734_v60 }
0x1998   :  { %15681 = vmatprep.subr.mxu1 %v18589_v14  ;;  %15630 = vmatmul.mubr.f32.vlgmr.msra.gmra.mxu1 %v16084_v46 }
0x1999   :  { %15682 = vmatpush3.msra.mxu1 %v18589_v14  ;;  %15632 = vmatprep.mubr.f32.mxu1 %v16085_v36 }
0x199a   :  { %15683 = vmatprep.subr.mxu1 %v18598_v10 }
0x199b   :  { %15684 = vmatpush3.msra.mxu1 %v18598_v10 }
0x199c   :  { %15685 = vmatprep.subr.mxu1 %v18611_v61  ;;  %15633 = vmatmul.mubr.f32.gmra.mxu1 %v16086_v35 }
0x199d   :  { %15686 = vmatpush3.msra.mxu1 %v18611_v61  ;;  %15635 = vmatprep.mubr.f32.mxu1 %v16087_v8 }
0x199e   :  { %15687 = vmatprep.subr.mxu1 %v18624_v56 }
0x199f   :  { %15688 = vmatpush3.msra.mxu1 %v18624_v56 }
0x19a0   :  { %15689 = vmatprep.subr.mxu1 %v18637_v16  ;;  %15636 = vmatmul.mubr.f32.gmra.mxu1 %v16088_v25  ;;  %v16123_v25 = vld [vmem:[%s19855_s13 + $0x3c0] sm:$0xff] }
0x19a1   :  { %15690 = vmatpush3.msra.mxu1 %v18637_v16  ;;  %15638 = vmatprep.mubr.f32.mxu1 %v16089_v53 }
0x19a2   :  { %15691 = vmatprep.subr.mxu1 %v18648_v38 }
0x19a3   :  { %15692 = vmatpush3.msra.mxu1 %v18648_v38 }
0x19a4   :  { %15693 = vmatprep.subr.mxu1 %v18660_v45  ;;  %15639 = vmatmul.mubr.f32.gmra.mxu1 %v16090_v40 }
0x19a5   :  { %15694 = vmatpush3.msra.mxu1 %v18660_v45  ;;  %15641 = vmatprep.mubr.f32.mxu1 %v16091_v21 }
0x19a6   :  { %15695 = vmatprep.subr.mxu1 %v18670_v51 }
0x19a7   :  { %15696 = vmatpush3.msra.mxu1 %v18670_v51 }
0x19a8   :  { %15697 = vmatprep.subr.mxu1 %v18681_v43  ;;  %15642 = vmatmul.mubr.f32.gmra.mxu1 %v16092_v41 }
0x19a9   :  { %15698 = vmatpush3.msra.mxu1 %v18681_v43  ;;  %15644 = vmatprep.mubr.f32.mxu1 %v16093_v29  ;;  %v16125_v29 = vld [vmem:[%s19855_s13 + $0x3d0] sm:$0xff] }
0x19aa   :  { %15699 = vmatprep.subr.mxu1 %v18690_v62 }
0x19ab   :  { %15700 = vmatpush3.msra.mxu1 %v18690_v62 }
0x19ac   :  { %15701 = vmatprep.subr.mxu1 %v18700_v42  ;;  %15645 = vmatmul.mubr.f32.gmra.mxu1 %v16094_v49 }
0x19ad   :  { %15702 = vmatpush3.msra.mxu1 %v18700_v42  ;;  %15647 = vmatprep.mubr.f32.mxu1 %v16095_v0 }
0x19ae   :  { %15703 = vmatprep.subr.mxu1 %v18708_v11 }
0x19af   :  { %15704 = vmatpush3.msra.mxu1 %v18708_v11 }
0x19b0   :  { %15705 = vmatprep.subr.mxu1 %v18715_v27  ;;  %15648 = vmatmul.mubr.f32.gmra.mxu1 %v16096_v6 }
0x19b1   :  { %15706 = vmatpush3.msra.mxu1 %v18715_v27  ;;  %15650 = vmatprep.mubr.f32.mxu1 %v16097_v52 }
0x19b2   :  { %15707 = vmatprep.subr.mxu1 %v18722_v54 }
0x19b3   :  { %15708 = vmatpush3.msra.mxu1 %v18722_v54 }
0x19b4   :  { %15709 = vmatprep.subr.mxu1 %v18728_v7  ;;  %15651 = vmatmul.mubr.f32.gmra.mxu1 %v16098_v5  ;;  %v16127_v5 = vld [vmem:[%s19855_s13 + $0x3e0] sm:$0xff] }
0x19b5   :  { %15710 = vmatpush3.msra.mxu1 %v18728_v7  ;;  %15713 = vmatprep.mubr.f32.mxu1 %v16099_v44 }
0x19b6   :  { %15711 = vmatprep.subr.mxu1 %v18734_v60 }
0x19b7   :  { %15712 = vmatpush3.msra.mxu1 %v18734_v60 }
0x19b8   :  { %15765 = vmatprep.subr.mxu1 %v18589_v14  ;;  %15714 = vmatmul.mubr.f32.vlgmr.msra.gmra.mxu1 %v16100_v2 }
0x19b9   :  { %15766 = vmatpush3.msra.mxu1 %v18589_v14  ;;  %15716 = vmatprep.mubr.f32.mxu1 %v16101_v34 }
0x19ba   :  { %15767 = vmatprep.subr.mxu1 %v18598_v10 }
0x19bb   :  { %15768 = vmatpush3.msra.mxu1 %v18598_v10 }
0x19bc   :  { %15769 = vmatprep.subr.mxu1 %v18611_v61  ;;  %15717 = vmatmul.mubr.f32.gmra.mxu1 %v16102_v22 }
0x19bd   :  { %15770 = vmatpush3.msra.mxu1 %v18611_v61  ;;  %15719 = vmatprep.mubr.f32.mxu1 %v16103_v58  ;;  %v16129_v58 = vld [vmem:[%s19855_s13 + $0x3f0] sm:$0xff] }
0x19be   :  { %15771 = vmatprep.subr.mxu1 %v18624_v56 }
0x19bf   :  { %15772 = vmatpush3.msra.mxu1 %v18624_v56 }
0x19c0   :  { %15773 = vmatprep.subr.mxu1 %v18637_v16  ;;  %15720 = vmatmul.mubr.f32.gmra.mxu1 %v16104_v15 }
0x19c1   :  { %15774 = vmatpush3.msra.mxu1 %v18637_v16  ;;  %15722 = vmatprep.mubr.f32.mxu1 %v16105_v59 }
0x19c2   :  { %15775 = vmatprep.subr.mxu1 %v18648_v38 }
0x19c3   :  { %15776 = vmatpush3.msra.mxu1 %v18648_v38 }
0x19c4   :  { %15777 = vmatprep.subr.mxu1 %v18660_v45  ;;  %15723 = vmatmul.mubr.f32.gmra.mxu1 %v16106_v17 }
0x19c5   :  { %15778 = vmatpush3.msra.mxu1 %v18660_v45  ;;  %15725 = vmatprep.mubr.f32.mxu1 %v16107_v55 }
0x19c6   :  { %15779 = vmatprep.subr.mxu1 %v18670_v51 }
0x19c7   :  { %15780 = vmatpush3.msra.mxu1 %v18670_v51 }
0x19c8   :  { %15781 = vmatprep.subr.mxu1 %v18681_v43  ;;  %15726 = vmatmul.mubr.f32.gmra.mxu1 %v16108_v57  ;;  %v16131_v57 = vld [vmem:[%s19855_s13 + $0x400] sm:$0xff] }
0x19c9   :  { %15782 = vmatpush3.msra.mxu1 %v18681_v43  ;;  %15728 = vmatprep.mubr.f32.mxu1 %v16109_v37 }
0x19ca   :  { %15783 = vmatprep.subr.mxu1 %v18690_v62 }
0x19cb   :  { %15784 = vmatpush3.msra.mxu1 %v18690_v62 }
0x19cc   :  { %15785 = vmatprep.subr.mxu1 %v18700_v42  ;;  %15729 = vmatmul.mubr.f32.gmra.mxu1 %v16110_v32 }
0x19cd   :  { %15786 = vmatpush3.msra.mxu1 %v18700_v42  ;;  %15731 = vmatprep.mubr.f32.mxu1 %v16111_v12  ;;  %v16132_v12 = vld [vmem:[%s19855_s13 + $0x408] sm:$0xff] }
0x19ce   :  { %15787 = vmatprep.subr.mxu1 %v18708_v11 }
0x19cf   :  { %15788 = vmatpush3.msra.mxu1 %v18708_v11 }
0x19d0   :  { %15789 = vmatprep.subr.mxu1 %v18715_v27  ;;  %15732 = vmatmul.mubr.f32.gmra.mxu1 %v16112_v48  ;;  %v16133_v48 = vld [vmem:[%s19855_s13 + $0x410] sm:$0xff] }
0x19d1   :  { %15790 = vmatpush3.msra.mxu1 %v18715_v27  ;;  %15734 = vmatprep.mubr.f32.mxu1 %v16113_v63 }
0x19d2   :  { %15791 = vmatprep.subr.mxu1 %v18722_v54 }
0x19d3   :  { %15792 = vmatpush3.msra.mxu1 %v18722_v54 }
0x19d4   :  { %15793 = vmatprep.subr.mxu1 %v18728_v7  ;;  %15735 = vmatmul.mubr.f32.gmra.mxu1 %v16114_v26 }
0x19d5   :  { %15794 = vmatpush3.msra.mxu1 %v18728_v7  ;;  %15797 = vmatprep.mubr.f32.mxu1 %v16115_v13  ;;  %v16134_v13 = vld [vmem:[%s19855_s13 + $0x418] sm:$0xff] }
0x19d6   :  { %15795 = vmatprep.subr.mxu1 %v18734_v60 }
0x19d7   :  { %15796 = vmatpush3.msra.mxu1 %v18734_v60  ;;  %v15295_v1 = vpop.f32.mrf.mxu1  ;;  %v15323_v31 = vpop.f32.mrf.mxu0 }
0x19d8   :  { %15849 = vmatprep.subr.mxu1 %v18589_v14  ;;  %v19326_v47 = vadd.f32 %v15323_v31, %v15295_v1  ;;  %15798 = vmatmul.mubr.f32.vlgmr.msra.gmra.mxu1 %v16116_v20  ;;  %v16135_v1 = vld [vmem:[%s19855_s13 + $0x420] sm:$0xff]  ;;  %v12260_v20 = vld [vmem:[%s19858_s16 + $0x48] sm:$0xff] }
0x19d9   :  { %15850 = vmatpush3.msra.mxu1 %v18589_v14  ;;  %v19332_v33 = vpop.f32.mrf.mxu1  ;;  %v19334_v4 = vpop.f32.mrf.mxu0  ;;  %15800 = vmatprep.mubr.f32.mxu1 %v16117_v23  ;;  %v16118_v14 = vld [vmem:[%s19855_s13 + $0x398] sm:$0xff] }
0x19da   :  { %15851 = vmatprep.subr.mxu1 %v18598_v10 }
0x19db   :  { %15852 = vmatpush3.msra.mxu1 %v18598_v10 }
0x19dc   :  { %15853 = vmatprep.subr.mxu1 %v18611_v61  ;;  %v15298_v24 = vpop.f32.mrf.mxu1  ;;  %v15326_v30 = vpop.f32.mrf.mxu0  ;;  %15801 = vmatmul.mubr.f32.gmra.mxu1 %v16118_v14 }
0x19dd   :  { %v19345_v9 = vadd.f32 %v15326_v30, %v15298_v24  ;;  %15854 = vmatpush3.msra.mxu1 %v18611_v61  ;;  %15803 = vmatprep.mubr.f32.mxu1 %v16119_v3  ;;  %v16120_v61 = vld [vmem:[%s19855_s13 + $0x3a8] sm:$0xff]  ;;  %v16137_v24 = vld [vmem:[%s19855_s13 + $0x430] sm:$0xff]  ;;  %v16138_v3 = vld [vmem:[%s19855_s13 + $0x438] sm:$0xff] }
0x19de   :  { %15855 = vmatprep.subr.mxu1 %v18624_v56  ;;  %v19352_v10 = vpop.f32.mrf.mxu1  ;;  %v19354_v18 = vpop.f32.mrf.mxu0 }
0x19df   :  { %15856 = vmatpush3.msra.mxu1 %v18624_v56 }
0x19e0   :  { %15857 = vmatprep.subr.mxu1 %v18637_v16  ;;  %v15301_v19 = vpop.f32.mrf.mxu1  ;;  %15804 = vmatmul.mubr.f32.gmra.mxu1 %v16120_v61 }
0x19e1   :  { %v15329_v39 = vpop.f32.mrf.mxu0  ;;  %15858 = vmatpush3.msra.mxu1 %v18637_v16  ;;  %15806 = vmatprep.mubr.f32.mxu1 %v16121_v28  ;;  %v16122_v16 = vld [vmem:[%s19855_s13 + $0x3b8] sm:$0xff]  ;;  %v16140_v28 = vld [vmem:[%s19855_s13 + $0x448] sm:$0xff] }
0x19e2   :  { %v19365_v46 = vadd.f32 %v15329_v39, %v15301_v19  ;;  %15859 = vmatprep.subr.mxu1 %v18648_v38  ;;  %v19368_v56 = vpop.f32.mrf.mxu1  ;;  %v16139_v19 = vld [vmem:[%s19855_s13 + $0x440] sm:$0xff] }
0x19e3   :  { %v19370_v36 = vpop.f32.mrf.mxu0  ;;  %15860 = vmatpush3.msra.mxu1 %v18648_v38 }
0x19e4   :  { %15861 = vmatprep.subr.mxu1 %v18660_v45  ;;  %v15304_v35 = vpop.f32.mrf.mxu1  ;;  %15807 = vmatmul.mubr.f32.gmra.mxu1 %v16122_v16 }
0x19e5   :  { %v15332_v8 = vpop.f32.mrf.mxu0  ;;  %15862 = vmatpush3.msra.mxu1 %v18660_v45  ;;  %15809 = vmatprep.mubr.f32.mxu1 %v16123_v25  ;;  %v16124_v45 = vld [vmem:[%s19855_s13 + $0x3c8] sm:$0xff]  ;;  %v16142_v25 = vld [vmem:[%s19855_s13 + $0x458] sm:$0xff] }
0x19e6   :  { %v19381_v53 = vadd.f32 %v15332_v8, %v15304_v35  ;;  %15863 = vmatprep.subr.mxu1 %v18670_v51  ;;  %v19384_v38 = vpop.f32.mrf.mxu1  ;;  %v16141_v35 = vld [vmem:[%s19855_s13 + $0x450] sm:$0xff] }
0x19e7   :  { %v19386_v40 = vpop.f32.mrf.mxu0  ;;  %15864 = vmatpush3.msra.mxu1 %v18670_v51 }
0x19e8   :  { %15865 = vmatprep.subr.mxu1 %v18681_v43  ;;  %v15307_v21 = vpop.f32.mrf.mxu1  ;;  %15810 = vmatmul.mubr.f32.gmra.mxu1 %v16124_v45 }
0x19e9   :  { %v15335_v41 = vpop.f32.mrf.mxu0  ;;  %15866 = vmatpush3.msra.mxu1 %v18681_v43  ;;  %15812 = vmatprep.mubr.f32.mxu1 %v16125_v29  ;;  %v16126_v43 = vld [vmem:[%s19855_s13 + $0x3d8] sm:$0xff]  ;;  %v16144_v29 = vld [vmem:[%s19855_s13 + $0x468] sm:$0xff] }
0x19ea   :  { %v19397_v49 = vadd.f32 %v15335_v41, %v15307_v21  ;;  %15867 = vmatprep.subr.mxu1 %v18690_v62  ;;  %v19400_v51 = vpop.f32.mrf.mxu1  ;;  %v16143_v21 = vld [vmem:[%s19855_s13 + $0x460] sm:$0xff] }
0x19eb   :  { %v19402_v0 = vpop.f32.mrf.mxu0  ;;  %15868 = vmatpush3.msra.mxu1 %v18690_v62 }
0x19ec   :  { %15869 = vmatprep.subr.mxu1 %v18700_v42  ;;  %v15310_v6 = vpop.f32.mrf.mxu1  ;;  %15813 = vmatmul.mubr.f32.gmra.mxu1 %v16126_v43 }
0x19ed   :  { %v15338_v52 = vpop.f32.mrf.mxu0  ;;  %15870 = vmatpush3.msra.mxu1 %v18700_v42  ;;  %15815 = vmatprep.mubr.f32.mxu1 %v16127_v5  ;;  %v16128_v42 = vld [vmem:[%s19855_s13 + $0x3e8] sm:$0xff]  ;;  %v16146_v5 = vld [vmem:[%s19855_s13 + $0x478] sm:$0xff] }
0x19ee   :  { %v19413_v44 = vadd.f32 %v15338_v52, %v15310_v6  ;;  %15871 = vmatprep.subr.mxu1 %v18708_v11  ;;  %v19416_v62 = vpop.f32.mrf.mxu1  ;;  %v16145_v6 = vld [vmem:[%s19855_s13 + $0x470] sm:$0xff] }
0x19ef   :  { %v19418_v2 = vpop.f32.mrf.mxu0  ;;  %15872 = vmatpush3.msra.mxu1 %v18708_v11 }
0x19f0   :  { %15873 = vmatprep.subr.mxu1 %v18715_v27  ;;  %v15313_v34 = vpop.f32.mrf.mxu1  ;;  %15816 = vmatmul.mubr.f32.gmra.mxu1 %v16128_v42 }
0x19f1   :  { %v15341_v22 = vpop.f32.mrf.mxu0  ;;  %15874 = vmatpush3.msra.mxu1 %v18715_v27  ;;  %15818 = vmatprep.mubr.f32.mxu1 %v16129_v58  ;;  %v16130_v27 = vld [vmem:[%s19855_s13 + $0x3f8] sm:$0xff]  ;;  %v12259_v58 = vld [vmem:[%s19858_s16 + $0x40] sm:$0xff] }
0x19f2   :  { %v19429_v15 = vadd.f32 %v15341_v22, %v15313_v34  ;;  %15875 = vmatprep.subr.mxu1 %v18722_v54  ;;  %v19432_v11 = vpop.f32.mrf.mxu1 }
0x19f3   :  { %v19434_v59 = vpop.f32.mrf.mxu0  ;;  %15876 = vmatpush3.msra.mxu1 %v18722_v54 }
0x19f4   :  { %15877 = vmatprep.subr.mxu1 %v18728_v7  ;;  %v15316_v17 = vpop.f32.mrf.mxu1  ;;  %15819 = vmatmul.mubr.f32.gmra.mxu1 %v16130_v27  ;;  %v12278_v27 = vld [vmem:[%s19858_s16 + $0x58] sm:$0xff] }
0x19f5   :  { %v15344_v55 = vpop.f32.mrf.mxu0  ;;  %15878 = vmatpush3.msra.mxu1 %v18728_v7  ;;  %15881 = vmatprep.mubr.f32.mxu1 %v16131_v57  ;;  %v19949_v7 = vmov 0.0  }
0x19f6   :  { %v19445_v37 = vadd.f32 %v15344_v55, %v15316_v17  ;;  %15879 = vmatprep.subr.mxu1 %v18734_v60  ;;  %v19448_v54 = vpop.f32.mrf.mxu1 }
0x19f7   :  { %15880 = vmatpush3.msra.mxu1 %v18734_v60  ;;  %v12241_v60 = vld [vmem:[%s19858_s16 + $0x30] sm:$0xff] }
0x19f8   :  { %v15379_v32 = vpop.f32.mrf.mxu1  ;;  %15882 = vmatmul.mubr.f32.vlgmr.msra.gmra.mxu1 %v16132_v12  ;;  %15933 = vmatprep.subr.mxu1 %v19949_v7 }
0x19f9   :  { %15884 = vmatprep.mubr.f32.mxu1 %v16133_v48 }
0x19fa   :  { %v8830_v63 = vpop.f32.mrf.mxu1 }
0x19fb   :  { %15405 = vmatprep.mubr.msk.f32.mxu0 %vm2236_vm6, %v8830_v63 }
0x19fc   :  { %v15382_v26 = vpop.f32.mrf.mxu1  ;;  %15406 = vmatmul.mubr.msk.f32.vlgmr.msra.gmra.mxu0 %vm2236_vm6, %v15379_v32  ;;  %15885 = vmatmul.mubr.f32.gmra.mxu1 %v16134_v13 }
0x19fd   :  { %15486 = vmatpush3.msra.mxu0 %v19096_v50  ;;  %15887 = vmatprep.mubr.f32.mxu1 %v16135_v1  ;;  %v16136_v50 = vld [vmem:[%s19855_s13 + $0x428] sm:$0xff] }
0x19fe   :  { %v8840_v31 = vpop.f32.mrf.mxu1  ;;  %15487 = vmatprep.subr.mxu0 %v12241_v60 }
0x19ff   :  { %15408 = vmatprep.mubr.msk.f32.mxu0 %vm2236_vm6, %v8840_v31  ;;  %15488 = vmatpush3.msra.mxu0 %v12241_v60 }
0x1a00   :  { %v15385_v23 = vpop.f32.mrf.mxu1  ;;  %15409 = vmatmul.mubr.msk.f32.gmra.mxu0 %vm2236_vm6, %v15382_v26  ;;  %15888 = vmatmul.mubr.f32.gmra.mxu1 %v16136_v50 }
0x1a01   :  { %15890 = vmatprep.mubr.f32.mxu1 %v16137_v24  ;;  %15569 = vmatprep.subr.mxu0 %v12260_v20 }
0x1a02   :  { %v8850_v30 = vpop.f32.mrf.mxu1 }
0x1a03   :  { %15411 = vmatprep.mubr.msk.f32.mxu0 %vm2236_vm6, %v8850_v30  ;;  %v12277_v30 = vld [vmem:[%s19858_s16 + $0x50] sm:$0xff] }
0x1a04   :  { %v15388_v14 = vpop.f32.mrf.mxu1  ;;  %15412 = vmatmul.mubr.msk.f32.gmra.mxu0 %vm2236_vm6, %v15385_v23  ;;  %15891 = vmatmul.mubr.f32.gmra.mxu1 %v16138_v3  ;;  %v12296_v3 = vld [vmem:[%s19858_s16 + $0x68] sm:$0xff] }
0x1a05   :  { %15893 = vmatprep.mubr.f32.mxu1 %v16139_v19 }
0x1a06   :  { %v8860_v61 = vpop.f32.mrf.mxu1 }
0x1a07   :  { %15414 = vmatprep.mubr.msk.f32.mxu0 %vm2236_vm6, %v8860_v61 }
0x1a08   :  { %v15391_v39 = vpop.f32.mrf.mxu1  ;;  %15415 = vmatmul.mubr.msk.f32.gmra.mxu0 %vm2236_vm6, %v15388_v14  ;;  %15894 = vmatmul.mubr.f32.gmra.mxu1 %v16140_v28 }
0x1a09   :  { %15896 = vmatprep.mubr.f32.mxu1 %v16141_v35 }
0x1a0a   :  { %v8870_v16 = vpop.f32.mrf.mxu1 }
0x1a0b   :  { %15417 = vmatprep.mubr.msk.f32.mxu0 %vm2236_vm6, %v8870_v16 }
0x1a0c   :  { %v15394_v8 = vpop.f32.mrf.mxu1  ;;  %15418 = vmatmul.mubr.msk.f32.gmra.mxu0 %vm2236_vm6, %v15391_v39  ;;  %15897 = vmatmul.mubr.f32.gmra.mxu1 %v16142_v25 }
0x1a0d   :  { %15899 = vmatprep.mubr.f32.mxu1 %v16143_v21 }
0x1a0e   :  { %v8880_v45 = vpop.f32.mrf.mxu1 }
0x1a0f   :  { %15420 = vmatprep.mubr.msk.f32.mxu0 %vm2236_vm6, %v8880_v45 }
0x1a10   :  { %v15397_v41 = vpop.f32.mrf.mxu1  ;;  %15421 = vmatmul.mubr.msk.f32.gmra.mxu0 %vm2236_vm6, %v15394_v8  ;;  %15900 = vmatmul.mubr.f32.gmra.mxu1 %v16144_v29 }
0x1a11   :  { %15902 = vmatprep.mubr.f32.mxu1 %v16145_v6 }
0x1a12   :  { %v8890_v43 = vpop.f32.mrf.mxu1 }
0x1a13   :  { %15423 = vmatprep.mubr.msk.f32.mxu0 %vm2236_vm6, %v8890_v43 }
0x1a14   :  { %v15400_v52 = vpop.f32.mrf.mxu1  ;;  %15424 = vmatmul.mubr.msk.f32.gmra.mxu0 %vm2236_vm6, %v15397_v41  ;;  %15903 = vmatmul.mubr.f32.gmra.mxu1 %v16146_v5  ;;  %v12295_v5 = vld [vmem:[%s19858_s16 + $0x60] sm:$0xff] }
0x1a15   :  { %15949 = vmatprep.mubr.msk.f32.mxu1 %vm16170_vm4, %v19949_v7 }
0x1a16   :  { %v8900_v34 = vpop.f32.mrf.mxu1 }
0x1a17   :  { %15426 = vmatprep.mubr.msk.f32.mxu0 %vm2236_vm6, %v8900_v34 }
0x1a18   :  { %15427 = vmatmul.mubr.msk.f32.gmra.mxu0 %vm2236_vm6, %v15400_v52  ;;  %v15463_v42 = vpop.f32.mrf.mxu1 }
0x1a1a   :  { %v9187_v22 = vpop.f32.mrf.mxu1 }
0x1a1b   :  { %15489 = vmatprep.mubr.msk.f32.mxu0 %vm2236_vm6, %v9187_v22 }
0x1a1c   :  { %v15466_v17 = vpop.f32.mrf.mxu1  ;;  %15490 = vmatmul.mubr.msk.f32.vlgmr.msra.gmra.mxu0 %vm2236_vm6, %v15463_v42  ;;  %v12314_v42 = vld [vmem:[%s19858_s16 + $0x78] sm:$0xff] }
0x1a1d   :  { %15570 = vmatpush3.msra.mxu0 %v12260_v20 }
0x1a1e   :  { %v9197_v55 = vpop.f32.mrf.mxu1  ;;  %15571 = vmatprep.subr.mxu0 %v12259_v58 }
0x1a1f   :  { %15492 = vmatprep.mubr.msk.f32.mxu0 %vm2236_vm6, %v9197_v55  ;;  %15572 = vmatpush3.msra.mxu0 %v12259_v58 }
0x1a20   :  { %v15469_v57 = vpop.f32.mrf.mxu1  ;;  %15493 = vmatmul.mubr.msk.f32.gmra.mxu0 %vm2236_vm6, %v15466_v17  ;;  %15653 = vmatprep.subr.mxu0 %v12278_v27 }
0x1a22   :  { %v9207_v32 = vpop.f32.mrf.mxu1 }
0x1a23   :  { %15495 = vmatprep.mubr.msk.f32.mxu0 %vm2236_vm6, %v9207_v32 }
0x1a24   :  { %v15472_v12 = vpop.f32.mrf.mxu1  ;;  %15496 = vmatmul.mubr.msk.f32.gmra.mxu0 %vm2236_vm6, %v15469_v57 }
0x1a26   :  { %v9217_v48 = vpop.f32.mrf.mxu1 }
0x1a27   :  { %15498 = vmatprep.mubr.msk.f32.mxu0 %vm2236_vm6, %v9217_v48 }
0x1a28   :  { %v15475_v63 = vpop.f32.mrf.mxu1  ;;  %15499 = vmatmul.mubr.msk.f32.gmra.mxu0 %vm2236_vm6, %v15472_v12 }
0x1a2a   :  { %v9227_v60 = vpop.f32.mrf.mxu1 }
0x1a2b   :  { %15501 = vmatprep.mubr.msk.f32.mxu0 %vm2236_vm6, %v9227_v60 }
0x1a2c   :  { %v15478_v26 = vpop.f32.mrf.mxu1  ;;  %15502 = vmatmul.mubr.msk.f32.gmra.mxu0 %vm2236_vm6, %v15475_v63 }
0x1a2e   :  { %v9237_v13 = vpop.f32.mrf.mxu1 }
0x1a2f   :  { %15504 = vmatprep.mubr.msk.f32.mxu0 %vm2236_vm6, %v9237_v13 }
0x1a30   :  { %v15481_v1 = vpop.f32.mrf.mxu1  ;;  %15505 = vmatmul.mubr.msk.f32.gmra.mxu0 %vm2236_vm6, %v15478_v26 }
0x1a32   :  { %v9247_v31 = vpop.f32.mrf.mxu1 }
0x1a33   :  { %15507 = vmatprep.mubr.msk.f32.mxu0 %vm2236_vm6, %v9247_v31 }
0x1a34   :  { %v15484_v20 = vpop.f32.mrf.mxu1  ;;  %15508 = vmatmul.mubr.msk.f32.gmra.mxu0 %vm2236_vm6, %v15481_v1 }
0x1a36   :  { %v9257_v23 = vpop.f32.mrf.mxu1 }
0x1a37   :  { %15510 = vmatprep.mubr.msk.f32.mxu0 %vm2236_vm6, %v9257_v23 }
0x1a38   :  { %15511 = vmatmul.mubr.msk.f32.gmra.mxu0 %vm2236_vm6, %v15484_v20  ;;  %v15547_v50 = vpop.f32.mrf.mxu1  ;;  %v12313_v20 = vld [vmem:[%s19858_s16 + $0x70] sm:$0xff] }
0x1a3a   :  { %v9544_v24 = vpop.f32.mrf.mxu1 }
0x1a3b   :  { %15573 = vmatprep.mubr.msk.f32.mxu0 %vm2236_vm6, %v9544_v24 }
0x1a3c   :  { %v15550_v14 = vpop.f32.mrf.mxu1  ;;  %15574 = vmatmul.mubr.msk.f32.vlgmr.msra.gmra.mxu0 %vm2236_vm6, %v15547_v50  ;;  %v12332_v50 = vld [vmem:[%s19858_s16 + $0x88] sm:$0xff] }
0x1a3d   :  { %15654 = vmatpush3.msra.mxu0 %v12278_v27 }
0x1a3e   :  { %v9554_v19 = vpop.f32.mrf.mxu1  ;;  %15655 = vmatprep.subr.mxu0 %v12277_v30 }
0x1a3f   :  { %15576 = vmatprep.mubr.msk.f32.mxu0 %vm2236_vm6, %v9554_v19  ;;  %15656 = vmatpush3.msra.mxu0 %v12277_v30 }
0x1a40   :  { %v15553_v61 = vpop.f32.mrf.mxu1  ;;  %15577 = vmatmul.mubr.msk.f32.gmra.mxu0 %vm2236_vm6, %v15550_v14  ;;  %15737 = vmatprep.subr.mxu0 %v12296_v3 }
0x1a42   :  { %v9564_v39 = vpop.f32.mrf.mxu1 }
0x1a43   :  { %15579 = vmatprep.mubr.msk.f32.mxu0 %vm2236_vm6, %v9564_v39 }
0x1a44   :  { %v15556_v28 = vpop.f32.mrf.mxu1  ;;  %15580 = vmatmul.mubr.msk.f32.gmra.mxu0 %vm2236_vm6, %v15553_v61 }
0x1a46   :  { %v9574_v35 = vpop.f32.mrf.mxu1 }
0x1a47   :  { %15582 = vmatprep.mubr.msk.f32.mxu0 %vm2236_vm6, %v9574_v35 }
0x1a48   :  { %v15559_v16 = vpop.f32.mrf.mxu1  ;;  %15583 = vmatmul.mubr.msk.f32.gmra.mxu0 %vm2236_vm6, %v15556_v28 }
0x1a4a   :  { %v9584_v8 = vpop.f32.mrf.mxu1 }
0x1a4b   :  { %15585 = vmatprep.mubr.msk.f32.mxu0 %vm2236_vm6, %v9584_v8 }
0x1a4c   :  { %v15562_v25 = vpop.f32.mrf.mxu1  ;;  %15586 = vmatmul.mubr.msk.f32.gmra.mxu0 %vm2236_vm6, %v15559_v16 }
0x1a4e   :  { %v9594_v21 = vpop.f32.mrf.mxu1 }
0x1a4f   :  { %15588 = vmatprep.mubr.msk.f32.mxu0 %vm2236_vm6, %v9594_v21 }
0x1a50   :  { %v15565_v45 = vpop.f32.mrf.mxu1  ;;  %15589 = vmatmul.mubr.msk.f32.gmra.mxu0 %vm2236_vm6, %v15562_v25 }
0x1a52   :  { %v9604_v41 = vpop.f32.mrf.mxu1 }
0x1a53   :  { %15591 = vmatprep.mubr.msk.f32.mxu0 %vm2236_vm6, %v9604_v41 }
0x1a54   :  { %v15568_v29 = vpop.f32.mrf.mxu1  ;;  %15592 = vmatmul.mubr.msk.f32.gmra.mxu0 %vm2236_vm6, %v15565_v45 }
0x1a56   :  { %v9614_v6 = vpop.f32.mrf.mxu1 }
0x1a57   :  { %15594 = vmatprep.mubr.msk.f32.mxu0 %vm2236_vm6, %v9614_v6 }
0x1a58   :  { %15595 = vmatmul.mubr.msk.f32.gmra.mxu0 %vm2236_vm6, %v15568_v29  ;;  %v15631_v43 = vpop.f32.mrf.mxu1  ;;  %v12331_v29 = vld [vmem:[%s19858_s16 + $0x80] sm:$0xff] }
0x1a5a   :  { %v9901_v52 = vpop.f32.mrf.mxu1 }
0x1a5b   :  { %15657 = vmatprep.mubr.msk.f32.mxu0 %vm2236_vm6, %v9901_v52 }
0x1a5c   :  { %v15634_v34 = vpop.f32.mrf.mxu1  ;;  %15658 = vmatmul.mubr.msk.f32.vlgmr.msra.gmra.mxu0 %vm2236_vm6, %v15631_v43 }
0x1a5d   :  { %15738 = vmatpush3.msra.mxu0 %v12296_v3 }
0x1a5e   :  { %v9911_v22 = vpop.f32.mrf.mxu1  ;;  %15739 = vmatprep.subr.mxu0 %v12295_v5 }
0x1a5f   :  { %15660 = vmatprep.mubr.msk.f32.mxu0 %vm2236_vm6, %v9911_v22  ;;  %15740 = vmatpush3.msra.mxu0 %v12295_v5 }
0x1a60   :  { %v15637_v58 = vpop.f32.mrf.mxu1  ;;  %15661 = vmatmul.mubr.msk.f32.gmra.mxu0 %vm2236_vm6, %v15634_v34  ;;  %15821 = vmatprep.subr.mxu0 %v12314_v42 }
0x1a62   :  { %v9921_v17 = vpop.f32.mrf.mxu1 }
0x1a63   :  { %15663 = vmatprep.mubr.msk.f32.mxu0 %vm2236_vm6, %v9921_v17 }
0x1a64   :  { %v15640_v27 = vpop.f32.mrf.mxu1  ;;  %15664 = vmatmul.mubr.msk.f32.gmra.mxu0 %vm2236_vm6, %v15637_v58 }
0x1a66   :  { %v9931_v55 = vpop.f32.mrf.mxu1 }
0x1a67   :  { %15666 = vmatprep.mubr.msk.f32.mxu0 %vm2236_vm6, %v9931_v55 }
0x1a68   :  { %v15643_v57 = vpop.f32.mrf.mxu1  ;;  %15667 = vmatmul.mubr.msk.f32.gmra.mxu0 %vm2236_vm6, %v15640_v27 }
0x1a6a   :  { %v9941_v32 = vpop.f32.mrf.mxu1 }
0x1a6b   :  { %15669 = vmatprep.mubr.msk.f32.mxu0 %vm2236_vm6, %v9941_v32 }
0x1a6c   :  { %v15646_v12 = vpop.f32.mrf.mxu1  ;;  %15670 = vmatmul.mubr.msk.f32.gmra.mxu0 %vm2236_vm6, %v15643_v57 }
0x1a6e   :  { %v9951_v48 = vpop.f32.mrf.mxu1 }
0x1a6f   :  { %15672 = vmatprep.mubr.msk.f32.mxu0 %vm2236_vm6, %v9951_v48 }
0x1a70   :  { %v15649_v63 = vpop.f32.mrf.mxu1  ;;  %15673 = vmatmul.mubr.msk.f32.gmra.mxu0 %vm2236_vm6, %v15646_v12 }
0x1a72   :  { %v9961_v60 = vpop.f32.mrf.mxu1 }
0x1a73   :  { %15675 = vmatprep.mubr.msk.f32.mxu0 %vm2236_vm6, %v9961_v60 }
0x1a74   :  { %v15652_v26 = vpop.f32.mrf.mxu1  ;;  %15676 = vmatmul.mubr.msk.f32.gmra.mxu0 %vm2236_vm6, %v15649_v63  ;;  %v8755_v63 = vpop.f32.mrf.mxu0 }
0x1a76   :  { %v9971_v13 = vpop.f32.mrf.mxu1 }
0x1a77   :  { %15678 = vmatprep.mubr.msk.f32.mxu0 %vm2236_vm6, %v9971_v13 }
0x1a78   :  { %15679 = vmatmul.mubr.msk.f32.gmra.mxu0 %vm2236_vm6, %v15652_v26  ;;  %v15715_v1 = vpop.f32.mrf.mxu1 }
0x1a7a   :  { %v10258_v31 = vpop.f32.mrf.mxu1 }
0x1a7b   :  { %15741 = vmatprep.mubr.msk.f32.mxu0 %vm2236_vm6, %v10258_v31 }
0x1a7c   :  { %v15718_v23 = vpop.f32.mrf.mxu1  ;;  %15742 = vmatmul.mubr.msk.f32.vlgmr.msra.gmra.mxu0 %vm2236_vm6, %v15715_v1 }
0x1a7d   :  { %15822 = vmatpush3.msra.mxu0 %v12314_v42 }
0x1a7e   :  { %v10268_v24 = vpop.f32.mrf.mxu1  ;;  %15823 = vmatprep.subr.mxu0 %v12313_v20 }
0x1a7f   :  { %15744 = vmatprep.mubr.msk.f32.mxu0 %vm2236_vm6, %v10268_v24  ;;  %15824 = vmatpush3.msra.mxu0 %v12313_v20 }
0x1a80   :  { %v15721_v30 = vpop.f32.mrf.mxu1  ;;  %15745 = vmatmul.mubr.msk.f32.gmra.mxu0 %vm2236_vm6, %v15718_v23  ;;  %15905 = vmatprep.subr.mxu0 %v12332_v50 }
0x1a82   :  { %v10278_v14 = vpop.f32.mrf.mxu1 }
0x1a83   :  { %15747 = vmatprep.mubr.msk.f32.mxu0 %vm2236_vm6, %v10278_v14 }
0x1a84   :  { %v15724_v3 = vpop.f32.mrf.mxu1  ;;  %15748 = vmatmul.mubr.msk.f32.gmra.mxu0 %vm2236_vm6, %v15721_v30 }
0x1a86   :  { %v10288_v19 = vpop.f32.mrf.mxu1 }
0x1a87   :  { %15750 = vmatprep.mubr.msk.f32.mxu0 %vm2236_vm6, %v10288_v19 }
0x1a88   :  { %v15727_v61 = vpop.f32.mrf.mxu1  ;;  %15751 = vmatmul.mubr.msk.f32.gmra.mxu0 %vm2236_vm6, %v15724_v3 }
0x1a8a   :  { %v10298_v39 = vpop.f32.mrf.mxu1 }
0x1a8b   :  { %15753 = vmatprep.mubr.msk.f32.mxu0 %vm2236_vm6, %v10298_v39 }
0x1a8c   :  { %v15730_v28 = vpop.f32.mrf.mxu1  ;;  %15754 = vmatmul.mubr.msk.f32.gmra.mxu0 %vm2236_vm6, %v15727_v61 }
0x1a8e   :  { %v10308_v35 = vpop.f32.mrf.mxu1 }
0x1a8f   :  { %15756 = vmatprep.mubr.msk.f32.mxu0 %vm2236_vm6, %v10308_v35 }
0x1a90   :  { %v15733_v16 = vpop.f32.mrf.mxu1  ;;  %15757 = vmatmul.mubr.msk.f32.gmra.mxu0 %vm2236_vm6, %v15730_v28 }
0x1a92   :  { %v10318_v8 = vpop.f32.mrf.mxu1 }
0x1a93   :  { %15759 = vmatprep.mubr.msk.f32.mxu0 %vm2236_vm6, %v10318_v8 }
0x1a94   :  { %v15736_v25 = vpop.f32.mrf.mxu1  ;;  %15760 = vmatmul.mubr.msk.f32.gmra.mxu0 %vm2236_vm6, %v15733_v16 }
0x1a96   :  { %v10328_v21 = vpop.f32.mrf.mxu1 }
0x1a97   :  { %15762 = vmatprep.mubr.msk.f32.mxu0 %vm2236_vm6, %v10328_v21 }
0x1a98   :  { %15763 = vmatmul.mubr.msk.f32.gmra.mxu0 %vm2236_vm6, %v15736_v25  ;;  %v15799_v45 = vpop.f32.mrf.mxu1 }
0x1a9a   :  { %v10615_v41 = vpop.f32.mrf.mxu1 }
0x1a9b   :  { %15825 = vmatprep.mubr.msk.f32.mxu0 %vm2236_vm6, %v10615_v41  ;;  %v8726_v41 = vadd.f32 %v19402_v0, %v19400_v51  ;;  %v8746_v0 = vadd.f32 %v19434_v59, %v19432_v11  ;;  %v8686_v11 = vadd.f32 %v19334_v4, %v19332_v33 }
0x1a9c   :  { %v15802_v6 = vpop.f32.mrf.mxu1  ;;  %15826 = vmatmul.mubr.msk.f32.vlgmr.msra.gmra.mxu0 %vm2236_vm6, %v15799_v45 }
0x1a9d   :  { %15906 = vmatpush3.msra.mxu0 %v12332_v50 }
0x1a9e   :  { %v10625_v43 = vpop.f32.mrf.mxu1  ;;  %15907 = vmatprep.subr.mxu0 %v12331_v29 }
0x1a9f   :  { %15828 = vmatprep.mubr.msk.f32.mxu0 %vm2236_vm6, %v10625_v43  ;;  %15908 = vmatpush3.msra.mxu0 %v12331_v29 }
0x1aa0   :  { %v15805_v52 = vpop.f32.mrf.mxu1  ;;  %15829 = vmatmul.mubr.msk.f32.gmra.mxu0 %vm2236_vm6, %v15802_v6  ;;  %15958 = vmatprep.subr.mxu0 %v19949_v7 }
0x1aa2   :  { %v10635_v5 = vpop.f32.mrf.mxu1 }
0x1aa3   :  { %15831 = vmatprep.mubr.msk.f32.mxu0 %vm2236_vm6, %v10635_v5 }
0x1aa4   :  { %v15808_v34 = vpop.f32.mrf.mxu1  ;;  %15832 = vmatmul.mubr.msk.f32.gmra.mxu0 %vm2236_vm6, %v15805_v52 }
0x1aa6   :  { %v10645_v42 = vpop.f32.mrf.mxu1 }
0x1aa7   :  { %15834 = vmatprep.mubr.msk.f32.mxu0 %vm2236_vm6, %v10645_v42 }
0x1aa8   :  { %v15811_v22 = vpop.f32.mrf.mxu1  ;;  %15835 = vmatmul.mubr.msk.f32.gmra.mxu0 %vm2236_vm6, %v15808_v34 }
0x1aaa   :  { %v10655_v58 = vpop.f32.mrf.mxu1 }
0x1aab   :  { %15837 = vmatprep.mubr.msk.f32.mxu0 %vm2236_vm6, %v10655_v58 }
0x1aac   :  { %v15814_v17 = vpop.f32.mrf.mxu1  ;;  %15838 = vmatmul.mubr.msk.f32.gmra.mxu0 %vm2236_vm6, %v15811_v22 }
0x1aae   :  { %v10665_v27 = vpop.f32.mrf.mxu1 }
0x1aaf   :  { %15840 = vmatprep.mubr.msk.f32.mxu0 %vm2236_vm6, %v10665_v27 }
0x1ab0   :  { %v15817_v55 = vpop.f32.mrf.mxu1  ;;  %15841 = vmatmul.mubr.msk.f32.gmra.mxu0 %vm2236_vm6, %v15814_v17 }
0x1ab2   :  { %v10675_v57 = vpop.f32.mrf.mxu1 }
0x1ab3   :  { %15843 = vmatprep.mubr.msk.f32.mxu0 %vm2236_vm6, %v10675_v57 }
0x1ab4   :  { %v15820_v32 = vpop.f32.mrf.mxu1  ;;  %15844 = vmatmul.mubr.msk.f32.gmra.mxu0 %vm2236_vm6, %v15817_v55 }
0x1ab6   :  { %v10685_v12 = vpop.f32.mrf.mxu1 }
0x1ab7   :  { %15846 = vmatprep.mubr.msk.f32.mxu0 %vm2236_vm6, %v10685_v12 }
0x1ab8   :  { %15847 = vmatmul.mubr.msk.f32.gmra.mxu0 %vm2236_vm6, %v15820_v32  ;;  %v15883_v48 = vpop.f32.mrf.mxu1 }
0x1aba   :  { %v10972_v60 = vpop.f32.mrf.mxu1 }
0x1abb   :  { %15909 = vmatprep.mubr.msk.f32.mxu0 %vm2236_vm6, %v10972_v60  ;;  %v8696_v60 = vadd.f32 %v19354_v18, %v19352_v10 }
0x1abc   :  { %v15407_v26 = vpop.f32.mrf.mxu0  ;;  %v15886_v13 = vpop.f32.mrf.mxu1  ;;  %15910 = vmatmul.mubr.msk.f32.vlgmr.msra.gmra.mxu0 %vm2236_vm6, %v15883_v48 }
0x1abd   :  { %v19633_v1 = vadd.f32 %v15407_v26, %v19326_v47 }
0x1abe   :  { %v9026_v31 = vpop.f32.mrf.mxu0  ;;  %v10982_v20 = vpop.f32.mrf.mxu1 }
0x1abf   :  { %15912 = vmatprep.mubr.msk.f32.mxu0 %vm2236_vm6, %v10982_v20  ;;  %v9105_v32 = vadd.f32 %v9026_v31, %v8686_v11  ;;  %v8706_v20 = vadd.f32 %v19370_v36, %v19368_v56 }
0x1ac0   :  { %v15410_v23 = vpop.f32.mrf.mxu0  ;;  %v15889_v50 = vpop.f32.mrf.mxu1  ;;  %15913 = vmatmul.mubr.msk.f32.gmra.mxu0 %vm2236_vm6, %v15886_v13 }
0x1ac1   :  { %v19638_v24 = vadd.f32 %v15410_v23, %v19345_v9  ;;  %v8716_v9 = vadd.f32 %v19386_v40, %v19384_v38  ;;  %v8736_v40 = vadd.f32 %v19418_v2, %v19416_v62  ;;  %v8756_v62 = vadd.f32 %v8755_v63, %v19448_v54 }
0x1ac2   :  { %v9036_v30 = vpop.f32.mrf.mxu0  ;;  %v10992_v14 = vpop.f32.mrf.mxu1 }
0x1ac3   :  { %15915 = vmatprep.mubr.msk.f32.mxu0 %vm2236_vm6, %v10992_v14  ;;  %v9107_v63 = vadd.f32 %v9036_v30, %v8696_v60 }
0x1ac4   :  { %v15413_v3 = vpop.f32.mrf.mxu0  ;;  %v15892_v19 = vpop.f32.mrf.mxu1  ;;  %15916 = vmatmul.mubr.msk.f32.gmra.mxu0 %vm2236_vm6, %v15889_v50 }
0x1ac5   :  { %v9110_v47 = vadd.f32 %v15413_v3, %v19365_v46 }
0x1ac6   :  { %v9046_v61 = vpop.f32.mrf.mxu0  ;;  %v11002_v39 = vpop.f32.mrf.mxu1 }
0x1ac7   :  { %15918 = vmatprep.mubr.msk.f32.mxu0 %vm2236_vm6, %v11002_v39  ;;  %v9109_v4 = vadd.f32 %v9046_v61, %v8706_v20 }
0x1ac8   :  { %v15416_v28 = vpop.f32.mrf.mxu0  ;;  %v15895_v35 = vpop.f32.mrf.mxu1  ;;  %15919 = vmatmul.mubr.msk.f32.gmra.mxu0 %vm2236_vm6, %v15892_v19 }
0x1ac9   :  { %v9112_v16 = vadd.f32 %v15416_v28, %v19381_v53 }
0x1aca   :  { %v9056_v8 = vpop.f32.mrf.mxu0  ;;  %v11012_v25 = vpop.f32.mrf.mxu1 }
0x1acb   :  { %v9111_v21 = vadd.f32 %v9056_v8, %v8716_v9  ;;  %15921 = vmatprep.mubr.msk.f32.mxu0 %vm2236_vm6, %v11012_v25 }
0x1acc   :  { %v15419_v45 = vpop.f32.mrf.mxu0  ;;  %v15898_v46 = vpop.f32.mrf.mxu1  ;;  %15922 = vmatmul.mubr.msk.f32.gmra.mxu0 %vm2236_vm6, %v15895_v35 }
0x1acd   :  { %v9114_v29 = vadd.f32 %v15419_v45, %v19397_v49 }
0x1ace   :  { %v9066_v6 = vpop.f32.mrf.mxu0  ;;  %v11022_v43 = vpop.f32.mrf.mxu1 }
0x1acf   :  { %v9113_v52 = vadd.f32 %v9066_v6, %v8726_v41  ;;  %15924 = vmatprep.mubr.msk.f32.mxu0 %vm2236_vm6, %v11022_v43 }
0x1ad0   :  { %v15422_v53 = vpop.f32.mrf.mxu0  ;;  %v15901_v38 = vpop.f32.mrf.mxu1  ;;  %15925 = vmatmul.mubr.msk.f32.gmra.mxu0 %vm2236_vm6, %v15898_v46 }
0x1ad1   :  { %v9116_v5 = vadd.f32 %v15422_v53, %v19413_v44 }
0x1ad2   :  { %v9076_v34 = vpop.f32.mrf.mxu0  ;;  %v11032_v42 = vpop.f32.mrf.mxu1 }
0x1ad3   :  { %v9115_v22 = vadd.f32 %v9076_v34, %v8736_v40  ;;  %15927 = vmatprep.mubr.msk.f32.mxu0 %vm2236_vm6, %v11032_v42 }
0x1ad4   :  { %v15425_v49 = vpop.f32.mrf.mxu0  ;;  %v15904_v51 = vpop.f32.mrf.mxu1  ;;  %15928 = vmatmul.mubr.msk.f32.gmra.mxu0 %vm2236_vm6, %v15901_v38 }
0x1ad5   :  { %v9118_v58 = vadd.f32 %v15425_v49, %v19429_v15 }
0x1ad6   :  { %v9086_v17 = vpop.f32.mrf.mxu0  ;;  %v11042_v27 = vpop.f32.mrf.mxu1 }
0x1ad7   :  { %v9117_v55 = vadd.f32 %v9086_v17, %v8746_v0  ;;  %15930 = vmatprep.mubr.msk.f32.mxu0 %vm2236_vm6, %v11042_v27 }
0x1ad8   :  { %v15428_v44 = vpop.f32.mrf.mxu0  ;;  %15931 = vmatmul.mubr.msk.f32.gmra.mxu0 %vm2236_vm6, %v15904_v51 }
0x1ad9   :  { %v9120_v2 = vadd.f32 %v15428_v44, %v19445_v37  ;;  %15974 = vmatprep.mubr.msk.f32.mxu0 %vm16170_vm4, %v19949_v7 }
0x1ada   :  { %v9096_v57 = vpop.f32.mrf.mxu0 }
0x1adb   :  { %v9119_v15 = vadd.f32 %v9096_v57, %v8756_v62 }
0x1adc   :  { %v15491_v59 = vpop.f32.mrf.mxu0 }
0x1add   :  { %v9463_v12 = vadd.f32 %v15491_v59, %v19633_v1 }
0x1ade   :  { %v9383_v48 = vpop.f32.mrf.mxu0 }
0x1adf   :  { %v9462_v26 = vadd.f32 %v9383_v48, %v9105_v32 }
0x1ae0   :  { %v15494_v54 = vpop.f32.mrf.mxu0 }
0x1ae1   :  { %v9465_v37 = vadd.f32 %v15494_v54, %v19638_v24 }
0x1ae2   :  { %v9393_v13 = vpop.f32.mrf.mxu0 }
0x1ae3   :  { %v9464_v23 = vadd.f32 %v9393_v13, %v9107_v63 }
0x1ae4   :  { %v15497_v33 = vpop.f32.mrf.mxu0 }
0x1ae5   :  { %v9467_v50 = vadd.f32 %v15497_v33, %v9110_v47 }
0x1ae6   :  { %v9403_v31 = vpop.f32.mrf.mxu0 }
0x1ae7   :  { %v9466_v14 = vadd.f32 %v9403_v31, %v9109_v4 }
0x1ae8   :  { %v15500_v1 = vpop.f32.mrf.mxu0 }
0x1ae9   :  { %v9469_v3 = vadd.f32 %v15500_v1, %v9112_v16 }
0x1aea   :  { %v9413_v19 = vpop.f32.mrf.mxu0 }
0x1aeb   :  { %v9468_v39 = vadd.f32 %v9413_v19, %v9111_v21 }
0x1aec   :  { %v15503_v10 = vpop.f32.mrf.mxu0 }
0x1aed   :  { %v9471_v18 = vadd.f32 %v15503_v10, %v9114_v29 }
0x1aee   :  { %v9423_v28 = vpop.f32.mrf.mxu0 }
0x1aef   :  { %v9470_v30 = vadd.f32 %v9423_v28, %v9113_v52 }
0x1af0   :  { %v15506_v35 = vpop.f32.mrf.mxu0 }
0x1af1   :  { %v9473_v24 = vadd.f32 %v15506_v35, %v9116_v5 }
0x1af2   :  { %v9433_v9 = vpop.f32.mrf.mxu0 }
0x1af3   :  { %v9472_v8 = vadd.f32 %v9433_v9, %v9115_v22 }
0x1af4   :  { %v15509_v25 = vpop.f32.mrf.mxu0 }
0x1af5   :  { %v9475_v56 = vadd.f32 %v15509_v25, %v9118_v58 }
0x1af6   :  { %v9443_v36 = vpop.f32.mrf.mxu0 }
0x1af7   :  { %v9474_v45 = vadd.f32 %v9443_v36, %v9117_v55 }
0x1af8   :  { %v15512_v61 = vpop.f32.mrf.mxu0 }
0x1af9   :  { %v9477_v47 = vadd.f32 %v15512_v61, %v9120_v2 }
0x1afa   :  { %v9453_v46 = vpop.f32.mrf.mxu0 }
0x1afb   :  { %v9476_v41 = vadd.f32 %v9453_v46, %v9119_v15 }
0x1afc   :  { %v15575_v6 = vpop.f32.mrf.mxu0 }
0x1afd   :  { %v9820_v16 = vadd.f32 %v15575_v6, %v9463_v12 }
0x1afe   :  { %v9740_v43 = vpop.f32.mrf.mxu0 }
0x1aff   :  { %v9819_v21 = vadd.f32 %v9740_v43, %v9462_v26 }
0x1b00   :  { %v15578_v53 = vpop.f32.mrf.mxu0 }
0x1b01   :  { %v9822_v29 = vadd.f32 %v15578_v53, %v9465_v37 }
0x1b02   :  { %v9750_v38 = vpop.f32.mrf.mxu0 }
0x1b03   :  { %v9821_v52 = vadd.f32 %v9750_v38, %v9464_v23 }
0x1b04   :  { %v15581_v40 = vpop.f32.mrf.mxu0 }
0x1b05   :  { %v9824_v5 = vadd.f32 %v15581_v40, %v9467_v50 }
0x1b06   :  { %v9760_v34 = vpop.f32.mrf.mxu0 }
0x1b07   :  { %v9823_v42 = vadd.f32 %v9760_v34, %v9466_v14 }
0x1b08   :  { %v15584_v22 = vpop.f32.mrf.mxu0 }
0x1b09   :  { %v9826_v49 = vadd.f32 %v15584_v22, %v9469_v3  ;;  %v11286_v22 = vld [vmem:[%s19860_s18] sm:$0xff] }
0x1b0a   :  { %v9770_v51 = vpop.f32.mrf.mxu0 }
0x1b0b   :  { %v9825_v0 = vadd.f32 %v9770_v51, %v9468_v39 }
0x1b0c   :  { %v15587_v58 = vpop.f32.mrf.mxu0 }
0x1b0d   :  { %v9828_v17 = vadd.f32 %v15587_v58, %v9471_v18 }
0x1b0e   :  { %v9780_v27 = vpop.f32.mrf.mxu0 }
0x1b0f   :  { %v9827_v55 = vadd.f32 %v9780_v27, %v9470_v30 }
0x1b10   :  { %v15590_v44 = vpop.f32.mrf.mxu0 }
0x1b11   :  { %v9830_v62 = vadd.f32 %v15590_v44, %v9473_v24 }
0x1b12   :  { %v9790_v2 = vpop.f32.mrf.mxu0 }
0x1b13   :  { %v9829_v57 = vadd.f32 %v9790_v2, %v9472_v8 }
0x1b14   :  { %v15593_v11 = vpop.f32.mrf.mxu0 }
0x1b15   :  { %v9832_v15 = vadd.f32 %v15593_v11, %v9475_v56 }
0x1b16   :  { %v9800_v59 = vpop.f32.mrf.mxu0 }
0x1b17   :  { %v9831_v32 = vadd.f32 %v9800_v59, %v9474_v45 }
0x1b18   :  { %v15596_v12 = vpop.f32.mrf.mxu0 }
0x1b19   :  { %v9834_v48 = vadd.f32 %v15596_v12, %v9477_v47 }
0x1b1a   :  { %v9810_v60 = vpop.f32.mrf.mxu0 }
0x1b1b   :  { %v9833_v26 = vadd.f32 %v9810_v60, %v9476_v41 }
0x1b1c   :  { %v15659_v54 = vpop.f32.mrf.mxu0 }
0x1b1d   :  { %v10177_v63 = vadd.f32 %v15659_v54, %v9820_v16 }
0x1b1e   :  { %v10097_v37 = vpop.f32.mrf.mxu0 }
0x1b1f   :  { %v10176_v13 = vadd.f32 %v10097_v37, %v9819_v21 }
0x1b20   :  { %v15662_v20 = vpop.f32.mrf.mxu0 }
0x1b21   :  { %v10179_v23 = vadd.f32 %v15662_v20, %v9822_v29 }
0x1b22   :  { %v10107_v33 = vpop.f32.mrf.mxu0 }
0x1b23   :  { %v10178_v4 = vadd.f32 %v10107_v33, %v9821_v52 }
0x1b24   :  { %v15665_v50 = vpop.f32.mrf.mxu0 }
0x1b25   :  { %v10181_v31 = vadd.f32 %v15665_v50, %v9824_v5 }
0x1b26   :  { %v10117_v14 = vpop.f32.mrf.mxu0 }
0x1b27   :  { %v10180_v1 = vadd.f32 %v10117_v14, %v9823_v42 }
0x1b28   :  { %v15668_v3 = vpop.f32.mrf.mxu0 }
0x1b29   :  { %v19677_v19 = vadd.f32 %v15668_v3, %v9826_v49  ;;  %v11288_v49 = vld [vmem:[%s19860_s18 + $0x10] sm:$0xff] }
0x1b2a   :  { %v10127_v39 = vpop.f32.mrf.mxu0 }
0x1b2b   :  { %v19679_v10 = vadd.f32 %v10127_v39, %v9825_v0  ;;  %v16171_v0 = vmov 0  }
0x1b2c   :  { %v15671_v18 = vpop.f32.mrf.mxu0  ;;  %15989 = vset.pattern.permute.xlu0 %v16171_v0  ;;  %15990 = vset.pattern.permute.xlu1 %v16171_v0 }
0x1b2d   :  { %v10185_v28 = vadd.f32 %v15671_v18, %v9828_v17  ;;  %11291 = vperm.xlu0 %15989, %v11286_v22   ;;  %11301 = vperm.xlu1 %15990, %v11288_v49   ;;  %v11287_v17 = vld [vmem:[%s19860_s18 + $0x8] sm:$0xff] }
0x1b2e   :  { %v10137_v30 = vpop.f32.mrf.mxu0 }
0x1b2f   :  { %v10184_v35 = vadd.f32 %v10137_v30, %v9827_v55  ;;  %v11263_v30 = vlaneseq }
0x1b30   :  { %v15674_v24 = vpop.f32.mrf.mxu0 }
0x1b31   :  { %v10187_v9 = vadd.f32 %v15674_v24, %v9830_v62  ;;  %11296 = vperm.xlu0 %15989, %v11287_v17   ;;  %11508 = vperm.xlu1 %15990, %v11286_v22  }
0x1b32   :  { %v10147_v8 = vpop.f32.mrf.mxu0 }
0x1b33   :  { %v10186_v25 = vadd.f32 %v10147_v8, %v9829_v57  ;;  %v11897_v8 = vld [vmem:[%s19854_s12] ss:$0 sm:$0xff] }
0x1b34   :  { %v15677_v56 = vpop.f32.mrf.mxu0 }
0x1b35   :  { %v10189_v36 = vadd.f32 %v15677_v56, %v9832_v15  ;;  %11513 = vperm.xlu0 %15989, %v11287_v17   ;;  %11518 = vperm.xlu1 %15990, %v11288_v49  }
0x1b36   :  { %v10157_v45 = vpop.f32.mrf.mxu0 }
0x1b37   :  { %v10188_v61 = vadd.f32 %v10157_v45, %v9831_v32 }
0x1b38   :  { %v15680_v47 = vpop.f32.mrf.mxu0 }
0x1b39   :  { %v19681_v46 = vadd.f32 %v15680_v47, %v9834_v48 }
0x1b3a   :  { %v10167_v41 = vpop.f32.mrf.mxu0 }
0x1b3b   :  { %v19683_v6 = vadd.f32 %v10167_v41, %v9833_v26 }
0x1b3c   :  { %v15743_v16 = vpop.f32.mrf.mxu0 }
0x1b3d   :  { %v10534_v43 = vadd.f32 %v15743_v16, %v10177_v63 }
0x1b3e   :  { %v10454_v21 = vpop.f32.mrf.mxu0 }
0x1b3f   :  { %v10533_v53 = vadd.f32 %v10454_v21, %v10176_v13 }
0x1b40   :  { %v15746_v29 = vpop.f32.mrf.mxu0 }
0x1b41   :  { %v19685_v38 = vadd.f32 %v15746_v29, %v10179_v23 }
0x1b42   :  { %v10464_v52 = vpop.f32.mrf.mxu0 }
0x1b43   :  { %v19687_v40 = vadd.f32 %v10464_v52, %v10178_v4 }
0x1b44   :  { %v15749_v5 = vpop.f32.mrf.mxu0 }
0x1b45   :  { %v19689_v34 = vadd.f32 %v15749_v5, %v10181_v31 }
0x1b46   :  { %v10474_v42 = vpop.f32.mrf.mxu0 }
0x1b47   :  { %v19697_v51 = vadd.f32 %v10474_v42, %v10180_v1 }
0x1b48   :  { %v19699_v58 = vpop.f32.mrf.mxu0 }
0x1b4a   :  { %v19704_v27 = vpop.f32.mrf.mxu0 }
0x1b4c   :  { %v15755_v55 = vpop.f32.mrf.mxu0 }
0x1b4d   :  { %v10542_v44 = vadd.f32 %v15755_v55, %v10185_v28 }
0x1b4e   :  { %v10494_v62 = vpop.f32.mrf.mxu0 }
0x1b4f   :  { %v10541_v2 = vadd.f32 %v10494_v62, %v10184_v35 }
0x1b50   :  { %v15758_v57 = vpop.f32.mrf.mxu0 }
0x1b51   :  { %v19706_v11 = vadd.f32 %v15758_v57, %v10187_v9  ;;  %v11264_v9 = vshrl.u32 %v11263_v30, 7 }
0x1b52   :  { %v10504_v15 = vpop.f32.mrf.mxu0 }
0x1b53   :  { %v19708_v59 = vadd.f32 %v10504_v15, %v10186_v25 }
0x1b54   :  { %v15761_v32 = vpop.f32.mrf.mxu0 }
0x1b55   :  { %v19710_v12 = vadd.f32 %v15761_v32, %v10189_v36  ;;  %v19950_v36 = vld [vmem:[#allocation5_spill] sm:$0xff] }
0x1b56   :  { %v10514_v48 = vpop.f32.mrf.mxu0  ;;  %v4691_v45 = vadd.f32 %v11897_v8, %v19950_v36 }
0x1b57   :  { %v19712_v60 = vadd.f32 %v10514_v48, %v10188_v61  ;;  %v11265_v61 = vsub.s32 0, %v11264_v9 }
0x1b58   :  { %v19714_v26 = vpop.f32.mrf.mxu0 }
0x1b59   :  { %v11266_v16 = vrot.slane %v4691_v45, %v11265_v61 }
0x1b5a   :  { %v19716_v54 = vpop.f32.mrf.mxu0 }
0x1b5c   :  { %v15827_v63 = vpop.f32.mrf.mxu0 }
0x1b5d   :  { %v10891_v37 = vadd.f32 %v15827_v63, %v10534_v43 }
0x1b5e   :  { %v10811_v13 = vpop.f32.mrf.mxu0 }
0x1b5f   :  { %v10890_v20 = vadd.f32 %v10811_v13, %v10533_v53  ;;  %v11482_v13 = vsub.s32 1, %v11264_v9 }
0x1b60   :  { %v15830_v23 = vpop.f32.mrf.mxu0 }
0x1b61   :  { %v10893_v53 = vadd.f32 %v15830_v23, %v19685_v38 }
0x1b62   :  { %v10821_v33 = vpop.f32.mrf.mxu0 }
0x1b63   :  { %v10892_v42 = vadd.f32 %v10821_v33, %v19687_v40  ;;  %v10539_v40 = vadd.f32 %v19704_v27, %v19679_v10 }
0x1b64   :  { %v15833_v4 = vpop.f32.mrf.mxu0 }
0x1b65   :  { %v10895_v17 = vadd.f32 %v15833_v4, %v19689_v34 }
0x1b66   :  { %v10831_v50 = vpop.f32.mrf.mxu0 }
0x1b67   :  { %v10894_v38 = vadd.f32 %v10831_v50, %v19697_v51  ;;  %v11483_v51 = vrot.slane %v4691_v45, %v11482_v13 }
0x1b68   :  { %v15836_v31 = vpop.f32.mrf.mxu0 }
0x1b6a   :  { %v10841_v14 = vpop.f32.mrf.mxu0 }
0x1b6c   :  { %v15839_v1 = vpop.f32.mrf.mxu0 }
0x1b6d   :  { %v10899_v3 = vadd.f32 %v15839_v1, %v10542_v44 }
0x1b6e   :  { %v10851_v39 = vpop.f32.mrf.mxu0 }
0x1b6f   :  { %v10898_v18 = vadd.f32 %v10851_v39, %v10541_v2  ;;  %v10540_v2 = vadd.f32 %v19699_v58, %v19677_v19 }
0x1b70   :  { %v15842_v28 = vpop.f32.mrf.mxu0 }
0x1b71   :  { %v10897_v48 = vadd.f32 %v15836_v31, %v10540_v2  ;;  %v10901_v36 = vadd.f32 %v15842_v28, %v19706_v11  ;;  %v10548_v11 = vadd.f32 %v19714_v26, %v19681_v46 }
0x1b72   :  { %v10861_v35 = vpop.f32.mrf.mxu0 }
0x1b74   :  { %v15845_v24 = vpop.f32.mrf.mxu0 }
0x1b76   :  { %v10871_v25 = vpop.f32.mrf.mxu0 }
0x1b77   :  { %v10902_v28 = vadd.f32 %v10871_v25, %v19712_v60 }
0x1b78   :  { %v19721_v56 = vpop.f32.mrf.mxu0 }
0x1b7a   :  { %v19724_v47 = vpop.f32.mrf.mxu0 }
0x1b7c   :  { %v15911_v41 = vpop.f32.mrf.mxu0 }
0x1b7d   :  { %v11248_v43 = vadd.f32 %v15911_v41, %v10891_v37 }
0x1b7e   :  { %v11168_v21 = vpop.f32.mrf.mxu0 }
0x1b7f   :  { %v19727_v29 = vadd.f32 %v11266_v16, %v11248_v43  ;;  %v11247_v52 = vadd.f32 %v11168_v21, %v10890_v20  ;;  %v10896_v20 = vadd.f32 %v10841_v14, %v10539_v40  ;;  %v10900_v14 = vadd.f32 %v10861_v35, %v19708_v59 }
0x1b80   :  { %v15914_v5 = vpop.f32.mrf.mxu0 }
0x1b81   :  { %v19730_v22 = vadd.f32 %v11266_v16, %v11247_v52  ;;  %v11250_v49 = vadd.f32 %v15914_v5, %v10893_v53  ;;  %v10547_v52 = vadd.f32 %v19716_v54, %v19683_v6 }
0x1b82   :  { %v11178_v0 = vpop.f32.mrf.mxu0 }
0x1b83   :  { %v19733_v55 = vadd.f32 %v11266_v16, %v11250_v49  ;;  %v11249_v44 = vadd.f32 %v11178_v0, %v10892_v42  ;;  %v10904_v46 = vadd.f32 %v19724_v47, %v10547_v52  ;;  %v11275_v2 = vmax.f32 %v19730_v22, 0.0  ;;  %v11284_v22 = vld [vmem:[%s19859_s17 + $0x8] sm:$0xff] }
0x1b84   :  { %v15917_v62 = vpop.f32.mrf.mxu0 }
0x1b85   :  { %v19738_v57 = vadd.f32 %v11266_v16, %v11249_v44  ;;  %v11252_v15 = vadd.f32 %v15917_v62, %v10895_v17  ;;  %v11278_v6 = vmax.f32 %v19733_v55, 0.0  ;;  %v11276_v55 = vmax.f32 %v19727_v29, 0.0  ;;  %v11283_v29 = vld [vmem:[%s19859_s17] sm:$0xff] }
0x1b86   :  { %v11188_v32 = vpop.f32.mrf.mxu0 }
0x1b87   :  { %v11272_v63 = vadd.f32 %v11266_v16, %v11252_v15  ;;  %v11251_v37 = vadd.f32 %v11188_v32, %v10894_v38  ;;  %v11277_v47 = vmax.f32 %v19738_v57, 0.0  ;;  %v11285_v32 = vld [vmem:[%s19859_s17 + $0x10] sm:$0xff] }
0x1b88   :  { %v15920_v34 = vpop.f32.mrf.mxu0 }
0x1b89   :  { %v11271_v23 = vadd.f32 %v11266_v16, %v11251_v37  ;;  %v11254_v33 = vadd.f32 %v15920_v34, %v10897_v48  ;;  %v11280_v59 = vmax.f32 %v11272_v63, 0.0 }
0x1b8a   :  { %v11198_v4 = vpop.f32.mrf.mxu0 }
0x1b8b   :  { %v11274_v1 = vadd.f32 %v11266_v16, %v11254_v33  ;;  %v11253_v19 = vadd.f32 %v11198_v4, %v10896_v20  ;;  %v11279_v26 = vmax.f32 %v11271_v23, 0.0 }
0x1b8c   :  { %v15923_v58 = vpop.f32.mrf.mxu0 }
0x1b8d   :  { %v11282_v50 = vmax.f32 %v11274_v1, 0.0  ;;  %v11273_v39 = vadd.f32 %v11266_v16, %v11253_v19  ;;  %v11256_v30 = vadd.f32 %v15923_v58, %v10899_v3  ;;  %v10903_v3 = vadd.f32 %v15845_v24, %v19710_v12 }
0x1b8e   :  { %v11208_v8 = vpop.f32.mrf.mxu0  ;;  %v10905_v12 = vadd.f32 %v19721_v56, %v10548_v11 }
0x1b8f   :  { %v19743_v10 = vadd.f32 %v11483_v51, %v11256_v30  ;;  %v11255_v27 = vadd.f32 %v11208_v8, %v10898_v18  ;;  %15934 = vmatpush3.xpose.msk.msra.mxu1 %vm2236_vm6, %v11282_v50  ;;  %v11281_v9 = vmax.f32 %v11273_v39, 0.0 }
0x1b90   :  { %v15926_v31 = vpop.f32.mrf.mxu0  ;;  %15935 = vmatprep.subr.mxu1 %v19949_v7 }
0x1b91   :  { %v19748_v61 = vadd.f32 %v11483_v51, %v11255_v27  ;;  %v11258_v45 = vadd.f32 %v15926_v31, %v10901_v36  ;;  %v11493_v40 = vmax.f32 %v19743_v10, 0.0 }
0x1b92   :  { %v11218_v41 = vpop.f32.mrf.mxu0 }
0x1b93   :  { %v11487_v16 = vadd.f32 %v11483_v51, %v11258_v45  ;;  %v11257_v43 = vadd.f32 %v11218_v41, %v10900_v14  ;;  %15936 = vmatpush3.xpose.msk.msra.mxu1 %vm2236_vm6, %v11281_v9  ;;  %v11492_v48 = vmax.f32 %v19748_v61, 0.0 }
0x1b94   :  { %v15929_v18 = vpop.f32.mrf.mxu0  ;;  %15937 = vmatprep.subr.mxu1 %v19949_v7 }
0x1b95   :  { %v11486_v35 = vadd.f32 %v11483_v51, %v11257_v43  ;;  %v11260_v21 = vadd.f32 %v15929_v18, %v10903_v3  ;;  %v11495_v57 = vmax.f32 %v11487_v16, 0.0 }
0x1b96   :  { %v11228_v53 = vpop.f32.mrf.mxu0 }
0x1b97   :  { %v11489_v24 = vadd.f32 %v11483_v51, %v11260_v21  ;;  %v11259_v5 = vadd.f32 %v11228_v53, %v10902_v28  ;;  %15938 = vmatpush3.xpose.msk.msra.mxu1 %vm2236_vm6, %v11280_v59  ;;  %v11494_v15 = vmax.f32 %v11486_v35, 0.0 }
0x1b98   :  { %v15932_v42 = vpop.f32.mrf.mxu0  ;;  %15939 = vmatprep.subr.mxu1 %v19949_v7 }
0x1b99   :  { %v11488_v60 = vadd.f32 %v11483_v51, %v11259_v5  ;;  %v11262_v25 = vadd.f32 %v15932_v42, %v10905_v12  ;;  %v11497_v62 = vmax.f32 %v11489_v24, 0.0 }
0x1b9a   :  { %v11238_v49 = vpop.f32.mrf.mxu0 }
0x1b9b   :  { %v11491_v0 = vadd.f32 %v11483_v51, %v11262_v25  ;;  %v11261_v17 = vadd.f32 %v11238_v49, %v10904_v46  ;;  %15940 = vmatpush3.xpose.msk.msra.mxu1 %vm2236_vm6, %v11279_v26  ;;  %v11496_v38 = vmax.f32 %v11488_v60, 0.0 }
0x1b9c   :  { %15941 = vmatprep.subr.mxu1 %v19949_v7 }
0x1b9d   :  { %v11499_v54 = vmax.f32 %v11491_v0, 0.0  ;;  %v11490_v56 = vadd.f32 %v11483_v51, %v11261_v17 }
0x1b9f   :  { %15942 = vmatpush3.xpose.msk.msra.mxu1 %vm2236_vm6, %v11278_v6  ;;  %15959 = vmatpush3.xpose.msk.msra.mxu0 %vm2236_vm6, %v11499_v54  ;;  %v11498_v44 = vmax.f32 %v11490_v56, 0.0 }
0x1ba0   :  { %15943 = vmatprep.subr.mxu1 %v19949_v7  ;;  %15960 = vmatprep.subr.mxu0 %v19949_v7 }
0x1ba3   :  { %15944 = vmatpush3.xpose.msk.msra.mxu1 %vm2236_vm6, %v11277_v47  ;;  %15961 = vmatpush3.xpose.msk.msra.mxu0 %vm2236_vm6, %v11498_v44 }
0x1ba4   :  { %15945 = vmatprep.subr.mxu1 %v19949_v7  ;;  %15962 = vmatprep.subr.mxu0 %v19949_v7 }
0x1ba7   :  { %15946 = vmatpush3.xpose.msk.msra.mxu1 %vm2236_vm6, %v11276_v55  ;;  %15963 = vmatpush3.xpose.msk.msra.mxu0 %vm2236_vm6, %v11497_v62 }
0x1ba8   :  { %15947 = vmatprep.subr.mxu1 %v19949_v7  ;;  %15964 = vmatprep.subr.mxu0 %v19949_v7  ;;  %v11292_v63 = vpop.permute.xlu0 %11291  ;;  %v11302_v19 = vpop.permute.xlu1 %11301 }
0x1bab   :  { %15948 = vmatpush3.xpose.msk.msra.mxu1 %vm2236_vm6, %v11275_v2  ;;  %15965 = vmatpush3.xpose.msk.msra.mxu0 %vm2236_vm6, %v11496_v38 }
0x1bac   :  { %15966 = vmatprep.subr.mxu0 %v19949_v7  ;;  %v11297_v20 = vpop.permute.xlu0 %11296  ;;  %v11509_v30 = vpop.permute.xlu1 %11508 }
0x1bae   :  { %15950 = vmatmul.mubr.msk.f32.vlgmr.msra.gmra.mxu1 %vm2236_vm6, %v11283_v29 }
0x1baf   :  { %15967 = vmatpush3.xpose.msk.msra.mxu0 %vm2236_vm6, %v11495_v57  ;;  %15952 = vmatprep.mubr.msk.f32.mxu1 %vm16170_vm4, %v19949_v7 }
0x1bb0   :  { %15968 = vmatprep.subr.mxu0 %v19949_v7  ;;  %v11514_v31 = vpop.permute.xlu0 %11513  ;;  %v11519_v41 = vpop.permute.xlu1 %11518 }
0x1bb2   :  { %15953 = vmatmul.mubr.msk.f32.gmra.mxu1 %vm2236_vm6, %v11284_v22 }
0x1bb3   :  { %15969 = vmatpush3.xpose.msk.msra.mxu0 %vm2236_vm6, %v11494_v15  ;;  %15955 = vmatprep.mubr.msk.f32.mxu1 %vm16170_vm4, %v19949_v7 }
0x1bb4   :  { %15970 = vmatprep.subr.mxu0 %v19949_v7 }
0x1bb6   :  { %15956 = vmatmul.mubr.msk.f32.gmra.mxu1 %vm2236_vm6, %v11285_v32 }
0x1bb7   :  { %15971 = vmatpush3.xpose.msk.msra.mxu0 %vm2236_vm6, %v11493_v40 }
0x1bb8   :  { %15972 = vmatprep.subr.mxu0 %v19949_v7 }
0x1bbb   :  { %15973 = vmatpush3.xpose.msk.msra.mxu0 %vm2236_vm6, %v11492_v48 }
0x1bbe   :  { %15975 = vmatmul.mubr.msk.f32.vlgmr.msra.gmra.mxu0 %vm2236_vm6, %v11283_v29 }
0x1bbf   :  { %15977 = vmatprep.mubr.msk.f32.mxu0 %vm16170_vm4, %v19949_v7 }
0x1bc2   :  { %15978 = vmatmul.mubr.msk.f32.gmra.mxu0 %vm2236_vm6, %v11284_v22 }
0x1bc3   :  { %15980 = vmatprep.mubr.msk.f32.mxu0 %vm16170_vm4, %v19949_v7 }
0x1bc6   :  { %15981 = vmatmul.mubr.msk.f32.gmra.mxu0 %vm2236_vm6, %v11285_v32 }
0x1c6e   :  { %v11403_v37 = vpop.f32.mrf.mxu1 }
0x1c6f   :  { %v11404_v34 = vadd.f32 %v11403_v37, %v11292_v63 }
0x1c70   :  { %v15951_v13 = vpop.f32.mrf.mxu1 }
0x1c71   :  { %v11417_v23 = vsel %vm4535_vm7, %v11404_v34, 0.0 }
0x1c72   :  { %11418 = vadd.xlane.f32.xlu0 %v11417_v23  ;;  %v11408_v33 = vpop.f32.mrf.mxu1 }
0x1c73   :  { %v11409_v4 = vadd.f32 %v11408_v33, %v11297_v20 }
0x1c74   :  { %v15954_v1 = vpop.f32.mrf.mxu1 }
0x1c75   :  { %v11420_v58 = vsel %vm4535_vm7, %v11409_v4, 0.0  ;;  %v12360_v1 = vld [vmem:[%s19861_s19] ss:$0 sm:$0xff]  ;;  %s16172_s19 = smov [#allocation2]  }
0x1c76   :  { %11421 = vadd.xlane.f32.xlu1 %v11420_v58  ;;  %v11413_v51 = vpop.f32.mrf.mxu1 }
0x1c77   :  { %v11414_v50 = vadd.f32 %v11413_v51, %v11302_v19  ;;  %v12361_v51 = vld [vmem:[%s19862_s20] ss:$0 sm:$0xff]  ;;  %s11702_s20 = sshll.u32 %s16172_s19, 4  ;;  %s11703_s20 = int_to_ptr.vmem [resolvable:$true] %s11702_s20 }
0x1c78   :  { %v15957_v7 = vpop.f32.mrf.mxu1  ;;  %s16147_s3 = scalar_lea.vmem %s11703_s20, 768  ;;  %p16152_p1 = scmp.lt.s32.totalorder %s11703_s20, %s11703_s20 }
0x1c79   :  { %v11423_v39 = vsel %vm4535_vm7, %v11414_v50, 0.0  ;;  %p16148_p0 = scmp.ne.s32.totalorder %s11703_s20, %s16147_s3  ;;  %p16153_p2 = scmp.lt.s32.totalorder %s16147_s3, %s16147_s3 }
0x1c7a   :  { %11424 = vadd.xlane.f32.xlu0 %v11423_v39 }
0x1c7b   :  { %p16154_p3 = por %p16153_p2, %p16152_p1 }
0x1c7d   :  { %p16155_p4 = pnand %p16154_p3, %p16148_p0 }
0x1c7e   :  { %v11620_v8 = vpop.f32.mrf.mxu0 }
0x1c7f   :  { %v11621_v36 = vadd.f32 %v11620_v8, %v11509_v30 }
0x1c80   :  { %v15976_v10 = vpop.f32.mrf.mxu0 }
0x1c81   :  { %v11634_v27 = vsel %vm4535_vm7, %v11621_v36, 0.0 }
0x1c82   :  { %11635 = vadd.xlane.f32.xlu0 %v11634_v27  ;;  %v11625_v14 = vpop.f32.mrf.mxu0 }
0x1c83   :  { %v11626_v9 = vadd.f32 %v11625_v14, %v11514_v31 }
0x1c84   :  { %v15979_v61 = vpop.f32.mrf.mxu0 }
0x1c85   :  { %v11637_v45 = vsel %vm4535_vm7, %v11626_v9, 0.0 }
0x1c86   :  { %11638 = vadd.xlane.f32.xlu1 %v11637_v45  ;;  %v11630_v3 = vpop.f32.mrf.mxu0 }
0x1c87   :  { %v11631_v16 = vadd.f32 %v11630_v3, %v11519_v41 }
0x1c88   :  { %v15982_v43 = vpop.f32.mrf.mxu0 }
0x1c89   :  { %v11640_v11 = vsel %vm4535_vm7, %v11631_v16, 0.0 }
0x1c8a   :  { %11641 = vadd.xlane.f32.xlu0 %v11640_v11 }
0x1cfb   :  { %v11419_v18 = vpop.xlane.xlu0 %11418 }
0x1cfc   :  { %v11427_v28 = vmul.f32 0.015625, %v11419_v18 }
0x1cfe   :  { %v11430_v59 = vsub.f32 %v11404_v34, %v11427_v28 }
0x1cff   :  { %v11422_v35 = vpop.xlane.xlu1 %11421 }
0x1d00   :  { %v11428_v21 = vmul.f32 0.015625, %v11422_v35  ;;  %v11433_v53 = vmul.f32 %v11430_v59, %v11430_v59 }
0x1d02   :  { %v11431_v52 = vsub.f32 %v11409_v4, %v11428_v21  ;;  %v11436_v12 = vsel %vm4535_vm7, %v11433_v53, 0.0 }
0x1d03   :  { %v11425_v24 = vpop.xlane.xlu0 %11424  ;;  %11437 = vadd.xlane.f32.xlu1 %v11436_v12 }
0x1d04   :  { %v11429_v5 = vmul.f32 0.015625, %v11425_v24  ;;  %v11434_v42 = vmul.f32 %v11431_v52, %v11431_v52 }
0x1d06   :  { %v11432_v46 = vsub.f32 %v11414_v50, %v11429_v5  ;;  %v11439_v26 = vsel %vm4535_vm7, %v11434_v42, 0.0 }
0x1d07   :  { %11440 = vadd.xlane.f32.xlu0 %v11439_v26 }
0x1d08   :  { %v11435_v60 = vmul.f32 %v11432_v46, %v11432_v46 }
0x1d0a   :  { %v11442_v25 = vsel %vm4535_vm7, %v11435_v60, 0.0 }
0x1d0b   :  { %v11636_v49 = vpop.xlane.xlu0 %11635  ;;  %11443 = vadd.xlane.f32.xlu1 %v11442_v25 }
0x1d0c   :  { %v11643_v0 = vmul.f32 0.015625, %v11636_v49 }
0x1d0e   :  { %v11646_v17 = vsub.f32 %v11621_v36, %v11643_v0 }
0x1d0f   :  { %v11639_v6 = vpop.xlane.xlu1 %11638 }
0x1d10   :  { %v11644_v54 = vmul.f32 0.015625, %v11639_v6  ;;  %v11649_v56 = vmul.f32 %v11646_v17, %v11646_v17 }
0x1d12   :  { %v11647_v47 = vsub.f32 %v11626_v9, %v11644_v54  ;;  %v11652_v44 = vsel %vm4535_vm7, %v11649_v56, 0.0 }
0x1d13   :  { %11653 = vadd.xlane.f32.xlu0 %v11652_v44  ;;  %v11642_v55 = vpop.xlane.xlu0 %11641 }
0x1d14   :  { %v11645_v62 = vmul.f32 0.015625, %v11642_v55  ;;  %v11650_v2 = vmul.f32 %v11647_v47, %v11647_v47 }
0x1d16   :  { %v11648_v38 = vsub.f32 %v11631_v16, %v11645_v62  ;;  %v11655_v29 = vsel %vm4535_vm7, %v11650_v2, 0.0 }
0x1d17   :  { %11656 = vadd.xlane.f32.xlu1 %v11655_v29 }
0x1d18   :  { %v11651_v57 = vmul.f32 %v11648_v38, %v11648_v38 }
0x1d1a   :  { %v11658_v22 = vsel %vm4535_vm7, %v11651_v57, 0.0 }
0x1d1b   :  { %11659 = vadd.xlane.f32.xlu0 %v11658_v22 }
0x1d8c   :  { %v11438_v15 = vpop.xlane.xlu1 %11437 }
0x1d8d   :  { %v11445_v32 = vmul.f32 0.015625, %v11438_v15 }
0x1d8f   :  { %v11448_v40 = vadd.f32 1e-05, %v11445_v32 }
0x1d90   :  { %v11441_v48 = vpop.xlane.xlu0 %11440 }
0x1d91   :  { %15991 = vrsqrt.f32 %v11448_v40  ;;  %v11446_v63 = vmul.f32 0.015625, %v11441_v48 }
0x1d93   :  { %v11449_v37 = vadd.f32 1e-05, %v11446_v63 }
0x1d94   :  { %v11444_v34 = vpop.xlane.xlu1 %11443 }
0x1d95   :  { %15993 = vrsqrt.f32 %v11449_v37  ;;  %v11447_v13 = vmul.f32 0.015625, %v11444_v34 }
0x1d97   :  { %v11450_v20 = vadd.f32 1e-05, %v11447_v13 }
0x1d99   :  { %15995 = vrsqrt.f32 %v11450_v20 }
0x1d9c   :  { %v11654_v23 = vpop.xlane.xlu0 %11653 }
0x1d9d   :  { %v11661_v33 = vmul.f32 0.015625, %v11654_v23 }
0x1d9e   :  { %v15992_v4 = vpop.eup %15991 }
0x1d9f   :  { %v11454_v19 = vmul.f32 %v15992_v4, %v11430_v59  ;;  %v11664_v58 = vadd.f32 1e-05, %v11661_v33 }
0x1da0   :  { %v11657_v50 = vpop.xlane.xlu1 %11656 }
0x1da1   :  { %v11464_v7 = vmul.f32 %v12360_v1, %v11454_v19  ;;  %15997 = vrsqrt.f32 %v11664_v58  ;;  %v11662_v39 = vmul.f32 0.015625, %v11657_v50 }
0x1da2   :  { %v15994_v30 = vpop.eup %15993 }
0x1da3   :  { %v11474_v8 = vadd.f32 %v12361_v51, %v11464_v7  ;;  %v11455_v36 = vmul.f32 %v15994_v30, %v11431_v52  ;;  %v11665_v10 = vadd.f32 1e-05, %v11662_v39 }
0x1da4   :  { %v11660_v27 = vpop.xlane.xlu0 %11659 }
0x1da5   :  { %11477 = vst.msk [vmem:[#allocation2] sm:$0xff] %vm4535_vm7, %v11474_v8  ;;  %v11465_v31 = vmul.f32 %v12360_v1, %v11455_v36  ;;  %15999 = vrsqrt.f32 %v11665_v10  ;;  %v11663_v14 = vmul.f32 0.015625, %v11660_v27 }
0x1da6   :  { %v15996_v9 = vpop.eup %15995 }
0x1da7   :  { %v11475_v61 = vadd.f32 %v12361_v51, %v11465_v31  ;;  %v11456_v45 = vmul.f32 %v15996_v9, %v11432_v46  ;;  %v11666_v41 = vadd.f32 1e-05, %v11663_v14 }
0x1da9   :  { %11478 = vst.msk [vmem:[#allocation2 + $0x8] sm:$0xff] %vm4535_vm7, %v11475_v61  ;;  %v11466_v3 = vmul.f32 %v12360_v1, %v11456_v45  ;;  %16001 = vrsqrt.f32 %v11666_v41 }
0x1dab   :  { %v11476_v16 = vadd.f32 %v12361_v51, %v11466_v3 }
0x1dad   :  { %11479 = vst.msk [vmem:[#allocation2 + $0x10] sm:$0xff] %vm4535_vm7, %v11476_v16 }
0x1dae   :  { %v15998_v43 = vpop.eup %15997 }
0x1daf   :  { %v11670_v11 = vmul.f32 %v15998_v43, %v11646_v17 }
0x1db1   :  { %v11680_v18 = vmul.f32 %v12360_v1, %v11670_v11 }
0x1db2   :  { %v16000_v28 = vpop.eup %15999 }
0x1db3   :  { %v11690_v59 = vadd.f32 %v12361_v51, %v11680_v18  ;;  %v11671_v35 = vmul.f32 %v16000_v28, %v11647_v47 }
0x1db5   :  { %11694 = vst.msk [vmem:[#allocation2 + $0x18] sm:$0xff] %vm4535_vm7, %v11690_v59  ;;  %v11681_v21 = vmul.f32 %v12360_v1, %v11671_v35 }
0x1db6   :  { %v16002_v53 = vpop.eup %16001 }
0x1db7   :  { %v11691_v52 = vadd.f32 %v12361_v51, %v11681_v21  ;;  %v11672_v12 = vmul.f32 %v16002_v53, %v11648_v38 }
0x1db9   :  { %11695 = vst.msk [vmem:[#allocation2 + $0x20] sm:$0xff] %vm4535_vm7, %v11691_v52  ;;  %v11682_v24 = vmul.f32 %v12360_v1, %v11672_v12 }
0x1dbb   :  { %v11692_v5 = vadd.f32 %v12361_v51, %v11682_v24 }
0x1dbd   :  { %11696 = vst.msk [vmem:[#allocation2 + $0x28] sm:$0xff] %vm4535_vm7, %v11692_v5 }
0x1dbe   :  { %16158 = shalt.err (!%p16155_p4)
}
0x1dbf   :  { %s16173_s28 = smov 128   ;;  %s16174_s29 = smov 8  }
0x1dc0   :  { %11708 = dma.vmem_to_hbm [thread:$0]  %s11703_s20, 768, %s19863_s21, [#allocation3], %s16173_s28, %s16173_s28, %s16174_s29  }
0x1dc1   :  { %16167 = dma.done.wait [#allocation3], 768  }
0x1dc2   :  { %16168 = vsyncadd [#allocation3], 4294966528 }
0x1dc3   :  { %11712 = vsyncpa [#allocation3], 1 }

</bundles_post_ra>
